<compile_context>
chip_gen: v7x
topology: tpu7x:2x2x1
jax: 0.10.0
libtpu: 0.0.40
codegen_flags: <defaults>
</compile_context>

<pallas_src>
import numpy as np
import jax
import jax.numpy as jnp
from jax.experimental import pallas as pl
from jax.experimental.pallas import tpu as pltpu

NEG_SLOPE = 0.01             # nn.LeakyReLU default
BN_EPS = 1e-5                # nn.BatchNorm2d default
VMEM_LIMIT = 32 * 1024 * 1024


def _round_up(x, m):
    return ((x + m - 1) // m) * m


def _row_tile(m, target=256):
    tm = target if m >= target else _round_up(m, 8)
    return tm, _round_up(m, tm)


def _pad_rows(a, mp):
    m = a.shape[0]
    return a if mp == m else jnp.pad(a, ((0, mp - m), (0, 0)))


def _compiler_params():
    return pltpu.CompilerParams(dimension_semantics=("parallel",),
                                vmem_limit_bytes=VMEM_LIMIT)


# ----------------------------- Pallas kernels -----------------------------

def _transform_kernel(x_ref, w_ref, b_ref, s_ref, h_ref, t_ref, a_ref):
    # t = x @ W + b                (residual, f32)
    # a = leaky(t * s + h)         (folded eval BN1 + LeakyReLU)
    t = jnp.dot(x_ref[...], w_ref[...],
                preferred_element_type=jnp.float32) + b_ref[...]
    t_ref[...] = t
    y = t * s_ref[...] + h_ref[...]
    a_ref[...] = jnp.where(y >= 0, y, NEG_SLOPE * y)


def _make_conv3x3_kernel(offs, n_rows, residual):
    """3x3 conv over one image resident in VMEM.

    The input block is the zero-padded image flattened to rows of length W+2
    (plus 2 guard rows); tap (dh, dw) is the static row window starting at
    dh*(W+2)+dw, so all 9 taps are slices of the SAME VMEM block and the 9
    partial GEMMs accumulate in registers — no im2col traffic to HBM.
    """
    def _acc(x_ref, w_ref):
        acc = None
        for k, off in enumerate(offs):
            tap = x_ref[0, pl.ds(off, n_rows), :].astype(jnp.bfloat16)
            c = jnp.dot(tap, w_ref[k], preferred_element_type=jnp.float32)
            acc = c if acc is None else acc + c
        return acc

    if residual:
        def kern(x_ref, w_ref, r_ref, o_ref):           # conv2 + residual
            o_ref[0] = _acc(x_ref, w_ref) + r_ref[0]
    else:
        def kern(x_ref, w_ref, b_ref, o_ref):            # conv1 + bn2 + leaky
            y = _acc(x_ref, w_ref) + b_ref[...]
            o_ref[0] = jnp.where(y >= 0, y, NEG_SLOPE * y)
    return kern


def _max_kernel(*refs):
    o_ref = refs[-1]
    acc = refs[0][...]
    for r in refs[1:-1]:
        acc = jnp.maximum(acc, r[...])
    o_ref[...] = acc


def _lerp4_kernel(c00, c01, c10, c11, w00, w01, w10, w11, o_ref):
    o_ref[...] = (c00[...] * w00[...] + c01[...] * w01[...] +
                  c10[...] * w10[...] + c11[...] * w11[...]).astype(o_ref.dtype)


def _make_outconv_kernel(n_branches):
    def kern(*refs):
        xs = refs[:n_branches]
        w_ref, b_ref, o_ref = refs[n_branches], refs[n_branches + 1], refs[-1]
        acc = None
        for i in range(n_branches):
            c = jnp.dot(xs[i][...], w_ref[i], preferred_element_type=jnp.float32)
            acc = c if acc is None else acc + c
        o_ref[...] = acc + b_ref[...]
    return kern


# ----------------------------- kernel wrappers -----------------------------

def transform_leaky(x2d_bf16, w, b, s, h):
    """Fused 1x1 conv (+bias) -> residual t, and leaky(bn1(t)) -> a."""
    M, Cin = x2d_bf16.shape
    Cout = w.shape[1]
    TM, Mp = _row_tile(M)
    xb = _pad_rows(x2d_bf16, Mp)
    t, a = pl.pallas_call(
        _transform_kernel,
        out_shape=(jax.ShapeDtypeStruct((Mp, Cout), jnp.float32),
                   jax.ShapeDtypeStruct((Mp, Cout), jnp.float32)),
        grid=(Mp // TM,),
        in_specs=[pl.BlockSpec((TM, Cin), lambda i: (i, 0)),
                  pl.BlockSpec((Cin, Cout), lambda i: (0, 0)),
                  pl.BlockSpec((1, Cout), lambda i: (0, 0)),
                  pl.BlockSpec((1, Cout), lambda i: (0, 0)),
                  pl.BlockSpec((1, Cout), lambda i: (0, 0))],
        out_specs=(pl.BlockSpec((TM, Cout), lambda i: (i, 0)),
                   pl.BlockSpec((TM, Cout), lambda i: (i, 0))),
        compiler_params=_compiler_params(),
    )(xb, w, b, s, h)
    if Mp != M:
        t, a = t[:M], a[:M]
    return t, a


def _pad_flat(x_nhwc):
    """Zero-pad (N,H,W,C) spatially by 1 and flatten the rows; add 2 guard
    rows so every 3x3 tap window is a valid in-block slice."""
    N, H, W, C = x_nhwc.shape
    xp = jnp.pad(x_nhwc, ((0, 0), (1, 1), (1, 1), (0, 0)))
    flat = xp.reshape(N, (H + 2) * (W + 2), C)
    return jnp.pad(flat, ((0, 0), (0, 2), (0, 0)))


def _pad_cols(x_nhwc):
    """(N,H,W,C) -> (N, H*(W+2), C): the padded-column row layout the conv3x3
    kernels produce (2 junk columns per row, sliced away afterwards)."""
    N, H, W, C = x_nhwc.shape
    return jnp.pad(x_nhwc, ((0, 0), (0, 0), (0, 2), (0, 0))).reshape(
        N, H * (W + 2), C)


def conv3x3(x_nhwc, w9_bf16, *, bias=None, residual_pc=None):
    """3x3 conv, padding=1, bias=False (grouped weights already made dense).
    Fuses either leaky(acc + bias) (folded BN2 + act) or acc + residual."""
    N, H, W, Cin = x_nhwc.shape
    Cout = w9_bf16.shape[2]
    Wp = W + 2
    L = H * Wp
    P = (H + 2) * Wp + 2
    xpf = _pad_flat(x_nhwc)                               # (N, P, Cin) f32
    offs = tuple(dh * Wp + dw for dh in range(3) for dw in range(3))
    if residual_pc is not None:
        kern = _make_conv3x3_kernel(offs, L, residual=True)
        extra = residual_pc
        extra_spec = pl.BlockSpec((1, L, Cout), lambda n: (n, 0, 0))
    else:
        kern = _make_conv3x3_kernel(offs, L, residual=False)
        extra = bias
        extra_spec = pl.BlockSpec((1, Cout), lambda n: (0, 0))
    out_pc = pl.pallas_call(
        kern,
        out_shape=jax.ShapeDtypeStruct((N, L, Cout), jnp.float32),
        grid=(N,),
        in_specs=[pl.BlockSpec((1, P, Cin), lambda n: (n, 0, 0)),
                  pl.BlockSpec((9, Cin, Cout), lambda n: (0, 0, 0)),
                  extra_spec],
        out_specs=pl.BlockSpec((1, L, Cout), lambda n: (n, 0, 0)),
        compiler_params=_compiler_params(),
    )(xpf, w9_bf16, extra)
    return out_pc.reshape(N, H, Wp, Cout)[:, :, :W, :]


def _elementwise_call(kernel, inputs, out_cols, out_dtype):
    """Row-blocked elementwise pallas_call over 2-D (rows, cols) inputs."""
    M = inputs[0].shape[0]
    TM, Mp = _row_tile(M)
    padded = [_pad_rows(a, Mp) for a in inputs]
    in_specs = [pl.BlockSpec((TM, a.shape[1]), lambda i: (i, 0)) for a in padded]
    out = pl.pallas_call(
        kernel,
        out_shape=jax.ShapeDtypeStruct((Mp, out_cols), out_dtype),
        grid=(Mp // TM,),
        in_specs=in_specs,
        out_specs=pl.BlockSpec((TM, out_cols), lambda i: (i, 0)),
        compiler_params=_compiler_params(),
    )(*padded)
    return out if Mp == M else out[:M]


def max_pool2d(x_nhwc, kernel, stride, pad):
    """PyTorch MaxPool2d semantics (floor mode, -inf padding), separable."""
    N, H, W, C = x_nhwc.shape
    Ho = (H + 2 * pad - kernel) // stride + 1
    Wo = (W + 2 * pad - kernel) // stride + 1
    # max over H taps
    xp = jnp.pad(x_nhwc, ((0, 0), (pad, pad), (0, 0), (0, 0)),
                 constant_values=-jnp.inf)
    taps = [xp[:, d:d + stride * (Ho - 1) + 1:stride, :, :].reshape(N * Ho * W, C)
            for d in range(kernel)]
    y = _elementwise_call(_max_kernel, taps, C, jnp.float32).reshape(N, Ho, W, C)
    # max over W taps
    yp = jnp.pad(y, ((0, 0), (0, 0), (pad, pad), (0, 0)),
                 constant_values=-jnp.inf)
    taps = [yp[:, :, d:d + stride * (Wo - 1) + 1:stride, :].reshape(N * Ho * Wo, C)
            for d in range(kernel)]
    return _elementwise_call(_max_kernel, taps, C,
                             jnp.float32).reshape(N, Ho, Wo, C)


def _bilinear_src(in_size, out_size):
    # torch.nn.Upsample(mode='bilinear', align_corners=False)
    scale = in_size / out_size
    o = np.arange(out_size, dtype=np.float64)
    src = np.maximum((o + 0.5) * scale - 0.5, 0.0)
    i0 = np.minimum(np.floor(src), in_size - 1).astype(np.int32)
    i1 = np.minimum(i0 + 1, in_size - 1).astype(np.int32)
    w1 = (src - i0).astype(np.float32)
    w0 = (1.0 - w1).astype(np.float32)
    return i0, i1, w0, w1


def upsample_bilinear(x_nhwc, scale_factor):
    """Fused bilinear upsample: one kernel reading the 4 corner taps; the
    (ho, wo)-dependent weights ride along as (M, 1) columns."""
    N, H, W, C = x_nhwc.shape
    Ho, Wo = H * scale_factor, W * scale_factor
    i0, i1, wh0, wh1 = _bilinear_src(H, Ho)
    j0, j1, wv0, wv1 = _bilinear_src(W, Wo)
    xi0, xi1 = x_nhwc[:, i0], x_nhwc[:, i1]
    corners = [xi0[:, :, j0], xi0[:, :, j1], xi1[:, :, j0], xi1[:, :, j1]]
    corners = [c.reshape(N * Ho * Wo, C) for c in corners]
    weights = []
    for wh, wv in ((wh0, wv0), (wh0, wv1), (wh1, wv0), (wh1, wv1)):
        w2d = np.tile((wh[:, None] * wv[None, :]).reshape(-1, 1), (N, 1))
        weights.append(jnp.asarray(w2d, jnp.float32))
    out = _elementwise_call(_lerp4_kernel, corners + weights, C, jnp.bfloat16)
    return out.reshape(N, Ho, Wo, C)


def out_conv(branches_2d, w_stack, b):
    """Concat-free out_conv: out = sum_i branch_i @ W_i + b in one kernel."""
    nb = len(branches_2d)
    M, cb = branches_2d[0].shape
    Cout = w_stack.shape[2]
    TM, Mp = _row_tile(M)
    xs = [_pad_rows(a, Mp) for a in branches_2d]
    in_specs = ([pl.BlockSpec((TM, cb), lambda i: (i, 0)) for _ in range(nb)]
                + [pl.BlockSpec((nb, cb, Cout), lambda i: (0, 0, 0)),
                   pl.BlockSpec((1, Cout), lambda i: (0, 0))])
    out = pl.pallas_call(
        _make_outconv_kernel(nb),
        out_shape=jax.ShapeDtypeStruct((Mp, Cout), jnp.float32),
        grid=(Mp // TM,),
        in_specs=in_specs,
        out_specs=pl.BlockSpec((TM, Cout), lambda i: (i, 0)),
        compiler_params=_compiler_params(),
    )(*xs, w_stack, b)
    return out if Mp == M else out[:M]


# ----------------------------- parameter init -----------------------------

def _init_conv1x1(key, cin, cout):
    k1, k2 = jax.random.split(key)
    w = jax.random.normal(k1, (cin, cout), jnp.float32) / np.sqrt(cin)
    b = 0.1 * jax.random.normal(k2, (1, cout), jnp.float32)
    return w, b


def _init_conv3x3(key, cin, cout, groups):
    """PyTorch weight (cout, cin//groups, 3, 3) -> dense block-diag (9, cin, cout)."""
    cin_g, cout_g = cin // groups, cout // groups
    w = jax.random.normal(key, (cout, cin_g, 3, 3), jnp.float32) / np.sqrt(cin_g * 9)
    dense = jnp.zeros((3, 3, cin, cout), jnp.float32)
    for g in range(groups):
        wg = w[g * cout_g:(g + 1) * cout_g]          # (cout_g, cin_g, 3, 3)
        dense = dense.at[:, :, g * cin_g:(g + 1) * cin_g,
                         g * cout_g:(g + 1) * cout_g].set(
            jnp.transpose(wg, (2, 3, 1, 0)))
    return dense.reshape(9, cin, cout)


def _init_bn(key, c):
    # eval-mode BN folded into per-channel scale/shift
    k1, k2, k3, k4 = jax.random.split(key, 4)
    gamma = 1.0 + 0.1 * jax.random.normal(k1, (c,), jnp.float32)
    beta = 0.1 * jax.random.normal(k2, (c,), jnp.float32)
    mean = 0.1 * jax.random.normal(k3, (c,), jnp.float32)
    var = 0.5 + jax.random.uniform(k4, (c,), jnp.float32)
    scale = gamma / jnp.sqrt(var + BN_EPS)
    shift = beta - mean * scale
    return scale.reshape(1, c), shift.reshape(1, c)


def init_res_block(key, cin, cout, groups):
    ks = jax.random.split(key, 5)
    wt, bt = _init_conv1x1(ks[0], cin, cout)
    s1, t1 = _init_bn(ks[1], cout)
    w1 = _init_conv3x3(ks[2], cout, cout, groups)
    s2, t2 = _init_bn(ks[3], cout)
    w2 = _init_conv3x3(ks[4], cout, cout, groups)
    return dict(wt=wt, bt=bt, s1=s1, t1=t1, w1=w1, s2=s2, t2=t2, w2=w2)


def init_psp_triangle_net(key, conv_channels, input_nch, output_nch, groups):
    ph = len(conv_channels)
    keys = jax.random.split(key, 3 * ph)
    blocks = []
    for i in range(ph - 1):
        cin = input_nch if i == 0 else conv_channels[i - 1]
        blocks.append(init_res_block(keys[i], cin, conv_channels[i], groups))
    ms_blocks = [init_res_block(keys[ph - 1 + i], conv_channels[-2],
                                conv_channels[-1] // ph, groups=1)
                 for i in range(ph)]
    # channel_out_convs are only used in training mode; kept for shape fidelity.
    ch_out = [_init_conv1x1(keys[2 * ph - 1 + i], conv_channels[-1] // ph, output_nch)
              for i in range(ph)]
    out_w, out_b = _init_conv1x1(keys[3 * ph - 1], conv_channels[-1], output_nch)
    return dict(blocks=blocks, ms_blocks=ms_blocks, ch_out=ch_out,
                out_w=out_w, out_b=out_b, pyramid_height=ph)


# --------------------- fold / merge params for the kernels ---------------------

def _prep_block(b):
    # Fold the eval-BN2 scale into conv1's weights (shift becomes the fused
    # bias). BN1 stays in the transform-GEMM epilogue because the residual
    # needs the pre-BN transform output.
    return dict(
        wt=b['wt'].astype(jnp.bfloat16), bt=b['bt'], s1=b['s1'], t1=b['t1'],
        w1=(b['w1'] * b['s2'].reshape(1, 1, -1)).astype(jnp.bfloat16),
        b1=b['t2'],
        w2=b['w2'].astype(jnp.bfloat16))


def _merge_ms_blocks(ms_list):
    """Batch the sibling ms_blocks (same input) into one block-diagonal block
    so their GEMMs run lane-denser with 1/len the launches."""
    n = len(ms_list)
    cms = ms_list[0]['wt'].shape[1]
    ct = n * cms
    wt = jnp.concatenate([b['wt'] for b in ms_list], axis=1)
    bt = jnp.concatenate([b['bt'] for b in ms_list], axis=1)
    s1 = jnp.concatenate([b['s1'] for b in ms_list], axis=1)
    t1 = jnp.concatenate([b['t1'] for b in ms_list], axis=1)
    b1 = jnp.concatenate([b['t2'] for b in ms_list], axis=1)
    w1 = jnp.zeros((9, ct, ct), jnp.float32)
    w2 = jnp.zeros((9, ct, ct), jnp.float32)
    for i, b in enumerate(ms_list):
        sl = slice(i * cms, (i + 1) * cms)
        w1 = w1.at[:, sl, sl].set(b['w1'] * b['s2'].reshape(1, 1, -1))
        w2 = w2.at[:, sl, sl].set(b['w2'])
    return dict(wt=wt.astype(jnp.bfloat16), bt=bt, s1=s1, t1=t1,
                w1=w1.astype(jnp.bfloat16), b1=b1, w2=w2.astype(jnp.bfloat16))


def prepare_params(raw):
    ph = raw['pyramid_height']
    cms = raw['ms_blocks'][0]['wt'].shape[1]
    return dict(
        ph=ph, cms=cms,
        blocks=[_prep_block(b) for b in raw['blocks']],
        # Faithful to the reference: ms_blocks[-1] is never used in eval.
        ms=_merge_ms_blocks(raw['ms_blocks'][:ph - 1]),
        out_w=raw['out_w'].reshape(ph, cms, -1).astype(jnp.bfloat16),
        out_b=raw['out_b'])


# ----------------------------- forward pass -----------------------------

def basic_res_block(x_nhwc, p):
    N, H, W, Cin = x_nhwc.shape
    Cout = p['wt'].shape[1]
    M = N * H * W
    t2d, a1 = transform_leaky(x_nhwc.reshape(M, Cin).astype(jnp.bfloat16),
                              p['wt'], p['bt'], p['s1'], p['t1'])
    a1n = a1.reshape(N, H, W, Cout)
    c1 = conv3x3(a1n, p['w1'], bias=p['b1'])             # leaky(bn2(conv1(.)))
    res_pc = _pad_cols(t2d.reshape(N, H, W, Cout))
    return conv3x3(c1, p['w2'], residual_pc=res_pc)      # conv2(.) + residual


def psp_triangle_net_forward(prep, x_nchw):
    """Eval-mode forward (self.training == False)."""
    ph, cms = prep['ph'], prep['cms']
    x = jnp.transpose(x_nchw, (0, 2, 3, 1)).astype(jnp.float32)   # NCHW -> NHWC
    for blk in prep['blocks']:
        x = basic_res_block(x, blk)
    ms_out = basic_res_block(x, prep['ms'])              # all used ms_blocks at once
    N, H, W, _ = ms_out.shape
    M = N * H * W
    branches = [ms_out[..., :cms].reshape(M, cms).astype(jnp.bfloat16)]
    for i in range(ph - 1):
        kk, ss, pp = 2 ** (i + 1) + 1, 2 ** (i + 1), 2 ** i
        pooled = max_pool2d(ms_out[..., i * cms:(i + 1) * cms], kk, ss, pp)
        branches.append(upsample_bilinear(pooled, 2 ** (i + 1)).reshape(M, cms))
    # TODO(synk): training-only branch (channel_out_convs -> ms_out list) is not
    # executed in eval mode and is therefore not lowered.
    out2d = out_conv(branches, prep['out_w'], prep['out_b'])
    return jnp.transpose(out2d.reshape(N, H, W, -1), (0, 3, 1, 2))  # NHWC -> NCHW


# ----------------------------- main -----------------------------

if __name__ == "__main__":
    key = jax.random.PRNGKey(0)
    kp, kx = jax.random.split(key)

    conv_channels = (8, 8, 12)   # pyramid_height = 3; 12 % 3 == 0
    input_nch, output_nch, groups = 4, 3, 2

    raw = init_psp_triangle_net(kp, conv_channels, input_nch, output_nch, groups)
    params = prepare_params(raw)
    x = jax.random.normal(kx, (2, input_nch, 16, 16), jnp.float32)  # NCHW

    fwd = jax.jit(lambda inp: psp_triangle_net_forward(params, inp))
    out = jax.block_until_ready(fwd(x))

    assert out.shape == (2, output_nch, 16, 16), out.shape
    assert bool(jnp.all(jnp.isfinite(out)))
    print("KERNEL_OK")
</pallas_src>

<mosaic_0001>
module attributes {stable_mosaic.version = 11 : i64} {
  func.func @_transform_kernel(%arg0: i32, %arg1: memref<256x4xbf16, #tpu.memory_space<vmem>>, %arg2: memref<4x8xbf16, #tpu.memory_space<vmem>>, %arg3: memref<1x8xf32, #tpu.memory_space<vmem>>, %arg4: memref<1x8xf32, #tpu.memory_space<vmem>>, %arg5: memref<1x8xf32, #tpu.memory_space<vmem>>, %arg6: memref<256x8xf32, #tpu.memory_space<vmem>>, %arg7: memref<256x8xf32, #tpu.memory_space<vmem>>) attributes {dimension_semantics = [#tpu.dimension_semantics<parallel>], iteration_bounds = array<i64: 2>, scalar_prefetch = 0 : i64, scratch_operands = 0 : i64, tpu.core_type = #tpu.core_type<tc>, window_params = [{transform_indices = @transform_0, window_bounds = array<i64: 256, 4>}, {pipeline_mode = #tpu.pipeline_mode<synchronous>, transform_indices = @transform_1, window_bounds = array<i64: 4, 8>}, {pipeline_mode = #tpu.pipeline_mode<synchronous>, transform_indices = @transform_2, window_bounds = array<i64: 1, 8>}, {pipeline_mode = #tpu.pipeline_mode<synchronous>, transform_indices = @transform_3, window_bounds = array<i64: 1, 8>}, {pipeline_mode = #tpu.pipeline_mode<synchronous>, transform_indices = @transform_4, window_bounds = array<i64: 1, 8>}, {transform_indices = @transform_5, window_bounds = array<i64: 256, 8>}, {transform_indices = @transform_6, window_bounds = array<i64: 256, 8>}]} {
    %c0 = arith.constant 0 : index
    %c0_0 = arith.constant 0 : index
    %0 = vector.load %arg1[%c0, %c0_0] : memref<256x4xbf16, #tpu.memory_space<vmem>>, vector<256x4xbf16>
    %c0_1 = arith.constant 0 : index
    %c0_2 = arith.constant 0 : index
    %1 = vector.load %arg2[%c0_1, %c0_2] : memref<4x8xbf16, #tpu.memory_space<vmem>>, vector<4x8xbf16>
    %cst = arith.constant dense<0.000000e+00> : vector<256x8xf32>
    %2 = tpu.matmul %0, %1, %cst {dimension_numbers = #tpu.dot_dimension_numbers<[1], [0], [0], [1], [0, 0, 1, 1], [], []>} : vector<256x4xbf16>, vector<4x8xbf16>, vector<256x8xf32> -> vector<256x8xf32>
    %c0_3 = arith.constant 0 : index
    %c0_4 = arith.constant 0 : index
    %3 = vector.load %arg3[%c0_3, %c0_4] : memref<1x8xf32, #tpu.memory_space<vmem>>, vector<1x8xf32>
    %4 = vector.broadcast %3 : vector<1x8xf32> to vector<256x8xf32>
    %5 = arith.addf %2, %4 : vector<256x8xf32>
    %c0_5 = arith.constant 0 : index
    %c0_6 = arith.constant 0 : index
    %6 = vector.load %arg6[%c0_5, %c0_6] : memref<256x8xf32, #tpu.memory_space<vmem>>, vector<256x8xf32>
    tpu.vector_store %arg6[%c0_5, %c0_6], %5 {strides = array<i32>} : memref<256x8xf32, #tpu.memory_space<vmem>>, vector<256x8xf32>,
    %c0_7 = arith.constant 0 : index
    %c0_8 = arith.constant 0 : index
    %7 = vector.load %arg4[%c0_7, %c0_8] : memref<1x8xf32, #tpu.memory_space<vmem>>, vector<1x8xf32>
    %8 = vector.broadcast %7 : vector<1x8xf32> to vector<256x8xf32>
    %9 = arith.mulf %5, %8 : vector<256x8xf32>
    %c0_9 = arith.constant 0 : index
    %c0_10 = arith.constant 0 : index
    %10 = vector.load %arg5[%c0_9, %c0_10] : memref<1x8xf32, #tpu.memory_space<vmem>>, vector<1x8xf32>
    %11 = vector.broadcast %10 : vector<1x8xf32> to vector<256x8xf32>
    %12 = arith.addf %9, %11 : vector<256x8xf32>
    %cst_11 = arith.constant 0.000000e+00 : f32
    %13 = vector.broadcast %cst_11 : f32 to vector<256x8xf32>
    %14 = arith.cmpf oge, %12, %13 : vector<256x8xf32>
    %cst_12 = arith.constant 0.00999999977 : f32
    %15 = vector.broadcast %cst_12 : f32 to vector<256x8xf32>
    %16 = arith.mulf %15, %12 : vector<256x8xf32>
    %17 = arith.select %14, %12, %16 : vector<256x8xi1>, vector<256x8xf32>
    %c0_13 = arith.constant 0 : index
    %c0_14 = arith.constant 0 : index
    %18 = vector.load %arg7[%c0_13, %c0_14] : memref<256x8xf32, #tpu.memory_space<vmem>>, vector<256x8xf32>
    tpu.vector_store %arg7[%c0_13, %c0_14], %17 {strides = array<i32>} : memref<256x8xf32, #tpu.memory_space<vmem>>, vector<256x8xf32>,
    return
  }
  func.func @transform_0(%arg0: i32) -> (i32, i32) {
    %c0_i32 = arith.constant 0 : i32
    %c0_i32_0 = arith.constant 0 : i32
    return %arg0, %c0_i32 : i32, i32
  }
  func.func @transform_1(%arg0: i32) -> (i32, i32) {
    %c0_i32 = arith.constant 0 : i32
    %c0_i32_0 = arith.constant 0 : i32
    %c0_i32_1 = arith.constant 0 : i32
    return %c0_i32, %c0_i32_0 : i32, i32
  }
  func.func @transform_2(%arg0: i32) -> (i32, i32) {
    %c0_i32 = arith.constant 0 : i32
    %c0_i32_0 = arith.constant 0 : i32
    %c0_i32_1 = arith.constant 0 : i32
    return %c0_i32, %c0_i32_0 : i32, i32
  }
  func.func @transform_3(%arg0: i32) -> (i32, i32) {
    %c0_i32 = arith.constant 0 : i32
    %c0_i32_0 = arith.constant 0 : i32
    %c0_i32_1 = arith.constant 0 : i32
    return %c0_i32, %c0_i32_0 : i32, i32
  }
  func.func @transform_4(%arg0: i32) -> (i32, i32) {
    %c0_i32 = arith.constant 0 : i32
    %c0_i32_0 = arith.constant 0 : i32
    %c0_i32_1 = arith.constant 0 : i32
    return %c0_i32, %c0_i32_0 : i32, i32
  }
  func.func @transform_5(%arg0: i32) -> (i32, i32) {
    %c0_i32 = arith.constant 0 : i32
    %c0_i32_0 = arith.constant 0 : i32
    return %arg0, %c0_i32 : i32, i32
  }
  func.func @transform_6(%arg0: i32) -> (i32, i32) {
    %c0_i32 = arith.constant 0 : i32
    %c0_i32_0 = arith.constant 0 : i32
    return %arg0, %c0_i32 : i32, i32
  }
}

module attributes {stable_mosaic.version = 11 : i64} {
  func.func @kern(%arg0: i32, %arg1: memref<1x326x8xf32, #tpu.memory_space<vmem>>, %arg2: memref<9x8x8xbf16, #tpu.memory_space<vmem>>, %arg3: memref<1x8xf32, #tpu.memory_space<vmem>>, %arg4: memref<1x288x8xf32, #tpu.memory_space<vmem>>) attributes {dimension_semantics = [#tpu.dimension_semantics<parallel>], iteration_bounds = array<i64: 2>, scalar_prefetch = 0 : i64, scratch_operands = 0 : i64, tpu.core_type = #tpu.core_type<tc>, window_params = [{transform_indices = @transform_0, window_bounds = array<i64: 1, 326, 8>}, {pipeline_mode = #tpu.pipeline_mode<synchronous>, transform_indices = @transform_1, window_bounds = array<i64: 9, 8, 8>}, {pipeline_mode = #tpu.pipeline_mode<synchronous>, transform_indices = @transform_2, window_bounds = array<i64: 1, 8>}, {transform_indices = @transform_3, window_bounds = array<i64: 1, 288, 8>}]} {
    %c0 = arith.constant 0 : index
    %c0_0 = arith.constant 0 : index
    %c0_1 = arith.constant 0 : index
    %0 = vector.load %arg1[%c0, %c0_0, %c0_1] : memref<1x326x8xf32, #tpu.memory_space<vmem>>, vector<1x288x8xf32>
    %1 = vector.shape_cast %0 : vector<1x288x8xf32> to vector<288x8xf32>
    %2 = arith.truncf %1 : vector<288x8xf32> to vector<288x8xbf16>
    %c0_2 = arith.constant 0 : index
    %c0_3 = arith.constant 0 : index
    %c0_4 = arith.constant 0 : index
    %3 = vector.load %arg2[%c0_2, %c0_3, %c0_4] : memref<9x8x8xbf16, #tpu.memory_space<vmem>>, vector<1x8x8xbf16>
    %4 = vector.shape_cast %3 : vector<1x8x8xbf16> to vector<8x8xbf16>
    %cst = arith.constant dense<0.000000e+00> : vector<288x8xf32>
    %5 = tpu.matmul %2, %4, %cst {dimension_numbers = #tpu.dot_dimension_numbers<[1], [0], [0], [1], [0, 0, 1, 1], [], []>} : vector<288x8xbf16>, vector<8x8xbf16>, vector<288x8xf32> -> vector<288x8xf32>
    %c0_5 = arith.constant 0 : index
    %c1 = arith.constant 1 : index
    %c0_6 = arith.constant 0 : index
    %6 = vector.load %arg1[%c0_5, %c1, %c0_6] : memref<1x326x8xf32, #tpu.memory_space<vmem>>, vector<1x288x8xf32>
    %7 = vector.shape_cast %6 : vector<1x288x8xf32> to vector<288x8xf32>
    %8 = arith.truncf %7 : vector<288x8xf32> to vector<288x8xbf16>
    %c1_7 = arith.constant 1 : index
    %c0_8 = arith.constant 0 : index
    %c0_9 = arith.constant 0 : index
    %9 = vector.load %arg2[%c1_7, %c0_8, %c0_9] : memref<9x8x8xbf16, #tpu.memory_space<vmem>>, vector<1x8x8xbf16>
    %10 = vector.shape_cast %9 : vector<1x8x8xbf16> to vector<8x8xbf16>
    %cst_10 = arith.constant dense<0.000000e+00> : vector<288x8xf32>
    %11 = tpu.matmul %8, %10, %cst_10 {dimension_numbers = #tpu.dot_dimension_numbers<[1], [0], [0], [1], [0, 0, 1, 1], [], []>} : vector<288x8xbf16>, vector<8x8xbf16>, vector<288x8xf32> -> vector<288x8xf32>
    %12 = arith.addf %5, %11 : vector<288x8xf32>
    %c0_11 = arith.constant 0 : index
    %c2 = arith.constant 2 : index
    %c0_12 = arith.constant 0 : index
    %13 = vector.load %arg1[%c0_11, %c2, %c0_12] : memref<1x326x8xf32, #tpu.memory_space<vmem>>, vector<1x288x8xf32>
    %14 = vector.shape_cast %13 : vector<1x288x8xf32> to vector<288x8xf32>
    %15 = arith.truncf %14 : vector<288x8xf32> to vector<288x8xbf16>
    %c2_13 = arith.constant 2 : index
    %c0_14 = arith.constant 0 : index
    %c0_15 = arith.constant 0 : index
    %16 = vector.load %arg2[%c2_13, %c0_14, %c0_15] : memref<9x8x8xbf16, #tpu.memory_space<vmem>>, vector<1x8x8xbf16>
    %17 = vector.shape_cast %16 : vector<1x8x8xbf16> to vector<8x8xbf16>
    %cst_16 = arith.constant dense<0.000000e+00> : vector<288x8xf32>
    %18 = tpu.matmul %15, %17, %cst_16 {dimension_numbers = #tpu.dot_dimension_numbers<[1], [0], [0], [1], [0, 0, 1, 1], [], []>} : vector<288x8xbf16>, vector<8x8xbf16>, vector<288x8xf32> -> vector<288x8xf32>
    %19 = arith.addf %12, %18 : vector<288x8xf32>
    %c0_17 = arith.constant 0 : index
    %c18 = arith.constant 18 : index
    %c0_18 = arith.constant 0 : index
    %20 = vector.load %arg1[%c0_17, %c18, %c0_18] : memref<1x326x8xf32, #tpu.memory_space<vmem>>, vector<1x288x8xf32>
    %21 = vector.shape_cast %20 : vector<1x288x8xf32> to vector<288x8xf32>
    %22 = arith.truncf %21 : vector<288x8xf32> to vector<288x8xbf16>
    %c3 = arith.constant 3 : index
    %c0_19 = arith.constant 0 : index
    %c0_20 = arith.constant 0 : index
    %23 = vector.load %arg2[%c3, %c0_19, %c0_20] : memref<9x8x8xbf16, #tpu.memory_space<vmem>>, vector<1x8x8xbf16>
    %24 = vector.shape_cast %23 : vector<1x8x8xbf16> to vector<8x8xbf16>
    %cst_21 = arith.constant dense<0.000000e+00> : vector<288x8xf32>
    %25 = tpu.matmul %22, %24, %cst_21 {dimension_numbers = #tpu.dot_dimension_numbers<[1], [0], [0], [1], [0, 0, 1, 1], [], []>} : vector<288x8xbf16>, vector<8x8xbf16>, vector<288x8xf32> -> vector<288x8xf32>
    %26 = arith.addf %19, %25 : vector<288x8xf32>
    %c0_22 = arith.constant 0 : index
    %c19 = arith.constant 19 : index
    %c0_23 = arith.constant 0 : index
    %27 = vector.load %arg1[%c0_22, %c19, %c0_23] : memref<1x326x8xf32, #tpu.memory_space<vmem>>, vector<1x288x8xf32>
    %28 = vector.shape_cast %27 : vector<1x288x8xf32> to vector<288x8xf32>
    %29 = arith.truncf %28 : vector<288x8xf32> to vector<288x8xbf16>
    %c4 = arith.constant 4 : index
    %c0_24 = arith.constant 0 : index
    %c0_25 = arith.constant 0 : index
    %30 = vector.load %arg2[%c4, %c0_24, %c0_25] : memref<9x8x8xbf16, #tpu.memory_space<vmem>>, vector<1x8x8xbf16>
    %31 = vector.shape_cast %30 : vector<1x8x8xbf16> to vector<8x8xbf16>
    %cst_26 = arith.constant dense<0.000000e+00> : vector<288x8xf32>
    %32 = tpu.matmul %29, %31, %cst_26 {dimension_numbers = #tpu.dot_dimension_numbers<[1], [0], [0], [1], [0, 0, 1, 1], [], []>} : vector<288x8xbf16>, vector<8x8xbf16>, vector<288x8xf32> -> vector<288x8xf32>
    %33 = arith.addf %26, %32 : vector<288x8xf32>
    %c0_27 = arith.constant 0 : index
    %c20 = arith.constant 20 : index
    %c0_28 = arith.constant 0 : index
    %34 = vector.load %arg1[%c0_27, %c20, %c0_28] : memref<1x326x8xf32, #tpu.memory_space<vmem>>, vector<1x288x8xf32>
    %35 = vector.shape_cast %34 : vector<1x288x8xf32> to vector<288x8xf32>
    %36 = arith.truncf %35 : vector<288x8xf32> to vector<288x8xbf16>
    %c5 = arith.constant 5 : index
    %c0_29 = arith.constant 0 : index
    %c0_30 = arith.constant 0 : index
    %37 = vector.load %arg2[%c5, %c0_29, %c0_30] : memref<9x8x8xbf16, #tpu.memory_space<vmem>>, vector<1x8x8xbf16>
    %38 = vector.shape_cast %37 : vector<1x8x8xbf16> to vector<8x8xbf16>
    %cst_31 = arith.constant dense<0.000000e+00> : vector<288x8xf32>
    %39 = tpu.matmul %36, %38, %cst_31 {dimension_numbers = #tpu.dot_dimension_numbers<[1], [0], [0], [1], [0, 0, 1, 1], [], []>} : vector<288x8xbf16>, vector<8x8xbf16>, vector<288x8xf32> -> vector<288x8xf32>
    %40 = arith.addf %33, %39 : vector<288x8xf32>
    %c0_32 = arith.constant 0 : index
    %c36 = arith.constant 36 : index
    %c0_33 = arith.constant 0 : index
    %41 = vector.load %arg1[%c0_32, %c36, %c0_33] : memref<1x326x8xf32, #tpu.memory_space<vmem>>, vector<1x288x8xf32>
    %42 = vector.shape_cast %41 : vector<1x288x8xf32> to vector<288x8xf32>
    %43 = arith.truncf %42 : vector<288x8xf32> to vector<288x8xbf16>
    %c6 = arith.constant 6 : index
    %c0_34 = arith.constant 0 : index
    %c0_35 = arith.constant 0 : index
    %44 = vector.load %arg2[%c6, %c0_34, %c0_35] : memref<9x8x8xbf16, #tpu.memory_space<vmem>>, vector<1x8x8xbf16>
    %45 = vector.shape_cast %44 : vector<1x8x8xbf16> to vector<8x8xbf16>
    %cst_36 = arith.constant dense<0.000000e+00> : vector<288x8xf32>
    %46 = tpu.matmul %43, %45, %cst_36 {dimension_numbers = #tpu.dot_dimension_numbers<[1], [0], [0], [1], [0, 0, 1, 1], [], []>} : vector<288x8xbf16>, vector<8x8xbf16>, vector<288x8xf32> -> vector<288x8xf32>
    %47 = arith.addf %40, %46 : vector<288x8xf32>
    %c0_37 = arith.constant 0 : index
    %c37 = arith.constant 37 : index
    %c0_38 = arith.constant 0 : index
    %48 = vector.load %arg1[%c0_37, %c37, %c0_38] : memref<1x326x8xf32, #tpu.memory_space<vmem>>, vector<1x288x8xf32>
    %49 = vector.shape_cast %48 : vector<1x288x8xf32> to vector<288x8xf32>
    %50 = arith.truncf %49 : vector<288x8xf32> to vector<288x8xbf16>
    %c7 = arith.constant 7 : index
    %c0_39 = arith.constant 0 : index
    %c0_40 = arith.constant 0 : index
    %51 = vector.load %arg2[%c7, %c0_39, %c0_40] : memref<9x8x8xbf16, #tpu.memory_space<vmem>>, vector<1x8x8xbf16>
    %52 = vector.shape_cast %51 : vector<1x8x8xbf16> to vector<8x8xbf16>
    %cst_41 = arith.constant dense<0.000000e+00> : vector<288x8xf32>
    %53 = tpu.matmul %50, %52, %cst_41 {dimension_numbers = #tpu.dot_dimension_numbers<[1], [0], [0], [1], [0, 0, 1, 1], [], []>} : vector<288x8xbf16>, vector<8x8xbf16>, vector<288x8xf32> -> vector<288x8xf32>
    %54 = arith.addf %47, %53 : vector<288x8xf32>
    %c0_42 = arith.constant 0 : index
    %c38 = arith.constant 38 : index
    %c0_43 = arith.constant 0 : index
    %55 = vector.load %arg1[%c0_42, %c38, %c0_43] : memref<1x326x8xf32, #tpu.memory_space<vmem>>, vector<1x288x8xf32>
    %56 = vector.shape_cast %55 : vector<1x288x8xf32> to vector<288x8xf32>
    %57 = arith.truncf %56 : vector<288x8xf32> to vector<288x8xbf16>
    %c8 = arith.constant 8 : index
    %c0_44 = arith.constant 0 : index
    %c0_45 = arith.constant 0 : index
    %58 = vector.load %arg2[%c8, %c0_44, %c0_45] : memref<9x8x8xbf16, #tpu.memory_space<vmem>>, vector<1x8x8xbf16>
    %59 = vector.shape_cast %58 : vector<1x8x8xbf16> to vector<8x8xbf16>
    %cst_46 = arith.constant dense<0.000000e+00> : vector<288x8xf32>
    %60 = tpu.matmul %57, %59, %cst_46 {dimension_numbers = #tpu.dot_dimension_numbers<[1], [0], [0], [1], [0, 0, 1, 1], [], []>} : vector<288x8xbf16>, vector<8x8xbf16>, vector<288x8xf32> -> vector<288x8xf32>
    %61 = arith.addf %54, %60 : vector<288x8xf32>
    %c0_47 = arith.constant 0 : index
    %c0_48 = arith.constant 0 : index
    %62 = vector.load %arg3[%c0_47, %c0_48] : memref<1x8xf32, #tpu.memory_space<vmem>>, vector<1x8xf32>
    %63 = vector.broadcast %62 : vector<1x8xf32> to vector<288x8xf32>
    %64 = arith.addf %61, %63 : vector<288x8xf32>
    %cst_49 = arith.constant 0.000000e+00 : f32
    %65 = vector.broadcast %cst_49 : f32 to vector<288x8xf32>
    %66 = arith.cmpf oge, %64, %65 : vector<288x8xf32>
    %cst_50 = arith.constant 0.00999999977 : f32
    %67 = vector.broadcast %cst_50 : f32 to vector<288x8xf32>
    %68 = arith.mulf %67, %64 : vector<288x8xf32>
    %69 = arith.select %66, %64, %68 : vector<288x8xi1>, vector<288x8xf32>
    %c0_51 = arith.constant 0 : index
    %c0_52 = arith.constant 0 : index
    %c0_53 = arith.constant 0 : index
    %70 = vector.load %arg4[%c0_51, %c0_52, %c0_53] : memref<1x288x8xf32, #tpu.memory_space<vmem>>, vector<1x288x8xf32>
    %71 = vector.shape_cast %70 : vector<1x288x8xf32> to vector<288x8xf32>
    %72 = vector.shape_cast %69 : vector<288x8xf32> to vector<1x288x8xf32>
    tpu.vector_store %arg4[%c0_51, %c0_52, %c0_53], %72 {strides = array<i32>} : memref<1x288x8xf32, #tpu.memory_space<vmem>>, vector<1x288x8xf32>,
    return
  }
  func.func @transform_0(%arg0: i32) -> (i32, i32, i32) {
    %c0_i32 = arith.constant 0 : i32
    %c0_i32_0 = arith.constant 0 : i32
    %c0_i32_1 = arith.constant 0 : i32
    return %arg0, %c0_i32, %c0_i32_0 : i32, i32, i32
  }
  func.func @transform_1(%arg0: i32) -> (i32, i32, i32) {
    %c0_i32 = arith.constant 0 : i32
    %c0_i32_0 = arith.constant 0 : i32
    %c0_i32_1 = arith.constant 0 : i32
    %c0_i32_2 = arith.constant 0 : i32
    return %c0_i32, %c0_i32_0, %c0_i32_1 : i32, i32, i32
  }
  func.func @transform_2(%arg0: i32) -> (i32, i32) {
    %c0_i32 = arith.constant 0 : i32
    %c0_i32_0 = arith.constant 0 : i32
    %c0_i32_1 = arith.constant 0 : i32
    return %c0_i32, %c0_i32_0 : i32, i32
  }
  func.func @transform_3(%arg0: i32) -> (i32, i32, i32) {
    %c0_i32 = arith.constant 0 : i32
    %c0_i32_0 = arith.constant 0 : i32
    %c0_i32_1 = arith.constant 0 : i32
    return %arg0, %c0_i32, %c0_i32_0 : i32, i32, i32
  }
}

module attributes {stable_mosaic.version = 11 : i64} {
  func.func @kern(%arg0: i32, %arg1: memref<1x326x8xf32, #tpu.memory_space<vmem>>, %arg2: memref<9x8x8xbf16, #tpu.memory_space<vmem>>, %arg3: memref<1x288x8xf32, #tpu.memory_space<vmem>>, %arg4: memref<1x288x8xf32, #tpu.memory_space<vmem>>) attributes {dimension_semantics = [#tpu.dimension_semantics<parallel>], iteration_bounds = array<i64: 2>, scalar_prefetch = 0 : i64, scratch_operands = 0 : i64, tpu.core_type = #tpu.core_type<tc>, window_params = [{transform_indices = @transform_0, window_bounds = array<i64: 1, 326, 8>}, {pipeline_mode = #tpu.pipeline_mode<synchronous>, transform_indices = @transform_1, window_bounds = array<i64: 9, 8, 8>}, {transform_indices = @transform_2, window_bounds = array<i64: 1, 288, 8>}, {transform_indices = @transform_3, window_bounds = array<i64: 1, 288, 8>}]} {
    %c0 = arith.constant 0 : index
    %c0_0 = arith.constant 0 : index
    %c0_1 = arith.constant 0 : index
    %0 = vector.load %arg1[%c0, %c0_0, %c0_1] : memref<1x326x8xf32, #tpu.memory_space<vmem>>, vector<1x288x8xf32>
    %1 = vector.shape_cast %0 : vector<1x288x8xf32> to vector<288x8xf32>
    %2 = arith.truncf %1 : vector<288x8xf32> to vector<288x8xbf16>
    %c0_2 = arith.constant 0 : index
    %c0_3 = arith.constant 0 : index
    %c0_4 = arith.constant 0 : index
    %3 = vector.load %arg2[%c0_2, %c0_3, %c0_4] : memref<9x8x8xbf16, #tpu.memory_space<vmem>>, vector<1x8x8xbf16>
    %4 = vector.shape_cast %3 : vector<1x8x8xbf16> to vector<8x8xbf16>
    %cst = arith.constant dense<0.000000e+00> : vector<288x8xf32>
    %5 = tpu.matmul %2, %4, %cst {dimension_numbers = #tpu.dot_dimension_numbers<[1], [0], [0], [1], [0, 0, 1, 1], [], []>} : vector<288x8xbf16>, vector<8x8xbf16>, vector<288x8xf32> -> vector<288x8xf32>
    %c0_5 = arith.constant 0 : index
    %c1 = arith.constant 1 : index
    %c0_6 = arith.constant 0 : index
    %6 = vector.load %arg1[%c0_5, %c1, %c0_6] : memref<1x326x8xf32, #tpu.memory_space<vmem>>, vector<1x288x8xf32>
    %7 = vector.shape_cast %6 : vector<1x288x8xf32> to vector<288x8xf32>
    %8 = arith.truncf %7 : vector<288x8xf32> to vector<288x8xbf16>
    %c1_7 = arith.constant 1 : index
    %c0_8 = arith.constant 0 : index
    %c0_9 = arith.constant 0 : index
    %9 = vector.load %arg2[%c1_7, %c0_8, %c0_9] : memref<9x8x8xbf16, #tpu.memory_space<vmem>>, vector<1x8x8xbf16>
    %10 = vector.shape_cast %9 : vector<1x8x8xbf16> to vector<8x8xbf16>
    %cst_10 = arith.constant dense<0.000000e+00> : vector<288x8xf32>
    %11 = tpu.matmul %8, %10, %cst_10 {dimension_numbers = #tpu.dot_dimension_numbers<[1], [0], [0], [1], [0, 0, 1, 1], [], []>} : vector<288x8xbf16>, vector<8x8xbf16>, vector<288x8xf32> -> vector<288x8xf32>
    %12 = arith.addf %5, %11 : vector<288x8xf32>
    %c0_11 = arith.constant 0 : index
    %c2 = arith.constant 2 : index
    %c0_12 = arith.constant 0 : index
    %13 = vector.load %arg1[%c0_11, %c2, %c0_12] : memref<1x326x8xf32, #tpu.memory_space<vmem>>, vector<1x288x8xf32>
    %14 = vector.shape_cast %13 : vector<1x288x8xf32> to vector<288x8xf32>
    %15 = arith.truncf %14 : vector<288x8xf32> to vector<288x8xbf16>
    %c2_13 = arith.constant 2 : index
    %c0_14 = arith.constant 0 : index
    %c0_15 = arith.constant 0 : index
    %16 = vector.load %arg2[%c2_13, %c0_14, %c0_15] : memref<9x8x8xbf16, #tpu.memory_space<vmem>>, vector<1x8x8xbf16>
    %17 = vector.shape_cast %16 : vector<1x8x8xbf16> to vector<8x8xbf16>
    %cst_16 = arith.constant dense<0.000000e+00> : vector<288x8xf32>
    %18 = tpu.matmul %15, %17, %cst_16 {dimension_numbers = #tpu.dot_dimension_numbers<[1], [0], [0], [1], [0, 0, 1, 1], [], []>} : vector<288x8xbf16>, vector<8x8xbf16>, vector<288x8xf32> -> vector<288x8xf32>
    %19 = arith.addf %12, %18 : vector<288x8xf32>
    %c0_17 = arith.constant 0 : index
    %c18 = arith.constant 18 : index
    %c0_18 = arith.constant 0 : index
    %20 = vector.load %arg1[%c0_17, %c18, %c0_18] : memref<1x326x8xf32, #tpu.memory_space<vmem>>, vector<1x288x8xf32>
    %21 = vector.shape_cast %20 : vector<1x288x8xf32> to vector<288x8xf32>
    %22 = arith.truncf %21 : vector<288x8xf32> to vector<288x8xbf16>
    %c3 = arith.constant 3 : index
    %c0_19 = arith.constant 0 : index
    %c0_20 = arith.constant 0 : index
    %23 = vector.load %arg2[%c3, %c0_19, %c0_20] : memref<9x8x8xbf16, #tpu.memory_space<vmem>>, vector<1x8x8xbf16>
    %24 = vector.shape_cast %23 : vector<1x8x8xbf16> to vector<8x8xbf16>
    %cst_21 = arith.constant dense<0.000000e+00> : vector<288x8xf32>
    %25 = tpu.matmul %22, %24, %cst_21 {dimension_numbers = #tpu.dot_dimension_numbers<[1], [0], [0], [1], [0, 0, 1, 1], [], []>} : vector<288x8xbf16>, vector<8x8xbf16>, vector<288x8xf32> -> vector<288x8xf32>
    %26 = arith.addf %19, %25 : vector<288x8xf32>
    %c0_22 = arith.constant 0 : index
    %c19 = arith.constant 19 : index
    %c0_23 = arith.constant 0 : index
    %27 = vector.load %arg1[%c0_22, %c19, %c0_23] : memref<1x326x8xf32, #tpu.memory_space<vmem>>, vector<1x288x8xf32>
    %28 = vector.shape_cast %27 : vector<1x288x8xf32> to vector<288x8xf32>
    %29 = arith.truncf %28 : vector<288x8xf32> to vector<288x8xbf16>
    %c4 = arith.constant 4 : index
    %c0_24 = arith.constant 0 : index
    %c0_25 = arith.constant 0 : index
    %30 = vector.load %arg2[%c4, %c0_24, %c0_25] : memref<9x8x8xbf16, #tpu.memory_space<vmem>>, vector<1x8x8xbf16>
    %31 = vector.shape_cast %30 : vector<1x8x8xbf16> to vector<8x8xbf16>
    %cst_26 = arith.constant dense<0.000000e+00> : vector<288x8xf32>
    %32 = tpu.matmul %29, %31, %cst_26 {dimension_numbers = #tpu.dot_dimension_numbers<[1], [0], [0], [1], [0, 0, 1, 1], [], []>} : vector<288x8xbf16>, vector<8x8xbf16>, vector<288x8xf32> -> vector<288x8xf32>
    %33 = arith.addf %26, %32 : vector<288x8xf32>
    %c0_27 = arith.constant 0 : index
    %c20 = arith.constant 20 : index
    %c0_28 = arith.constant 0 : index
    %34 = vector.load %arg1[%c0_27, %c20, %c0_28] : memref<1x326x8xf32, #tpu.memory_space<vmem>>, vector<1x288x8xf32>
    %35 = vector.shape_cast %34 : vector<1x288x8xf32> to vector<288x8xf32>
    %36 = arith.truncf %35 : vector<288x8xf32> to vector<288x8xbf16>
    %c5 = arith.constant 5 : index
    %c0_29 = arith.constant 0 : index
    %c0_30 = arith.constant 0 : index
    %37 = vector.load %arg2[%c5, %c0_29, %c0_30] : memref<9x8x8xbf16, #tpu.memory_space<vmem>>, vector<1x8x8xbf16>
    %38 = vector.shape_cast %37 : vector<1x8x8xbf16> to vector<8x8xbf16>
    %cst_31 = arith.constant dense<0.000000e+00> : vector<288x8xf32>
    %39 = tpu.matmul %36, %38, %cst_31 {dimension_numbers = #tpu.dot_dimension_numbers<[1], [0], [0], [1], [0, 0, 1, 1], [], []>} : vector<288x8xbf16>, vector<8x8xbf16>, vector<288x8xf32> -> vector<288x8xf32>
    %40 = arith.addf %33, %39 : vector<288x8xf32>
    %c0_32 = arith.constant 0 : index
    %c36 = arith.constant 36 : index
    %c0_33 = arith.constant 0 : index
    %41 = vector.load %arg1[%c0_32, %c36, %c0_33] : memref<1x326x8xf32, #tpu.memory_space<vmem>>, vector<1x288x8xf32>
    %42 = vector.shape_cast %41 : vector<1x288x8xf32> to vector<288x8xf32>
    %43 = arith.truncf %42 : vector<288x8xf32> to vector<288x8xbf16>
    %c6 = arith.constant 6 : index
    %c0_34 = arith.constant 0 : index
    %c0_35 = arith.constant 0 : index
    %44 = vector.load %arg2[%c6, %c0_34, %c0_35] : memref<9x8x8xbf16, #tpu.memory_space<vmem>>, vector<1x8x8xbf16>
    %45 = vector.shape_cast %44 : vector<1x8x8xbf16> to vector<8x8xbf16>
    %cst_36 = arith.constant dense<0.000000e+00> : vector<288x8xf32>
    %46 = tpu.matmul %43, %45, %cst_36 {dimension_numbers = #tpu.dot_dimension_numbers<[1], [0], [0], [1], [0, 0, 1, 1], [], []>} : vector<288x8xbf16>, vector<8x8xbf16>, vector<288x8xf32> -> vector<288x8xf32>
    %47 = arith.addf %40, %46 : vector<288x8xf32>
    %c0_37 = arith.constant 0 : index
    %c37 = arith.constant 37 : index
    %c0_38 = arith.constant 0 : index
    %48 = vector.load %arg1[%c0_37, %c37, %c0_38] : memref<1x326x8xf32, #tpu.memory_space<vmem>>, vector<1x288x8xf32>
    %49 = vector.shape_cast %48 : vector<1x288x8xf32> to vector<288x8xf32>
    %50 = arith.truncf %49 : vector<288x8xf32> to vector<288x8xbf16>
    %c7 = arith.constant 7 : index
    %c0_39 = arith.constant 0 : index
    %c0_40 = arith.constant 0 : index
    %51 = vector.load %arg2[%c7, %c0_39, %c0_40] : memref<9x8x8xbf16, #tpu.memory_space<vmem>>, vector<1x8x8xbf16>
    %52 = vector.shape_cast %51 : vector<1x8x8xbf16> to vector<8x8xbf16>
    %cst_41 = arith.constant dense<0.000000e+00> : vector<288x8xf32>
    %53 = tpu.matmul %50, %52, %cst_41 {dimension_numbers = #tpu.dot_dimension_numbers<[1], [0], [0], [1], [0, 0, 1, 1], [], []>} : vector<288x8xbf16>, vector<8x8xbf16>, vector<288x8xf32> -> vector<288x8xf32>
    %54 = arith.addf %47, %53 : vector<288x8xf32>
    %c0_42 = arith.constant 0 : index
    %c38 = arith.constant 38 : index
    %c0_43 = arith.constant 0 : index
    %55 = vector.load %arg1[%c0_42, %c38, %c0_43] : memref<1x326x8xf32, #tpu.memory_space<vmem>>, vector<1x288x8xf32>
    %56 = vector.shape_cast %55 : vector<1x288x8xf32> to vector<288x8xf32>
    %57 = arith.truncf %56 : vector<288x8xf32> to vector<288x8xbf16>
    %c8 = arith.constant 8 : index
    %c0_44 = arith.constant 0 : index
    %c0_45 = arith.constant 0 : index
    %58 = vector.load %arg2[%c8, %c0_44, %c0_45] : memref<9x8x8xbf16, #tpu.memory_space<vmem>>, vector<1x8x8xbf16>
    %59 = vector.shape_cast %58 : vector<1x8x8xbf16> to vector<8x8xbf16>
    %cst_46 = arith.constant dense<0.000000e+00> : vector<288x8xf32>
    %60 = tpu.matmul %57, %59, %cst_46 {dimension_numbers = #tpu.dot_dimension_numbers<[1], [0], [0], [1], [0, 0, 1, 1], [], []>} : vector<288x8xbf16>, vector<8x8xbf16>, vector<288x8xf32> -> vector<288x8xf32>
    %61 = arith.addf %54, %60 : vector<288x8xf32>
    %c0_47 = arith.constant 0 : index
    %c0_48 = arith.constant 0 : index
    %c0_49 = arith.constant 0 : index
    %62 = vector.load %arg3[%c0_47, %c0_48, %c0_49] : memref<1x288x8xf32, #tpu.memory_space<vmem>>, vector<1x288x8xf32>
    %63 = vector.shape_cast %62 : vector<1x288x8xf32> to vector<288x8xf32>
    %64 = arith.addf %61, %63 : vector<288x8xf32>
    %c0_50 = arith.constant 0 : index
    %c0_51 = arith.constant 0 : index
    %c0_52 = arith.constant 0 : index
    %65 = vector.load %arg4[%c0_50, %c0_51, %c0_52] : memref<1x288x8xf32, #tpu.memory_space<vmem>>, vector<1x288x8xf32>
    %66 = vector.shape_cast %65 : vector<1x288x8xf32> to vector<288x8xf32>
    %67 = vector.shape_cast %64 : vector<288x8xf32> to vector<1x288x8xf32>
    tpu.vector_store %arg4[%c0_50, %c0_51, %c0_52], %67 {strides = array<i32>} : memref<1x288x8xf32, #tpu.memory_space<vmem>>, vector<1x288x8xf32>,
    return
  }
  func.func @transform_0(%arg0: i32) -> (i32, i32, i32) {
    %c0_i32 = arith.constant 0 : i32
    %c0_i32_0 = arith.constant 0 : i32
    %c0_i32_1 = arith.constant 0 : i32
    return %arg0, %c0_i32, %c0_i32_0 : i32, i32, i32
  }
  func.func @transform_1(%arg0: i32) -> (i32, i32, i32) {
    %c0_i32 = arith.constant 0 : i32
    %c0_i32_0 = arith.constant 0 : i32
    %c0_i32_1 = arith.constant 0 : i32
    %c0_i32_2 = arith.constant 0 : i32
    return %c0_i32, %c0_i32_0, %c0_i32_1 : i32, i32, i32
  }
  func.func @transform_2(%arg0: i32) -> (i32, i32, i32) {
    %c0_i32 = arith.constant 0 : i32
    %c0_i32_0 = arith.constant 0 : i32
    %c0_i32_1 = arith.constant 0 : i32
    return %arg0, %c0_i32, %c0_i32_0 : i32, i32, i32
  }
  func.func @transform_3(%arg0: i32) -> (i32, i32, i32) {
    %c0_i32 = arith.constant 0 : i32
    %c0_i32_0 = arith.constant 0 : i32
    %c0_i32_1 = arith.constant 0 : i32
    return %arg0, %c0_i32, %c0_i32_0 : i32, i32, i32
  }
}

module attributes {stable_mosaic.version = 11 : i64} {
  func.func @_transform_kernel(%arg0: i32, %arg1: memref<256x8xbf16, #tpu.memory_space<vmem>>, %arg2: memref<8x8xbf16, #tpu.memory_space<vmem>>, %arg3: memref<1x8xf32, #tpu.memory_space<vmem>>, %arg4: memref<1x8xf32, #tpu.memory_space<vmem>>, %arg5: memref<1x8xf32, #tpu.memory_space<vmem>>, %arg6: memref<256x8xf32, #tpu.memory_space<vmem>>, %arg7: memref<256x8xf32, #tpu.memory_space<vmem>>) attributes {dimension_semantics = [#tpu.dimension_semantics<parallel>], iteration_bounds = array<i64: 2>, scalar_prefetch = 0 : i64, scratch_operands = 0 : i64, tpu.core_type = #tpu.core_type<tc>, window_params = [{transform_indices = @transform_0, window_bounds = array<i64: 256, 8>}, {pipeline_mode = #tpu.pipeline_mode<synchronous>, transform_indices = @transform_1, window_bounds = array<i64: 8, 8>}, {pipeline_mode = #tpu.pipeline_mode<synchronous>, transform_indices = @transform_2, window_bounds = array<i64: 1, 8>}, {pipeline_mode = #tpu.pipeline_mode<synchronous>, transform_indices = @transform_3, window_bounds = array<i64: 1, 8>}, {pipeline_mode = #tpu.pipeline_mode<synchronous>, transform_indices = @transform_4, window_bounds = array<i64: 1, 8>}, {transform_indices = @transform_5, window_bounds = array<i64: 256, 8>}, {transform_indices = @transform_6, window_bounds = array<i64: 256, 8>}]} {
    %c0 = arith.constant 0 : index
    %c0_0 = arith.constant 0 : index
    %0 = vector.load %arg1[%c0, %c0_0] : memref<256x8xbf16, #tpu.memory_space<vmem>>, vector<256x8xbf16>
    %c0_1 = arith.constant 0 : index
    %c0_2 = arith.constant 0 : index
    %1 = vector.load %arg2[%c0_1, %c0_2] : memref<8x8xbf16, #tpu.memory_space<vmem>>, vector<8x8xbf16>
    %cst = arith.constant dense<0.000000e+00> : vector<256x8xf32>
    %2 = tpu.matmul %0, %1, %cst {dimension_numbers = #tpu.dot_dimension_numbers<[1], [0], [0], [1], [0, 0, 1, 1], [], []>} : vector<256x8xbf16>, vector<8x8xbf16>, vector<256x8xf32> -> vector<256x8xf32>
    %c0_3 = arith.constant 0 : index
    %c0_4 = arith.constant 0 : index
    %3 = vector.load %arg3[%c0_3, %c0_4] : memref<1x8xf32, #tpu.memory_space<vmem>>, vector<1x8xf32>
    %4 = vector.broadcast %3 : vector<1x8xf32> to vector<256x8xf32>
    %5 = arith.addf %2, %4 : vector<256x8xf32>
    %c0_5 = arith.constant 0 : index
    %c0_6 = arith.constant 0 : index
    %6 = vector.load %arg6[%c0_5, %c0_6] : memref<256x8xf32, #tpu.memory_space<vmem>>, vector<256x8xf32>
    tpu.vector_store %arg6[%c0_5, %c0_6], %5 {strides = array<i32>} : memref<256x8xf32, #tpu.memory_space<vmem>>, vector<256x8xf32>,
    %c0_7 = arith.constant 0 : index
    %c0_8 = arith.constant 0 : index
    %7 = vector.load %arg4[%c0_7, %c0_8] : memref<1x8xf32, #tpu.memory_space<vmem>>, vector<1x8xf32>
    %8 = vector.broadcast %7 : vector<1x8xf32> to vector<256x8xf32>
    %9 = arith.mulf %5, %8 : vector<256x8xf32>
    %c0_9 = arith.constant 0 : index
    %c0_10 = arith.constant 0 : index
    %10 = vector.load %arg5[%c0_9, %c0_10] : memref<1x8xf32, #tpu.memory_space<vmem>>, vector<1x8xf32>
    %11 = vector.broadcast %10 : vector<1x8xf32> to vector<256x8xf32>
    %12 = arith.addf %9, %11 : vector<256x8xf32>
    %cst_11 = arith.constant 0.000000e+00 : f32
    %13 = vector.broadcast %cst_11 : f32 to vector<256x8xf32>
    %14 = arith.cmpf oge, %12, %13 : vector<256x8xf32>
    %cst_12 = arith.constant 0.00999999977 : f32
    %15 = vector.broadcast %cst_12 : f32 to vector<256x8xf32>
    %16 = arith.mulf %15, %12 : vector<256x8xf32>
    %17 = arith.select %14, %12, %16 : vector<256x8xi1>, vector<256x8xf32>
    %c0_13 = arith.constant 0 : index
    %c0_14 = arith.constant 0 : index
    %18 = vector.load %arg7[%c0_13, %c0_14] : memref<256x8xf32, #tpu.memory_space<vmem>>, vector<256x8xf32>
    tpu.vector_store %arg7[%c0_13, %c0_14], %17 {strides = array<i32>} : memref<256x8xf32, #tpu.memory_space<vmem>>, vector<256x8xf32>,
    return
  }
  func.func @transform_0(%arg0: i32) -> (i32, i32) {
    %c0_i32 = arith.constant 0 : i32
    %c0_i32_0 = arith.constant 0 : i32
    return %arg0, %c0_i32 : i32, i32
  }
  func.func @transform_1(%arg0: i32) -> (i32, i32) {
    %c0_i32 = arith.constant 0 : i32
    %c0_i32_0 = arith.constant 0 : i32
    %c0_i32_1 = arith.constant 0 : i32
    return %c0_i32, %c0_i32_0 : i32, i32
  }
  func.func @transform_2(%arg0: i32) -> (i32, i32) {
    %c0_i32 = arith.constant 0 : i32
    %c0_i32_0 = arith.constant 0 : i32
    %c0_i32_1 = arith.constant 0 : i32
    return %c0_i32, %c0_i32_0 : i32, i32
  }
  func.func @transform_3(%arg0: i32) -> (i32, i32) {
    %c0_i32 = arith.constant 0 : i32
    %c0_i32_0 = arith.constant 0 : i32
    %c0_i32_1 = arith.constant 0 : i32
    return %c0_i32, %c0_i32_0 : i32, i32
  }
  func.func @transform_4(%arg0: i32) -> (i32, i32) {
    %c0_i32 = arith.constant 0 : i32
    %c0_i32_0 = arith.constant 0 : i32
    %c0_i32_1 = arith.constant 0 : i32
    return %c0_i32, %c0_i32_0 : i32, i32
  }
  func.func @transform_5(%arg0: i32) -> (i32, i32) {
    %c0_i32 = arith.constant 0 : i32
    %c0_i32_0 = arith.constant 0 : i32
    return %arg0, %c0_i32 : i32, i32
  }
  func.func @transform_6(%arg0: i32) -> (i32, i32) {
    %c0_i32 = arith.constant 0 : i32
    %c0_i32_0 = arith.constant 0 : i32
    return %arg0, %c0_i32 : i32, i32
  }
}

module attributes {stable_mosaic.version = 11 : i64} {
  func.func @_max_kernel(%arg0: i32, %arg1: memref<128x4xf32, #tpu.memory_space<vmem>>, %arg2: memref<128x4xf32, #tpu.memory_space<vmem>>, %arg3: memref<128x4xf32, #tpu.memory_space<vmem>>, %arg4: memref<128x4xf32, #tpu.memory_space<vmem>>, %arg5: memref<128x4xf32, #tpu.memory_space<vmem>>, %arg6: memref<128x4xf32, #tpu.memory_space<vmem>>) attributes {dimension_semantics = [#tpu.dimension_semantics<parallel>], iteration_bounds = array<i64: 1>, scalar_prefetch = 0 : i64, scratch_operands = 0 : i64, tpu.core_type = #tpu.core_type<tc>, window_params = [{transform_indices = @transform_0, window_bounds = array<i64: 128, 4>}, {transform_indices = @transform_1, window_bounds = array<i64: 128, 4>}, {transform_indices = @transform_2, window_bounds = array<i64: 128, 4>}, {transform_indices = @transform_3, window_bounds = array<i64: 128, 4>}, {transform_indices = @transform_4, window_bounds = array<i64: 128, 4>}, {transform_indices = @transform_5, window_bounds = array<i64: 128, 4>}]} {
    %c0 = arith.constant 0 : index
    %c0_0 = arith.constant 0 : index
    %0 = vector.load %arg1[%c0, %c0_0] : memref<128x4xf32, #tpu.memory_space<vmem>>, vector<128x4xf32>
    %c0_1 = arith.constant 0 : index
    %c0_2 = arith.constant 0 : index
    %1 = vector.load %arg2[%c0_1, %c0_2] : memref<128x4xf32, #tpu.memory_space<vmem>>, vector<128x4xf32>
    %2 = arith.maximumf %0, %1 : vector<128x4xf32>
    %c0_3 = arith.constant 0 : index
    %c0_4 = arith.constant 0 : index
    %3 = vector.load %arg3[%c0_3, %c0_4] : memref<128x4xf32, #tpu.memory_space<vmem>>, vector<128x4xf32>
    %4 = arith.maximumf %2, %3 : vector<128x4xf32>
    %c0_5 = arith.constant 0 : index
    %c0_6 = arith.constant 0 : index
    %5 = vector.load %arg4[%c0_5, %c0_6] : memref<128x4xf32, #tpu.memory_space<vmem>>, vector<128x4xf32>
    %6 = arith.maximumf %4, %5 : vector<128x4xf32>
    %c0_7 = arith.constant 0 : index
    %c0_8 = arith.constant 0 : index
    %7 = vector.load %arg5[%c0_7, %c0_8] : memref<128x4xf32, #tpu.memory_space<vmem>>, vector<128x4xf32>
    %8 = arith.maximumf %6, %7 : vector<128x4xf32>
    %c0_9 = arith.constant 0 : index
    %c0_10 = arith.constant 0 : index
    %9 = vector.load %arg6[%c0_9, %c0_10] : memref<128x4xf32, #tpu.memory_space<vmem>>, vector<128x4xf32>
    tpu.vector_store %arg6[%c0_9, %c0_10], %8 {strides = array<i32>} : memref<128x4xf32, #tpu.memory_space<vmem>>, vector<128x4xf32>,
    return
  }
  func.func @transform_0(%arg0: i32) -> (i32, i32) {
    %c0_i32 = arith.constant 0 : i32
    %c0_i32_0 = arith.constant 0 : i32
    return %arg0, %c0_i32 : i32, i32
  }
  func.func @transform_1(%arg0: i32) -> (i32, i32) {
    %c0_i32 = arith.constant 0 : i32
    %c0_i32_0 = arith.constant 0 : i32
    return %arg0, %c0_i32 : i32, i32
  }
  func.func @transform_2(%arg0: i32) -> (i32, i32) {
    %c0_i32 = arith.constant 0 : i32
    %c0_i32_0 = arith.constant 0 : i32
    return %arg0, %c0_i32 : i32, i32
  }
  func.func @transform_3(%arg0: i32) -> (i32, i32) {
    %c0_i32 = arith.constant 0 : i32
    %c0_i32_0 = arith.constant 0 : i32
    return %arg0, %c0_i32 : i32, i32
  }
  func.func @transform_4(%arg0: i32) -> (i32, i32) {
    %c0_i32 = arith.constant 0 : i32
    %c0_i32_0 = arith.constant 0 : i32
    return %arg0, %c0_i32 : i32, i32
  }
  func.func @transform_5(%arg0: i32) -> (i32, i32) {
    %c0_i32 = arith.constant 0 : i32
    %c0_i32_0 = arith.constant 0 : i32
    return %arg0, %c0_i32 : i32, i32
  }
}

module attributes {stable_mosaic.version = 11 : i64} {
  func.func @_max_kernel(%arg0: i32, %arg1: memref<32x4xf32, #tpu.memory_space<vmem>>, %arg2: memref<32x4xf32, #tpu.memory_space<vmem>>, %arg3: memref<32x4xf32, #tpu.memory_space<vmem>>, %arg4: memref<32x4xf32, #tpu.memory_space<vmem>>, %arg5: memref<32x4xf32, #tpu.memory_space<vmem>>, %arg6: memref<32x4xf32, #tpu.memory_space<vmem>>) attributes {dimension_semantics = [#tpu.dimension_semantics<parallel>], iteration_bounds = array<i64: 1>, scalar_prefetch = 0 : i64, scratch_operands = 0 : i64, tpu.core_type = #tpu.core_type<tc>, window_params = [{transform_indices = @transform_0, window_bounds = array<i64: 32, 4>}, {transform_indices = @transform_1, window_bounds = array<i64: 32, 4>}, {transform_indices = @transform_2, window_bounds = array<i64: 32, 4>}, {transform_indices = @transform_3, window_bounds = array<i64: 32, 4>}, {transform_indices = @transform_4, window_bounds = array<i64: 32, 4>}, {transform_indices = @transform_5, window_bounds = array<i64: 32, 4>}]} {
    %c0 = arith.constant 0 : index
    %c0_0 = arith.constant 0 : index
    %0 = vector.load %arg1[%c0, %c0_0] : memref<32x4xf32, #tpu.memory_space<vmem>>, vector<32x4xf32>
    %c0_1 = arith.constant 0 : index
    %c0_2 = arith.constant 0 : index
    %1 = vector.load %arg2[%c0_1, %c0_2] : memref<32x4xf32, #tpu.memory_space<vmem>>, vector<32x4xf32>
    %2 = arith.maximumf %0, %1 : vector<32x4xf32>
    %c0_3 = arith.constant 0 : index
    %c0_4 = arith.constant 0 : index
    %3 = vector.load %arg3[%c0_3, %c0_4] : memref<32x4xf32, #tpu.memory_space<vmem>>, vector<32x4xf32>
    %4 = arith.maximumf %2, %3 : vector<32x4xf32>
    %c0_5 = arith.constant 0 : index
    %c0_6 = arith.constant 0 : index
    %5 = vector.load %arg4[%c0_5, %c0_6] : memref<32x4xf32, #tpu.memory_space<vmem>>, vector<32x4xf32>
    %6 = arith.maximumf %4, %5 : vector<32x4xf32>
    %c0_7 = arith.constant 0 : index
    %c0_8 = arith.constant 0 : index
    %7 = vector.load %arg5[%c0_7, %c0_8] : memref<32x4xf32, #tpu.memory_space<vmem>>, vector<32x4xf32>
    %8 = arith.maximumf %6, %7 : vector<32x4xf32>
    %c0_9 = arith.constant 0 : index
    %c0_10 = arith.constant 0 : index
    %9 = vector.load %arg6[%c0_9, %c0_10] : memref<32x4xf32, #tpu.memory_space<vmem>>, vector<32x4xf32>
    tpu.vector_store %arg6[%c0_9, %c0_10], %8 {strides = array<i32>} : memref<32x4xf32, #tpu.memory_space<vmem>>, vector<32x4xf32>,
    return
  }
  func.func @transform_0(%arg0: i32) -> (i32, i32) {
    %c0_i32 = arith.constant 0 : i32
    %c0_i32_0 = arith.constant 0 : i32
    return %arg0, %c0_i32 : i32, i32
  }
  func.func @transform_1(%arg0: i32) -> (i32, i32) {
    %c0_i32 = arith.constant 0 : i32
    %c0_i32_0 = arith.constant 0 : i32
    return %arg0, %c0_i32 : i32, i32
  }
  func.func @transform_2(%arg0: i32) -> (i32, i32) {
    %c0_i32 = arith.constant 0 : i32
    %c0_i32_0 = arith.constant 0 : i32
    return %arg0, %c0_i32 : i32, i32
  }
  func.func @transform_3(%arg0: i32) -> (i32, i32) {
    %c0_i32 = arith.constant 0 : i32
    %c0_i32_0 = arith.constant 0 : i32
    return %arg0, %c0_i32 : i32, i32
  }
  func.func @transform_4(%arg0: i32) -> (i32, i32) {
    %c0_i32 = arith.constant 0 : i32
    %c0_i32_0 = arith.constant 0 : i32
    return %arg0, %c0_i32 : i32, i32
  }
  func.func @transform_5(%arg0: i32) -> (i32, i32) {
    %c0_i32 = arith.constant 0 : i32
    %c0_i32_0 = arith.constant 0 : i32
    return %arg0, %c0_i32 : i32, i32
  }
}

module attributes {stable_mosaic.version = 11 : i64} {
  func.func @_lerp4_kernel(%arg0: i32, %arg1: memref<256x4xf32, #tpu.memory_space<vmem>>, %arg2: memref<256x4xf32, #tpu.memory_space<vmem>>, %arg3: memref<256x4xf32, #tpu.memory_space<vmem>>, %arg4: memref<256x4xf32, #tpu.memory_space<vmem>>, %arg5: memref<256x1xf32, #tpu.memory_space<vmem>>, %arg6: memref<256x1xf32, #tpu.memory_space<vmem>>, %arg7: memref<256x1xf32, #tpu.memory_space<vmem>>, %arg8: memref<256x1xf32, #tpu.memory_space<vmem>>, %arg9: memref<256x4xbf16, #tpu.memory_space<vmem>>) attributes {dimension_semantics = [#tpu.dimension_semantics<parallel>], iteration_bounds = array<i64: 2>, scalar_prefetch = 0 : i64, scratch_operands = 0 : i64, tpu.core_type = #tpu.core_type<tc>, window_params = [{transform_indices = @transform_0, window_bounds = array<i64: 256, 4>}, {transform_indices = @transform_1, window_bounds = array<i64: 256, 4>}, {transform_indices = @transform_2, window_bounds = array<i64: 256, 4>}, {transform_indices = @transform_3, window_bounds = array<i64: 256, 4>}, {transform_indices = @transform_4, window_bounds = array<i64: 256, 1>}, {transform_indices = @transform_5, window_bounds = array<i64: 256, 1>}, {transform_indices = @transform_6, window_bounds = array<i64: 256, 1>}, {transform_indices = @transform_7, window_bounds = array<i64: 256, 1>}, {transform_indices = @transform_8, window_bounds = array<i64: 256, 4>}]} {
    %c0 = arith.constant 0 : index
    %c0_0 = arith.constant 0 : index
    %0 = vector.load %arg1[%c0, %c0_0] : memref<256x4xf32, #tpu.memory_space<vmem>>, vector<256x4xf32>
    %c0_1 = arith.constant 0 : index
    %c0_2 = arith.constant 0 : index
    %1 = vector.load %arg5[%c0_1, %c0_2] : memref<256x1xf32, #tpu.memory_space<vmem>>, vector<256x1xf32>
    %2 = vector.broadcast %1 : vector<256x1xf32> to vector<256x4xf32>
    %3 = arith.mulf %0, %2 : vector<256x4xf32>
    %c0_3 = arith.constant 0 : index
    %c0_4 = arith.constant 0 : index
    %4 = vector.load %arg2[%c0_3, %c0_4] : memref<256x4xf32, #tpu.memory_space<vmem>>, vector<256x4xf32>
    %c0_5 = arith.constant 0 : index
    %c0_6 = arith.constant 0 : index
    %5 = vector.load %arg6[%c0_5, %c0_6] : memref<256x1xf32, #tpu.memory_space<vmem>>, vector<256x1xf32>
    %6 = vector.broadcast %5 : vector<256x1xf32> to vector<256x4xf32>
    %7 = arith.mulf %4, %6 : vector<256x4xf32>
    %8 = arith.addf %3, %7 : vector<256x4xf32>
    %c0_7 = arith.constant 0 : index
    %c0_8 = arith.constant 0 : index
    %9 = vector.load %arg3[%c0_7, %c0_8] : memref<256x4xf32, #tpu.memory_space<vmem>>, vector<256x4xf32>
    %c0_9 = arith.constant 0 : index
    %c0_10 = arith.constant 0 : index
    %10 = vector.load %arg7[%c0_9, %c0_10] : memref<256x1xf32, #tpu.memory_space<vmem>>, vector<256x1xf32>
    %11 = vector.broadcast %10 : vector<256x1xf32> to vector<256x4xf32>
    %12 = arith.mulf %9, %11 : vector<256x4xf32>
    %13 = arith.addf %8, %12 : vector<256x4xf32>
    %c0_11 = arith.constant 0 : index
    %c0_12 = arith.constant 0 : index
    %14 = vector.load %arg4[%c0_11, %c0_12] : memref<256x4xf32, #tpu.memory_space<vmem>>, vector<256x4xf32>
    %c0_13 = arith.constant 0 : index
    %c0_14 = arith.constant 0 : index
    %15 = vector.load %arg8[%c0_13, %c0_14] : memref<256x1xf32, #tpu.memory_space<vmem>>, vector<256x1xf32>
    %16 = vector.broadcast %15 : vector<256x1xf32> to vector<256x4xf32>
    %17 = arith.mulf %14, %16 : vector<256x4xf32>
    %18 = arith.addf %13, %17 : vector<256x4xf32>
    %19 = arith.truncf %18 : vector<256x4xf32> to vector<256x4xbf16>
    %c0_15 = arith.constant 0 : index
    %c0_16 = arith.constant 0 : index
    %20 = vector.load %arg9[%c0_15, %c0_16] : memref<256x4xbf16, #tpu.memory_space<vmem>>, vector<256x4xbf16>
    tpu.vector_store %arg9[%c0_15, %c0_16], %19 {strides = array<i32>} : memref<256x4xbf16, #tpu.memory_space<vmem>>, vector<256x4xbf16>,
    return
  }
  func.func @transform_0(%arg0: i32) -> (i32, i32) {
    %c0_i32 = arith.constant 0 : i32
    %c0_i32_0 = arith.constant 0 : i32
    return %arg0, %c0_i32 : i32, i32
  }
  func.func @transform_1(%arg0: i32) -> (i32, i32) {
    %c0_i32 = arith.constant 0 : i32
    %c0_i32_0 = arith.constant 0 : i32
    return %arg0, %c0_i32 : i32, i32
  }
  func.func @transform_2(%arg0: i32) -> (i32, i32) {
    %c0_i32 = arith.constant 0 : i32
    %c0_i32_0 = arith.constant 0 : i32
    return %arg0, %c0_i32 : i32, i32
  }
  func.func @transform_3(%arg0: i32) -> (i32, i32) {
    %c0_i32 = arith.constant 0 : i32
    %c0_i32_0 = arith.constant 0 : i32
    return %arg0, %c0_i32 : i32, i32
  }
  func.func @transform_4(%arg0: i32) -> (i32, i32) {
    %c0_i32 = arith.constant 0 : i32
    %c0_i32_0 = arith.constant 0 : i32
    return %arg0, %c0_i32 : i32, i32
  }
  func.func @transform_5(%arg0: i32) -> (i32, i32) {
    %c0_i32 = arith.constant 0 : i32
    %c0_i32_0 = arith.constant 0 : i32
    return %arg0, %c0_i32 : i32, i32
  }
  func.func @transform_6(%arg0: i32) -> (i32, i32) {
    %c0_i32 = arith.constant 0 : i32
    %c0_i32_0 = arith.constant 0 : i32
    return %arg0, %c0_i32 : i32, i32
  }
  func.func @transform_7(%arg0: i32) -> (i32, i32) {
    %c0_i32 = arith.constant 0 : i32
    %c0_i32_0 = arith.constant 0 : i32
    return %arg0, %c0_i32 : i32, i32
  }
  func.func @transform_8(%arg0: i32) -> (i32, i32) {
    %c0_i32 = arith.constant 0 : i32
    %c0_i32_0 = arith.constant 0 : i32
    return %arg0, %c0_i32 : i32, i32
  }
}

module attributes {stable_mosaic.version = 11 : i64} {
  func.func @_max_kernel(%arg0: i32, %arg1: memref<128x4xf32, #tpu.memory_space<vmem>>, %arg2: memref<128x4xf32, #tpu.memory_space<vmem>>, %arg3: memref<128x4xf32, #tpu.memory_space<vmem>>, %arg4: memref<128x4xf32, #tpu.memory_space<vmem>>) attributes {dimension_semantics = [#tpu.dimension_semantics<parallel>], iteration_bounds = array<i64: 1>, scalar_prefetch = 0 : i64, scratch_operands = 0 : i64, tpu.core_type = #tpu.core_type<tc>, window_params = [{transform_indices = @transform_0, window_bounds = array<i64: 128, 4>}, {transform_indices = @transform_1, window_bounds = array<i64: 128, 4>}, {transform_indices = @transform_2, window_bounds = array<i64: 128, 4>}, {transform_indices = @transform_3, window_bounds = array<i64: 128, 4>}]} {
    %c0 = arith.constant 0 : index
    %c0_0 = arith.constant 0 : index
    %0 = vector.load %arg1[%c0, %c0_0] : memref<128x4xf32, #tpu.memory_space<vmem>>, vector<128x4xf32>
    %c0_1 = arith.constant 0 : index
    %c0_2 = arith.constant 0 : index
    %1 = vector.load %arg2[%c0_1, %c0_2] : memref<128x4xf32, #tpu.memory_space<vmem>>, vector<128x4xf32>
    %2 = arith.maximumf %0, %1 : vector<128x4xf32>
    %c0_3 = arith.constant 0 : index
    %c0_4 = arith.constant 0 : index
    %3 = vector.load %arg3[%c0_3, %c0_4] : memref<128x4xf32, #tpu.memory_space<vmem>>, vector<128x4xf32>
    %4 = arith.maximumf %2, %3 : vector<128x4xf32>
    %c0_5 = arith.constant 0 : index
    %c0_6 = arith.constant 0 : index
    %5 = vector.load %arg4[%c0_5, %c0_6] : memref<128x4xf32, #tpu.memory_space<vmem>>, vector<128x4xf32>
    tpu.vector_store %arg4[%c0_5, %c0_6], %4 {strides = array<i32>} : memref<128x4xf32, #tpu.memory_space<vmem>>, vector<128x4xf32>,
    return
  }
  func.func @transform_0(%arg0: i32) -> (i32, i32) {
    %c0_i32 = arith.constant 0 : i32
    %c0_i32_0 = arith.constant 0 : i32
    return %arg0, %c0_i32 : i32, i32
  }
  func.func @transform_1(%arg0: i32) -> (i32, i32) {
    %c0_i32 = arith.constant 0 : i32
    %c0_i32_0 = arith.constant 0 : i32
    return %arg0, %c0_i32 : i32, i32
  }
  func.func @transform_2(%arg0: i32) -> (i32, i32) {
    %c0_i32 = arith.constant 0 : i32
    %c0_i32_0 = arith.constant 0 : i32
    return %arg0, %c0_i32 : i32, i32
  }
  func.func @transform_3(%arg0: i32) -> (i32, i32) {
    %c0_i32 = arith.constant 0 : i32
    %c0_i32_0 = arith.constant 0 : i32
    return %arg0, %c0_i32 : i32, i32
  }
}

module attributes {stable_mosaic.version = 11 : i64} {
  func.func @_max_kernel(%arg0: i32, %arg1: memref<256x4xf32, #tpu.memory_space<vmem>>, %arg2: memref<256x4xf32, #tpu.memory_space<vmem>>, %arg3: memref<256x4xf32, #tpu.memory_space<vmem>>, %arg4: memref<256x4xf32, #tpu.memory_space<vmem>>) attributes {dimension_semantics = [#tpu.dimension_semantics<parallel>], iteration_bounds = array<i64: 1>, scalar_prefetch = 0 : i64, scratch_operands = 0 : i64, tpu.core_type = #tpu.core_type<tc>, window_params = [{transform_indices = @transform_0, window_bounds = array<i64: 256, 4>}, {transform_indices = @transform_1, window_bounds = array<i64: 256, 4>}, {transform_indices = @transform_2, window_bounds = array<i64: 256, 4>}, {transform_indices = @transform_3, window_bounds = array<i64: 256, 4>}]} {
    %c0 = arith.constant 0 : index
    %c0_0 = arith.constant 0 : index
    %0 = vector.load %arg1[%c0, %c0_0] : memref<256x4xf32, #tpu.memory_space<vmem>>, vector<256x4xf32>
    %c0_1 = arith.constant 0 : index
    %c0_2 = arith.constant 0 : index
    %1 = vector.load %arg2[%c0_1, %c0_2] : memref<256x4xf32, #tpu.memory_space<vmem>>, vector<256x4xf32>
    %2 = arith.maximumf %0, %1 : vector<256x4xf32>
    %c0_3 = arith.constant 0 : index
    %c0_4 = arith.constant 0 : index
    %3 = vector.load %arg3[%c0_3, %c0_4] : memref<256x4xf32, #tpu.memory_space<vmem>>, vector<256x4xf32>
    %4 = arith.maximumf %2, %3 : vector<256x4xf32>
    %c0_5 = arith.constant 0 : index
    %c0_6 = arith.constant 0 : index
    %5 = vector.load %arg4[%c0_5, %c0_6] : memref<256x4xf32, #tpu.memory_space<vmem>>, vector<256x4xf32>
    tpu.vector_store %arg4[%c0_5, %c0_6], %4 {strides = array<i32>} : memref<256x4xf32, #tpu.memory_space<vmem>>, vector<256x4xf32>,
    return
  }
  func.func @transform_0(%arg0: i32) -> (i32, i32) {
    %c0_i32 = arith.constant 0 : i32
    %c0_i32_0 = arith.constant 0 : i32
    return %arg0, %c0_i32 : i32, i32
  }
  func.func @transform_1(%arg0: i32) -> (i32, i32) {
    %c0_i32 = arith.constant 0 : i32
    %c0_i32_0 = arith.constant 0 : i32
    return %arg0, %c0_i32 : i32, i32
  }
  func.func @transform_2(%arg0: i32) -> (i32, i32) {
    %c0_i32 = arith.constant 0 : i32
    %c0_i32_0 = arith.constant 0 : i32
    return %arg0, %c0_i32 : i32, i32
  }
  func.func @transform_3(%arg0: i32) -> (i32, i32) {
    %c0_i32 = arith.constant 0 : i32
    %c0_i32_0 = arith.constant 0 : i32
    return %arg0, %c0_i32 : i32, i32
  }
}

module attributes {stable_mosaic.version = 11 : i64} {
  func.func @kern(%arg0: i32, %arg1: memref<256x4xbf16, #tpu.memory_space<vmem>>, %arg2: memref<256x4xbf16, #tpu.memory_space<vmem>>, %arg3: memref<256x4xbf16, #tpu.memory_space<vmem>>, %arg4: memref<3x4x3xbf16, #tpu.memory_space<vmem>>, %arg5: memref<1x3xf32, #tpu.memory_space<vmem>>, %arg6: memref<256x3xf32, #tpu.memory_space<vmem>>) attributes {dimension_semantics = [#tpu.dimension_semantics<parallel>], iteration_bounds = array<i64: 2>, scalar_prefetch = 0 : i64, scratch_operands = 0 : i64, tpu.core_type = #tpu.core_type<tc>, window_params = [{transform_indices = @transform_0, window_bounds = array<i64: 256, 4>}, {transform_indices = @transform_1, window_bounds = array<i64: 256, 4>}, {transform_indices = @transform_2, window_bounds = array<i64: 256, 4>}, {pipeline_mode = #tpu.pipeline_mode<synchronous>, transform_indices = @transform_3, window_bounds = array<i64: 3, 4, 3>}, {pipeline_mode = #tpu.pipeline_mode<synchronous>, transform_indices = @transform_4, window_bounds = array<i64: 1, 3>}, {transform_indices = @transform_5, window_bounds = array<i64: 256, 3>}]} {
    %c0 = arith.constant 0 : index
    %c0_0 = arith.constant 0 : index
    %0 = vector.load %arg1[%c0, %c0_0] : memref<256x4xbf16, #tpu.memory_space<vmem>>, vector<256x4xbf16>
    %c0_1 = arith.constant 0 : index
    %c0_2 = arith.constant 0 : index
    %c0_3 = arith.constant 0 : index
    %1 = vector.load %arg4[%c0_1, %c0_2, %c0_3] : memref<3x4x3xbf16, #tpu.memory_space<vmem>>, vector<1x4x3xbf16>
    %2 = vector.shape_cast %1 : vector<1x4x3xbf16> to vector<4x3xbf16>
    %cst = arith.constant dense<0.000000e+00> : vector<256x3xf32>
    %3 = tpu.matmul %0, %2, %cst {dimension_numbers = #tpu.dot_dimension_numbers<[1], [0], [0], [1], [0, 0, 1, 1], [], []>} : vector<256x4xbf16>, vector<4x3xbf16>, vector<256x3xf32> -> vector<256x3xf32>
    %c0_4 = arith.constant 0 : index
    %c0_5 = arith.constant 0 : index
    %4 = vector.load %arg2[%c0_4, %c0_5] : memref<256x4xbf16, #tpu.memory_space<vmem>>, vector<256x4xbf16>
    %c1 = arith.constant 1 : index
    %c0_6 = arith.constant 0 : index
    %c0_7 = arith.constant 0 : index
    %5 = vector.load %arg4[%c1, %c0_6, %c0_7] : memref<3x4x3xbf16, #tpu.memory_space<vmem>>, vector<1x4x3xbf16>
    %6 = vector.shape_cast %5 : vector<1x4x3xbf16> to vector<4x3xbf16>
    %cst_8 = arith.constant dense<0.000000e+00> : vector<256x3xf32>
    %7 = tpu.matmul %4, %6, %cst_8 {dimension_numbers = #tpu.dot_dimension_numbers<[1], [0], [0], [1], [0, 0, 1, 1], [], []>} : vector<256x4xbf16>, vector<4x3xbf16>, vector<256x3xf32> -> vector<256x3xf32>
    %8 = arith.addf %3, %7 : vector<256x3xf32>
    %c0_9 = arith.constant 0 : index
    %c0_10 = arith.constant 0 : index
    %9 = vector.load %arg3[%c0_9, %c0_10] : memref<256x4xbf16, #tpu.memory_space<vmem>>, vector<256x4xbf16>
    %c2 = arith.constant 2 : index
    %c0_11 = arith.constant 0 : index
    %c0_12 = arith.constant 0 : index
    %10 = vector.load %arg4[%c2, %c0_11, %c0_12] : memref<3x4x3xbf16, #tpu.memory_space<vmem>>, vector<1x4x3xbf16>
    %11 = vector.shape_cast %10 : vector<1x4x3xbf16> to vector<4x3xbf16>
    %cst_13 = arith.constant dense<0.000000e+00> : vector<256x3xf32>
    %12 = tpu.matmul %9, %11, %cst_13 {dimension_numbers = #tpu.dot_dimension_numbers<[1], [0], [0], [1], [0, 0, 1, 1], [], []>} : vector<256x4xbf16>, vector<4x3xbf16>, vector<256x3xf32> -> vector<256x3xf32>
    %13 = arith.addf %8, %12 : vector<256x3xf32>
    %c0_14 = arith.constant 0 : index
    %c0_15 = arith.constant 0 : index
    %14 = vector.load %arg5[%c0_14, %c0_15] : memref<1x3xf32, #tpu.memory_space<vmem>>, vector<1x3xf32>
    %15 = vector.broadcast %14 : vector<1x3xf32> to vector<256x3xf32>
    %16 = arith.addf %13, %15 : vector<256x3xf32>
    %c0_16 = arith.constant 0 : index
    %c0_17 = arith.constant 0 : index
    %17 = vector.load %arg6[%c0_16, %c0_17] : memref<256x3xf32, #tpu.memory_space<vmem>>, vector<256x3xf32>
    tpu.vector_store %arg6[%c0_16, %c0_17], %16 {strides = array<i32>} : memref<256x3xf32, #tpu.memory_space<vmem>>, vector<256x3xf32>,
    return
  }
  func.func @transform_0(%arg0: i32) -> (i32, i32) {
    %c0_i32 = arith.constant 0 : i32
    %c0_i32_0 = arith.constant 0 : i32
    return %arg0, %c0_i32 : i32, i32
  }
  func.func @transform_1(%arg0: i32) -> (i32, i32) {
    %c0_i32 = arith.constant 0 : i32
    %c0_i32_0 = arith.constant 0 : i32
    return %arg0, %c0_i32 : i32, i32
  }
  func.func @transform_2(%arg0: i32) -> (i32, i32) {
    %c0_i32 = arith.constant 0 : i32
    %c0_i32_0 = arith.constant 0 : i32
    return %arg0, %c0_i32 : i32, i32
  }
  func.func @transform_3(%arg0: i32) -> (i32, i32, i32) {
    %c0_i32 = arith.constant 0 : i32
    %c0_i32_0 = arith.constant 0 : i32
    %c0_i32_1 = arith.constant 0 : i32
    %c0_i32_2 = arith.constant 0 : i32
    return %c0_i32, %c0_i32_0, %c0_i32_1 : i32, i32, i32
  }
  func.func @transform_4(%arg0: i32) -> (i32, i32) {
    %c0_i32 = arith.constant 0 : i32
    %c0_i32_0 = arith.constant 0 : i32
    %c0_i32_1 = arith.constant 0 : i32
    return %c0_i32, %c0_i32_0 : i32, i32
  }
  func.func @transform_5(%arg0: i32) -> (i32, i32) {
    %c0_i32 = arith.constant 0 : i32
    %c0_i32_0 = arith.constant 0 : i32
    return %arg0, %c0_i32 : i32, i32
  }
}

</mosaic_0001>

<bundles_post_ra>
// kernel: _lambda_.16
= control target key start
LH: loop header
LB: loop body
LE: loop exit
PB: predicated region body
PF: predicated region fallthrough
CT: control target
= control target key end

     0   :  { %s1103_s21 = smov 0   ;;  %s1443_s0 = inlined_call_operand.vmem [shape: bf16[512,4], index: 0, kind: input, shape index: {}]   ;;  %s1444_s1 = inlined_call_operand.vmem [shape: bf16[4,8], index: 1, kind: input, shape index: {}]   ;;  %s1445_s2 = inlined_call_operand.vmem [shape: f32[1,8], index: 2, kind: input, shape index: {}]   ;;  %s1446_s3 = inlined_call_operand.vmem [shape: f32[1,8], index: 3, kind: input, shape index: {}]   ;;  %s1447_s4 = inlined_call_operand.vmem [shape: f32[1,8], index: 4, kind: input, shape index: {}]   ;;  %s1448_s5 = inlined_call_operand.vmem [shape: f32[512,8], index: 5, kind: output, shape index: {0}]   ;;  %s1449_s6 = inlined_call_operand.vmem [shape: f32[512,8], index: 6, kind: output, shape index: {1}]  }
   0x1 LB: > { %s933_s22 = sadd.s32 4294967295, %s1066_s21   ;;  %p937_p0 = scmp.ge.s32.totalorder %s1066_s21, 1  ;;  %s1066_s21 = sphi %s1103_s21, %s17_s21  }
   0x2   : > { %p216_p1 = scmp.lt.s32.totalorder %s1066_s21, 3 }
   0x4   : > { %p217_p2 = pnand %p937_p0, %p216_p1 }
   0x5   : > { %v302_v0 = vld [vmem:[%s1444_s1] sm:$0x3] (!%p217_p2)  ;;  %vm439_vm0 = vcmask (!%p217_p2), 1041408   ;;  %s938_s25 = sshll.u32 (!%p217_p2), %s933_s22, 5  ;;  %vm390_vm1 = vcmask (!%p217_p2), 31744   ;;  %vm604_vm2 = vcmask (!%p217_p2), 64512  }
   0x6   : > { %220 = sbr.rel (%p217_p2) target bundleno = 286 (0x11e), region = 40  ;;  %1034 = vmatprep.subr.msk.bf16.mxu0 (!%p217_p2), %vm439_vm0, %v302_v0  ;;  %1035 = vmatprep.subr.msk.bf16.mxu1 (!%p217_p2), %vm439_vm0, %v302_v0  ;;  %v441_v1 = vsel (!%p217_p2), %vm439_vm0, %v302_v0, 0  ;;  %p252_p3 = scmp.lt.s32.totalorder (!%p217_p2), %s938_s25, 63  ;;  %v1158_v18 = vld [vmem:[%s1445_s2] ss:$0 sm:$0xff] (!%p217_p2) }
   0x7   : > { %999 = vmatpush3.bf16.msra.mxu0 (!%p217_p2), %v441_v1  ;;  %1033 = vmatpush3.bf16.msra.mxu1 (!%p217_p2), %v441_v1  ;;  %v1170_v20 = vld [vmem:[%s1446_s3] ss:$0 sm:$0xff] (!%p217_p2) }
   0x8   : > { %v1176_v24 = vld [vmem:[%s1447_s4] ss:$0 sm:$0xff] (!%p217_p2) }
   0xd   : > { %s1451_s25 = smov (!%p252_p3, %s938_s25), 63 }
   0xe   : > { %s939_s26 = sshll.u32 %s1451_s25, 2  ;;  %s941_s30 = sshll.u32 %s1451_s25, 3 }
   0xf   : > { %s1120_s29 = scalar_lea.vmem %s1443_s0, %s939_s26  ;;  %s1165_s11 = scalar_lea.vmem %s1448_s5, %s941_s30 }
  0x10   : > { %v1044_v2 = vld [vmem:[%s1120_s29] sm:$0xff]   ;;  %v1046_v4 = vld [vmem:[%s1120_s29 + $0x8] sm:$0xff]   ;;  %v1048_v6 = vld [vmem:[%s1120_s29 + $0x10] sm:$0xff]   ;;  %s1214_s18 = scalar_lea.vmem %s1449_s6, %s941_s30 }
  0x11   : > { %v1045_v3 = vld [vmem:[%s1120_s29 + $0x40] sm:$0xff]   ;;  %1000 = vmatprep.mubr.msk.bf16.mxu0 %vm390_vm1, %v1044_v2  ;;  %v1047_v5 = vld [vmem:[%s1120_s29 + $0x48] sm:$0xff]   ;;  %v1049_v7 = vld [vmem:[%s1120_s29 + $0x50] sm:$0xff]  }
  0x12   : > { %1016 = vmatprep.mubr.msk.bf16.mxu1 %vm390_vm1, %v1045_v3  ;;  %1001 = vmatmul.mubr.msk.bf16.vlgmr.msra.gmra.mrb[0].mxu0 %vm390_vm1, %v1046_v4  ;;  %v1050_v8 = vld [vmem:[%s1120_s29 + $0x18] sm:$0xff]   ;;  %v1052_v10 = vld [vmem:[%s1120_s29 + $0x20] sm:$0xff]   ;;  %v1054_v12 = vld [vmem:[%s1120_s29 + $0x28] sm:$0xff]  }
  0x13   : > { %1017 = vmatmul.mubr.msk.bf16.vlgmr.msra.gmra.mrb[0].mxu1 %vm390_vm1, %v1047_v5  ;;  %1004 = vmatprep.mubr.msk.bf16.mxu0 %vm390_vm1, %v1048_v6  ;;  %v1051_v9 = vld [vmem:[%s1120_s29 + $0x58] sm:$0xff]   ;;  %v1053_v11 = vld [vmem:[%s1120_s29 + $0x60] sm:$0xff]   ;;  %v1055_v13 = vld [vmem:[%s1120_s29 + $0x68] sm:$0xff]  }
  0x14   : > { %1020 = vmatprep.mubr.msk.bf16.mxu1 %vm390_vm1, %v1049_v7  ;;  %v1056_v14 = vld [vmem:[%s1120_s29 + $0x30] sm:$0xff]   ;;  %v1058_v16 = vld [vmem:[%s1120_s29 + $0x38] sm:$0xff]  }
  0x15   : > { %v1057_v15 = vld [vmem:[%s1120_s29 + $0x70] sm:$0xff]   ;;  %v1059_v17 = vld [vmem:[%s1120_s29 + $0x78] sm:$0xff]  }
  0x1a   : > { %1005 = vmatmul.mubr.msk.bf16.gmra.mrb[4].mxu0 %vm390_vm1, %v1050_v8 }
  0x1b   : > { %1021 = vmatmul.mubr.msk.bf16.gmra.mrb[4].mxu1 %vm390_vm1, %v1051_v9  ;;  %1008 = vmatprep.mubr.msk.bf16.mxu0 %vm390_vm1, %v1052_v10 }
  0x1c   : > { %1024 = vmatprep.mubr.msk.bf16.mxu1 %vm390_vm1, %v1053_v11 }
  0x22   : > { %1009 = vmatmul.mubr.msk.bf16.gmra.mrb[8].mxu0 %vm390_vm1, %v1054_v12 }
  0x23   : > { %1025 = vmatmul.mubr.msk.bf16.gmra.mrb[8].mxu1 %vm390_vm1, %v1055_v13  ;;  %1012 = vmatprep.mubr.msk.bf16.mxu0 %vm390_vm1, %v1056_v14 }
  0x24   : > { %1028 = vmatprep.mubr.msk.bf16.mxu1 %vm390_vm1, %v1057_v15 }
  0x2a   : > { %1013 = vmatmul.mubr.msk.bf16.gmra.mrb[12].mxu0 %vm390_vm1, %v1058_v16 }
  0x2b   : > { %1029 = vmatmul.mubr.msk.bf16.gmra.mrb[12].mxu1 %vm390_vm1, %v1059_v17 }
  0xe5   : > { %v1002_v19 = vpop.f32.mrb[0].mxu0 }
  0xe6   : > { %v486_v21 = vadd.f32 %v1002_v19, %v1158_v18  ;;  %v1018_v22 = vpop.f32.mrb[0].mxu1  ;;  %v477_v23 = vpop.f32.mrb[1].mxu0 }
  0xe7   : > { %v550_v25 = vadd.f32 %v1018_v22, %v1158_v18  ;;  %v478_v26 = vadd.f32 %v1158_v18, %v477_v23  ;;  %v541_v27 = vpop.f32.mrb[1].mxu1  ;;  %v1003_v28 = vpop.f32.mrb[2].mxu0 }
  0xe8   : > { %607 = vst.msk [vmem:[%s1165_s11 + $0x10] sm:$0xff] %vm604_vm2, %v486_v21  ;;  %v646_v29 = vmul.f32 %v1170_v20, %v486_v21  ;;  %v542_v30 = vadd.f32 %v1158_v18, %v541_v27  ;;  %v489_v31 = vadd.f32 %v1003_v28, %v1158_v18  ;;  %v1019_v32 = vpop.f32.mrb[2].mxu1  ;;  %v480_v33 = vpop.f32.mrb[3].mxu0 }
  0xe9   : > { %623 = vst.msk [vmem:[%s1165_s11 + $0x90] sm:$0xff] %vm604_vm2, %v550_v25  ;;  %v662_v34 = vmul.f32 %v1170_v20, %v550_v25  ;;  %605 = vst.msk [vmem:[%s1165_s11] sm:$0xff] %vm604_vm2, %v478_v26  ;;  %v644_v35 = vmul.f32 %v1170_v20, %v478_v26  ;;  %v553_v36 = vadd.f32 %v1019_v32, %v1158_v18  ;;  %v544_v38 = vpop.f32.mrb[3].mxu1 }
  0xea   : > { %v481_v37 = vadd.f32 %v1158_v18, %v480_v33  ;;  %v685_v39 = vadd.f32 %v1176_v24, %v646_v29  ;;  %621 = vst.msk [vmem:[%s1165_s11 + $0x80] sm:$0xff] %vm604_vm2, %v542_v30  ;;  %v660_v40 = vmul.f32 %v1170_v20, %v542_v30  ;;  %608 = vst.msk [vmem:[%s1165_s11 + $0x18] sm:$0xff] %vm604_vm2, %v489_v31 }
  0xeb   : > { %v647_v41 = vmul.f32 %v1170_v20, %v489_v31  ;;  %v545_v42 = vadd.f32 %v1158_v18, %v544_v38  ;;  %v701_v43 = vadd.f32 %v1176_v24, %v662_v34  ;;  %v683_v44 = vadd.f32 %v1176_v24, %v644_v35  ;;  %624 = vst.msk [vmem:[%s1165_s11 + $0x98] sm:$0xff] %vm604_vm2, %v553_v36 }
  0xec   : > { %v663_v45 = vmul.f32 %v1170_v20, %v553_v36  ;;  %606 = vst.msk [vmem:[%s1165_s11 + $0x8] sm:$0xff] %vm604_vm2, %v481_v37  ;;  %v645_v46 = vmul.f32 %v1170_v20, %v481_v37  ;;  %vm717_vm3 = vcmp.ge.f32.partialorder %v685_v39, 0.0  ;;  %v749_v47 = vmul.f32 0.01, %v685_v39 }
  0xed   : > { %v699_v48 = vadd.f32 %v1176_v24, %v660_v40  ;;  %v686_v49 = vadd.f32 %v1176_v24, %v647_v41  ;;  %622 = vst.msk [vmem:[%s1165_s11 + $0x88] sm:$0xff] %vm604_vm2, %v545_v42  ;;  %vm733_vm4 = vcmp.ge.f32.partialorder %v701_v43, 0.0  ;;  %v765_v50 = vmul.f32 0.01, %v701_v43  ;;  %v1006_v54 = vpop.f32.mrb[4].mxu0 }
  0xee   : > { %vm715_vm5 = vcmp.ge.f32.partialorder %v683_v44, 0.0  ;;  %v747_v51 = vmul.f32 0.01, %v683_v44  ;;  %v781_v52 = vsel %vm717_vm3, %v685_v39, %v749_v47  ;;  %v1022_v55 = vpop.f32.mrb[4].mxu1  ;;  %v702_v59 = vadd.f32 %v1176_v24, %v663_v45  ;;  %v493_v60 = vpop.f32.mrb[5].mxu0 }
  0xef   : > { %vm731_vm6 = vcmp.ge.f32.partialorder %v699_v48, 0.0  ;;  %v763_v53 = vmul.f32 0.01, %v699_v48  ;;  %vm718_vm7 = vcmp.ge.f32.partialorder %v686_v49, 0.0  ;;  %813 = vst.msk [vmem:[%s1214_s18 + $0x10] sm:$0xff] %vm604_vm2, %v781_v52  ;;  %v797_v56 = vsel %vm733_vm4, %v701_v43, %v765_v50  ;;  %v557_v61 = vpop.f32.mrb[5].mxu1 }
  0xf0   : > { %v779_v57 = vsel %vm715_vm5, %v683_v44, %v747_v51  ;;  %v750_v58 = vmul.f32 0.01, %v686_v49  ;;  %829 = vst.msk [vmem:[%s1214_s18 + $0x90] sm:$0xff] %vm604_vm2, %v797_v56  ;;  %v684_v63 = vadd.f32 %v1176_v24, %v645_v46  ;;  %v661_v0 = vmul.f32 %v1170_v20, %v545_v42  ;;  %v1007_v2 = vpop.f32.mrb[6].mxu0  ;;  %v1023_v3 = vpop.f32.mrb[6].mxu1 }
  0xf1   : > { %811 = vst.msk [vmem:[%s1214_s18] sm:$0xff] %vm604_vm2, %v779_v57  ;;  %v795_v62 = vsel %vm731_vm6, %v699_v48, %v763_v53  ;;  %v502_v1 = vadd.f32 %v1006_v54, %v1158_v18  ;;  %vm734_vm8 = vcmp.ge.f32.partialorder %v702_v59, 0.0  ;;  %v766_v5 = vmul.f32 0.01, %v702_v59  ;;  %v496_v7 = vpop.f32.mrb[7].mxu0  ;;  %v560_v8 = vpop.f32.mrb[7].mxu1 }
  0xf2   : > { %827 = vst.msk [vmem:[%s1214_s18 + $0x80] sm:$0xff] %vm604_vm2, %v795_v62  ;;  %v782_v4 = vsel %vm718_vm7, %v686_v49, %v750_v58  ;;  %v566_v6 = vadd.f32 %v1022_v55, %v1158_v18  ;;  %vm716_vm9 = vcmp.ge.f32.partialorder %v684_v63, 0.0  ;;  %v748_v9 = vmul.f32 0.01, %v684_v63 }
  0xf3   : > { %814 = vst.msk [vmem:[%s1214_s18 + $0x18] sm:$0xff] %vm604_vm2, %v782_v4  ;;  %v700_v10 = vadd.f32 %v1176_v24, %v661_v0  ;;  %611 = vst.msk [vmem:[%s1165_s11 + $0x30] sm:$0xff] %vm604_vm2, %v502_v1  ;;  %v650_v11 = vmul.f32 %v1170_v20, %v502_v1  ;;  %v798_v12 = vsel %vm734_vm8, %v702_v59, %v766_v5 }
  0xf4   : > { %627 = vst.msk [vmem:[%s1165_s11 + $0xb0] sm:$0xff] %vm604_vm2, %v566_v6  ;;  %v666_v13 = vmul.f32 %v1170_v20, %v566_v6  ;;  %v494_v14 = vadd.f32 %v1158_v18, %v493_v60  ;;  %v558_v15 = vadd.f32 %v1158_v18, %v557_v61  ;;  %830 = vst.msk [vmem:[%s1214_s18 + $0x98] sm:$0xff] %vm604_vm2, %v798_v12 }
  0xf5   : > { %v780_v16 = vsel %vm716_vm9, %v684_v63, %v748_v9  ;;  %vm732_vm10 = vcmp.ge.f32.partialorder %v700_v10, 0.0  ;;  %v764_v17 = vmul.f32 0.01, %v700_v10  ;;  %v689_v19 = vadd.f32 %v1176_v24, %v650_v11  ;;  %v1010_v26 = vpop.f32.mrb[8].mxu0 }
  0xf6   : > { %812 = vst.msk [vmem:[%s1214_s18 + $0x8] sm:$0xff] %vm604_vm2, %v780_v16  ;;  %v705_v21 = vadd.f32 %v1176_v24, %v666_v13  ;;  %609 = vst.msk [vmem:[%s1165_s11 + $0x20] sm:$0xff] %vm604_vm2, %v494_v14  ;;  %v648_v22 = vmul.f32 %v1170_v20, %v494_v14  ;;  %v664_v23 = vmul.f32 %v1170_v20, %v558_v15  ;;  %v1026_v30 = vpop.f32.mrb[8].mxu1  ;;  %v509_v31 = vpop.f32.mrb[9].mxu0 }
  0xf7   : > { %625 = vst.msk [vmem:[%s1165_s11 + $0xa0] sm:$0xff] %vm604_vm2, %v558_v15  ;;  %v505_v25 = vadd.f32 %v1007_v2, %v1158_v18  ;;  %v796_v27 = vsel %vm732_vm10, %v700_v10, %v764_v17  ;;  %vm721_vm11 = vcmp.ge.f32.partialorder %v689_v19, 0.0  ;;  %v753_v28 = vmul.f32 0.01, %v689_v19  ;;  %v573_v35 = vpop.f32.mrb[9].mxu1  ;;  %v1265_v36 = vpop.f32.mrb[10].mxu0 }
  0xf8   : > { %v569_v29 = vadd.f32 %v1023_v3, %v1158_v18  ;;  %828 = vst.msk [vmem:[%s1214_s18 + $0x88] sm:$0xff] %vm604_vm2, %v796_v27  ;;  %vm737_vm12 = vcmp.ge.f32.partialorder %v705_v21, 0.0  ;;  %v769_v32 = vmul.f32 0.01, %v705_v21  ;;  %v687_v33 = vadd.f32 %v1176_v24, %v648_v22  ;;  %v1272_v41 = vpop.f32.mrb[10].mxu1  ;;  %v1274_v42 = vpop.f32.mrb[11].mxu0 }
  0xf9   : > { %v703_v34 = vadd.f32 %v1176_v24, %v664_v23  ;;  %612 = vst.msk [vmem:[%s1165_s11 + $0x38] sm:$0xff] %vm604_vm2, %v505_v25  ;;  %v785_v37 = vsel %vm721_vm11, %v689_v19, %v753_v28  ;;  %v651_v38 = vmul.f32 %v1170_v20, %v505_v25  ;;  %v497_v40 = vadd.f32 %v1158_v18, %v496_v7  ;;  %v1278_v45 = vpop.f32.mrb[11].mxu1 }
  0xfa   : > { %628 = vst.msk [vmem:[%s1165_s11 + $0xb8] sm:$0xff] %vm604_vm2, %v569_v29  ;;  %v667_v39 = vmul.f32 %v1170_v20, %v569_v29  ;;  %817 = vst.msk [vmem:[%s1214_s18 + $0x30] sm:$0xff] %vm604_vm2, %v785_v37  ;;  %v801_v43 = vsel %vm737_vm12, %v705_v21, %v769_v32  ;;  %vm719_vm13 = vcmp.ge.f32.partialorder %v687_v33, 0.0  ;;  %v751_v44 = vmul.f32 0.01, %v687_v33 }
  0xfb   : > { %vm735_vm14 = vcmp.ge.f32.partialorder %v703_v34, 0.0  ;;  %833 = vst.msk [vmem:[%s1214_s18 + $0xb0] sm:$0xff] %vm604_vm2, %v801_v43  ;;  %v767_v46 = vmul.f32 0.01, %v703_v34  ;;  %v690_v47 = vadd.f32 %v1176_v24, %v651_v38  ;;  %610 = vst.msk [vmem:[%s1165_s11 + $0x28] sm:$0xff] %vm604_vm2, %v497_v40  ;;  %v649_v49 = vmul.f32 %v1170_v20, %v497_v40 }
  0xfc   : > { %v706_v48 = vadd.f32 %v1176_v24, %v667_v39  ;;  %v783_v50 = vsel %vm719_vm13, %v687_v33, %v751_v44  ;;  %v561_v51 = vadd.f32 %v1158_v18, %v560_v8  ;;  %v518_v52 = vadd.f32 %v1010_v26, %v1158_v18 }
  0xfd   : > { %v582_v53 = vadd.f32 %v1026_v30, %v1158_v18  ;;  %815 = vst.msk [vmem:[%s1214_s18 + $0x20] sm:$0xff] %vm604_vm2, %v783_v50  ;;  %v799_v54 = vsel %vm735_vm14, %v703_v34, %v767_v46  ;;  %vm722_vm15 = vcmp.ge.f32.partialorder %v690_v47, 0.0  ;;  %v754_v55 = vmul.f32 0.01, %v690_v47  ;;  %v1014_v60 = vpop.f32.mrb[12].mxu0 }
  0xfe   : > { %vm738_vm0 = vcmp.ge.f32.partialorder %v706_v48, 0.0  ;;  %831 = vst.msk [vmem:[%s1214_s18 + $0xa0] sm:$0xff] %vm604_vm2, %v799_v54  ;;  %v770_v56 = vmul.f32 0.01, %v706_v48  ;;  %v688_v57 = vadd.f32 %v1176_v24, %v649_v49  ;;  %626 = vst.msk [vmem:[%s1165_s11 + $0xa8] sm:$0xff] %vm604_vm2, %v561_v51  ;;  %v665_v58 = vmul.f32 %v1170_v20, %v561_v51  ;;  %v1030_v1 = vpop.f32.mrb[12].mxu1 }
  0xff   : > { %615 = vst.msk [vmem:[%s1165_s11 + $0x50] sm:$0xff] %vm604_vm2, %v518_v52  ;;  %v654_v59 = vmul.f32 %v1170_v20, %v518_v52  ;;  %631 = vst.msk [vmem:[%s1165_s11 + $0xd0] sm:$0xff] %vm604_vm2, %v582_v53  ;;  %v786_v61 = vsel %vm722_vm15, %v690_v47, %v754_v55  ;;  %v670_v62 = vmul.f32 %v1170_v20, %v582_v53  ;;  %v1306_v2 = vpop.f32.mrb[13].mxu0  ;;  %v1312_v6 = vpop.f32.mrb[13].mxu1 }
 0x100   : > { %v510_v63 = vadd.f32 %v1158_v18, %v509_v31  ;;  %v574_v0 = vadd.f32 %v1158_v18, %v573_v35  ;;  %818 = vst.msk [vmem:[%s1214_s18 + $0x38] sm:$0xff] %vm604_vm2, %v786_v61  ;;  %v802_v3 = vsel %vm738_vm0, %v706_v48, %v770_v56  ;;  %vm720_vm1 = vcmp.ge.f32.partialorder %v688_v57, 0.0  ;;  %v1314_v7 = vpop.f32.mrb[14].mxu0  ;;  %v1326_v12 = vpop.f32.mrb[14].mxu1 }
 0x101   : > { %v752_v4 = vmul.f32 0.01, %v688_v57  ;;  %v704_v5 = vadd.f32 %v1176_v24, %v665_v58  ;;  %834 = vst.msk [vmem:[%s1214_s18 + $0xb8] sm:$0xff] %vm604_vm2, %v802_v3  ;;  %v693_v8 = vadd.f32 %v1176_v24, %v654_v59  ;;  %v709_v9 = vadd.f32 %v1176_v24, %v670_v62  ;;  %v1328_v13 = vpop.f32.mrb[15].mxu0  ;;  %v1332_v17 = vpop.f32.mrb[15].mxu1 }
 0x102   : > { %613 = vst.msk [vmem:[%s1165_s11 + $0x40] sm:$0xff] %vm604_vm2, %v510_v63  ;;  %v652_v10 = vmul.f32 %v1170_v20, %v510_v63  ;;  %629 = vst.msk [vmem:[%s1165_s11 + $0xc0] sm:$0xff] %vm604_vm2, %v574_v0  ;;  %v668_v11 = vmul.f32 %v1170_v20, %v574_v0  ;;  %v521_v16 = vadd.f32 %v1265_v36, %v1158_v18 }
 0x103   : > { %v784_v14 = vsel %vm720_vm1, %v688_v57, %v752_v4  ;;  %vm736_vm3 = vcmp.ge.f32.partialorder %v704_v5, 0.0  ;;  %v768_v15 = vmul.f32 0.01, %v704_v5  ;;  %vm725_vm4 = vcmp.ge.f32.partialorder %v693_v8, 0.0 }
 0x104   : > { %816 = vst.msk [vmem:[%s1214_s18 + $0x28] sm:$0xff] %vm604_vm2, %v784_v14  ;;  %v757_v19 = vmul.f32 0.01, %v693_v8  ;;  %vm741_vm5 = vcmp.ge.f32.partialorder %v709_v9, 0.0  ;;  %v773_v21 = vmul.f32 0.01, %v709_v9  ;;  %v691_v23 = vadd.f32 %v1176_v24, %v652_v10 }
 0x105   : > { %v800_v22 = vsel %vm736_vm3, %v704_v5, %v768_v15  ;;  %v707_v25 = vadd.f32 %v1176_v24, %v668_v11  ;;  %616 = vst.msk [vmem:[%s1165_s11 + $0x58] sm:$0xff] %vm604_vm2, %v521_v16  ;;  %v655_v26 = vmul.f32 %v1170_v20, %v521_v16  ;;  %v585_v29 = vadd.f32 %v1272_v41, %v1158_v18 }
 0x106   : > { %832 = vst.msk [vmem:[%s1214_s18 + $0xa8] sm:$0xff] %vm604_vm2, %v800_v22  ;;  %v789_v27 = vsel %vm725_vm4, %v693_v8, %v757_v19  ;;  %v805_v28 = vsel %vm741_vm5, %v709_v9, %v773_v21  ;;  %v513_v30 = vadd.f32 %v1158_v18, %v1274_v42  ;;  %vm723_vm6 = vcmp.ge.f32.partialorder %v691_v23, 0.0 }
 0x107   : > { %821 = vst.msk [vmem:[%s1214_s18 + $0x50] sm:$0xff] %vm604_vm2, %v789_v27  ;;  %837 = vst.msk [vmem:[%s1214_s18 + $0xd0] sm:$0xff] %vm604_vm2, %v805_v28  ;;  %v755_v31 = vmul.f32 0.01, %v691_v23  ;;  %vm739_vm7 = vcmp.ge.f32.partialorder %v707_v25, 0.0  ;;  %v694_v33 = vadd.f32 %v1176_v24, %v655_v26  ;;  %v671_v34 = vmul.f32 %v1170_v20, %v585_v29 }
 0x108   : > { %v771_v32 = vmul.f32 0.01, %v707_v25  ;;  %632 = vst.msk [vmem:[%s1165_s11 + $0xd8] sm:$0xff] %vm604_vm2, %v585_v29  ;;  %614 = vst.msk [vmem:[%s1165_s11 + $0x48] sm:$0xff] %vm604_vm2, %v513_v30  ;;  %v653_v35 = vmul.f32 %v1170_v20, %v513_v30  ;;  %v577_v36 = vadd.f32 %v1158_v18, %v1278_v45  ;;  %v534_v39 = vadd.f32 %v1014_v60, %v1158_v18 }
 0x109   : > { %v787_v37 = vsel %vm723_vm6, %v691_v23, %v755_v31  ;;  %v598_v40 = vadd.f32 %v1030_v1, %v1158_v18  ;;  %vm726_vm8 = vcmp.ge.f32.partialorder %v694_v33, 0.0  ;;  %v758_v41 = vmul.f32 0.01, %v694_v33 }
 0x10a   : > { %v803_v38 = vsel %vm739_vm7, %v707_v25, %v771_v32  ;;  %819 = vst.msk [vmem:[%s1214_s18 + $0x40] sm:$0xff] %vm604_vm2, %v787_v37  ;;  %v710_v42 = vadd.f32 %v1176_v24, %v671_v34  ;;  %v692_v43 = vadd.f32 %v1176_v24, %v653_v35  ;;  %630 = vst.msk [vmem:[%s1165_s11 + $0xc8] sm:$0xff] %vm604_vm2, %v577_v36 }
 0x10b   : > { %835 = vst.msk [vmem:[%s1214_s18 + $0xc0] sm:$0xff] %vm604_vm2, %v803_v38  ;;  %v669_v44 = vmul.f32 %v1170_v20, %v577_v36  ;;  %619 = vst.msk [vmem:[%s1165_s11 + $0x70] sm:$0xff] %vm604_vm2, %v534_v39  ;;  %v658_v45 = vmul.f32 %v1170_v20, %v534_v39  ;;  %v674_v46 = vmul.f32 %v1170_v20, %v598_v40 }
 0x10c   : > { %635 = vst.msk [vmem:[%s1165_s11 + $0xf0] sm:$0xff] %vm604_vm2, %v598_v40  ;;  %v526_v47 = vadd.f32 %v1158_v18, %v1306_v2  ;;  %v790_v48 = vsel %vm726_vm8, %v694_v33, %v758_v41  ;;  %vm742_vm9 = vcmp.ge.f32.partialorder %v710_v42, 0.0  ;;  %v774_v49 = vmul.f32 0.01, %v710_v42 }
 0x10d   : > { %vm724_vm10 = vcmp.ge.f32.partialorder %v692_v43, 0.0  ;;  %822 = vst.msk [vmem:[%s1214_s18 + $0x58] sm:$0xff] %vm604_vm2, %v790_v48  ;;  %v756_v50 = vmul.f32 0.01, %v692_v43  ;;  %v708_v51 = vadd.f32 %v1176_v24, %v669_v44  ;;  %v697_v52 = vadd.f32 %v1176_v24, %v658_v45 }
 0x10e   : > { %v713_v53 = vadd.f32 %v1176_v24, %v674_v46  ;;  %617 = vst.msk [vmem:[%s1165_s11 + $0x60] sm:$0xff] %vm604_vm2, %v526_v47  ;;  %v806_v54 = vsel %vm742_vm9, %v710_v42, %v774_v49  ;;  %v656_v55 = vmul.f32 %v1170_v20, %v526_v47  ;;  %v590_v56 = vadd.f32 %v1158_v18, %v1312_v6 }
 0x10f   : > { %v537_v57 = vadd.f32 %v1314_v7, %v1158_v18  ;;  %838 = vst.msk [vmem:[%s1214_s18 + $0xd8] sm:$0xff] %vm604_vm2, %v806_v54  ;;  %v788_v58 = vsel %vm724_vm10, %v692_v43, %v756_v50  ;;  %vm740_vm11 = vcmp.ge.f32.partialorder %v708_v51, 0.0  ;;  %v772_v59 = vmul.f32 0.01, %v708_v51 }
 0x110   : > { %vm729_vm12 = vcmp.ge.f32.partialorder %v697_v52, 0.0  ;;  %820 = vst.msk [vmem:[%s1214_s18 + $0x48] sm:$0xff] %vm604_vm2, %v788_v58  ;;  %v761_v60 = vmul.f32 0.01, %v697_v52  ;;  %vm745_vm13 = vcmp.ge.f32.partialorder %v713_v53, 0.0  ;;  %v695_v62 = vadd.f32 %v1176_v24, %v656_v55  ;;  %633 = vst.msk [vmem:[%s1165_s11 + $0xe0] sm:$0xff] %vm604_vm2, %v590_v56 }
 0x111   : > { %v777_v61 = vmul.f32 0.01, %v713_v53  ;;  %620 = vst.msk [vmem:[%s1165_s11 + $0x78] sm:$0xff] %vm604_vm2, %v537_v57  ;;  %v804_v63 = vsel %vm740_vm11, %v708_v51, %v772_v59  ;;  %v672_v0 = vmul.f32 %v1170_v20, %v590_v56  ;;  %v659_v1 = vmul.f32 %v1170_v20, %v537_v57 }
 0x112   : > { %v601_v2 = vadd.f32 %v1326_v12, %v1158_v18  ;;  %836 = vst.msk [vmem:[%s1214_s18 + $0xc8] sm:$0xff] %vm604_vm2, %v804_v63  ;;  %v793_v3 = vsel %vm729_vm12, %v697_v52, %v761_v60  ;;  %vm727_vm14 = vcmp.ge.f32.partialorder %v695_v62, 0.0  ;;  %v759_v5 = vmul.f32 0.01, %v695_v62 }
 0x113   : > { %v809_v4 = vsel %vm745_vm13, %v713_v53, %v777_v61  ;;  %825 = vst.msk [vmem:[%s1214_s18 + $0x70] sm:$0xff] %vm604_vm2, %v793_v3  ;;  %v711_v6 = vadd.f32 %v1176_v24, %v672_v0  ;;  %v698_v7 = vadd.f32 %v1176_v24, %v659_v1  ;;  %v529_v9 = vadd.f32 %v1158_v18, %v1328_v13 }
 0x114   : > { %841 = vst.msk [vmem:[%s1214_s18 + $0xf0] sm:$0xff] %vm604_vm2, %v809_v4  ;;  %636 = vst.msk [vmem:[%s1165_s11 + $0xf8] sm:$0xff] %vm604_vm2, %v601_v2  ;;  %v675_v8 = vmul.f32 %v1170_v20, %v601_v2  ;;  %v791_v10 = vsel %vm727_vm14, %v695_v62, %v759_v5  ;;  %v593_v11 = vadd.f32 %v1158_v18, %v1332_v17 }
 0x115   : > { %823 = vst.msk [vmem:[%s1214_s18 + $0x60] sm:$0xff] %vm604_vm2, %v791_v10  ;;  %vm743_vm15 = vcmp.ge.f32.partialorder %v711_v6, 0.0  ;;  %v775_v12 = vmul.f32 0.01, %v711_v6  ;;  %vm730_vm0 = vcmp.ge.f32.partialorder %v698_v7, 0.0  ;;  %618 = vst.msk [vmem:[%s1165_s11 + $0x68] sm:$0xff] %vm604_vm2, %v529_v9  ;;  %v657_v16 = vmul.f32 %v1170_v20, %v529_v9 }
 0x116   : > { %v762_v14 = vmul.f32 0.01, %v698_v7  ;;  %v714_v15 = vadd.f32 %v1176_v24, %v675_v8  ;;  %634 = vst.msk [vmem:[%s1165_s11 + $0xe8] sm:$0xff] %vm604_vm2, %v593_v11  ;;  %v673_v13 = vmul.f32 %v1170_v20, %v593_v11 }
 0x117   : > { %v807_v19 = vsel %vm743_vm15, %v711_v6, %v775_v12  ;;  %v696_v21 = vadd.f32 %v1176_v24, %v657_v16 }
 0x118   : > { %v794_v18 = vsel %vm730_vm0, %v698_v7, %v762_v14  ;;  %839 = vst.msk [vmem:[%s1214_s18 + $0xe0] sm:$0xff] %vm604_vm2, %v807_v19  ;;  %vm746_vm1 = vcmp.ge.f32.partialorder %v714_v15, 0.0  ;;  %v778_v17 = vmul.f32 0.01, %v714_v15  ;;  %v712_v22 = vadd.f32 %v1176_v24, %v673_v13 }
 0x119   : > { %826 = vst.msk [vmem:[%s1214_s18 + $0x78] sm:$0xff] %vm604_vm2, %v794_v18  ;;  %vm728_vm3 = vcmp.ge.f32.partialorder %v696_v21, 0.0  ;;  %v760_v25 = vmul.f32 0.01, %v696_v21 }
 0x11a   : > { %v810_v23 = vsel %vm746_vm1, %v714_v15, %v778_v17  ;;  %vm744_vm4 = vcmp.ge.f32.partialorder %v712_v22, 0.0  ;;  %v776_v20 = vmul.f32 0.01, %v712_v22 }
 0x11b   : > { %842 = vst.msk [vmem:[%s1214_s18 + $0xf8] sm:$0xff] %vm604_vm2, %v810_v23  ;;  %v792_v26 = vsel %vm728_vm3, %v696_v21, %v760_v25 }
 0x11c   : > { %824 = vst.msk [vmem:[%s1214_s18 + $0x68] sm:$0xff] %vm604_vm2, %v792_v26  ;;  %v808_v27 = vsel %vm744_vm4, %v712_v22, %v776_v20 }
 0x11d   : > { %840 = vst.msk [vmem:[%s1214_s18 + $0xe8] sm:$0xff] %vm604_vm2, %v808_v27 }
 0x11e PF: > { %s17_s21 = sadd.s32 1, %s1066_s21  }
 0x11f   : > { %p14_p4 = scmp.ge.s32.totalorder %s17_s21, 4  }
 0x121   :  { %16 = sbr.rel (!%p14_p4) target bundleno = 1 (0x1), region = 82 }

// kernel: _lambda_.17
= control target key start
LH: loop header
LB: loop body
LE: loop exit
PB: predicated region body
PF: predicated region fallthrough
CT: control target
= control target key end

     0   :  { %s4308_s12 = smov 0   ;;  %s5111_s0 = inlined_call_operand.vmem [shape: f32[2,326,8], index: 0, kind: input, shape index: {}]   ;;  %s5112_s1 = inlined_call_operand.vmem [shape: bf16[9,8,8], index: 1, kind: input, shape index: {}]   ;;  %s5113_s2 = inlined_call_operand.vmem [shape: f32[1,8], index: 2, kind: input, shape index: {}]   ;;  %s5114_s3 = inlined_call_operand.vmem [shape: f32[2,288,8], index: 3, kind: output, shape index: {}]  }
   0x1 LB: > { %s3277_s13 = sadd.s32 4294967295, %s4286_s12   ;;  %p3281_p0 = scmp.ge.s32.totalorder %s4286_s12, 1  ;;  %s4286_s12 = sphi %s4308_s12, %s13_s12  }
   0x2   : > { %p137_p1 = scmp.lt.s32.totalorder %s4286_s12, 3 }
   0x4   : > { %p138_p2 = pnand %p3281_p0, %p137_p1 }
   0x5   : > { %vm338_vm0 = vcmask (!%p138_p2), 1043456   ;;  %v4319_v0 = vld [vmem:[%s5112_s1 + $0x10] sm:$0xf] (!%p138_p2)  ;;  %v3284_v1 = vld [vmem:[%s5112_s1 + $0x4] sm:$0xf] (!%p138_p2)  ;;  %p161_p3 = scmp.lt.s32.totalorder (!%p138_p2), %s3277_s13, 1 }
   0x6   : > { %141 = sbr.rel (%p138_p2) target bundleno = 565 (0x235), region = 32  ;;  %4264 = vmatprep.subr.msk.bf16.mxu0 (!%p138_p2), %vm338_vm0, %v4319_v0  ;;  %4260 = vmatprep.subr.msk.bf16.mxu1 (!%p138_p2), %vm338_vm0, %v3284_v1  ;;  %v4329_v2 = vsel (!%p138_p2), %vm338_vm0, %v4319_v0, 0  ;;  %v340_v3 = vsel (!%p138_p2), %vm338_vm0, %v3284_v1, 0  ;;  %v3378_v4 = vld [vmem:[%s5112_s1 + $0x14] sm:$0xf] (!%p138_p2)  ;;  %vm283_vm1 = vcmask (!%p138_p2), 64512  }
   0x7   : > { %3781 = vmatpush3.bf16.msra.mxu0 (!%p138_p2), %v4329_v2  ;;  %3629 = vmatpush3.bf16.msra.mxu1 (!%p138_p2), %v340_v3  ;;  %v226_v5 = vld [vmem:[%s5112_s1] sm:$0xf] (!%p138_p2)  ;;  %v1842_v20 = vsel (!%p138_p2), %vm338_vm0, %v3378_v4, 0  ;;  %v4369_v26 = vld [vmem:[%s5112_s1 + $0x18] sm:$0xf] (!%p138_p2) }
   0x8   : > { %4266 = vmatprep.subr.msk.bf16.mxu0 (!%p138_p2), %vm338_vm0, %v3378_v4  ;;  %4261 = vmatprep.subr.msk.bf16.mxu1 (!%p138_p2), %vm338_vm0, %v226_v5  ;;  %v574_v18 = vsel (!%p138_p2), %vm338_vm0, %v226_v5, 0  ;;  %v4374_v27 = vld [vmem:[%s5112_s1 + $0x8] sm:$0xf] (!%p138_p2) }
   0xd   : > { %s5116_s13 = smov (!%p161_p3, %s3277_s13), 1 }
   0xe   : > { %s4270_s22 = smul.u32 328, %s5116_s13 }
   0xf   : > { %s4271_s11 = smul.u32 288, %s5116_s13 }
  0x10   : > { %s4347_s25 = scalar_lea.vmem %s5111_s0, %s4270_s22 }
  0x11   : > { %v227_v6 = vld [vmem:[%s4347_s25 + $0x1] sm:$0xff]  ;;  %v228_v7 = vld [vmem:[%s4347_s25 + $0x9] sm:$0xff]  ;;  %v1405_v8 = vld [vmem:[%s4347_s25 + $0x13] sm:$0xff]  ;;  %s4988_s16 = scalar_lea.vmem %s5114_s3, %s4271_s11 }
  0x12   : > { %v263_v9 = vpack.c.bf16 %v228_v7, %v227_v6  ;;  %v1406_v10 = vld [vmem:[%s4347_s25 + $0x1b] sm:$0xff]  ;;  %v229_v11 = vld [vmem:[%s4347_s25 + $0x11] sm:$0xff]  ;;  %v1407_v15 = vld [vmem:[%s4347_s25 + $0x23] sm:$0xff] }
  0x13   : > { %v230_v12 = vld [vmem:[%s4347_s25 + $0x19] sm:$0xff]  ;;  %v1441_v13 = vpack.c.bf16 %v1406_v10, %v1405_v8  ;;  %v1408_v16 = vld [vmem:[%s4347_s25 + $0x2b] sm:$0xff]  ;;  %v231_v17 = vld [vmem:[%s4347_s25 + $0x21] sm:$0xff] }
  0x14   : > { %v264_v14 = vpack.c.bf16 %v230_v12, %v229_v11  ;;  %3630 = vmatprep.mubr.msk.bf16.mxu1 %vm283_vm1, %v263_v9  ;;  %v1442_v19 = vpack.c.bf16 %v1408_v16, %v1407_v15  ;;  %v232_v21 = vld [vmem:[%s4347_s25 + $0x29] sm:$0xff]  ;;  %v1409_v22 = vld [vmem:[%s4347_s25 + $0x33] sm:$0xff]  ;;  %v1410_v23 = vld [vmem:[%s4347_s25 + $0x3b] sm:$0xff] }
  0x15   : > { %3782 = vmatprep.mubr.msk.bf16.mxu0 %vm283_vm1, %v1441_v13  ;;  %v265_v24 = vpack.c.bf16 %v232_v21, %v231_v17  ;;  %v1443_v25 = vpack.c.bf16 %v1410_v23, %v1409_v22  ;;  %v233_v28 = vld [vmem:[%s4347_s25 + $0x31] sm:$0xff]  ;;  %v234_v29 = vld [vmem:[%s4347_s25 + $0x39] sm:$0xff]  ;;  %v1411_v30 = vld [vmem:[%s4347_s25 + $0x43] sm:$0xff] }
  0x16   : > { %3631 = vmatmul.mubr.msk.bf16.vlgmr.msra.gmra.mrb[0].mxu1 %vm283_vm1, %v264_v14  ;;  %3783 = vmatmul.mubr.msk.bf16.vlgmr.msra.gmra.mrb[0].mxu0 %vm283_vm1, %v1442_v19  ;;  %v1412_v31 = vld [vmem:[%s4347_s25 + $0x4b] sm:$0xff]  ;;  %v235_v32 = vld [vmem:[%s4347_s25 + $0x41] sm:$0xff]  ;;  %v1413_v34 = vld [vmem:[%s4347_s25 + $0x53] sm:$0xff]  ;;  %v266_v36 = vpack.c.bf16 %v234_v29, %v233_v28  ;;  %v2168_v28 = vsel %vm338_vm0, %v4369_v26, 0 }
  0x17   : > { %3667 = vmatpush3.bf16.msra.mxu1 %v574_v18  ;;  %3819 = vmatpush3.bf16.msra.mxu0 %v1842_v20  ;;  %v236_v33 = vld [vmem:[%s4347_s25 + $0x49] sm:$0xff]  ;;  %v1414_v35 = vld [vmem:[%s4347_s25 + $0x5b] sm:$0xff]  ;;  %v1444_v37 = vpack.c.bf16 %v1412_v31, %v1411_v30  ;;  %v237_v40 = vld [vmem:[%s4347_s25 + $0x51] sm:$0xff] }
  0x18   : > { %3634 = vmatprep.mubr.msk.bf16.mxu1 %vm283_vm1, %v265_v24  ;;  %3786 = vmatprep.mubr.msk.bf16.mxu0 %vm283_vm1, %v1443_v25  ;;  %v267_v38 = vpack.c.bf16 %v236_v33, %v235_v32  ;;  %v1445_v39 = vpack.c.bf16 %v1414_v35, %v1413_v34  ;;  %v238_v41 = vld [vmem:[%s4347_s25 + $0x59] sm:$0xff]  ;;  %v1415_v42 = vld [vmem:[%s4347_s25 + $0x63] sm:$0xff]  ;;  %v1416_v43 = vld [vmem:[%s4347_s25 + $0x6b] sm:$0xff] }
  0x19   : > { %4267 = vmatprep.subr.msk.bf16.mxu0 %vm338_vm0, %v4369_v26  ;;  %4262 = vmatprep.subr.msk.bf16.mxu1 %vm338_vm0, %v4374_v27  ;;  %v239_v44 = vld [vmem:[%s4347_s25 + $0x61] sm:$0xff]  ;;  %v240_v45 = vld [vmem:[%s4347_s25 + $0x69] sm:$0xff]  ;;  %v1417_v46 = vld [vmem:[%s4347_s25 + $0x73] sm:$0xff]  ;;  %v268_v48 = vpack.c.bf16 %v238_v41, %v237_v40  ;;  %v1446_v49 = vpack.c.bf16 %v1416_v43, %v1415_v42 }
  0x1a   : > { %v1418_v47 = vld [vmem:[%s4347_s25 + $0x7b] sm:$0xff]  ;;  %v269_v50 = vpack.c.bf16 %v240_v45, %v239_v44  ;;  %v241_v52 = vld [vmem:[%s4347_s25 + $0x71] sm:$0xff]  ;;  %v1419_v54 = vld [vmem:[%s4347_s25 + $0x83] sm:$0xff] }
  0x1b   : > { %v1447_v51 = vpack.c.bf16 %v1418_v47, %v1417_v46  ;;  %v242_v53 = vld [vmem:[%s4347_s25 + $0x79] sm:$0xff]  ;;  %v1420_v55 = vld [vmem:[%s4347_s25 + $0x8b] sm:$0xff]  ;;  %v243_v56 = vld [vmem:[%s4347_s25 + $0x81] sm:$0xff] }
  0x1c   : > { %v244_v57 = vld [vmem:[%s4347_s25 + $0x89] sm:$0xff]  ;;  %v1421_v58 = vld [vmem:[%s4347_s25 + $0x93] sm:$0xff]  ;;  %v1422_v59 = vld [vmem:[%s4347_s25 + $0x9b] sm:$0xff]  ;;  %v270_v60 = vpack.c.bf16 %v242_v53, %v241_v52  ;;  %v1448_v61 = vpack.c.bf16 %v1420_v55, %v1419_v54 }
  0x1d   : > { %v271_v62 = vpack.c.bf16 %v244_v57, %v243_v56  ;;  %v1449_v63 = vpack.c.bf16 %v1422_v59, %v1421_v58  ;;  %v245_v1 = vld [vmem:[%s4347_s25 + $0x91] sm:$0xff]  ;;  %v246_v3 = vld [vmem:[%s4347_s25 + $0x99] sm:$0xff]  ;;  %v1423_v4 = vld [vmem:[%s4347_s25 + $0xa3] sm:$0xff] }
  0x1e   : > { %3635 = vmatmul.mubr.msk.bf16.gmra.mrb[4].mxu1 %vm283_vm1, %v266_v36  ;;  %3787 = vmatmul.mubr.msk.bf16.gmra.mrb[4].mxu0 %vm283_vm1, %v1444_v37  ;;  %v1424_v5 = vld [vmem:[%s4347_s25 + $0xab] sm:$0xff]  ;;  %v247_v6 = vld [vmem:[%s4347_s25 + $0xa1] sm:$0xff]  ;;  %v1731_v8 = vld [vmem:[%s4347_s25 + $0x14] sm:$0xff]  ;;  %v272_v10 = vpack.c.bf16 %v246_v3, %v245_v1 }
  0x1f   : > { %3638 = vmatprep.mubr.msk.bf16.mxu1 %vm283_vm1, %v267_v38  ;;  %3790 = vmatprep.mubr.msk.bf16.mxu0 %vm283_vm1, %v1445_v39  ;;  %v248_v7 = vld [vmem:[%s4347_s25 + $0xa9] sm:$0xff]  ;;  %v1732_v9 = vld [vmem:[%s4347_s25 + $0x1c] sm:$0xff]  ;;  %v1450_v11 = vpack.c.bf16 %v1424_v5, %v1423_v4  ;;  %v249_v14 = vld [vmem:[%s4347_s25 + $0xb1] sm:$0xff] }
  0x20   : > { %v273_v12 = vpack.c.bf16 %v248_v7, %v247_v6  ;;  %v1767_v13 = vpack.c.bf16 %v1732_v9, %v1731_v8  ;;  %v250_v15 = vld [vmem:[%s4347_s25 + $0xb9] sm:$0xff]  ;;  %v1733_v16 = vld [vmem:[%s4347_s25 + $0x24] sm:$0xff]  ;;  %v1734_v17 = vld [vmem:[%s4347_s25 + $0x2c] sm:$0xff] }
  0x21   : > { %v251_v18 = vld [vmem:[%s4347_s25 + $0xc1] sm:$0xff]  ;;  %v252_v19 = vld [vmem:[%s4347_s25 + $0xc9] sm:$0xff]  ;;  %v1735_v20 = vld [vmem:[%s4347_s25 + $0x34] sm:$0xff]  ;;  %v274_v22 = vpack.c.bf16 %v250_v15, %v249_v14  ;;  %v4439_v23 = vpack.c.bf16 %v1734_v17, %v1733_v16  ;;  %v864_v15 = vsel %vm338_vm0, %v4374_v27, 0 }
  0x22   : > { %v1736_v21 = vld [vmem:[%s4347_s25 + $0x3c] sm:$0xff]  ;;  %v275_v24 = vpack.c.bf16 %v252_v19, %v251_v18  ;;  %v253_v30 = vld [vmem:[%s4347_s25 + $0xd1] sm:$0xff]  ;;  %v1737_v32 = vld [vmem:[%s4347_s25 + $0x44] sm:$0xff] }
  0x23   : > { %v4441_v25 = vpack.c.bf16 %v1736_v21, %v1735_v20  ;;  %v4449_v29 = vld [vmem:[%s5112_s1 + $0x1c] sm:$0xf]  ;;  %v1738_v26 = vld [vmem:[%s4347_s25 + $0x4c] sm:$0xff]  ;;  %v255_v33 = vld [vmem:[%s4347_s25 + $0xe1] sm:$0xff] }
  0x24   : > { %v254_v31 = vld [vmem:[%s4347_s25 + $0xd9] sm:$0xff]  ;;  %v256_v34 = vld [vmem:[%s4347_s25 + $0xe9] sm:$0xff]  ;;  %v4466_v38 = vpack.c.bf16 %v1738_v26, %v1737_v32  ;;  %v257_v41 = vld [vmem:[%s4347_s25 + $0xf1] sm:$0xff] }
  0x25   : > { %v1739_v35 = vld [vmem:[%s4347_s25 + $0x54] sm:$0xff]  ;;  %v1740_v36 = vld [vmem:[%s4347_s25 + $0x5c] sm:$0xff]  ;;  %v276_v37 = vpack.c.bf16 %v254_v31, %v253_v30  ;;  %v277_v39 = vpack.c.bf16 %v256_v34, %v255_v33  ;;  %v1741_v43 = vld [vmem:[%s4347_s25 + $0x64] sm:$0xff] }
  0x26   : > { %3639 = vmatmul.mubr.msk.bf16.gmra.mrb[8].mxu1 %vm283_vm1, %v268_v48  ;;  %3791 = vmatmul.mubr.msk.bf16.gmra.mrb[8].mxu0 %vm283_vm1, %v1446_v49  ;;  %v4468_v40 = vpack.c.bf16 %v1740_v36, %v1739_v35  ;;  %v258_v42 = vld [vmem:[%s4347_s25 + $0xf9] sm:$0xff]  ;;  %v1742_v44 = vld [vmem:[%s4347_s25 + $0x6c] sm:$0xff]  ;;  %v259_v45 = vld [vmem:[%s4347_s25 + $0x101] sm:$0xff] }
  0x27   : > { %3642 = vmatprep.mubr.msk.bf16.mxu1 %vm283_vm1, %v269_v50  ;;  %3794 = vmatprep.mubr.msk.bf16.mxu0 %vm283_vm1, %v1447_v51  ;;  %v260_v46 = vld [vmem:[%s4347_s25 + $0x109] sm:$0xff]  ;;  %v1743_v47 = vld [vmem:[%s4347_s25 + $0x74] sm:$0xff]  ;;  %v1744_v48 = vld [vmem:[%s4347_s25 + $0x7c] sm:$0xff]  ;;  %v278_v49 = vpack.c.bf16 %v258_v42, %v257_v41  ;;  %v4484_v50 = vpack.c.bf16 %v1742_v44, %v1741_v43 }
  0x28   : > { %v279_v51 = vpack.c.bf16 %v260_v46, %v259_v45  ;;  %v4486_v52 = vpack.c.bf16 %v1744_v48, %v1743_v47  ;;  %v261_v53 = vld [vmem:[%s4347_s25 + $0x111] sm:$0xff]  ;;  %v262_v54 = vld [vmem:[%s4347_s25 + $0x119] sm:$0xff]  ;;  %v1745_v55 = vld [vmem:[%s4347_s25 + $0x84] sm:$0xff] }
  0x29   : > { %v1746_v56 = vld [vmem:[%s4347_s25 + $0x8c] sm:$0xff]  ;;  %v172_v57 = vld [vmem:[%s4347_s25] sm:$0xff]  ;;  %v1747_v59 = vld [vmem:[%s4347_s25 + $0x94] sm:$0xff] }
  0x2a   : > { %v173_v58 = vld [vmem:[%s4347_s25 + $0x8] sm:$0xff]  ;;  %v174_v3 = vld [vmem:[%s4347_s25 + $0x10] sm:$0xff]  ;;  %v175_v4 = vld [vmem:[%s4347_s25 + $0x18] sm:$0xff] }
  0x2b   : > { %v1749_v5 = vld [vmem:[%s4347_s25 + $0xa4] sm:$0xff]  ;;  %v1750_v6 = vld [vmem:[%s4347_s25 + $0xac] sm:$0xff]  ;;  %v1751_v9 = vld [vmem:[%s4347_s25 + $0xb4] sm:$0xff] }
  0x2c   : > { %v176_v7 = vld [vmem:[%s4347_s25 + $0x20] sm:$0xff]  ;;  %v177_v8 = vld [vmem:[%s4347_s25 + $0x28] sm:$0xff]  ;;  %v178_v17 = vld [vmem:[%s4347_s25 + $0x30] sm:$0xff] }
  0x2d   : > { %v4530_v16 = vld [vmem:[%s5112_s1 + $0xc] sm:$0xf]  ;;  %v179_v18 = vld [vmem:[%s4347_s25 + $0x38] sm:$0xff]  ;;  %v1753_v19 = vld [vmem:[%s4347_s25 + $0xc4] sm:$0xff] }
  0x2e   : > { %3643 = vmatmul.mubr.msk.bf16.gmra.mrb[12].mxu1 %vm283_vm1, %v270_v60  ;;  %3795 = vmatmul.mubr.msk.bf16.gmra.mrb[12].mxu0 %vm283_vm1, %v1448_v61  ;;  %v1748_v60 = vld [vmem:[%s4347_s25 + $0x9c] sm:$0xff]  ;;  %v280_v61 = vpack.c.bf16 %v262_v54, %v261_v53  ;;  %v1754_v27 = vld [vmem:[%s4347_s25 + $0xcc] sm:$0xff]  ;;  %v1757_v34 = vld [vmem:[%s4347_s25 + $0xe4] sm:$0xff] }
  0x2f   : > { %3646 = vmatprep.mubr.msk.bf16.mxu1 %vm283_vm1, %v271_v62  ;;  %3798 = vmatprep.mubr.msk.bf16.mxu0 %vm283_vm1, %v1449_v63  ;;  %v4502_v62 = vpack.c.bf16 %v1746_v56, %v1745_v55  ;;  %v208_v63 = vpack.c.bf16 %v173_v58, %v172_v57  ;;  %v4504_v1 = vpack.c.bf16 %v1748_v60, %v1747_v59  ;;  %v180_v20 = vld [vmem:[%s4347_s25 + $0x40] sm:$0xff]  ;;  %v181_v21 = vld [vmem:[%s4347_s25 + $0x48] sm:$0xff]  ;;  %v182_v26 = vld [vmem:[%s4347_s25 + $0x50] sm:$0xff] }
  0x30   : > { %v4547_v30 = vpack.c.bf16 %v1754_v27, %v1753_v19  ;;  %v212_v31 = vpack.c.bf16 %v181_v21, %v180_v20  ;;  %v183_v33 = vld [vmem:[%s4347_s25 + $0x58] sm:$0xff]  ;;  %v1758_v35 = vld [vmem:[%s4347_s25 + $0xec] sm:$0xff]  ;;  %v184_v36 = vld [vmem:[%s4347_s25 + $0x60] sm:$0xff] }
  0x31   : > { %v1760_v41 = vld [vmem:[%s4347_s25 + $0xfc] sm:$0xff]  ;;  %v213_v42 = vpack.c.bf16 %v183_v33, %v182_v26  ;;  %v4565_v43 = vpack.c.bf16 %v1758_v35, %v1757_v34  ;;  %v186_v46 = vld [vmem:[%s4347_s25 + $0x70] sm:$0xff]  ;;  %v1761_v48 = vld [vmem:[%s4347_s25 + $0x104] sm:$0xff] }
  0x32   : > { %v187_v47 = vld [vmem:[%s4347_s25 + $0x78] sm:$0xff]  ;;  %v189_v53 = vld [vmem:[%s4347_s25 + $0x88] sm:$0xff]  ;;  %v190_v60 = vld [vmem:[%s4347_s25 + $0x90] sm:$0xff] }
  0x33   : > { %v1763_v54 = vld [vmem:[%s4347_s25 + $0x114] sm:$0xff]  ;;  %v1764_v55 = vld [vmem:[%s4347_s25 + $0x11c] sm:$0xff]  ;;  %v215_v56 = vpack.c.bf16 %v187_v47, %v186_v46  ;;  %v201_v20 = vld [vmem:[%s4347_s25 + $0xe8] sm:$0xff] }
  0x34   : > { %v4585_v59 = vpack.c.bf16 %v1764_v55, %v1763_v54  ;;  %v4617_v19 = vld [vmem:[%s5112_s1 + $0x20] sm:$0xf]  ;;  %v199_v27 = vld [vmem:[%s4347_s25 + $0xd8] sm:$0xff]  ;;  %v754_v34 = vld [vmem:[%s4347_s25 + $0xa] sm:$0xff] }
  0x35   : > { %v207_v33 = vld [vmem:[%s4347_s25 + $0x118] sm:$0xff]  ;;  %v762_v46 = vld [vmem:[%s4347_s25 + $0x4a] sm:$0xff]  ;;  %v769_v54 = vld [vmem:[%s4347_s25 + $0x82] sm:$0xff] }
  0x36   : > { %3647 = vmatmul.mubr.msk.bf16.gmra.mrb[16].mxu1 %vm283_vm1, %v272_v10  ;;  %3799 = vmatmul.mubr.msk.bf16.gmra.mrb[16].mxu0 %vm283_vm1, %v1450_v11  ;;  %v1752_v10 = vld [vmem:[%s4347_s25 + $0xbc] sm:$0xff]  ;;  %v209_v11 = vpack.c.bf16 %v175_v4, %v174_v3  ;;  %v1766_v3 = vld [vmem:[%s4347_s25 + $0x12c] sm:$0xff] }
  0x37   : > { %3650 = vmatprep.mubr.msk.bf16.mxu1 %vm283_vm1, %v273_v12  ;;  %3820 = vmatprep.mubr.msk.bf16.mxu0 %vm283_vm1, %v1767_v13  ;;  %v4520_v12 = vpack.c.bf16 %v1750_v6, %v1749_v5  ;;  %v210_v13 = vpack.c.bf16 %v177_v8, %v176_v7  ;;  %v4522_v14 = vpack.c.bf16 %v1752_v10, %v1751_v9  ;;  %v192_v4 = vld [vmem:[%s4347_s25 + $0xa0] sm:$0xff]  ;;  %v193_v5 = vld [vmem:[%s4347_s25 + $0xa8] sm:$0xff]  ;;  %v194_v9 = vld [vmem:[%s4347_s25 + $0xb0] sm:$0xff] }
  0x38   : > { %v218_v8 = vpack.c.bf16 %v193_v5, %v192_v4  ;;  %v195_v10 = vld [vmem:[%s4347_s25 + $0xb8] sm:$0xff]  ;;  %v770_v55 = vld [vmem:[%s4347_s25 + $0x8a] sm:$0xff] }
  0x39   : > { %v2383_v4 = vld [vmem:[%s4347_s25 + $0x25] sm:$0xff] }
  0x3e   : > { %3651 = vmatmul.mubr.msk.bf16.gmra.mrb[20].mxu1 %vm283_vm1, %v274_v22  ;;  %3821 = vmatmul.mubr.msk.bf16.vlgmr.msra.gmra.mrb[0].mxu0 %vm283_vm1, %v4439_v23  ;;  %v1755_v22 = vld [vmem:[%s4347_s25 + $0xd4] sm:$0xff] }
  0x3f   : > { %3654 = vmatprep.mubr.msk.bf16.mxu1 %vm283_vm1, %v275_v24  ;;  %3857 = vmatpush3.bf16.msra.mxu0 %v2168_v28  ;;  %v1756_v24 = vld [vmem:[%s4347_s25 + $0xdc] sm:$0xff]  ;;  %v211_v28 = vpack.c.bf16 %v179_v18, %v178_v17  ;;  %v2494_v18 = vsel %vm338_vm0, %v4449_v29, 0 }
  0x40   : > { %3824 = vmatprep.mubr.msk.bf16.mxu0 %vm283_vm1, %v4441_v25  ;;  %4268 = vmatprep.subr.msk.bf16.mxu0 %vm338_vm0, %v4449_v29  ;;  %v4549_v32 = vpack.c.bf16 %v1756_v24, %v1755_v22  ;;  %v200_v29 = vld [vmem:[%s4347_s25 + $0xe0] sm:$0xff] }
  0x41   : > { %v222_v22 = vpack.c.bf16 %v201_v20, %v200_v29  ;;  %v204_v24 = vld [vmem:[%s4347_s25 + $0x100] sm:$0xff] }
  0x46   : > { %3655 = vmatmul.mubr.msk.bf16.gmra.mrb[24].mxu1 %vm283_vm1, %v276_v37  ;;  %3825 = vmatmul.mubr.msk.bf16.gmra.mrb[4].mxu0 %vm283_vm1, %v4466_v38  ;;  %v185_v37 = vld [vmem:[%s4347_s25 + $0x68] sm:$0xff] }
  0x47   : > { %3658 = vmatprep.mubr.msk.bf16.mxu1 %vm283_vm1, %v277_v39  ;;  %3828 = vmatprep.mubr.msk.bf16.mxu0 %vm283_vm1, %v4468_v40  ;;  %v1759_v39 = vld [vmem:[%s4347_s25 + $0xf4] sm:$0xff]  ;;  %v214_v44 = vpack.c.bf16 %v185_v37, %v184_v36 }
  0x48   : > { %v4567_v45 = vpack.c.bf16 %v1760_v41, %v1759_v39  ;;  %v756_v37 = vld [vmem:[%s4347_s25 + $0x1a] sm:$0xff]  ;;  %v758_v39 = vld [vmem:[%s4347_s25 + $0x2a] sm:$0xff] }
  0x4e   : > { %3659 = vmatmul.mubr.msk.bf16.gmra.mrb[28].mxu1 %vm283_vm1, %v278_v49  ;;  %3829 = vmatmul.mubr.msk.bf16.gmra.mrb[8].mxu0 %vm283_vm1, %v4484_v50  ;;  %v1762_v49 = vld [vmem:[%s4347_s25 + $0x10c] sm:$0xff] }
  0x4f   : > { %3662 = vmatprep.mubr.msk.bf16.mxu1 %vm283_vm1, %v279_v51  ;;  %3832 = vmatprep.mubr.msk.bf16.mxu0 %vm283_vm1, %v4486_v52  ;;  %v188_v51 = vld [vmem:[%s4347_s25 + $0x80] sm:$0xff]  ;;  %v4583_v57 = vpack.c.bf16 %v1762_v49, %v1761_v48  ;;  %v766_v49 = vld [vmem:[%s4347_s25 + $0x6a] sm:$0xff] }
  0x50   : > { %v216_v58 = vpack.c.bf16 %v189_v53, %v188_v51  ;;  %v764_v48 = vld [vmem:[%s4347_s25 + $0x5a] sm:$0xff] }
  0x56   : > { %3663 = vmatmul.mubr.msk.bf16.gmra.mrb[32].mxu1 %vm283_vm1, %v280_v61  ;;  %3833 = vmatmul.mubr.msk.bf16.gmra.mrb[12].mxu0 %vm283_vm1, %v4502_v62  ;;  %v191_v61 = vld [vmem:[%s4347_s25 + $0x98] sm:$0xff] }
  0x57   : > { %3668 = vmatprep.mubr.msk.bf16.mxu1 %vm283_vm1, %v208_v63  ;;  %3836 = vmatprep.mubr.msk.bf16.mxu0 %vm283_vm1, %v4504_v1  ;;  %v1765_v63 = vld [vmem:[%s4347_s25 + $0x124] sm:$0xff]  ;;  %v217_v6 = vpack.c.bf16 %v191_v61, %v190_v60  ;;  %v772_v60 = vld [vmem:[%s4347_s25 + $0x9a] sm:$0xff] }
  0x58   : > { %v4599_v7 = vpack.c.bf16 %v1766_v3, %v1765_v63  ;;  %v2092_v61 = vld [vmem:[%s4347_s25 + $0x13c] sm:$0xff]  ;;  %v774_v3 = vld [vmem:[%s4347_s25 + $0xaa] sm:$0xff] }
  0x59   : > { %v773_v63 = vld [vmem:[%s4347_s25 + $0xa2] sm:$0xff] }
  0x5e   : > { %3669 = vmatmul.mubr.msk.bf16.vlgmr.msra.gmra.mrb[0].mxu1 %vm283_vm1, %v209_v11  ;;  %3837 = vmatmul.mubr.msk.bf16.gmra.mrb[16].mxu0 %vm283_vm1, %v4520_v12  ;;  %v196_v11 = vld [vmem:[%s4347_s25 + $0xc0] sm:$0xff] }
  0x5f   : > { %3672 = vmatprep.mubr.msk.bf16.mxu1 %vm283_vm1, %v210_v13  ;;  %3840 = vmatprep.mubr.msk.bf16.mxu0 %vm283_vm1, %v4522_v14  ;;  %v197_v13 = vld [vmem:[%s4347_s25 + $0xc8] sm:$0xff] }
  0x60   : > { %3705 = vmatpush3.bf16.msra.mxu1 %v864_v15  ;;  %v219_v15 = vpack.c.bf16 %v195_v10, %v194_v9  ;;  %v220_v17 = vpack.c.bf16 %v197_v13, %v196_v11  ;;  %v776_v10 = vld [vmem:[%s4347_s25 + $0xba] sm:$0xff] }
  0x61   : > { %4263 = vmatprep.subr.msk.bf16.mxu1 %vm338_vm0, %v4530_v16  ;;  %v2385_v11 = vld [vmem:[%s4347_s25 + $0x35] sm:$0xff]  ;;  %v2386_v13 = vld [vmem:[%s4347_s25 + $0x3d] sm:$0xff] }
  0x62   : > { %v2420_v29 = vpack.c.bf16 %v2386_v13, %v2385_v11 }
  0x66   : > { %3673 = vmatmul.mubr.msk.bf16.gmra.mrb[4].mxu1 %vm283_vm1, %v211_v28  ;;  %3841 = vmatmul.mubr.msk.bf16.gmra.mrb[20].mxu0 %vm283_vm1, %v4547_v30  ;;  %v205_v28 = vld [vmem:[%s4347_s25 + $0x108] sm:$0xff] }
  0x67   : > { %3676 = vmatprep.mubr.msk.bf16.mxu1 %vm283_vm1, %v212_v31  ;;  %3844 = vmatprep.mubr.msk.bf16.mxu0 %vm283_vm1, %v4549_v32  ;;  %v224_v26 = vpack.c.bf16 %v205_v28, %v204_v24  ;;  %v2389_v24 = vld [vmem:[%s4347_s25 + $0x55] sm:$0xff]  ;;  %v2390_v28 = vld [vmem:[%s4347_s25 + $0x5d] sm:$0xff] }
  0x6e   : > { %3677 = vmatmul.mubr.msk.bf16.gmra.mrb[8].mxu1 %vm283_vm1, %v213_v42  ;;  %3845 = vmatmul.mubr.msk.bf16.gmra.mrb[24].mxu0 %vm283_vm1, %v4565_v43 }
  0x6f   : > { %3680 = vmatprep.mubr.msk.bf16.mxu1 %vm283_vm1, %v214_v44  ;;  %3848 = vmatprep.mubr.msk.bf16.mxu0 %vm283_vm1, %v4567_v45  ;;  %v1190_v44 = vsel %vm338_vm0, %v4530_v16, 0  ;;  %v761_v16 = vld [vmem:[%s4347_s25 + $0x42] sm:$0xff] }
  0x76   : > { %3681 = vmatmul.mubr.msk.bf16.gmra.mrb[12].mxu1 %vm283_vm1, %v215_v56  ;;  %3849 = vmatmul.mubr.msk.bf16.gmra.mrb[28].mxu0 %vm283_vm1, %v4583_v57 }
  0x77   : > { %3684 = vmatprep.mubr.msk.bf16.mxu1 %vm283_vm1, %v216_v58  ;;  %3852 = vmatprep.mubr.msk.bf16.mxu0 %vm283_vm1, %v4585_v59  ;;  %v4714_v58 = vpack.c.bf16 %v770_v55, %v769_v54  ;;  %v2399_v54 = vld [vmem:[%s4347_s25 + $0xa5] sm:$0xff]  ;;  %v2400_v55 = vld [vmem:[%s4347_s25 + $0xad] sm:$0xff] }
  0x7e   : > { %3685 = vmatmul.mubr.msk.bf16.gmra.mrb[16].mxu1 %vm283_vm1, %v217_v6  ;;  %3853 = vmatmul.mubr.msk.bf16.gmra.mrb[32].mxu0 %vm283_vm1, %v4599_v7 }
  0x7f   : > { %3688 = vmatprep.mubr.msk.bf16.mxu1 %vm283_vm1, %v218_v8  ;;  %3858 = vmatprep.mubr.msk.bf16.mxu0 %vm283_vm1, %v4439_v23  ;;  %v198_v23 = vld [vmem:[%s4347_s25 + $0xd0] sm:$0xff]  ;;  %v4734_v8 = vpack.c.bf16 %v774_v3, %v773_v63  ;;  %v2402_v63 = vld [vmem:[%s4347_s25 + $0xbd] sm:$0xff]  ;;  %v2403_v3 = vld [vmem:[%s4347_s25 + $0xc5] sm:$0xff] }
  0x80   : > { %v221_v21 = vpack.c.bf16 %v199_v27, %v198_v23  ;;  %v2388_v23 = vld [vmem:[%s4347_s25 + $0x4d] sm:$0xff] }
  0x86   : > { %3689 = vmatmul.mubr.msk.bf16.gmra.mrb[20].mxu1 %vm283_vm1, %v219_v15  ;;  %3859 = vmatmul.mubr.msk.bf16.vlgmr.msra.gmra.mrb[0].mxu0 %vm283_vm1, %v4441_v25  ;;  %v202_v25 = vld [vmem:[%s4347_s25 + $0xf0] sm:$0xff]  ;;  %v777_v15 = vld [vmem:[%s4347_s25 + $0xc2] sm:$0xff] }
  0x87   : > { %3692 = vmatprep.mubr.msk.bf16.mxu1 %vm283_vm1, %v220_v17  ;;  %3895 = vmatpush3.bf16.msra.mxu0 %v2494_v18  ;;  %v778_v17 = vld [vmem:[%s4347_s25 + $0xca] sm:$0xff] }
  0x88   : > { %3862 = vmatprep.mubr.msk.bf16.mxu0 %vm283_vm1, %v4466_v38  ;;  %4269 = vmatprep.subr.msk.bf16.mxu0 %vm338_vm0, %v4617_v19  ;;  %v203_v38 = vld [vmem:[%s4347_s25 + $0xf8] sm:$0xff]  ;;  %v2387_v18 = vld [vmem:[%s4347_s25 + $0x45] sm:$0xff]  ;;  %v4752_v20 = vpack.c.bf16 %v778_v17, %v777_v15  ;;  %v2412_v15 = vld [vmem:[%s4347_s25 + $0x10d] sm:$0xff] }
  0x89   : > { %v223_v31 = vpack.c.bf16 %v203_v38, %v202_v25  ;;  %v779_v25 = vld [vmem:[%s4347_s25 + $0xd2] sm:$0xff]  ;;  %v780_v38 = vld [vmem:[%s4347_s25 + $0xda] sm:$0xff] }
  0x8e   : > { %3693 = vmatmul.mubr.msk.bf16.gmra.mrb[24].mxu1 %vm283_vm1, %v221_v21  ;;  %3863 = vmatmul.mubr.msk.bf16.gmra.mrb[4].mxu0 %vm283_vm1, %v4468_v40  ;;  %v206_v40 = vld [vmem:[%s4347_s25 + $0x110] sm:$0xff]  ;;  %v2421_v21 = vpack.c.bf16 %v2388_v23, %v2387_v18  ;;  %v2415_v23 = vld [vmem:[%s4347_s25 + $0x125] sm:$0xff] }
  0x8f   : > { %3696 = vmatprep.mubr.msk.bf16.mxu1 %vm283_vm1, %v222_v22  ;;  %3866 = vmatprep.mubr.msk.bf16.mxu0 %vm283_vm1, %v4484_v50  ;;  %v753_v50 = vld [vmem:[%s4347_s25 + $0x2] sm:$0xff]  ;;  %v225_v35 = vpack.c.bf16 %v207_v33, %v206_v40  ;;  %v2820_v22 = vsel %vm338_vm0, %v4617_v19, 0  ;;  %v2392_v40 = vld [vmem:[%s4347_s25 + $0x6d] sm:$0xff]  ;;  %v4770_v33 = vpack.c.bf16 %v780_v38, %v779_v25 }
  0x90   : > { %v789_v36 = vpack.c.bf16 %v754_v34, %v753_v50  ;;  %v781_v19 = vld [vmem:[%s4347_s25 + $0xe2] sm:$0xff]  ;;  %v2422_v50 = vpack.c.bf16 %v2390_v28, %v2389_v24  ;;  %v2710_v38 = vld [vmem:[%s4347_s25 + $0x2e] sm:$0xff] }
  0x91   : > { %v2709_v25 = vld [vmem:[%s4347_s25 + $0x26] sm:$0xff] }
  0x92   : > { %v2745_v28 = vpack.c.bf16 %v2710_v38, %v2709_v25  ;;  %v2737_v25 = vld [vmem:[%s4347_s25 + $0x106] sm:$0xff]  ;;  %v2738_v38 = vld [vmem:[%s4347_s25 + $0x10e] sm:$0xff] }
  0x96   : > { %3697 = vmatmul.mubr.msk.bf16.gmra.mrb[28].mxu1 %vm283_vm1, %v223_v31  ;;  %3867 = vmatmul.mubr.msk.bf16.gmra.mrb[8].mxu0 %vm283_vm1, %v4486_v52  ;;  %v755_v52 = vld [vmem:[%s4347_s25 + $0x12] sm:$0xff]  ;;  %v782_v31 = vld [vmem:[%s4347_s25 + $0xea] sm:$0xff] }
  0x97   : > { %3700 = vmatprep.mubr.msk.bf16.mxu1 %vm283_vm1, %v224_v26  ;;  %3870 = vmatprep.mubr.msk.bf16.mxu0 %vm283_vm1, %v4502_v62  ;;  %v757_v62 = vld [vmem:[%s4347_s25 + $0x22] sm:$0xff]  ;;  %v4660_v41 = vpack.c.bf16 %v756_v37, %v755_v52  ;;  %v4772_v34 = vpack.c.bf16 %v782_v31, %v781_v19  ;;  %v784_v52 = vld [vmem:[%s4347_s25 + $0xfa] sm:$0xff]  ;;  %v2714_v31 = vld [vmem:[%s4347_s25 + $0x4e] sm:$0xff] }
  0x98   : > { %v4662_v42 = vpack.c.bf16 %v758_v39, %v757_v62  ;;  %v2391_v26 = vld [vmem:[%s4347_s25 + $0x65] sm:$0xff]  ;;  %v2393_v37 = vld [vmem:[%s4347_s25 + $0x75] sm:$0xff]  ;;  %v2394_v62 = vld [vmem:[%s4347_s25 + $0x7d] sm:$0xff] }
  0x99   : > { %v785_v39 = vld [vmem:[%s4347_s25 + $0x102] sm:$0xff] }
  0x9a   : > { %v2713_v19 = vld [vmem:[%s4347_s25 + $0x46] sm:$0xff] }
  0x9e   : > { %3701 = vmatmul.mubr.msk.bf16.gmra.mrb[32].mxu1 %vm283_vm1, %v225_v35  ;;  %3871 = vmatmul.mubr.msk.bf16.gmra.mrb[12].mxu0 %vm283_vm1, %v4504_v1  ;;  %v759_v1 = vld [vmem:[%s4347_s25 + $0x32] sm:$0xff]  ;;  %v2423_v35 = vpack.c.bf16 %v2392_v40, %v2391_v26  ;;  %v2747_v40 = vpack.c.bf16 %v2714_v31, %v2713_v19  ;;  %v1439_v19 = vld [vmem:[%s4347_s25 + $0x123] sm:$0xff] }
  0x9f   : > { %3706 = vmatprep.mubr.msk.bf16.mxu1 %vm283_vm1, %v789_v36  ;;  %3874 = vmatprep.mubr.msk.bf16.mxu0 %vm283_vm1, %v4520_v12  ;;  %v760_v12 = vld [vmem:[%s4347_s25 + $0x3a] sm:$0xff]  ;;  %v783_v36 = vld [vmem:[%s4347_s25 + $0xf2] sm:$0xff] }
  0xa0   : > { %v4680_v47 = vpack.c.bf16 %v760_v12, %v759_v1  ;;  %v2395_v1 = vld [vmem:[%s4347_s25 + $0x85] sm:$0xff]  ;;  %v2396_v12 = vld [vmem:[%s4347_s25 + $0x8d] sm:$0xff] }
  0xa1   : > { %v1440_v31 = vld [vmem:[%s4347_s25 + $0x12b] sm:$0xff] }
  0xa6   : > { %3707 = vmatmul.mubr.msk.bf16.vlgmr.msra.gmra.mrb[0].mxu1 %vm283_vm1, %v4660_v41  ;;  %3875 = vmatmul.mubr.msk.bf16.gmra.mrb[16].mxu0 %vm283_vm1, %v4522_v14  ;;  %v4682_v14 = vpack.c.bf16 %v762_v46, %v761_v16  ;;  %v4788_v16 = vpack.c.bf16 %v784_v52, %v783_v36  ;;  %v2424_v46 = vpack.c.bf16 %v2394_v62, %v2393_v37  ;;  %v2721_v37 = vld [vmem:[%s4347_s25 + $0x86] sm:$0xff]  ;;  %v2722_v62 = vld [vmem:[%s4347_s25 + $0x8e] sm:$0xff] }
  0xa7   : > { %3710 = vmatprep.mubr.msk.bf16.mxu1 %vm283_vm1, %v4662_v42  ;;  %3878 = vmatprep.mubr.msk.bf16.mxu0 %vm283_vm1, %v4547_v30  ;;  %v763_v30 = vld [vmem:[%s4347_s25 + $0x52] sm:$0xff] }
  0xa8   : > { %3743 = vmatpush3.bf16.msra.mxu1 %v1190_v44  ;;  %v4696_v51 = vpack.c.bf16 %v764_v48, %v763_v30  ;;  %v786_v44 = vld [vmem:[%s4347_s25 + $0x10a] sm:$0xff]  ;;  %v2425_v48 = vpack.c.bf16 %v2396_v12, %v2395_v1  ;;  %v2723_v12 = vld [vmem:[%s4347_s25 + $0x96] sm:$0xff] }
  0xa9   : > { %4265 = vmatprep.subr.msk.bf16.mxu1 %vm338_vm0, %v4319_v0  ;;  %v765_v0 = vld [vmem:[%s4347_s25 + $0x62] sm:$0xff]  ;;  %v4790_v30 = vpack.c.bf16 %v786_v44, %v785_v39  ;;  %v2751_v44 = vpack.c.bf16 %v2722_v62, %v2721_v37  ;;  %v1114_v1 = vld [vmem:[%s4347_s25 + $0x12a] sm:$0xff] }
  0xaa   : > { %v4698_v53 = vpack.c.bf16 %v766_v49, %v765_v0  ;;  %v787_v0 = vld [vmem:[%s4347_s25 + $0x112] sm:$0xff]  ;;  %v788_v49 = vld [vmem:[%s4347_s25 + $0x11a] sm:$0xff] }
  0xae   : > { %3711 = vmatmul.mubr.msk.bf16.gmra.mrb[4].mxu1 %vm283_vm1, %v4680_v47  ;;  %3879 = vmatmul.mubr.msk.bf16.gmra.mrb[20].mxu0 %vm283_vm1, %v4549_v32  ;;  %v767_v32 = vld [vmem:[%s4347_s25 + $0x72] sm:$0xff] }
  0xaf   : > { %3714 = vmatprep.mubr.msk.bf16.mxu1 %vm283_vm1, %v4682_v14  ;;  %3882 = vmatprep.mubr.msk.bf16.mxu0 %vm283_vm1, %v4565_v43  ;;  %v768_v43 = vld [vmem:[%s4347_s25 + $0x7a] sm:$0xff] }
  0xb0   : > { %v4712_v56 = vpack.c.bf16 %v768_v43, %v767_v32  ;;  %v2397_v32 = vld [vmem:[%s4347_s25 + $0x95] sm:$0xff]  ;;  %v2398_v43 = vld [vmem:[%s4347_s25 + $0x9d] sm:$0xff] }
  0xb6   : > { %3715 = vmatmul.mubr.msk.bf16.gmra.mrb[8].mxu1 %vm283_vm1, %v4696_v51  ;;  %3883 = vmatmul.mubr.msk.bf16.gmra.mrb[24].mxu0 %vm283_vm1, %v4567_v45  ;;  %v771_v45 = vld [vmem:[%s4347_s25 + $0x92] sm:$0xff] }
  0xb7   : > { %3718 = vmatprep.mubr.msk.bf16.mxu1 %vm283_vm1, %v4698_v53  ;;  %3886 = vmatprep.mubr.msk.bf16.mxu0 %vm283_vm1, %v4583_v57  ;;  %v2091_v57 = vld [vmem:[%s4347_s25 + $0x134] sm:$0xff]  ;;  %v4732_v5 = vpack.c.bf16 %v772_v60, %v771_v45  ;;  %v4804_v45 = vpack.c.bf16 %v788_v49, %v787_v0  ;;  %v2426_v60 = vpack.c.bf16 %v2398_v43, %v2397_v32 }
  0xb8   : > { %v2110_v6 = vpack.c.bf16 %v2092_v61, %v2091_v57  ;;  %v2427_v57 = vpack.c.bf16 %v2400_v55, %v2399_v54  ;;  %v2401_v61 = vld [vmem:[%s4347_s25 + $0xb5] sm:$0xff]  ;;  %v1427_v55 = vld [vmem:[%s4347_s25 + $0xc3] sm:$0xff] }
  0xb9   : > { %v2726_v0 = vld [vmem:[%s4347_s25 + $0xae] sm:$0xff] }
  0xbe   : > { %3719 = vmatmul.mubr.msk.bf16.gmra.mrb[12].mxu1 %vm283_vm1, %v4712_v56  ;;  %3887 = vmatmul.mubr.msk.bf16.gmra.mrb[28].mxu0 %vm283_vm1, %v4585_v59  ;;  %v2384_v59 = vld [vmem:[%s4347_s25 + $0x2d] sm:$0xff] }
  0xbf   : > { %3722 = vmatprep.mubr.msk.bf16.mxu1 %vm283_vm1, %v4714_v58  ;;  %3890 = vmatprep.mubr.msk.bf16.mxu0 %vm283_vm1, %v4599_v7  ;;  %v2419_v9 = vpack.c.bf16 %v2384_v59, %v2383_v4  ;;  %v775_v7 = vld [vmem:[%s4347_s25 + $0xb2] sm:$0xff]  ;;  %v2428_v59 = vpack.c.bf16 %v2402_v63, %v2401_v61  ;;  %v1430_v63 = vld [vmem:[%s4347_s25 + $0xdb] sm:$0xff] }
  0xc0   : > { %v4750_v27 = vpack.c.bf16 %v776_v10, %v775_v7  ;;  %v2404_v4 = vld [vmem:[%s4347_s25 + $0xcd] sm:$0xff]  ;;  %v2407_v7 = vld [vmem:[%s4347_s25 + $0xe5] sm:$0xff] }
  0xc1   : > { %v2408_v10 = vld [vmem:[%s4347_s25 + $0xed] sm:$0xff] }
  0xc2   : > { %v2431_v13 = vpack.c.bf16 %v2408_v10, %v2407_v7  ;;  %v1429_v61 = vld [vmem:[%s4347_s25 + $0xd3] sm:$0xff]  ;;  %v1431_v7 = vld [vmem:[%s4347_s25 + $0xe3] sm:$0xff]  ;;  %v1432_v10 = vld [vmem:[%s4347_s25 + $0xeb] sm:$0xff] }
  0xc6   : > { %3723 = vmatmul.mubr.msk.bf16.gmra.mrb[16].mxu1 %vm283_vm1, %v4732_v5  ;;  %3891 = vmatmul.mubr.msk.bf16.gmra.mrb[32].mxu0 %vm283_vm1, %v2110_v6  ;;  %v2429_v6 = vpack.c.bf16 %v2404_v4, %v2403_v3  ;;  %v2729_v3 = vld [vmem:[%s4347_s25 + $0xc6] sm:$0xff]  ;;  %v2730_v4 = vld [vmem:[%s4347_s25 + $0xce] sm:$0xff] }
  0xc7   : > { %3726 = vmatprep.mubr.msk.bf16.mxu1 %vm283_vm1, %v4734_v8  ;;  %3896 = vmatprep.mubr.msk.bf16.mxu0 %vm283_vm1, %v2419_v9  ;;  %v2406_v9 = vld [vmem:[%s4347_s25 + $0xdd] sm:$0xff] }
  0xce   : > { %3727 = vmatmul.mubr.msk.bf16.gmra.mrb[20].mxu1 %vm283_vm1, %v4750_v27  ;;  %3897 = vmatmul.mubr.msk.bf16.vlgmr.msra.gmra.mrb[0].mxu0 %vm283_vm1, %v2420_v29  ;;  %v2416_v29 = vld [vmem:[%s4347_s25 + $0x12d] sm:$0xff] }
  0xcf   : > { %3730 = vmatprep.mubr.msk.bf16.mxu1 %vm283_vm1, %v4752_v20  ;;  %3933 = vmatpush3.bf16.msra.mxu0 %v2820_v22  ;;  %v2435_v22 = vpack.c.bf16 %v2416_v29, %v2415_v23  ;;  %v1435_v23 = vld [vmem:[%s4347_s25 + $0x103] sm:$0xff]  ;;  %v1436_v29 = vld [vmem:[%s4347_s25 + $0x10b] sm:$0xff] }
  0xd0   : > { %3900 = vmatprep.mubr.msk.bf16.mxu0 %vm283_vm1, %v2421_v21 }
  0xd6   : > { %3731 = vmatmul.mubr.msk.bf16.gmra.mrb[24].mxu1 %vm283_vm1, %v4770_v33  ;;  %3901 = vmatmul.mubr.msk.bf16.gmra.mrb[4].mxu0 %vm283_vm1, %v2422_v50  ;;  %v2717_v50 = vld [vmem:[%s4347_s25 + $0x66] sm:$0xff] }
  0xd7   : > { %3734 = vmatprep.mubr.msk.bf16.mxu1 %vm283_vm1, %v4772_v34  ;;  %3904 = vmatprep.mubr.msk.bf16.mxu0 %vm283_vm1, %v2423_v35  ;;  %v2718_v35 = vld [vmem:[%s4347_s25 + $0x6e] sm:$0xff] }
  0xd8   : > { %v2749_v52 = vpack.c.bf16 %v2718_v35, %v2717_v50  ;;  %v1458_v50 = vpack.c.bf16 %v1440_v31, %v1439_v19 }
  0xde   : > { %3735 = vmatmul.mubr.msk.bf16.gmra.mrb[28].mxu1 %vm283_vm1, %v4788_v16  ;;  %3905 = vmatmul.mubr.msk.bf16.gmra.mrb[8].mxu0 %vm283_vm1, %v2424_v46  ;;  %v1425_v46 = vld [vmem:[%s4347_s25 + $0xb3] sm:$0xff] }
  0xdf   : > { %3738 = vmatprep.mubr.msk.bf16.mxu1 %vm283_vm1, %v4790_v30  ;;  %3908 = vmatprep.mubr.msk.bf16.mxu0 %vm283_vm1, %v2425_v48  ;;  %v1426_v48 = vld [vmem:[%s4347_s25 + $0xbb] sm:$0xff] }
  0xe0   : > { %v1451_v43 = vpack.c.bf16 %v1426_v48, %v1425_v46 }
  0xe6   : > { %3739 = vmatmul.mubr.msk.bf16.gmra.mrb[32].mxu1 %vm283_vm1, %v4804_v45  ;;  %3909 = vmatmul.mubr.msk.bf16.gmra.mrb[12].mxu0 %vm283_vm1, %v2426_v60  ;;  %v2727_v60 = vld [vmem:[%s4347_s25 + $0xb6] sm:$0xff] }
  0xe7   : > { %3744 = vmatprep.mubr.msk.bf16.mxu1 %vm283_vm1, %v4660_v41  ;;  %3912 = vmatprep.mubr.msk.bf16.mxu0 %vm283_vm1, %v2427_v57  ;;  %v2405_v41 = vld [vmem:[%s4347_s25 + $0xd5] sm:$0xff]  ;;  %v2728_v57 = vld [vmem:[%s4347_s25 + $0xbe] sm:$0xff] }
  0xe8   : > { %v2430_v11 = vpack.c.bf16 %v2406_v9, %v2405_v41  ;;  %v1453_v41 = vpack.c.bf16 %v1430_v63, %v1429_v61  ;;  %v2755_v9 = vpack.c.bf16 %v2730_v4, %v2729_v3  ;;  %v4980_v63 = vld [vmem:[%s5113_s2] ss:$0 sm:$0xff] }
  0xee   : > { %3745 = vmatmul.mubr.msk.bf16.vlgmr.msra.gmra.mrb[0].mxu1 %vm283_vm1, %v4662_v42  ;;  %3913 = vmatmul.mubr.msk.bf16.gmra.mrb[16].mxu0 %vm283_vm1, %v2428_v59  ;;  %v2410_v42 = vld [vmem:[%s4347_s25 + $0xfd] sm:$0xff] }
  0xef   : > { %3748 = vmatprep.mubr.msk.bf16.mxu1 %vm283_vm1, %v4680_v47  ;;  %3916 = vmatprep.mubr.msk.bf16.mxu0 %vm283_vm1, %v2429_v6  ;;  %v2411_v47 = vld [vmem:[%s4347_s25 + $0x105] sm:$0xff]  ;;  %v2754_v6 = vpack.c.bf16 %v2728_v57, %v2727_v60 }
  0xf0   : > { %3971 = vmatpush3.bf16.msra.mxu1 %v4329_v2  ;;  %v2409_v2 = vld [vmem:[%s4347_s25 + $0xf5] sm:$0xff]  ;;  %v2433_v18 = vpack.c.bf16 %v2412_v15, %v2411_v47  ;;  %v2733_v47 = vld [vmem:[%s4347_s25 + $0xe6] sm:$0xff] }
  0xf1   : > { %v2432_v17 = vpack.c.bf16 %v2410_v42, %v2409_v2  ;;  %v1433_v2 = vld [vmem:[%s4347_s25 + $0xf3] sm:$0xff]  ;;  %v1434_v42 = vld [vmem:[%s4347_s25 + $0xfb] sm:$0xff] }
  0xf2   : > { %v2734_v15 = vld [vmem:[%s4347_s25 + $0xee] sm:$0xff] }
  0xf6   : > { %3749 = vmatmul.mubr.msk.bf16.gmra.mrb[4].mxu1 %vm283_vm1, %v4682_v14  ;;  %3917 = vmatmul.mubr.msk.bf16.gmra.mrb[20].mxu0 %vm283_vm1, %v2430_v11  ;;  %v2413_v14 = vld [vmem:[%s4347_s25 + $0x115] sm:$0xff] }
  0xf7   : > { %3752 = vmatprep.mubr.msk.bf16.mxu1 %vm283_vm1, %v4696_v51  ;;  %3920 = vmatprep.mubr.msk.bf16.mxu0 %vm283_vm1, %v2431_v13  ;;  %v2414_v51 = vld [vmem:[%s4347_s25 + $0x11d] sm:$0xff] }
  0xf8   : > { %v2434_v21 = vpack.c.bf16 %v2414_v51, %v2413_v14  ;;  %v2731_v11 = vld [vmem:[%s4347_s25 + $0xd6] sm:$0xff]  ;;  %v2732_v13 = vld [vmem:[%s4347_s25 + $0xde] sm:$0xff]  ;;  %v1455_v14 = vpack.c.bf16 %v1434_v42, %v1433_v2  ;;  %v2757_v51 = vpack.c.bf16 %v2734_v15, %v2733_v47 }
  0xfe   : > { %3753 = vmatmul.mubr.msk.bf16.gmra.mrb[8].mxu1 %vm283_vm1, %v4698_v53  ;;  %3921 = vmatmul.mubr.msk.bf16.gmra.mrb[24].mxu0 %vm283_vm1, %v2432_v17  ;;  %v2417_v53 = vld [vmem:[%s4347_s25 + $0x135] sm:$0xff]  ;;  %v1454_v17 = vpack.c.bf16 %v1432_v10, %v1431_v7 }
  0xff   : > { %3756 = vmatprep.mubr.msk.bf16.mxu1 %vm283_vm1, %v4712_v56  ;;  %3924 = vmatprep.mubr.msk.bf16.mxu0 %vm283_vm1, %v2433_v18  ;;  %v2418_v56 = vld [vmem:[%s4347_s25 + $0x13d] sm:$0xff]  ;;  %v2756_v18 = vpack.c.bf16 %v2732_v13, %v2731_v11 }
 0x100   : > { %v2436_v24 = vpack.c.bf16 %v2418_v56, %v2417_v53  ;;  %v1437_v53 = vld [vmem:[%s4347_s25 + $0x113] sm:$0xff]  ;;  %v1438_v56 = vld [vmem:[%s4347_s25 + $0x11b] sm:$0xff] }
 0x106   : > { %3757 = vmatmul.mubr.msk.bf16.gmra.mrb[12].mxu1 %vm283_vm1, %v4714_v58  ;;  %3925 = vmatmul.mubr.msk.bf16.gmra.mrb[28].mxu0 %vm283_vm1, %v2434_v21  ;;  %v2711_v58 = vld [vmem:[%s4347_s25 + $0x36] sm:$0xff] }
 0x107   : > { %3760 = vmatprep.mubr.msk.bf16.mxu1 %vm283_vm1, %v4732_v5  ;;  %3928 = vmatprep.mubr.msk.bf16.mxu0 %vm283_vm1, %v2435_v22  ;;  %v2712_v5 = vld [vmem:[%s4347_s25 + $0x3e] sm:$0xff]  ;;  %v2735_v21 = vld [vmem:[%s4347_s25 + $0xf6] sm:$0xff] }
 0x108   : > { %v2746_v26 = vpack.c.bf16 %v2712_v5, %v2711_v58  ;;  %v2736_v22 = vld [vmem:[%s4347_s25 + $0xfe] sm:$0xff]  ;;  %v1457_v58 = vpack.c.bf16 %v1438_v56, %v1437_v53  ;;  %v2759_v5 = vpack.c.bf16 %v2738_v38, %v2737_v25 }
 0x10e   : > { %3761 = vmatmul.mubr.msk.bf16.gmra.mrb[16].mxu1 %vm283_vm1, %v4734_v8  ;;  %3929 = vmatmul.mubr.msk.bf16.gmra.mrb[32].mxu0 %vm283_vm1, %v2436_v24  ;;  %v2715_v8 = vld [vmem:[%s4347_s25 + $0x56] sm:$0xff]  ;;  %v1456_v24 = vpack.c.bf16 %v1436_v29, %v1435_v23 }
 0x10f   : > { %3764 = vmatprep.mubr.msk.bf16.mxu1 %vm283_vm1, %v4750_v27  ;;  %3934 = vmatprep.mubr.msk.bf16.mxu0 %vm283_vm1, %v2745_v28  ;;  %v2716_v27 = vld [vmem:[%s4347_s25 + $0x5e] sm:$0xff]  ;;  %v2758_v28 = vpack.c.bf16 %v2736_v22, %v2735_v21 }
 0x110   : > { %v2748_v36 = vpack.c.bf16 %v2716_v27, %v2715_v8  ;;  %v2741_v8 = vld [vmem:[%s4347_s25 + $0x126] sm:$0xff]  ;;  %v2742_v27 = vld [vmem:[%s4347_s25 + $0x12e] sm:$0xff] }
 0x116   : > { %3765 = vmatmul.mubr.msk.bf16.gmra.mrb[20].mxu1 %vm283_vm1, %v4752_v20  ;;  %3935 = vmatmul.mubr.msk.bf16.vlgmr.msra.gmra.mrb[0].mxu0 %vm283_vm1, %v2746_v26  ;;  %v2719_v20 = vld [vmem:[%s4347_s25 + $0x76] sm:$0xff] }
 0x117   : > { %3768 = vmatprep.mubr.msk.bf16.mxu1 %vm283_vm1, %v4770_v33  ;;  %3938 = vmatprep.mubr.msk.bf16.mxu0 %vm283_vm1, %v2747_v40  ;;  %v2720_v33 = vld [vmem:[%s4347_s25 + $0x7e] sm:$0xff]  ;;  %v2739_v26 = vld [vmem:[%s4347_s25 + $0x116] sm:$0xff] }
 0x118   : > { %v2750_v39 = vpack.c.bf16 %v2720_v33, %v2719_v20  ;;  %v2740_v40 = vld [vmem:[%s4347_s25 + $0x11e] sm:$0xff] }
 0x119   : > { %v2760_v35 = vpack.c.bf16 %v2740_v40, %v2739_v26  ;;  %v2744_v20 = vld [vmem:[%s4347_s25 + $0x13e] sm:$0xff] }
 0x11e   : > { %3769 = vmatmul.mubr.msk.bf16.gmra.mrb[24].mxu1 %vm283_vm1, %v4772_v34  ;;  %3939 = vmatmul.mubr.msk.bf16.gmra.mrb[4].mxu0 %vm283_vm1, %v2748_v36  ;;  %v1113_v34 = vld [vmem:[%s4347_s25 + $0x122] sm:$0xff]  ;;  %v2761_v36 = vpack.c.bf16 %v2742_v27, %v2741_v8 }
 0x11f   : > { %3772 = vmatprep.mubr.msk.bf16.mxu1 %vm283_vm1, %v4788_v16  ;;  %3942 = vmatprep.mubr.msk.bf16.mxu0 %vm283_vm1, %v2749_v52  ;;  %v2724_v16 = vld [vmem:[%s4347_s25 + $0x9e] sm:$0xff]  ;;  %v1132_v49 = vpack.c.bf16 %v1114_v1, %v1113_v34  ;;  %v2743_v52 = vld [vmem:[%s4347_s25 + $0x136] sm:$0xff] }
 0x120   : > { %v2752_v32 = vpack.c.bf16 %v2724_v16, %v2723_v12  ;;  %v2762_v33 = vpack.c.bf16 %v2744_v20, %v2743_v52 }
 0x126   : > { %3773 = vmatmul.mubr.msk.bf16.gmra.mrb[28].mxu1 %vm283_vm1, %v4790_v30  ;;  %3943 = vmatmul.mubr.msk.bf16.gmra.mrb[8].mxu0 %vm283_vm1, %v2750_v39  ;;  %v2725_v30 = vld [vmem:[%s4347_s25 + $0xa6] sm:$0xff] }
 0x127   : > { %3776 = vmatprep.mubr.msk.bf16.mxu1 %vm283_vm1, %v4804_v45  ;;  %3946 = vmatprep.mubr.msk.bf16.mxu0 %vm283_vm1, %v2751_v44  ;;  %v2753_v54 = vpack.c.bf16 %v2726_v0, %v2725_v30  ;;  %v1428_v45 = vld [vmem:[%s4347_s25 + $0xcb] sm:$0xff] }
 0x128   : > { %v1452_v59 = vpack.c.bf16 %v1428_v45, %v1427_v55 }
 0x12e   : > { %3777 = vmatmul.mubr.msk.bf16.gmra.mrb[32].mxu1 %vm283_vm1, %v1132_v49  ;;  %3947 = vmatmul.mubr.msk.bf16.gmra.mrb[12].mxu0 %vm283_vm1, %v2752_v32 }
 0x12f   : > { %3802 = vmatprep.mubr.msk.bf16.mxu1 %vm283_vm1, %v1451_v43  ;;  %3950 = vmatprep.mubr.msk.bf16.mxu0 %vm283_vm1, %v2753_v54 }
 0x136   : > { %3803 = vmatmul.mubr.msk.bf16.vlgmr.msra.gmra.mrb[20].mxu1 %vm283_vm1, %v1452_v59  ;;  %3951 = vmatmul.mubr.msk.bf16.gmra.mrb[16].mxu0 %vm283_vm1, %v2754_v6 }
 0x137   : > { %3806 = vmatprep.mubr.msk.bf16.mxu1 %vm283_vm1, %v1453_v41  ;;  %3954 = vmatprep.mubr.msk.bf16.mxu0 %vm283_vm1, %v2755_v9 }
 0x13e   : > { %3807 = vmatmul.mubr.msk.bf16.gmra.mrb[24].mxu1 %vm283_vm1, %v1454_v17  ;;  %3955 = vmatmul.mubr.msk.bf16.gmra.mrb[20].mxu0 %vm283_vm1, %v2756_v18 }
 0x13f   : > { %3810 = vmatprep.mubr.msk.bf16.mxu1 %vm283_vm1, %v1455_v14  ;;  %3958 = vmatprep.mubr.msk.bf16.mxu0 %vm283_vm1, %v2757_v51 }
 0x146   : > { %3811 = vmatmul.mubr.msk.bf16.gmra.mrb[28].mxu1 %vm283_vm1, %v1456_v24  ;;  %3959 = vmatmul.mubr.msk.bf16.gmra.mrb[24].mxu0 %vm283_vm1, %v2758_v28 }
 0x147   : > { %3814 = vmatprep.mubr.msk.bf16.mxu1 %vm283_vm1, %v1457_v58  ;;  %3962 = vmatprep.mubr.msk.bf16.mxu0 %vm283_vm1, %v2759_v5 }
 0x14e   : > { %3815 = vmatmul.mubr.msk.bf16.gmra.mrb[32].mxu1 %vm283_vm1, %v1458_v50  ;;  %3963 = vmatmul.mubr.msk.bf16.gmra.mrb[28].mxu0 %vm283_vm1, %v2760_v35 }
 0x14f   : > { %3966 = vmatprep.mubr.msk.bf16.mxu0 %vm283_vm1, %v2761_v36 }
 0x156   : > { %3967 = vmatmul.mubr.msk.bf16.gmra.mrb[32].mxu0 %vm283_vm1, %v2762_v33 }
 0x1c1   : > { %v3746_v37 = vpop.f32.mrb[0].mxu1 }
 0x1c2   : > { %v1226_v62 = vpop.f32.mrb[1].mxu1 }
 0x1c3   : > { %v3747_v39 = vpop.f32.mrb[2].mxu1 }
 0x1c4   : > { %v1229_v44 = vpop.f32.mrb[3].mxu1 }
 0x1c9   : > { %v3750_v34 = vpop.f32.mrb[4].mxu1 }
 0x1ca   : > { %v1242_v1 = vpop.f32.mrb[5].mxu1 }
 0x1cb   : > { %v3751_v12 = vpop.f32.mrb[6].mxu1 }
 0x1cc   : > { %v1245_v16 = vpop.f32.mrb[7].mxu1 }
 0x1d1   : > { %v4953_v46 = vpop.f32.mrb[8].mxu1 }
 0x1d2   : > { %v4955_v48 = vpop.f32.mrb[9].mxu1 }
 0x1d3   : > { %v4957_v30 = vpop.f32.mrb[10].mxu1 }
 0x1d4   : > { %v4959_v0 = vpop.f32.mrb[11].mxu1 }
 0x1d9   : > { %v4961_v49 = vpop.f32.mrb[12].mxu1 }
 0x1da   : > { %v4963_v32 = vpop.f32.mrb[13].mxu1 }
 0x1db   : > { %v4965_v43 = vpop.f32.mrb[14].mxu1 }
 0x1dc   : > { %v4967_v54 = vpop.f32.mrb[15].mxu1 }
 0x1e1   : > { %v4969_v55 = vpop.f32.mrb[16].mxu1 }
 0x1e2   : > { %v4971_v45 = vpop.f32.mrb[17].mxu1 }
 0x1e3   : > { %v4973_v60 = vpop.f32.mrb[18].mxu1 }
 0x1e4   : > { %v4975_v57 = vpop.f32.mrb[19].mxu1 }
 0x1e9   : > { %v3936_v61 = vpop.f32.mrb[0].mxu0 }
 0x1ea   : > { %v3972_v3 = vadd.f32 %v3936_v61, %v3746_v37  ;;  %v2856_v4 = vpop.f32.mrb[1].mxu0 }
 0x1eb   : > { %v3973_v59 = vadd.f32 %v2856_v4, %v1226_v62  ;;  %v3937_v6 = vpop.f32.mrb[2].mxu0 }
 0x1ec   : > { %v3044_v41 = vadd.f32 %v3972_v3, %v4980_v63  ;;  %v3974_v9 = vadd.f32 %v3937_v6, %v3747_v39  ;;  %v2859_v7 = vpop.f32.mrb[3].mxu0 }
 0x1ed   : > { %v3042_v10 = vadd.f32 %v3973_v59, %v4980_v63  ;;  %v3975_v11 = vadd.f32 %v2859_v7, %v1229_v44 }
 0x1ee   : > { %vm3080_vm2 = vcmp.ge.f32.partialorder %v3044_v41, 0.0  ;;  %v3116_v13 = vmul.f32 0.01, %v3044_v41  ;;  %v3045_v2 = vadd.f32 %v3974_v9, %v4980_v63 }
 0x1ef   : > { %vm3078_vm3 = vcmp.ge.f32.partialorder %v3042_v10, 0.0  ;;  %v3114_v42 = vmul.f32 0.01, %v3042_v10  ;;  %v3043_v47 = vadd.f32 %v3975_v11, %v4980_v63 }
 0x1f0   : > { %v3152_v15 = vsel %vm3080_vm2, %v3044_v41, %v3116_v13  ;;  %vm3081_vm4 = vcmp.ge.f32.partialorder %v3045_v2, 0.0  ;;  %v3117_v17 = vmul.f32 0.01, %v3045_v2 }
 0x1f1   : > { %3188 = vst.msk [vmem:[%s4988_s16 + $0x10] sm:$0xff] %vm283_vm1, %v3152_v15  ;;  %v3150_v18 = vsel %vm3078_vm3, %v3042_v10, %v3114_v42  ;;  %vm3079_vm5 = vcmp.ge.f32.partialorder %v3043_v47, 0.0  ;;  %v3115_v14 = vmul.f32 0.01, %v3043_v47  ;;  %v3940_v51 = vpop.f32.mrb[4].mxu0 }
 0x1f2   : > { %3186 = vst.msk [vmem:[%s4988_s16] sm:$0xff] %vm283_vm1, %v3150_v18  ;;  %v3153_v23 = vsel %vm3081_vm4, %v3045_v2, %v3117_v17  ;;  %v3976_v29 = vadd.f32 %v3940_v51, %v3750_v34  ;;  %v2872_v21 = vpop.f32.mrb[5].mxu0 }
 0x1f3   : > { %3189 = vst.msk [vmem:[%s4988_s16 + $0x18] sm:$0xff] %vm283_vm1, %v3153_v23  ;;  %v3151_v22 = vsel %vm3079_vm5, %v3043_v47, %v3115_v14  ;;  %v3977_v53 = vadd.f32 %v2872_v21, %v1242_v1  ;;  %v3941_v56 = vpop.f32.mrb[6].mxu0 }
 0x1f4   : > { %3187 = vst.msk [vmem:[%s4988_s16 + $0x8] sm:$0xff] %vm283_vm1, %v3151_v22  ;;  %v3048_v25 = vadd.f32 %v3976_v29, %v4980_v63  ;;  %v3978_v38 = vadd.f32 %v3941_v56, %v3751_v12  ;;  %v2875_v24 = vpop.f32.mrb[7].mxu0 }
 0x1f5   : > { %v3046_v28 = vadd.f32 %v3977_v53, %v4980_v63  ;;  %v3979_v58 = vadd.f32 %v2875_v24, %v1245_v16 }
 0x1f6   : > { %vm3084_vm6 = vcmp.ge.f32.partialorder %v3048_v25, 0.0  ;;  %v3120_v5 = vmul.f32 0.01, %v3048_v25  ;;  %v3049_v19 = vadd.f32 %v3978_v38, %v4980_v63 }
 0x1f7   : > { %vm3082_vm7 = vcmp.ge.f32.partialorder %v3046_v28, 0.0  ;;  %v3118_v31 = vmul.f32 0.01, %v3046_v28  ;;  %v3047_v26 = vadd.f32 %v3979_v58, %v4980_v63 }
 0x1f8   : > { %v3156_v40 = vsel %vm3084_vm6, %v3048_v25, %v3120_v5  ;;  %vm3085_vm8 = vcmp.ge.f32.partialorder %v3049_v19, 0.0  ;;  %v3121_v8 = vmul.f32 0.01, %v3049_v19 }
 0x1f9   : > { %3192 = vst.msk [vmem:[%s4988_s16 + $0x30] sm:$0xff] %vm283_vm1, %v3156_v40  ;;  %v3154_v27 = vsel %vm3082_vm7, %v3046_v28, %v3118_v31  ;;  %vm3083_vm9 = vcmp.ge.f32.partialorder %v3047_v26, 0.0  ;;  %v3119_v50 = vmul.f32 0.01, %v3047_v26  ;;  %v3944_v35 = vpop.f32.mrb[8].mxu0 }
 0x1fa   : > { %3190 = vst.msk [vmem:[%s4988_s16 + $0x20] sm:$0xff] %vm283_vm1, %v3154_v27  ;;  %v3157_v36 = vsel %vm3085_vm8, %v3049_v19, %v3121_v8  ;;  %v3980_v52 = vadd.f32 %v3944_v35, %v4953_v46  ;;  %v2888_v20 = vpop.f32.mrb[9].mxu0 }
 0x1fb   : > { %3193 = vst.msk [vmem:[%s4988_s16 + $0x38] sm:$0xff] %vm283_vm1, %v3157_v36  ;;  %v3155_v33 = vsel %vm3083_vm9, %v3047_v26, %v3119_v50  ;;  %v3981_v37 = vadd.f32 %v2888_v20, %v4955_v48  ;;  %v3945_v62 = vpop.f32.mrb[10].mxu0 }
 0x1fc   : > { %3191 = vst.msk [vmem:[%s4988_s16 + $0x28] sm:$0xff] %vm283_vm1, %v3155_v33  ;;  %v3052_v39 = vadd.f32 %v3980_v52, %v4980_v63  ;;  %v3982_v44 = vadd.f32 %v3945_v62, %v4957_v30  ;;  %v2891_v34 = vpop.f32.mrb[11].mxu0 }
 0x1fd   : > { %v3050_v1 = vadd.f32 %v3981_v37, %v4980_v63  ;;  %v3983_v12 = vadd.f32 %v2891_v34, %v4959_v0 }
 0x1fe   : > { %vm3088_vm10 = vcmp.ge.f32.partialorder %v3052_v39, 0.0  ;;  %v3124_v16 = vmul.f32 0.01, %v3052_v39  ;;  %v3053_v46 = vadd.f32 %v3982_v44, %v4980_v63 }
 0x1ff   : > { %vm3086_vm11 = vcmp.ge.f32.partialorder %v3050_v1, 0.0  ;;  %v3122_v48 = vmul.f32 0.01, %v3050_v1  ;;  %v3051_v61 = vadd.f32 %v3983_v12, %v4980_v63 }
 0x200   : > { %v3160_v3 = vsel %vm3088_vm10, %v3052_v39, %v3124_v16  ;;  %vm3089_vm12 = vcmp.ge.f32.partialorder %v3053_v46, 0.0  ;;  %v3125_v4 = vmul.f32 0.01, %v3053_v46 }
 0x201   : > { %3196 = vst.msk [vmem:[%s4988_s16 + $0x50] sm:$0xff] %vm283_vm1, %v3160_v3  ;;  %v3158_v30 = vsel %vm3086_vm11, %v3050_v1, %v3122_v48  ;;  %vm3087_vm13 = vcmp.ge.f32.partialorder %v3051_v61, 0.0  ;;  %v3123_v59 = vmul.f32 0.01, %v3051_v61  ;;  %v3948_v6 = vpop.f32.mrb[12].mxu0 }
 0x202   : > { %3194 = vst.msk [vmem:[%s4988_s16 + $0x40] sm:$0xff] %vm283_vm1, %v3158_v30  ;;  %v3161_v0 = vsel %vm3089_vm12, %v3053_v46, %v3125_v4  ;;  %v3984_v41 = vadd.f32 %v3948_v6, %v4961_v49  ;;  %v2904_v9 = vpop.f32.mrb[13].mxu0 }
 0x203   : > { %3197 = vst.msk [vmem:[%s4988_s16 + $0x58] sm:$0xff] %vm283_vm1, %v3161_v0  ;;  %v3159_v7 = vsel %vm3087_vm13, %v3051_v61, %v3123_v59  ;;  %v3985_v10 = vadd.f32 %v2904_v9, %v4963_v32  ;;  %v3949_v11 = vpop.f32.mrb[14].mxu0 }
 0x204   : > { %3195 = vst.msk [vmem:[%s4988_s16 + $0x48] sm:$0xff] %vm283_vm1, %v3159_v7  ;;  %v3056_v13 = vadd.f32 %v3984_v41, %v4980_v63  ;;  %v3986_v2 = vadd.f32 %v3949_v11, %v4965_v43  ;;  %v2907_v42 = vpop.f32.mrb[15].mxu0 }
 0x205   : > { %v3054_v47 = vadd.f32 %v3985_v10, %v4980_v63  ;;  %v3987_v15 = vadd.f32 %v2907_v42, %v4967_v54 }
 0x206   : > { %vm3092_vm14 = vcmp.ge.f32.partialorder %v3056_v13, 0.0  ;;  %v3128_v49 = vmul.f32 0.01, %v3056_v13  ;;  %v3057_v17 = vadd.f32 %v3986_v2, %v4980_v63 }
 0x207   : > { %vm3090_vm15 = vcmp.ge.f32.partialorder %v3054_v47, 0.0  ;;  %v3126_v32 = vmul.f32 0.01, %v3054_v47  ;;  %v3055_v18 = vadd.f32 %v3987_v15, %v4980_v63 }
 0x208   : > { %v3164_v14 = vsel %vm3092_vm14, %v3056_v13, %v3128_v49  ;;  %vm3093_vm0 = vcmp.ge.f32.partialorder %v3057_v17, 0.0  ;;  %v3129_v51 = vmul.f32 0.01, %v3057_v17 }
 0x209   : > { %v3804_v23 = vpop.f32.mrb[20].mxu1  ;;  %3200 = vst.msk [vmem:[%s4988_s16 + $0x70] sm:$0xff] %vm283_vm1, %v3164_v14  ;;  %v3162_v43 = vsel %vm3090_vm15, %v3054_v47, %v3126_v32  ;;  %vm3091_vm2 = vcmp.ge.f32.partialorder %v3055_v18, 0.0  ;;  %v3127_v54 = vmul.f32 0.01, %v3055_v18  ;;  %v3952_v29 = vpop.f32.mrb[16].mxu0 }
 0x20a   : > { %v1632_v21 = vpop.f32.mrb[21].mxu1  ;;  %3198 = vst.msk [vmem:[%s4988_s16 + $0x60] sm:$0xff] %vm283_vm1, %v3162_v43  ;;  %v3165_v22 = vsel %vm3093_vm0, %v3057_v17, %v3129_v51  ;;  %v3988_v53 = vadd.f32 %v3952_v29, %v4969_v55  ;;  %v2920_v56 = vpop.f32.mrb[17].mxu0 }
 0x20b   : > { %v3805_v25 = vpop.f32.mrb[22].mxu1  ;;  %3201 = vst.msk [vmem:[%s4988_s16 + $0x78] sm:$0xff] %vm283_vm1, %v3165_v22  ;;  %v3163_v38 = vsel %vm3091_vm2, %v3055_v18, %v3127_v54  ;;  %v3989_v24 = vadd.f32 %v2920_v56, %v4971_v45  ;;  %v3953_v28 = vpop.f32.mrb[18].mxu0 }
 0x20c   : > { %v1635_v58 = vpop.f32.mrb[23].mxu1  ;;  %3199 = vst.msk [vmem:[%s4988_s16 + $0x68] sm:$0xff] %vm283_vm1, %v3163_v38  ;;  %v3060_v5 = vadd.f32 %v3988_v53, %v4980_v63  ;;  %v3990_v19 = vadd.f32 %v3953_v28, %v4973_v60  ;;  %v2923_v31 = vpop.f32.mrb[19].mxu0 }
 0x20d   : > { %v3058_v26 = vadd.f32 %v3989_v24, %v4980_v63  ;;  %v3991_v55 = vadd.f32 %v2923_v31, %v4975_v57 }
 0x20e   : > { %vm3096_vm3 = vcmp.ge.f32.partialorder %v3060_v5, 0.0  ;;  %v3132_v40 = vmul.f32 0.01, %v3060_v5  ;;  %v3061_v8 = vadd.f32 %v3990_v19, %v4980_v63 }
 0x20f   : > { %vm3094_vm4 = vcmp.ge.f32.partialorder %v3058_v26, 0.0  ;;  %v3130_v45 = vmul.f32 0.01, %v3058_v26  ;;  %v3059_v27 = vadd.f32 %v3991_v55, %v4980_v63 }
 0x210   : > { %v3168_v50 = vsel %vm3096_vm3, %v3060_v5, %v3132_v40  ;;  %vm3097_vm5 = vcmp.ge.f32.partialorder %v3061_v8, 0.0  ;;  %v3133_v35 = vmul.f32 0.01, %v3061_v8 }
 0x211   : > { %v3808_v36 = vpop.f32.mrb[24].mxu1  ;;  %3204 = vst.msk [vmem:[%s4988_s16 + $0x90] sm:$0xff] %vm283_vm1, %v3168_v50  ;;  %v3166_v60 = vsel %vm3094_vm4, %v3058_v26, %v3130_v45  ;;  %vm3095_vm6 = vcmp.ge.f32.partialorder %v3059_v27, 0.0  ;;  %v3131_v57 = vmul.f32 0.01, %v3059_v27  ;;  %v3956_v52 = vpop.f32.mrb[20].mxu0 }
 0x212   : > { %v1648_v20 = vpop.f32.mrb[25].mxu1  ;;  %3202 = vst.msk [vmem:[%s4988_s16 + $0x80] sm:$0xff] %vm283_vm1, %v3166_v60  ;;  %v3169_v33 = vsel %vm3097_vm5, %v3061_v8, %v3133_v35  ;;  %v3992_v37 = vadd.f32 %v3956_v52, %v3804_v23  ;;  %v2936_v62 = vpop.f32.mrb[21].mxu0 }
 0x213   : > { %v3809_v39 = vpop.f32.mrb[26].mxu1  ;;  %3205 = vst.msk [vmem:[%s4988_s16 + $0x98] sm:$0xff] %vm283_vm1, %v3169_v33  ;;  %v3167_v44 = vsel %vm3095_vm6, %v3059_v27, %v3131_v57  ;;  %v3993_v34 = vadd.f32 %v2936_v62, %v1632_v21  ;;  %v3957_v1 = vpop.f32.mrb[22].mxu0 }
 0x214   : > { %v1651_v12 = vpop.f32.mrb[27].mxu1  ;;  %3203 = vst.msk [vmem:[%s4988_s16 + $0x88] sm:$0xff] %vm283_vm1, %v3167_v44  ;;  %v3064_v16 = vadd.f32 %v3992_v37, %v4980_v63  ;;  %v3994_v46 = vadd.f32 %v3957_v1, %v3805_v25  ;;  %v2939_v48 = vpop.f32.mrb[23].mxu0 }
 0x215   : > { %v3062_v61 = vadd.f32 %v3993_v34, %v4980_v63  ;;  %v3995_v3 = vadd.f32 %v2939_v48, %v1635_v58 }
 0x216   : > { %vm3100_vm7 = vcmp.ge.f32.partialorder %v3064_v16, 0.0  ;;  %v3136_v4 = vmul.f32 0.01, %v3064_v16  ;;  %v3065_v30 = vadd.f32 %v3994_v46, %v4980_v63 }
 0x217   : > { %vm3098_vm8 = vcmp.ge.f32.partialorder %v3062_v61, 0.0  ;;  %v3134_v59 = vmul.f32 0.01, %v3062_v61  ;;  %v3063_v6 = vadd.f32 %v3995_v3, %v4980_v63 }
 0x218   : > { %v3172_v0 = vsel %vm3100_vm7, %v3064_v16, %v3136_v4  ;;  %vm3101_vm9 = vcmp.ge.f32.partialorder %v3065_v30, 0.0  ;;  %v3137_v41 = vmul.f32 0.01, %v3065_v30 }
 0x219   : > { %v3812_v9 = vpop.f32.mrb[28].mxu1  ;;  %3208 = vst.msk [vmem:[%s4988_s16 + $0xb0] sm:$0xff] %vm283_vm1, %v3172_v0  ;;  %v3170_v7 = vsel %vm3098_vm8, %v3062_v61, %v3134_v59  ;;  %vm3099_vm10 = vcmp.ge.f32.partialorder %v3063_v6, 0.0  ;;  %v3135_v10 = vmul.f32 0.01, %v3063_v6  ;;  %v3960_v11 = vpop.f32.mrb[24].mxu0 }
 0x21a   : > { %v1664_v13 = vpop.f32.mrb[29].mxu1  ;;  %3206 = vst.msk [vmem:[%s4988_s16 + $0xa0] sm:$0xff] %vm283_vm1, %v3170_v7  ;;  %v3173_v2 = vsel %vm3101_vm9, %v3065_v30, %v3137_v41  ;;  %v3996_v42 = vadd.f32 %v3960_v11, %v3808_v36  ;;  %v2952_v47 = vpop.f32.mrb[25].mxu0 }
 0x21b   : > { %v3813_v15 = vpop.f32.mrb[30].mxu1  ;;  %3209 = vst.msk [vmem:[%s4988_s16 + $0xb8] sm:$0xff] %vm283_vm1, %v3173_v2  ;;  %v3171_v49 = vsel %vm3099_vm10, %v3063_v6, %v3135_v10  ;;  %v3997_v17 = vadd.f32 %v2952_v47, %v1648_v20  ;;  %v3961_v32 = vpop.f32.mrb[26].mxu0 }
 0x21c   : > { %v1667_v18 = vpop.f32.mrb[31].mxu1  ;;  %3207 = vst.msk [vmem:[%s4988_s16 + $0xa8] sm:$0xff] %vm283_vm1, %v3171_v49  ;;  %v3068_v14 = vadd.f32 %v3996_v42, %v4980_v63  ;;  %v3998_v51 = vadd.f32 %v3961_v32, %v3809_v39  ;;  %v2955_v23 = vpop.f32.mrb[27].mxu0 }
 0x21d   : > { %v3066_v43 = vadd.f32 %v3997_v17, %v4980_v63  ;;  %v3999_v54 = vadd.f32 %v2955_v23, %v1651_v12 }
 0x21e   : > { %vm3104_vm11 = vcmp.ge.f32.partialorder %v3068_v14, 0.0  ;;  %v3140_v29 = vmul.f32 0.01, %v3068_v14  ;;  %v3069_v21 = vadd.f32 %v3998_v51, %v4980_v63 }
 0x21f   : > { %vm3102_vm12 = vcmp.ge.f32.partialorder %v3066_v43, 0.0  ;;  %v3138_v22 = vmul.f32 0.01, %v3066_v43  ;;  %v3067_v53 = vadd.f32 %v3999_v54, %v4980_v63 }
 0x220   : > { %v3176_v56 = vsel %vm3104_vm11, %v3068_v14, %v3140_v29  ;;  %vm3105_vm13 = vcmp.ge.f32.partialorder %v3069_v21, 0.0  ;;  %v3141_v25 = vmul.f32 0.01, %v3069_v21 }
 0x221   : > { %v3816_v38 = vpop.f32.mrb[32].mxu1  ;;  %3212 = vst.msk [vmem:[%s4988_s16 + $0xd0] sm:$0xff] %vm283_vm1, %v3176_v56  ;;  %v3174_v24 = vsel %vm3102_vm12, %v3066_v43, %v3138_v22  ;;  %vm3103_vm14 = vcmp.ge.f32.partialorder %v3067_v53, 0.0  ;;  %v3139_v28 = vmul.f32 0.01, %v3067_v53  ;;  %v3964_v58 = vpop.f32.mrb[28].mxu0 }
 0x222   : > { %v1680_v5 = vpop.f32.mrb[33].mxu1  ;;  %3210 = vst.msk [vmem:[%s4988_s16 + $0xc0] sm:$0xff] %vm283_vm1, %v3174_v24  ;;  %v3177_v19 = vsel %vm3105_vm13, %v3069_v21, %v3141_v25  ;;  %v4000_v31 = vadd.f32 %v3964_v58, %v3812_v9  ;;  %v2968_v26 = vpop.f32.mrb[29].mxu0 }
 0x223   : > { %v3817_v55 = vpop.f32.mrb[34].mxu1  ;;  %3213 = vst.msk [vmem:[%s4988_s16 + $0xd8] sm:$0xff] %vm283_vm1, %v3177_v19  ;;  %v3175_v40 = vsel %vm3103_vm14, %v3067_v53, %v3139_v28  ;;  %v4001_v8 = vadd.f32 %v2968_v26, %v1664_v13  ;;  %v3965_v45 = vpop.f32.mrb[30].mxu0 }
 0x224   : > { %v1683_v27 = vpop.f32.mrb[35].mxu1  ;;  %3211 = vst.msk [vmem:[%s4988_s16 + $0xc8] sm:$0xff] %vm283_vm1, %v3175_v40  ;;  %v3072_v50 = vadd.f32 %v4000_v31, %v4980_v63  ;;  %v4002_v35 = vadd.f32 %v3965_v45, %v3813_v15  ;;  %v2971_v36 = vpop.f32.mrb[31].mxu0 }
 0x225   : > { %v3070_v60 = vadd.f32 %v4001_v8, %v4980_v63  ;;  %v4003_v57 = vadd.f32 %v2971_v36, %v1667_v18 }
 0x226   : > { %vm3108_vm15 = vcmp.ge.f32.partialorder %v3072_v50, 0.0  ;;  %v3144_v52 = vmul.f32 0.01, %v3072_v50  ;;  %v3073_v20 = vadd.f32 %v4002_v35, %v4980_v63 }
 0x227   : > { %vm3106_vm0 = vcmp.ge.f32.partialorder %v3070_v60, 0.0  ;;  %v3142_v33 = vmul.f32 0.01, %v3070_v60  ;;  %v3071_v37 = vadd.f32 %v4003_v57, %v4980_v63 }
 0x228   : > { %v3180_v62 = vsel %vm3108_vm15, %v3072_v50, %v3144_v52  ;;  %vm3109_vm2 = vcmp.ge.f32.partialorder %v3073_v20, 0.0  ;;  %v3145_v39 = vmul.f32 0.01, %v3073_v20 }
 0x229   : > { %3216 = vst.msk [vmem:[%s4988_s16 + $0xf0] sm:$0xff] %vm283_vm1, %v3180_v62  ;;  %v3178_v44 = vsel %vm3106_vm0, %v3070_v60, %v3142_v33  ;;  %vm3107_vm3 = vcmp.ge.f32.partialorder %v3071_v37, 0.0  ;;  %v3143_v34 = vmul.f32 0.01, %v3071_v37  ;;  %v3968_v1 = vpop.f32.mrb[32].mxu0 }
 0x22a   : > { %3214 = vst.msk [vmem:[%s4988_s16 + $0xe0] sm:$0xff] %vm283_vm1, %v3178_v44  ;;  %v3181_v12 = vsel %vm3109_vm2, %v3073_v20, %v3145_v39  ;;  %v4004_v16 = vadd.f32 %v3968_v1, %v3816_v38  ;;  %v2984_v46 = vpop.f32.mrb[33].mxu0 }
 0x22b   : > { %3217 = vst.msk [vmem:[%s4988_s16 + $0xf8] sm:$0xff] %vm283_vm1, %v3181_v12  ;;  %v3179_v48 = vsel %vm3107_vm3, %v3071_v37, %v3143_v34  ;;  %v4005_v61 = vadd.f32 %v2984_v46, %v1680_v5  ;;  %v3969_v3 = vpop.f32.mrb[34].mxu0 }
 0x22c   : > { %3215 = vst.msk [vmem:[%s4988_s16 + $0xe8] sm:$0xff] %vm283_vm1, %v3179_v48  ;;  %v3076_v4 = vadd.f32 %v4004_v16, %v4980_v63  ;;  %v4006_v30 = vadd.f32 %v3969_v3, %v3817_v55  ;;  %v2987_v59 = vpop.f32.mrb[35].mxu0 }
 0x22d   : > { %v3074_v6 = vadd.f32 %v4005_v61, %v4980_v63  ;;  %v4007_v0 = vadd.f32 %v2987_v59, %v1683_v27 }
 0x22e   : > { %vm3112_vm4 = vcmp.ge.f32.partialorder %v3076_v4, 0.0  ;;  %v3148_v41 = vmul.f32 0.01, %v3076_v4  ;;  %v3077_v9 = vadd.f32 %v4006_v30, %v4980_v63 }
 0x22f   : > { %vm3110_vm5 = vcmp.ge.f32.partialorder %v3074_v6, 0.0  ;;  %v3146_v7 = vmul.f32 0.01, %v3074_v6  ;;  %v3075_v10 = vadd.f32 %v4007_v0, %v4980_v63 }
 0x230   : > { %v3184_v11 = vsel %vm3112_vm4, %v3076_v4, %v3148_v41  ;;  %vm3113_vm6 = vcmp.ge.f32.partialorder %v3077_v9, 0.0  ;;  %v3149_v13 = vmul.f32 0.01, %v3077_v9 }
 0x231   : > { %3220 = vst.msk [vmem:[%s4988_s16 + $0x110] sm:$0xff] %vm283_vm1, %v3184_v11  ;;  %v3182_v2 = vsel %vm3110_vm5, %v3074_v6, %v3146_v7  ;;  %vm3111_vm7 = vcmp.ge.f32.partialorder %v3075_v10, 0.0  ;;  %v3147_v42 = vmul.f32 0.01, %v3075_v10 }
 0x232   : > { %3218 = vst.msk [vmem:[%s4988_s16 + $0x100] sm:$0xff] %vm283_vm1, %v3182_v2  ;;  %v3185_v47 = vsel %vm3113_vm6, %v3077_v9, %v3149_v13 }
 0x233   : > { %3221 = vst.msk [vmem:[%s4988_s16 + $0x118] sm:$0xff] %vm283_vm1, %v3185_v47  ;;  %v3183_v15 = vsel %vm3111_vm7, %v3075_v10, %v3147_v42 }
 0x234   : > { %3219 = vst.msk [vmem:[%s4988_s16 + $0x108] sm:$0xff] %vm283_vm1, %v3183_v15 }
 0x235 PF: > { %s13_s12 = sadd.s32 1, %s4286_s12  }
 0x236   : > { %p10_p4 = scmp.ge.s32.totalorder %s13_s12, 4  }
 0x238   :  { %12 = sbr.rel (!%p10_p4) target bundleno = 1 (0x1), region = 70 }

// kernel: _lambda_.19
= control target key start
LH: loop header
LB: loop body
LE: loop exit
PB: predicated region body
PF: predicated region fallthrough
CT: control target
= control target key end

     0   :  { %s1102_s21 = smov 0   ;;  %s1442_s0 = inlined_call_operand.vmem [shape: bf16[512,8], index: 0, kind: input, shape index: {}]   ;;  %s1443_s1 = inlined_call_operand.vmem [shape: bf16[8,8], index: 1, kind: input, shape index: {}]   ;;  %s1444_s2 = inlined_call_operand.vmem [shape: f32[1,8], index: 2, kind: input, shape index: {}]   ;;  %s1445_s3 = inlined_call_operand.vmem [shape: f32[1,8], index: 3, kind: input, shape index: {}]   ;;  %s1446_s4 = inlined_call_operand.vmem [shape: f32[1,8], index: 4, kind: input, shape index: {}]   ;;  %s1447_s5 = inlined_call_operand.vmem [shape: f32[512,8], index: 5, kind: output, shape index: {0}]   ;;  %s1448_s6 = inlined_call_operand.vmem [shape: f32[512,8], index: 6, kind: output, shape index: {1}]  }
   0x1 LB: > { %s932_s22 = sadd.s32 4294967295, %s1065_s21   ;;  %p936_p0 = scmp.ge.s32.totalorder %s1065_s21, 1  ;;  %s1065_s21 = sphi %s1102_s21, %s17_s21  }
   0x2   : > { %p216_p1 = scmp.lt.s32.totalorder %s1065_s21, 3 }
   0x4   : > { %p217_p2 = pnand %p936_p0, %p216_p1 }
   0x5   : > { %v302_v0 = vld [vmem:[%s1443_s1] sm:$0xf] (!%p217_p2)  ;;  %vm439_vm0 = vcmask (!%p217_p2), 1043456   ;;  %s937_s25 = sshll.u32 (!%p217_p2), %s932_s22, 5  ;;  %vm390_vm1 = vcmask (!%p217_p2), 64512  }
   0x6   : > { %220 = sbr.rel (%p217_p2) target bundleno = 286 (0x11e), region = 40  ;;  %1033 = vmatprep.subr.msk.bf16.mxu0 (!%p217_p2), %vm439_vm0, %v302_v0  ;;  %1034 = vmatprep.subr.msk.bf16.mxu1 (!%p217_p2), %vm439_vm0, %v302_v0  ;;  %v441_v1 = vsel (!%p217_p2), %vm439_vm0, %v302_v0, 0  ;;  %p252_p3 = scmp.lt.s32.totalorder (!%p217_p2), %s937_s25, 63  ;;  %v1157_v18 = vld [vmem:[%s1444_s2] ss:$0 sm:$0xff] (!%p217_p2) }
   0x7   : > { %998 = vmatpush3.bf16.msra.mxu0 (!%p217_p2), %v441_v1  ;;  %1032 = vmatpush3.bf16.msra.mxu1 (!%p217_p2), %v441_v1  ;;  %v1169_v20 = vld [vmem:[%s1445_s3] ss:$0 sm:$0xff] (!%p217_p2) }
   0x8   : > { %v1175_v24 = vld [vmem:[%s1446_s4] ss:$0 sm:$0xff] (!%p217_p2) }
   0xd   : > { %s1450_s25 = smov (!%p252_p3, %s937_s25), 63 }
   0xe   : > { %s938_s26 = sshll.u32 %s1450_s25, 2  ;;  %s940_s30 = sshll.u32 %s1450_s25, 3 }
   0xf   : > { %s1119_s29 = scalar_lea.vmem %s1442_s0, %s938_s26  ;;  %s1164_s11 = scalar_lea.vmem %s1447_s5, %s940_s30 }
  0x10   : > { %v1043_v2 = vld [vmem:[%s1119_s29] sm:$0xff]   ;;  %v1045_v4 = vld [vmem:[%s1119_s29 + $0x8] sm:$0xff]   ;;  %v1047_v6 = vld [vmem:[%s1119_s29 + $0x10] sm:$0xff]   ;;  %s1213_s18 = scalar_lea.vmem %s1448_s6, %s940_s30 }
  0x11   : > { %v1044_v3 = vld [vmem:[%s1119_s29 + $0x40] sm:$0xff]   ;;  %999 = vmatprep.mubr.msk.bf16.mxu0 %vm390_vm1, %v1043_v2  ;;  %v1046_v5 = vld [vmem:[%s1119_s29 + $0x48] sm:$0xff]   ;;  %v1048_v7 = vld [vmem:[%s1119_s29 + $0x50] sm:$0xff]  }
  0x12   : > { %1015 = vmatprep.mubr.msk.bf16.mxu1 %vm390_vm1, %v1044_v3  ;;  %1000 = vmatmul.mubr.msk.bf16.vlgmr.msra.gmra.mrb[0].mxu0 %vm390_vm1, %v1045_v4  ;;  %v1049_v8 = vld [vmem:[%s1119_s29 + $0x18] sm:$0xff]   ;;  %v1051_v10 = vld [vmem:[%s1119_s29 + $0x20] sm:$0xff]   ;;  %v1053_v12 = vld [vmem:[%s1119_s29 + $0x28] sm:$0xff]  }
  0x13   : > { %1016 = vmatmul.mubr.msk.bf16.vlgmr.msra.gmra.mrb[0].mxu1 %vm390_vm1, %v1046_v5  ;;  %1003 = vmatprep.mubr.msk.bf16.mxu0 %vm390_vm1, %v1047_v6  ;;  %v1050_v9 = vld [vmem:[%s1119_s29 + $0x58] sm:$0xff]   ;;  %v1052_v11 = vld [vmem:[%s1119_s29 + $0x60] sm:$0xff]   ;;  %v1054_v13 = vld [vmem:[%s1119_s29 + $0x68] sm:$0xff]  }
  0x14   : > { %1019 = vmatprep.mubr.msk.bf16.mxu1 %vm390_vm1, %v1048_v7  ;;  %v1055_v14 = vld [vmem:[%s1119_s29 + $0x30] sm:$0xff]   ;;  %v1057_v16 = vld [vmem:[%s1119_s29 + $0x38] sm:$0xff]  }
  0x15   : > { %v1056_v15 = vld [vmem:[%s1119_s29 + $0x70] sm:$0xff]   ;;  %v1058_v17 = vld [vmem:[%s1119_s29 + $0x78] sm:$0xff]  }
  0x1a   : > { %1004 = vmatmul.mubr.msk.bf16.gmra.mrb[4].mxu0 %vm390_vm1, %v1049_v8 }
  0x1b   : > { %1020 = vmatmul.mubr.msk.bf16.gmra.mrb[4].mxu1 %vm390_vm1, %v1050_v9  ;;  %1007 = vmatprep.mubr.msk.bf16.mxu0 %vm390_vm1, %v1051_v10 }
  0x1c   : > { %1023 = vmatprep.mubr.msk.bf16.mxu1 %vm390_vm1, %v1052_v11 }
  0x22   : > { %1008 = vmatmul.mubr.msk.bf16.gmra.mrb[8].mxu0 %vm390_vm1, %v1053_v12 }
  0x23   : > { %1024 = vmatmul.mubr.msk.bf16.gmra.mrb[8].mxu1 %vm390_vm1, %v1054_v13  ;;  %1011 = vmatprep.mubr.msk.bf16.mxu0 %vm390_vm1, %v1055_v14 }
  0x24   : > { %1027 = vmatprep.mubr.msk.bf16.mxu1 %vm390_vm1, %v1056_v15 }
  0x2a   : > { %1012 = vmatmul.mubr.msk.bf16.gmra.mrb[12].mxu0 %vm390_vm1, %v1057_v16 }
  0x2b   : > { %1028 = vmatmul.mubr.msk.bf16.gmra.mrb[12].mxu1 %vm390_vm1, %v1058_v17 }
  0xe5   : > { %v1001_v19 = vpop.f32.mrb[0].mxu0 }
  0xe6   : > { %v486_v21 = vadd.f32 %v1001_v19, %v1157_v18  ;;  %v1017_v22 = vpop.f32.mrb[0].mxu1  ;;  %v477_v23 = vpop.f32.mrb[1].mxu0 }
  0xe7   : > { %v550_v25 = vadd.f32 %v1017_v22, %v1157_v18  ;;  %v478_v26 = vadd.f32 %v1157_v18, %v477_v23  ;;  %v541_v27 = vpop.f32.mrb[1].mxu1  ;;  %v1002_v28 = vpop.f32.mrb[2].mxu0 }
  0xe8   : > { %606 = vst.msk [vmem:[%s1164_s11 + $0x10] sm:$0xff] %vm390_vm1, %v486_v21  ;;  %v645_v29 = vmul.f32 %v1169_v20, %v486_v21  ;;  %v542_v30 = vadd.f32 %v1157_v18, %v541_v27  ;;  %v489_v31 = vadd.f32 %v1002_v28, %v1157_v18  ;;  %v1018_v32 = vpop.f32.mrb[2].mxu1  ;;  %v480_v33 = vpop.f32.mrb[3].mxu0 }
  0xe9   : > { %622 = vst.msk [vmem:[%s1164_s11 + $0x90] sm:$0xff] %vm390_vm1, %v550_v25  ;;  %v661_v34 = vmul.f32 %v1169_v20, %v550_v25  ;;  %604 = vst.msk [vmem:[%s1164_s11] sm:$0xff] %vm390_vm1, %v478_v26  ;;  %v643_v35 = vmul.f32 %v1169_v20, %v478_v26  ;;  %v553_v36 = vadd.f32 %v1018_v32, %v1157_v18  ;;  %v544_v38 = vpop.f32.mrb[3].mxu1 }
  0xea   : > { %v481_v37 = vadd.f32 %v1157_v18, %v480_v33  ;;  %v684_v39 = vadd.f32 %v1175_v24, %v645_v29  ;;  %620 = vst.msk [vmem:[%s1164_s11 + $0x80] sm:$0xff] %vm390_vm1, %v542_v30  ;;  %v659_v40 = vmul.f32 %v1169_v20, %v542_v30  ;;  %607 = vst.msk [vmem:[%s1164_s11 + $0x18] sm:$0xff] %vm390_vm1, %v489_v31 }
  0xeb   : > { %v646_v41 = vmul.f32 %v1169_v20, %v489_v31  ;;  %v545_v42 = vadd.f32 %v1157_v18, %v544_v38  ;;  %v700_v43 = vadd.f32 %v1175_v24, %v661_v34  ;;  %v682_v44 = vadd.f32 %v1175_v24, %v643_v35  ;;  %623 = vst.msk [vmem:[%s1164_s11 + $0x98] sm:$0xff] %vm390_vm1, %v553_v36 }
  0xec   : > { %v662_v45 = vmul.f32 %v1169_v20, %v553_v36  ;;  %605 = vst.msk [vmem:[%s1164_s11 + $0x8] sm:$0xff] %vm390_vm1, %v481_v37  ;;  %v644_v46 = vmul.f32 %v1169_v20, %v481_v37  ;;  %vm716_vm2 = vcmp.ge.f32.partialorder %v684_v39, 0.0  ;;  %v748_v47 = vmul.f32 0.01, %v684_v39 }
  0xed   : > { %v698_v48 = vadd.f32 %v1175_v24, %v659_v40  ;;  %v685_v49 = vadd.f32 %v1175_v24, %v646_v41  ;;  %621 = vst.msk [vmem:[%s1164_s11 + $0x88] sm:$0xff] %vm390_vm1, %v545_v42  ;;  %vm732_vm3 = vcmp.ge.f32.partialorder %v700_v43, 0.0  ;;  %v764_v50 = vmul.f32 0.01, %v700_v43  ;;  %v1005_v54 = vpop.f32.mrb[4].mxu0 }
  0xee   : > { %vm714_vm4 = vcmp.ge.f32.partialorder %v682_v44, 0.0  ;;  %v746_v51 = vmul.f32 0.01, %v682_v44  ;;  %v780_v52 = vsel %vm716_vm2, %v684_v39, %v748_v47  ;;  %v1021_v55 = vpop.f32.mrb[4].mxu1  ;;  %v701_v59 = vadd.f32 %v1175_v24, %v662_v45  ;;  %v493_v60 = vpop.f32.mrb[5].mxu0 }
  0xef   : > { %vm730_vm5 = vcmp.ge.f32.partialorder %v698_v48, 0.0  ;;  %v762_v53 = vmul.f32 0.01, %v698_v48  ;;  %vm717_vm6 = vcmp.ge.f32.partialorder %v685_v49, 0.0  ;;  %812 = vst.msk [vmem:[%s1213_s18 + $0x10] sm:$0xff] %vm390_vm1, %v780_v52  ;;  %v796_v56 = vsel %vm732_vm3, %v700_v43, %v764_v50  ;;  %v557_v61 = vpop.f32.mrb[5].mxu1 }
  0xf0   : > { %v778_v57 = vsel %vm714_vm4, %v682_v44, %v746_v51  ;;  %v749_v58 = vmul.f32 0.01, %v685_v49  ;;  %828 = vst.msk [vmem:[%s1213_s18 + $0x90] sm:$0xff] %vm390_vm1, %v796_v56  ;;  %v683_v63 = vadd.f32 %v1175_v24, %v644_v46  ;;  %v660_v0 = vmul.f32 %v1169_v20, %v545_v42  ;;  %v1006_v2 = vpop.f32.mrb[6].mxu0  ;;  %v1022_v3 = vpop.f32.mrb[6].mxu1 }
  0xf1   : > { %810 = vst.msk [vmem:[%s1213_s18] sm:$0xff] %vm390_vm1, %v778_v57  ;;  %v794_v62 = vsel %vm730_vm5, %v698_v48, %v762_v53  ;;  %v502_v1 = vadd.f32 %v1005_v54, %v1157_v18  ;;  %vm733_vm7 = vcmp.ge.f32.partialorder %v701_v59, 0.0  ;;  %v765_v5 = vmul.f32 0.01, %v701_v59  ;;  %v496_v7 = vpop.f32.mrb[7].mxu0  ;;  %v560_v8 = vpop.f32.mrb[7].mxu1 }
  0xf2   : > { %826 = vst.msk [vmem:[%s1213_s18 + $0x80] sm:$0xff] %vm390_vm1, %v794_v62  ;;  %v781_v4 = vsel %vm717_vm6, %v685_v49, %v749_v58  ;;  %v566_v6 = vadd.f32 %v1021_v55, %v1157_v18  ;;  %vm715_vm8 = vcmp.ge.f32.partialorder %v683_v63, 0.0  ;;  %v747_v9 = vmul.f32 0.01, %v683_v63 }
  0xf3   : > { %813 = vst.msk [vmem:[%s1213_s18 + $0x18] sm:$0xff] %vm390_vm1, %v781_v4  ;;  %v699_v10 = vadd.f32 %v1175_v24, %v660_v0  ;;  %610 = vst.msk [vmem:[%s1164_s11 + $0x30] sm:$0xff] %vm390_vm1, %v502_v1  ;;  %v649_v11 = vmul.f32 %v1169_v20, %v502_v1  ;;  %v797_v12 = vsel %vm733_vm7, %v701_v59, %v765_v5 }
  0xf4   : > { %626 = vst.msk [vmem:[%s1164_s11 + $0xb0] sm:$0xff] %vm390_vm1, %v566_v6  ;;  %v665_v13 = vmul.f32 %v1169_v20, %v566_v6  ;;  %v494_v14 = vadd.f32 %v1157_v18, %v493_v60  ;;  %v558_v15 = vadd.f32 %v1157_v18, %v557_v61  ;;  %829 = vst.msk [vmem:[%s1213_s18 + $0x98] sm:$0xff] %vm390_vm1, %v797_v12 }
  0xf5   : > { %v779_v16 = vsel %vm715_vm8, %v683_v63, %v747_v9  ;;  %vm731_vm9 = vcmp.ge.f32.partialorder %v699_v10, 0.0  ;;  %v763_v17 = vmul.f32 0.01, %v699_v10  ;;  %v688_v19 = vadd.f32 %v1175_v24, %v649_v11  ;;  %v1009_v26 = vpop.f32.mrb[8].mxu0 }
  0xf6   : > { %811 = vst.msk [vmem:[%s1213_s18 + $0x8] sm:$0xff] %vm390_vm1, %v779_v16  ;;  %v704_v21 = vadd.f32 %v1175_v24, %v665_v13  ;;  %608 = vst.msk [vmem:[%s1164_s11 + $0x20] sm:$0xff] %vm390_vm1, %v494_v14  ;;  %v647_v22 = vmul.f32 %v1169_v20, %v494_v14  ;;  %v663_v23 = vmul.f32 %v1169_v20, %v558_v15  ;;  %v1025_v30 = vpop.f32.mrb[8].mxu1  ;;  %v509_v31 = vpop.f32.mrb[9].mxu0 }
  0xf7   : > { %624 = vst.msk [vmem:[%s1164_s11 + $0xa0] sm:$0xff] %vm390_vm1, %v558_v15  ;;  %v505_v25 = vadd.f32 %v1006_v2, %v1157_v18  ;;  %v795_v27 = vsel %vm731_vm9, %v699_v10, %v763_v17  ;;  %vm720_vm10 = vcmp.ge.f32.partialorder %v688_v19, 0.0  ;;  %v752_v28 = vmul.f32 0.01, %v688_v19  ;;  %v573_v35 = vpop.f32.mrb[9].mxu1  ;;  %v1264_v36 = vpop.f32.mrb[10].mxu0 }
  0xf8   : > { %v569_v29 = vadd.f32 %v1022_v3, %v1157_v18  ;;  %827 = vst.msk [vmem:[%s1213_s18 + $0x88] sm:$0xff] %vm390_vm1, %v795_v27  ;;  %vm736_vm11 = vcmp.ge.f32.partialorder %v704_v21, 0.0  ;;  %v768_v32 = vmul.f32 0.01, %v704_v21  ;;  %v686_v33 = vadd.f32 %v1175_v24, %v647_v22  ;;  %v1271_v41 = vpop.f32.mrb[10].mxu1  ;;  %v1273_v42 = vpop.f32.mrb[11].mxu0 }
  0xf9   : > { %v702_v34 = vadd.f32 %v1175_v24, %v663_v23  ;;  %611 = vst.msk [vmem:[%s1164_s11 + $0x38] sm:$0xff] %vm390_vm1, %v505_v25  ;;  %v784_v37 = vsel %vm720_vm10, %v688_v19, %v752_v28  ;;  %v650_v38 = vmul.f32 %v1169_v20, %v505_v25  ;;  %v497_v40 = vadd.f32 %v1157_v18, %v496_v7  ;;  %v1277_v45 = vpop.f32.mrb[11].mxu1 }
  0xfa   : > { %627 = vst.msk [vmem:[%s1164_s11 + $0xb8] sm:$0xff] %vm390_vm1, %v569_v29  ;;  %v666_v39 = vmul.f32 %v1169_v20, %v569_v29  ;;  %816 = vst.msk [vmem:[%s1213_s18 + $0x30] sm:$0xff] %vm390_vm1, %v784_v37  ;;  %v800_v43 = vsel %vm736_vm11, %v704_v21, %v768_v32  ;;  %vm718_vm12 = vcmp.ge.f32.partialorder %v686_v33, 0.0  ;;  %v750_v44 = vmul.f32 0.01, %v686_v33 }
  0xfb   : > { %vm734_vm13 = vcmp.ge.f32.partialorder %v702_v34, 0.0  ;;  %832 = vst.msk [vmem:[%s1213_s18 + $0xb0] sm:$0xff] %vm390_vm1, %v800_v43  ;;  %v766_v46 = vmul.f32 0.01, %v702_v34  ;;  %v689_v47 = vadd.f32 %v1175_v24, %v650_v38  ;;  %609 = vst.msk [vmem:[%s1164_s11 + $0x28] sm:$0xff] %vm390_vm1, %v497_v40  ;;  %v648_v49 = vmul.f32 %v1169_v20, %v497_v40 }
  0xfc   : > { %v705_v48 = vadd.f32 %v1175_v24, %v666_v39  ;;  %v782_v50 = vsel %vm718_vm12, %v686_v33, %v750_v44  ;;  %v561_v51 = vadd.f32 %v1157_v18, %v560_v8  ;;  %v518_v52 = vadd.f32 %v1009_v26, %v1157_v18 }
  0xfd   : > { %v582_v53 = vadd.f32 %v1025_v30, %v1157_v18  ;;  %814 = vst.msk [vmem:[%s1213_s18 + $0x20] sm:$0xff] %vm390_vm1, %v782_v50  ;;  %v798_v54 = vsel %vm734_vm13, %v702_v34, %v766_v46  ;;  %vm721_vm14 = vcmp.ge.f32.partialorder %v689_v47, 0.0  ;;  %v753_v55 = vmul.f32 0.01, %v689_v47  ;;  %v1013_v60 = vpop.f32.mrb[12].mxu0 }
  0xfe   : > { %vm737_vm15 = vcmp.ge.f32.partialorder %v705_v48, 0.0  ;;  %830 = vst.msk [vmem:[%s1213_s18 + $0xa0] sm:$0xff] %vm390_vm1, %v798_v54  ;;  %v769_v56 = vmul.f32 0.01, %v705_v48  ;;  %v687_v57 = vadd.f32 %v1175_v24, %v648_v49  ;;  %625 = vst.msk [vmem:[%s1164_s11 + $0xa8] sm:$0xff] %vm390_vm1, %v561_v51  ;;  %v664_v58 = vmul.f32 %v1169_v20, %v561_v51  ;;  %v1029_v1 = vpop.f32.mrb[12].mxu1 }
  0xff   : > { %614 = vst.msk [vmem:[%s1164_s11 + $0x50] sm:$0xff] %vm390_vm1, %v518_v52  ;;  %v653_v59 = vmul.f32 %v1169_v20, %v518_v52  ;;  %630 = vst.msk [vmem:[%s1164_s11 + $0xd0] sm:$0xff] %vm390_vm1, %v582_v53  ;;  %v785_v61 = vsel %vm721_vm14, %v689_v47, %v753_v55  ;;  %v669_v62 = vmul.f32 %v1169_v20, %v582_v53  ;;  %v1305_v2 = vpop.f32.mrb[13].mxu0  ;;  %v1311_v6 = vpop.f32.mrb[13].mxu1 }
 0x100   : > { %v510_v63 = vadd.f32 %v1157_v18, %v509_v31  ;;  %v574_v0 = vadd.f32 %v1157_v18, %v573_v35  ;;  %817 = vst.msk [vmem:[%s1213_s18 + $0x38] sm:$0xff] %vm390_vm1, %v785_v61  ;;  %v801_v3 = vsel %vm737_vm15, %v705_v48, %v769_v56  ;;  %vm719_vm0 = vcmp.ge.f32.partialorder %v687_v57, 0.0  ;;  %v1313_v7 = vpop.f32.mrb[14].mxu0  ;;  %v1325_v12 = vpop.f32.mrb[14].mxu1 }
 0x101   : > { %v751_v4 = vmul.f32 0.01, %v687_v57  ;;  %v703_v5 = vadd.f32 %v1175_v24, %v664_v58  ;;  %833 = vst.msk [vmem:[%s1213_s18 + $0xb8] sm:$0xff] %vm390_vm1, %v801_v3  ;;  %v692_v8 = vadd.f32 %v1175_v24, %v653_v59  ;;  %v708_v9 = vadd.f32 %v1175_v24, %v669_v62  ;;  %v1327_v13 = vpop.f32.mrb[15].mxu0  ;;  %v1331_v17 = vpop.f32.mrb[15].mxu1 }
 0x102   : > { %612 = vst.msk [vmem:[%s1164_s11 + $0x40] sm:$0xff] %vm390_vm1, %v510_v63  ;;  %v651_v10 = vmul.f32 %v1169_v20, %v510_v63  ;;  %628 = vst.msk [vmem:[%s1164_s11 + $0xc0] sm:$0xff] %vm390_vm1, %v574_v0  ;;  %v667_v11 = vmul.f32 %v1169_v20, %v574_v0  ;;  %v521_v16 = vadd.f32 %v1264_v36, %v1157_v18 }
 0x103   : > { %v783_v14 = vsel %vm719_vm0, %v687_v57, %v751_v4  ;;  %vm735_vm2 = vcmp.ge.f32.partialorder %v703_v5, 0.0  ;;  %v767_v15 = vmul.f32 0.01, %v703_v5  ;;  %vm724_vm3 = vcmp.ge.f32.partialorder %v692_v8, 0.0 }
 0x104   : > { %815 = vst.msk [vmem:[%s1213_s18 + $0x28] sm:$0xff] %vm390_vm1, %v783_v14  ;;  %v756_v19 = vmul.f32 0.01, %v692_v8  ;;  %vm740_vm4 = vcmp.ge.f32.partialorder %v708_v9, 0.0  ;;  %v772_v21 = vmul.f32 0.01, %v708_v9  ;;  %v690_v23 = vadd.f32 %v1175_v24, %v651_v10 }
 0x105   : > { %v799_v22 = vsel %vm735_vm2, %v703_v5, %v767_v15  ;;  %v706_v25 = vadd.f32 %v1175_v24, %v667_v11  ;;  %615 = vst.msk [vmem:[%s1164_s11 + $0x58] sm:$0xff] %vm390_vm1, %v521_v16  ;;  %v654_v26 = vmul.f32 %v1169_v20, %v521_v16  ;;  %v585_v29 = vadd.f32 %v1271_v41, %v1157_v18 }
 0x106   : > { %831 = vst.msk [vmem:[%s1213_s18 + $0xa8] sm:$0xff] %vm390_vm1, %v799_v22  ;;  %v788_v27 = vsel %vm724_vm3, %v692_v8, %v756_v19  ;;  %v804_v28 = vsel %vm740_vm4, %v708_v9, %v772_v21  ;;  %v513_v30 = vadd.f32 %v1157_v18, %v1273_v42  ;;  %vm722_vm5 = vcmp.ge.f32.partialorder %v690_v23, 0.0 }
 0x107   : > { %820 = vst.msk [vmem:[%s1213_s18 + $0x50] sm:$0xff] %vm390_vm1, %v788_v27  ;;  %836 = vst.msk [vmem:[%s1213_s18 + $0xd0] sm:$0xff] %vm390_vm1, %v804_v28  ;;  %v754_v31 = vmul.f32 0.01, %v690_v23  ;;  %vm738_vm6 = vcmp.ge.f32.partialorder %v706_v25, 0.0  ;;  %v693_v33 = vadd.f32 %v1175_v24, %v654_v26  ;;  %v670_v34 = vmul.f32 %v1169_v20, %v585_v29 }
 0x108   : > { %v770_v32 = vmul.f32 0.01, %v706_v25  ;;  %631 = vst.msk [vmem:[%s1164_s11 + $0xd8] sm:$0xff] %vm390_vm1, %v585_v29  ;;  %613 = vst.msk [vmem:[%s1164_s11 + $0x48] sm:$0xff] %vm390_vm1, %v513_v30  ;;  %v652_v35 = vmul.f32 %v1169_v20, %v513_v30  ;;  %v577_v36 = vadd.f32 %v1157_v18, %v1277_v45  ;;  %v534_v39 = vadd.f32 %v1013_v60, %v1157_v18 }
 0x109   : > { %v786_v37 = vsel %vm722_vm5, %v690_v23, %v754_v31  ;;  %v598_v40 = vadd.f32 %v1029_v1, %v1157_v18  ;;  %vm725_vm7 = vcmp.ge.f32.partialorder %v693_v33, 0.0  ;;  %v757_v41 = vmul.f32 0.01, %v693_v33 }
 0x10a   : > { %v802_v38 = vsel %vm738_vm6, %v706_v25, %v770_v32  ;;  %818 = vst.msk [vmem:[%s1213_s18 + $0x40] sm:$0xff] %vm390_vm1, %v786_v37  ;;  %v709_v42 = vadd.f32 %v1175_v24, %v670_v34  ;;  %v691_v43 = vadd.f32 %v1175_v24, %v652_v35  ;;  %629 = vst.msk [vmem:[%s1164_s11 + $0xc8] sm:$0xff] %vm390_vm1, %v577_v36 }
 0x10b   : > { %834 = vst.msk [vmem:[%s1213_s18 + $0xc0] sm:$0xff] %vm390_vm1, %v802_v38  ;;  %v668_v44 = vmul.f32 %v1169_v20, %v577_v36  ;;  %618 = vst.msk [vmem:[%s1164_s11 + $0x70] sm:$0xff] %vm390_vm1, %v534_v39  ;;  %v657_v45 = vmul.f32 %v1169_v20, %v534_v39  ;;  %v673_v46 = vmul.f32 %v1169_v20, %v598_v40 }
 0x10c   : > { %634 = vst.msk [vmem:[%s1164_s11 + $0xf0] sm:$0xff] %vm390_vm1, %v598_v40  ;;  %v526_v47 = vadd.f32 %v1157_v18, %v1305_v2  ;;  %v789_v48 = vsel %vm725_vm7, %v693_v33, %v757_v41  ;;  %vm741_vm8 = vcmp.ge.f32.partialorder %v709_v42, 0.0  ;;  %v773_v49 = vmul.f32 0.01, %v709_v42 }
 0x10d   : > { %vm723_vm9 = vcmp.ge.f32.partialorder %v691_v43, 0.0  ;;  %821 = vst.msk [vmem:[%s1213_s18 + $0x58] sm:$0xff] %vm390_vm1, %v789_v48  ;;  %v755_v50 = vmul.f32 0.01, %v691_v43  ;;  %v707_v51 = vadd.f32 %v1175_v24, %v668_v44  ;;  %v696_v52 = vadd.f32 %v1175_v24, %v657_v45 }
 0x10e   : > { %v712_v53 = vadd.f32 %v1175_v24, %v673_v46  ;;  %616 = vst.msk [vmem:[%s1164_s11 + $0x60] sm:$0xff] %vm390_vm1, %v526_v47  ;;  %v805_v54 = vsel %vm741_vm8, %v709_v42, %v773_v49  ;;  %v655_v55 = vmul.f32 %v1169_v20, %v526_v47  ;;  %v590_v56 = vadd.f32 %v1157_v18, %v1311_v6 }
 0x10f   : > { %v537_v57 = vadd.f32 %v1313_v7, %v1157_v18  ;;  %837 = vst.msk [vmem:[%s1213_s18 + $0xd8] sm:$0xff] %vm390_vm1, %v805_v54  ;;  %v787_v58 = vsel %vm723_vm9, %v691_v43, %v755_v50  ;;  %vm739_vm10 = vcmp.ge.f32.partialorder %v707_v51, 0.0  ;;  %v771_v59 = vmul.f32 0.01, %v707_v51 }
 0x110   : > { %vm728_vm11 = vcmp.ge.f32.partialorder %v696_v52, 0.0  ;;  %819 = vst.msk [vmem:[%s1213_s18 + $0x48] sm:$0xff] %vm390_vm1, %v787_v58  ;;  %v760_v60 = vmul.f32 0.01, %v696_v52  ;;  %vm744_vm12 = vcmp.ge.f32.partialorder %v712_v53, 0.0  ;;  %v694_v62 = vadd.f32 %v1175_v24, %v655_v55  ;;  %632 = vst.msk [vmem:[%s1164_s11 + $0xe0] sm:$0xff] %vm390_vm1, %v590_v56 }
 0x111   : > { %v776_v61 = vmul.f32 0.01, %v712_v53  ;;  %619 = vst.msk [vmem:[%s1164_s11 + $0x78] sm:$0xff] %vm390_vm1, %v537_v57  ;;  %v803_v63 = vsel %vm739_vm10, %v707_v51, %v771_v59  ;;  %v671_v0 = vmul.f32 %v1169_v20, %v590_v56  ;;  %v658_v1 = vmul.f32 %v1169_v20, %v537_v57 }
 0x112   : > { %v601_v2 = vadd.f32 %v1325_v12, %v1157_v18  ;;  %835 = vst.msk [vmem:[%s1213_s18 + $0xc8] sm:$0xff] %vm390_vm1, %v803_v63  ;;  %v792_v3 = vsel %vm728_vm11, %v696_v52, %v760_v60  ;;  %vm726_vm13 = vcmp.ge.f32.partialorder %v694_v62, 0.0  ;;  %v758_v5 = vmul.f32 0.01, %v694_v62 }
 0x113   : > { %v808_v4 = vsel %vm744_vm12, %v712_v53, %v776_v61  ;;  %824 = vst.msk [vmem:[%s1213_s18 + $0x70] sm:$0xff] %vm390_vm1, %v792_v3  ;;  %v710_v6 = vadd.f32 %v1175_v24, %v671_v0  ;;  %v697_v7 = vadd.f32 %v1175_v24, %v658_v1  ;;  %v529_v9 = vadd.f32 %v1157_v18, %v1327_v13 }
 0x114   : > { %840 = vst.msk [vmem:[%s1213_s18 + $0xf0] sm:$0xff] %vm390_vm1, %v808_v4  ;;  %635 = vst.msk [vmem:[%s1164_s11 + $0xf8] sm:$0xff] %vm390_vm1, %v601_v2  ;;  %v674_v8 = vmul.f32 %v1169_v20, %v601_v2  ;;  %v790_v10 = vsel %vm726_vm13, %v694_v62, %v758_v5  ;;  %v593_v11 = vadd.f32 %v1157_v18, %v1331_v17 }
 0x115   : > { %822 = vst.msk [vmem:[%s1213_s18 + $0x60] sm:$0xff] %vm390_vm1, %v790_v10  ;;  %vm742_vm14 = vcmp.ge.f32.partialorder %v710_v6, 0.0  ;;  %v774_v12 = vmul.f32 0.01, %v710_v6  ;;  %vm729_vm15 = vcmp.ge.f32.partialorder %v697_v7, 0.0  ;;  %617 = vst.msk [vmem:[%s1164_s11 + $0x68] sm:$0xff] %vm390_vm1, %v529_v9  ;;  %v656_v16 = vmul.f32 %v1169_v20, %v529_v9 }
 0x116   : > { %v761_v14 = vmul.f32 0.01, %v697_v7  ;;  %v713_v15 = vadd.f32 %v1175_v24, %v674_v8  ;;  %633 = vst.msk [vmem:[%s1164_s11 + $0xe8] sm:$0xff] %vm390_vm1, %v593_v11  ;;  %v672_v13 = vmul.f32 %v1169_v20, %v593_v11 }
 0x117   : > { %v806_v19 = vsel %vm742_vm14, %v710_v6, %v774_v12  ;;  %v695_v21 = vadd.f32 %v1175_v24, %v656_v16 }
 0x118   : > { %v793_v18 = vsel %vm729_vm15, %v697_v7, %v761_v14  ;;  %838 = vst.msk [vmem:[%s1213_s18 + $0xe0] sm:$0xff] %vm390_vm1, %v806_v19  ;;  %vm745_vm0 = vcmp.ge.f32.partialorder %v713_v15, 0.0  ;;  %v777_v17 = vmul.f32 0.01, %v713_v15  ;;  %v711_v22 = vadd.f32 %v1175_v24, %v672_v13 }
 0x119   : > { %825 = vst.msk [vmem:[%s1213_s18 + $0x78] sm:$0xff] %vm390_vm1, %v793_v18  ;;  %vm727_vm2 = vcmp.ge.f32.partialorder %v695_v21, 0.0  ;;  %v759_v25 = vmul.f32 0.01, %v695_v21 }
 0x11a   : > { %v809_v23 = vsel %vm745_vm0, %v713_v15, %v777_v17  ;;  %vm743_vm3 = vcmp.ge.f32.partialorder %v711_v22, 0.0  ;;  %v775_v20 = vmul.f32 0.01, %v711_v22 }
 0x11b   : > { %841 = vst.msk [vmem:[%s1213_s18 + $0xf8] sm:$0xff] %vm390_vm1, %v809_v23  ;;  %v791_v26 = vsel %vm727_vm2, %v695_v21, %v759_v25 }
 0x11c   : > { %823 = vst.msk [vmem:[%s1213_s18 + $0x68] sm:$0xff] %vm390_vm1, %v791_v26  ;;  %v807_v27 = vsel %vm743_vm3, %v711_v22, %v775_v20 }
 0x11d   : > { %839 = vst.msk [vmem:[%s1213_s18 + $0xe8] sm:$0xff] %vm390_vm1, %v807_v27 }
 0x11e PF: > { %s17_s21 = sadd.s32 1, %s1065_s21  }
 0x11f   : > { %p14_p4 = scmp.ge.s32.totalorder %s17_s21, 4  }
 0x121   :  { %16 = sbr.rel (!%p14_p4) target bundleno = 1 (0x1), region = 82 }

// kernel: _lambda_.18
= control target key start
LH: loop header
LB: loop body
LE: loop exit
PB: predicated region body
PF: predicated region fallthrough
CT: control target
= control target key end

     0   :  { %s4261_s12 = smov 0   ;;  %s5055_s0 = inlined_call_operand.vmem [shape: f32[2,326,8], index: 0, kind: input, shape index: {}]   ;;  %s5056_s1 = inlined_call_operand.vmem [shape: bf16[9,8,8], index: 1, kind: input, shape index: {}]   ;;  %s5057_s2 = inlined_call_operand.vmem [shape: f32[2,288,8], index: 2, kind: input, shape index: {}]   ;;  %s5058_s3 = inlined_call_operand.vmem [shape: f32[2,288,8], index: 3, kind: output, shape index: {}]  }
   0x1 LB: > { %s3230_s13 = sadd.s32 4294967295, %s4239_s12   ;;  %p3234_p0 = scmp.ge.s32.totalorder %s4239_s12, 1  ;;  %s4239_s12 = sphi %s4261_s12, %s13_s12  }
   0x2   : > { %p147_p1 = scmp.lt.s32.totalorder %s4239_s12, 3 }
   0x4   : > { %p148_p2 = pnand %p3234_p0, %p147_p1 }
   0x5   : > { %vm358_vm0 = vcmask (!%p148_p2), 1043456   ;;  %v4272_v0 = vld [vmem:[%s5056_s1 + $0x10] sm:$0xf] (!%p148_p2)  ;;  %v3238_v1 = vld [vmem:[%s5056_s1 + $0x4] sm:$0xf] (!%p148_p2)  ;;  %p176_p3 = scmp.lt.s32.totalorder (!%p148_p2), %s3230_s13, 1 }
   0x6   : > { %151 = sbr.rel (%p148_p2) target bundleno = 562 (0x232), region = 32  ;;  %4217 = vmatprep.subr.msk.bf16.mxu0 (!%p148_p2), %vm358_vm0, %v4272_v0  ;;  %4213 = vmatprep.subr.msk.bf16.mxu1 (!%p148_p2), %vm358_vm0, %v3238_v1  ;;  %v4282_v2 = vsel (!%p148_p2), %vm358_vm0, %v4272_v0, 0  ;;  %v360_v3 = vsel (!%p148_p2), %vm358_vm0, %v3238_v1, 0  ;;  %v3332_v4 = vld [vmem:[%s5056_s1 + $0x14] sm:$0xf] (!%p148_p2)  ;;  %vm303_vm1 = vcmask (!%p148_p2), 64512  }
   0x7   : > { %3734 = vmatpush3.bf16.msra.mxu0 (!%p148_p2), %v4282_v2  ;;  %3582 = vmatpush3.bf16.msra.mxu1 (!%p148_p2), %v360_v3  ;;  %v246_v5 = vld [vmem:[%s5056_s1] sm:$0xf] (!%p148_p2)  ;;  %v1862_v20 = vsel (!%p148_p2), %vm358_vm0, %v3332_v4, 0  ;;  %v4322_v26 = vld [vmem:[%s5056_s1 + $0x18] sm:$0xf] (!%p148_p2) }
   0x8   : > { %4219 = vmatprep.subr.msk.bf16.mxu0 (!%p148_p2), %vm358_vm0, %v3332_v4  ;;  %4214 = vmatprep.subr.msk.bf16.mxu1 (!%p148_p2), %vm358_vm0, %v246_v5  ;;  %v594_v18 = vsel (!%p148_p2), %vm358_vm0, %v246_v5, 0  ;;  %v4327_v27 = vld [vmem:[%s5056_s1 + $0x8] sm:$0xf] (!%p148_p2) }
   0xd   : > { %s5060_s13 = smov (!%p176_p3, %s3230_s13), 1 }
   0xe   : > { %s4223_s22 = smul.u32 328, %s5060_s13 }
   0xf   : > { %s4224_s9 = smul.u32 288, %s5060_s13 }
  0x10   : > { %s4300_s25 = scalar_lea.vmem %s5055_s0, %s4223_s22 }
  0x11   : > { %v247_v6 = vld [vmem:[%s4300_s25 + $0x1] sm:$0xff]  ;;  %v248_v7 = vld [vmem:[%s4300_s25 + $0x9] sm:$0xff]  ;;  %v1425_v8 = vld [vmem:[%s4300_s25 + $0x13] sm:$0xff]  ;;  %s4928_s14 = scalar_lea.vmem %s5057_s2, %s4224_s9  ;;  %s4935_s13 = scalar_lea.vmem %s5058_s3, %s4224_s9 }
  0x12   : > { %v283_v9 = vpack.c.bf16 %v248_v7, %v247_v6  ;;  %v1426_v10 = vld [vmem:[%s4300_s25 + $0x1b] sm:$0xff]  ;;  %v249_v11 = vld [vmem:[%s4300_s25 + $0x11] sm:$0xff]  ;;  %v1427_v15 = vld [vmem:[%s4300_s25 + $0x23] sm:$0xff] }
  0x13   : > { %v250_v12 = vld [vmem:[%s4300_s25 + $0x19] sm:$0xff]  ;;  %v1461_v13 = vpack.c.bf16 %v1426_v10, %v1425_v8  ;;  %v1428_v16 = vld [vmem:[%s4300_s25 + $0x2b] sm:$0xff]  ;;  %v251_v17 = vld [vmem:[%s4300_s25 + $0x21] sm:$0xff] }
  0x14   : > { %v284_v14 = vpack.c.bf16 %v250_v12, %v249_v11  ;;  %3583 = vmatprep.mubr.msk.bf16.mxu1 %vm303_vm1, %v283_v9  ;;  %v1462_v19 = vpack.c.bf16 %v1428_v16, %v1427_v15  ;;  %v252_v21 = vld [vmem:[%s4300_s25 + $0x29] sm:$0xff]  ;;  %v1429_v22 = vld [vmem:[%s4300_s25 + $0x33] sm:$0xff]  ;;  %v1430_v23 = vld [vmem:[%s4300_s25 + $0x3b] sm:$0xff] }
  0x15   : > { %3735 = vmatprep.mubr.msk.bf16.mxu0 %vm303_vm1, %v1461_v13  ;;  %v285_v24 = vpack.c.bf16 %v252_v21, %v251_v17  ;;  %v1463_v25 = vpack.c.bf16 %v1430_v23, %v1429_v22  ;;  %v253_v28 = vld [vmem:[%s4300_s25 + $0x31] sm:$0xff]  ;;  %v254_v29 = vld [vmem:[%s4300_s25 + $0x39] sm:$0xff]  ;;  %v1431_v30 = vld [vmem:[%s4300_s25 + $0x43] sm:$0xff] }
  0x16   : > { %3584 = vmatmul.mubr.msk.bf16.vlgmr.msra.gmra.mrb[0].mxu1 %vm303_vm1, %v284_v14  ;;  %3736 = vmatmul.mubr.msk.bf16.vlgmr.msra.gmra.mrb[0].mxu0 %vm303_vm1, %v1462_v19  ;;  %v1432_v31 = vld [vmem:[%s4300_s25 + $0x4b] sm:$0xff]  ;;  %v255_v32 = vld [vmem:[%s4300_s25 + $0x41] sm:$0xff]  ;;  %v1433_v34 = vld [vmem:[%s4300_s25 + $0x53] sm:$0xff]  ;;  %v286_v36 = vpack.c.bf16 %v254_v29, %v253_v28  ;;  %v2188_v28 = vsel %vm358_vm0, %v4322_v26, 0 }
  0x17   : > { %3620 = vmatpush3.bf16.msra.mxu1 %v594_v18  ;;  %3772 = vmatpush3.bf16.msra.mxu0 %v1862_v20  ;;  %v256_v33 = vld [vmem:[%s4300_s25 + $0x49] sm:$0xff]  ;;  %v1434_v35 = vld [vmem:[%s4300_s25 + $0x5b] sm:$0xff]  ;;  %v1464_v37 = vpack.c.bf16 %v1432_v31, %v1431_v30  ;;  %v257_v40 = vld [vmem:[%s4300_s25 + $0x51] sm:$0xff] }
  0x18   : > { %3587 = vmatprep.mubr.msk.bf16.mxu1 %vm303_vm1, %v285_v24  ;;  %3739 = vmatprep.mubr.msk.bf16.mxu0 %vm303_vm1, %v1463_v25  ;;  %v287_v38 = vpack.c.bf16 %v256_v33, %v255_v32  ;;  %v1465_v39 = vpack.c.bf16 %v1434_v35, %v1433_v34  ;;  %v258_v41 = vld [vmem:[%s4300_s25 + $0x59] sm:$0xff]  ;;  %v1435_v42 = vld [vmem:[%s4300_s25 + $0x63] sm:$0xff]  ;;  %v1436_v43 = vld [vmem:[%s4300_s25 + $0x6b] sm:$0xff] }
  0x19   : > { %4220 = vmatprep.subr.msk.bf16.mxu0 %vm358_vm0, %v4322_v26  ;;  %4215 = vmatprep.subr.msk.bf16.mxu1 %vm358_vm0, %v4327_v27  ;;  %v259_v44 = vld [vmem:[%s4300_s25 + $0x61] sm:$0xff]  ;;  %v260_v45 = vld [vmem:[%s4300_s25 + $0x69] sm:$0xff]  ;;  %v1437_v46 = vld [vmem:[%s4300_s25 + $0x73] sm:$0xff]  ;;  %v288_v48 = vpack.c.bf16 %v258_v41, %v257_v40  ;;  %v1466_v49 = vpack.c.bf16 %v1436_v43, %v1435_v42 }
  0x1a   : > { %v1438_v47 = vld [vmem:[%s4300_s25 + $0x7b] sm:$0xff]  ;;  %v289_v50 = vpack.c.bf16 %v260_v45, %v259_v44  ;;  %v261_v52 = vld [vmem:[%s4300_s25 + $0x71] sm:$0xff]  ;;  %v1439_v54 = vld [vmem:[%s4300_s25 + $0x83] sm:$0xff] }
  0x1b   : > { %v1467_v51 = vpack.c.bf16 %v1438_v47, %v1437_v46  ;;  %v262_v53 = vld [vmem:[%s4300_s25 + $0x79] sm:$0xff]  ;;  %v1440_v55 = vld [vmem:[%s4300_s25 + $0x8b] sm:$0xff]  ;;  %v263_v56 = vld [vmem:[%s4300_s25 + $0x81] sm:$0xff] }
  0x1c   : > { %v264_v57 = vld [vmem:[%s4300_s25 + $0x89] sm:$0xff]  ;;  %v1441_v58 = vld [vmem:[%s4300_s25 + $0x93] sm:$0xff]  ;;  %v1442_v59 = vld [vmem:[%s4300_s25 + $0x9b] sm:$0xff]  ;;  %v290_v60 = vpack.c.bf16 %v262_v53, %v261_v52  ;;  %v1468_v61 = vpack.c.bf16 %v1440_v55, %v1439_v54 }
  0x1d   : > { %v291_v62 = vpack.c.bf16 %v264_v57, %v263_v56  ;;  %v1469_v63 = vpack.c.bf16 %v1442_v59, %v1441_v58  ;;  %v265_v1 = vld [vmem:[%s4300_s25 + $0x91] sm:$0xff]  ;;  %v266_v3 = vld [vmem:[%s4300_s25 + $0x99] sm:$0xff]  ;;  %v1443_v4 = vld [vmem:[%s4300_s25 + $0xa3] sm:$0xff] }
  0x1e   : > { %3588 = vmatmul.mubr.msk.bf16.gmra.mrb[4].mxu1 %vm303_vm1, %v286_v36  ;;  %3740 = vmatmul.mubr.msk.bf16.gmra.mrb[4].mxu0 %vm303_vm1, %v1464_v37  ;;  %v1444_v5 = vld [vmem:[%s4300_s25 + $0xab] sm:$0xff]  ;;  %v267_v6 = vld [vmem:[%s4300_s25 + $0xa1] sm:$0xff]  ;;  %v1751_v8 = vld [vmem:[%s4300_s25 + $0x14] sm:$0xff]  ;;  %v292_v10 = vpack.c.bf16 %v266_v3, %v265_v1 }
  0x1f   : > { %3591 = vmatprep.mubr.msk.bf16.mxu1 %vm303_vm1, %v287_v38  ;;  %3743 = vmatprep.mubr.msk.bf16.mxu0 %vm303_vm1, %v1465_v39  ;;  %v268_v7 = vld [vmem:[%s4300_s25 + $0xa9] sm:$0xff]  ;;  %v1752_v9 = vld [vmem:[%s4300_s25 + $0x1c] sm:$0xff]  ;;  %v1470_v11 = vpack.c.bf16 %v1444_v5, %v1443_v4  ;;  %v269_v14 = vld [vmem:[%s4300_s25 + $0xb1] sm:$0xff] }
  0x20   : > { %v293_v12 = vpack.c.bf16 %v268_v7, %v267_v6  ;;  %v1787_v13 = vpack.c.bf16 %v1752_v9, %v1751_v8  ;;  %v270_v15 = vld [vmem:[%s4300_s25 + $0xb9] sm:$0xff]  ;;  %v1753_v16 = vld [vmem:[%s4300_s25 + $0x24] sm:$0xff]  ;;  %v1754_v17 = vld [vmem:[%s4300_s25 + $0x2c] sm:$0xff] }
  0x21   : > { %v271_v18 = vld [vmem:[%s4300_s25 + $0xc1] sm:$0xff]  ;;  %v272_v19 = vld [vmem:[%s4300_s25 + $0xc9] sm:$0xff]  ;;  %v1755_v20 = vld [vmem:[%s4300_s25 + $0x34] sm:$0xff]  ;;  %v294_v22 = vpack.c.bf16 %v270_v15, %v269_v14  ;;  %v4392_v23 = vpack.c.bf16 %v1754_v17, %v1753_v16  ;;  %v884_v15 = vsel %vm358_vm0, %v4327_v27, 0 }
  0x22   : > { %v1756_v21 = vld [vmem:[%s4300_s25 + $0x3c] sm:$0xff]  ;;  %v295_v24 = vpack.c.bf16 %v272_v19, %v271_v18  ;;  %v273_v30 = vld [vmem:[%s4300_s25 + $0xd1] sm:$0xff]  ;;  %v1757_v32 = vld [vmem:[%s4300_s25 + $0x44] sm:$0xff] }
  0x23   : > { %v4394_v25 = vpack.c.bf16 %v1756_v21, %v1755_v20  ;;  %v4402_v29 = vld [vmem:[%s5056_s1 + $0x1c] sm:$0xf]  ;;  %v1758_v26 = vld [vmem:[%s4300_s25 + $0x4c] sm:$0xff]  ;;  %v275_v33 = vld [vmem:[%s4300_s25 + $0xe1] sm:$0xff] }
  0x24   : > { %v274_v31 = vld [vmem:[%s4300_s25 + $0xd9] sm:$0xff]  ;;  %v276_v34 = vld [vmem:[%s4300_s25 + $0xe9] sm:$0xff]  ;;  %v4419_v38 = vpack.c.bf16 %v1758_v26, %v1757_v32  ;;  %v277_v41 = vld [vmem:[%s4300_s25 + $0xf1] sm:$0xff] }
  0x25   : > { %v1759_v35 = vld [vmem:[%s4300_s25 + $0x54] sm:$0xff]  ;;  %v1760_v36 = vld [vmem:[%s4300_s25 + $0x5c] sm:$0xff]  ;;  %v296_v37 = vpack.c.bf16 %v274_v31, %v273_v30  ;;  %v297_v39 = vpack.c.bf16 %v276_v34, %v275_v33  ;;  %v1761_v43 = vld [vmem:[%s4300_s25 + $0x64] sm:$0xff] }
  0x26   : > { %3592 = vmatmul.mubr.msk.bf16.gmra.mrb[8].mxu1 %vm303_vm1, %v288_v48  ;;  %3744 = vmatmul.mubr.msk.bf16.gmra.mrb[8].mxu0 %vm303_vm1, %v1466_v49  ;;  %v4421_v40 = vpack.c.bf16 %v1760_v36, %v1759_v35  ;;  %v278_v42 = vld [vmem:[%s4300_s25 + $0xf9] sm:$0xff]  ;;  %v1762_v44 = vld [vmem:[%s4300_s25 + $0x6c] sm:$0xff]  ;;  %v279_v45 = vld [vmem:[%s4300_s25 + $0x101] sm:$0xff] }
  0x27   : > { %3595 = vmatprep.mubr.msk.bf16.mxu1 %vm303_vm1, %v289_v50  ;;  %3747 = vmatprep.mubr.msk.bf16.mxu0 %vm303_vm1, %v1467_v51  ;;  %v280_v46 = vld [vmem:[%s4300_s25 + $0x109] sm:$0xff]  ;;  %v1763_v47 = vld [vmem:[%s4300_s25 + $0x74] sm:$0xff]  ;;  %v1764_v48 = vld [vmem:[%s4300_s25 + $0x7c] sm:$0xff]  ;;  %v298_v49 = vpack.c.bf16 %v278_v42, %v277_v41  ;;  %v4437_v50 = vpack.c.bf16 %v1762_v44, %v1761_v43 }
  0x28   : > { %v299_v51 = vpack.c.bf16 %v280_v46, %v279_v45  ;;  %v4439_v52 = vpack.c.bf16 %v1764_v48, %v1763_v47  ;;  %v281_v53 = vld [vmem:[%s4300_s25 + $0x111] sm:$0xff]  ;;  %v282_v54 = vld [vmem:[%s4300_s25 + $0x119] sm:$0xff]  ;;  %v1765_v55 = vld [vmem:[%s4300_s25 + $0x84] sm:$0xff] }
  0x29   : > { %v1766_v56 = vld [vmem:[%s4300_s25 + $0x8c] sm:$0xff]  ;;  %v192_v57 = vld [vmem:[%s4300_s25] sm:$0xff]  ;;  %v1767_v59 = vld [vmem:[%s4300_s25 + $0x94] sm:$0xff] }
  0x2a   : > { %v193_v58 = vld [vmem:[%s4300_s25 + $0x8] sm:$0xff]  ;;  %v194_v3 = vld [vmem:[%s4300_s25 + $0x10] sm:$0xff]  ;;  %v195_v4 = vld [vmem:[%s4300_s25 + $0x18] sm:$0xff] }
  0x2b   : > { %v1769_v5 = vld [vmem:[%s4300_s25 + $0xa4] sm:$0xff]  ;;  %v1770_v6 = vld [vmem:[%s4300_s25 + $0xac] sm:$0xff]  ;;  %v1771_v9 = vld [vmem:[%s4300_s25 + $0xb4] sm:$0xff] }
  0x2c   : > { %v196_v7 = vld [vmem:[%s4300_s25 + $0x20] sm:$0xff]  ;;  %v197_v8 = vld [vmem:[%s4300_s25 + $0x28] sm:$0xff]  ;;  %v198_v17 = vld [vmem:[%s4300_s25 + $0x30] sm:$0xff] }
  0x2d   : > { %v4483_v16 = vld [vmem:[%s5056_s1 + $0xc] sm:$0xf]  ;;  %v199_v18 = vld [vmem:[%s4300_s25 + $0x38] sm:$0xff]  ;;  %v1773_v19 = vld [vmem:[%s4300_s25 + $0xc4] sm:$0xff] }
  0x2e   : > { %3596 = vmatmul.mubr.msk.bf16.gmra.mrb[12].mxu1 %vm303_vm1, %v290_v60  ;;  %3748 = vmatmul.mubr.msk.bf16.gmra.mrb[12].mxu0 %vm303_vm1, %v1468_v61  ;;  %v1768_v60 = vld [vmem:[%s4300_s25 + $0x9c] sm:$0xff]  ;;  %v300_v61 = vpack.c.bf16 %v282_v54, %v281_v53  ;;  %v1774_v27 = vld [vmem:[%s4300_s25 + $0xcc] sm:$0xff]  ;;  %v1777_v34 = vld [vmem:[%s4300_s25 + $0xe4] sm:$0xff] }
  0x2f   : > { %3599 = vmatprep.mubr.msk.bf16.mxu1 %vm303_vm1, %v291_v62  ;;  %3751 = vmatprep.mubr.msk.bf16.mxu0 %vm303_vm1, %v1469_v63  ;;  %v4455_v62 = vpack.c.bf16 %v1766_v56, %v1765_v55  ;;  %v228_v63 = vpack.c.bf16 %v193_v58, %v192_v57  ;;  %v4457_v1 = vpack.c.bf16 %v1768_v60, %v1767_v59  ;;  %v200_v20 = vld [vmem:[%s4300_s25 + $0x40] sm:$0xff]  ;;  %v201_v21 = vld [vmem:[%s4300_s25 + $0x48] sm:$0xff]  ;;  %v202_v26 = vld [vmem:[%s4300_s25 + $0x50] sm:$0xff] }
  0x30   : > { %v4500_v30 = vpack.c.bf16 %v1774_v27, %v1773_v19  ;;  %v232_v31 = vpack.c.bf16 %v201_v21, %v200_v20  ;;  %v203_v33 = vld [vmem:[%s4300_s25 + $0x58] sm:$0xff]  ;;  %v1778_v35 = vld [vmem:[%s4300_s25 + $0xec] sm:$0xff]  ;;  %v204_v36 = vld [vmem:[%s4300_s25 + $0x60] sm:$0xff] }
  0x31   : > { %v1780_v41 = vld [vmem:[%s4300_s25 + $0xfc] sm:$0xff]  ;;  %v233_v42 = vpack.c.bf16 %v203_v33, %v202_v26  ;;  %v4518_v43 = vpack.c.bf16 %v1778_v35, %v1777_v34  ;;  %v206_v46 = vld [vmem:[%s4300_s25 + $0x70] sm:$0xff]  ;;  %v1781_v48 = vld [vmem:[%s4300_s25 + $0x104] sm:$0xff] }
  0x32   : > { %v207_v47 = vld [vmem:[%s4300_s25 + $0x78] sm:$0xff]  ;;  %v209_v53 = vld [vmem:[%s4300_s25 + $0x88] sm:$0xff]  ;;  %v210_v60 = vld [vmem:[%s4300_s25 + $0x90] sm:$0xff] }
  0x33   : > { %v1783_v54 = vld [vmem:[%s4300_s25 + $0x114] sm:$0xff]  ;;  %v1784_v55 = vld [vmem:[%s4300_s25 + $0x11c] sm:$0xff]  ;;  %v235_v56 = vpack.c.bf16 %v207_v47, %v206_v46  ;;  %v221_v20 = vld [vmem:[%s4300_s25 + $0xe8] sm:$0xff] }
  0x34   : > { %v4538_v59 = vpack.c.bf16 %v1784_v55, %v1783_v54  ;;  %v4570_v19 = vld [vmem:[%s5056_s1 + $0x20] sm:$0xf]  ;;  %v219_v27 = vld [vmem:[%s4300_s25 + $0xd8] sm:$0xff]  ;;  %v774_v34 = vld [vmem:[%s4300_s25 + $0xa] sm:$0xff] }
  0x35   : > { %v227_v33 = vld [vmem:[%s4300_s25 + $0x118] sm:$0xff]  ;;  %v782_v46 = vld [vmem:[%s4300_s25 + $0x4a] sm:$0xff]  ;;  %v789_v54 = vld [vmem:[%s4300_s25 + $0x82] sm:$0xff] }
  0x36   : > { %3600 = vmatmul.mubr.msk.bf16.gmra.mrb[16].mxu1 %vm303_vm1, %v292_v10  ;;  %3752 = vmatmul.mubr.msk.bf16.gmra.mrb[16].mxu0 %vm303_vm1, %v1470_v11  ;;  %v1772_v10 = vld [vmem:[%s4300_s25 + $0xbc] sm:$0xff]  ;;  %v229_v11 = vpack.c.bf16 %v195_v4, %v194_v3  ;;  %v1786_v3 = vld [vmem:[%s4300_s25 + $0x12c] sm:$0xff] }
  0x37   : > { %3603 = vmatprep.mubr.msk.bf16.mxu1 %vm303_vm1, %v293_v12  ;;  %3773 = vmatprep.mubr.msk.bf16.mxu0 %vm303_vm1, %v1787_v13  ;;  %v4473_v12 = vpack.c.bf16 %v1770_v6, %v1769_v5  ;;  %v230_v13 = vpack.c.bf16 %v197_v8, %v196_v7  ;;  %v4475_v14 = vpack.c.bf16 %v1772_v10, %v1771_v9  ;;  %v212_v4 = vld [vmem:[%s4300_s25 + $0xa0] sm:$0xff]  ;;  %v213_v5 = vld [vmem:[%s4300_s25 + $0xa8] sm:$0xff]  ;;  %v214_v9 = vld [vmem:[%s4300_s25 + $0xb0] sm:$0xff] }
  0x38   : > { %v238_v8 = vpack.c.bf16 %v213_v5, %v212_v4  ;;  %v215_v10 = vld [vmem:[%s4300_s25 + $0xb8] sm:$0xff]  ;;  %v790_v55 = vld [vmem:[%s4300_s25 + $0x8a] sm:$0xff] }
  0x39   : > { %v2403_v4 = vld [vmem:[%s4300_s25 + $0x25] sm:$0xff] }
  0x3e   : > { %3604 = vmatmul.mubr.msk.bf16.gmra.mrb[20].mxu1 %vm303_vm1, %v294_v22  ;;  %3774 = vmatmul.mubr.msk.bf16.vlgmr.msra.gmra.mrb[0].mxu0 %vm303_vm1, %v4392_v23  ;;  %v1775_v22 = vld [vmem:[%s4300_s25 + $0xd4] sm:$0xff] }
  0x3f   : > { %3607 = vmatprep.mubr.msk.bf16.mxu1 %vm303_vm1, %v295_v24  ;;  %3810 = vmatpush3.bf16.msra.mxu0 %v2188_v28  ;;  %v1776_v24 = vld [vmem:[%s4300_s25 + $0xdc] sm:$0xff]  ;;  %v231_v28 = vpack.c.bf16 %v199_v18, %v198_v17  ;;  %v2514_v18 = vsel %vm358_vm0, %v4402_v29, 0 }
  0x40   : > { %3777 = vmatprep.mubr.msk.bf16.mxu0 %vm303_vm1, %v4394_v25  ;;  %4221 = vmatprep.subr.msk.bf16.mxu0 %vm358_vm0, %v4402_v29  ;;  %v4502_v32 = vpack.c.bf16 %v1776_v24, %v1775_v22  ;;  %v220_v29 = vld [vmem:[%s4300_s25 + $0xe0] sm:$0xff] }
  0x41   : > { %v242_v22 = vpack.c.bf16 %v221_v20, %v220_v29  ;;  %v224_v24 = vld [vmem:[%s4300_s25 + $0x100] sm:$0xff] }
  0x46   : > { %3608 = vmatmul.mubr.msk.bf16.gmra.mrb[24].mxu1 %vm303_vm1, %v296_v37  ;;  %3778 = vmatmul.mubr.msk.bf16.gmra.mrb[4].mxu0 %vm303_vm1, %v4419_v38  ;;  %v205_v37 = vld [vmem:[%s4300_s25 + $0x68] sm:$0xff] }
  0x47   : > { %3611 = vmatprep.mubr.msk.bf16.mxu1 %vm303_vm1, %v297_v39  ;;  %3781 = vmatprep.mubr.msk.bf16.mxu0 %vm303_vm1, %v4421_v40  ;;  %v1779_v39 = vld [vmem:[%s4300_s25 + $0xf4] sm:$0xff]  ;;  %v234_v44 = vpack.c.bf16 %v205_v37, %v204_v36 }
  0x48   : > { %v4520_v45 = vpack.c.bf16 %v1780_v41, %v1779_v39  ;;  %v776_v37 = vld [vmem:[%s4300_s25 + $0x1a] sm:$0xff]  ;;  %v778_v39 = vld [vmem:[%s4300_s25 + $0x2a] sm:$0xff] }
  0x4e   : > { %3612 = vmatmul.mubr.msk.bf16.gmra.mrb[28].mxu1 %vm303_vm1, %v298_v49  ;;  %3782 = vmatmul.mubr.msk.bf16.gmra.mrb[8].mxu0 %vm303_vm1, %v4437_v50  ;;  %v1782_v49 = vld [vmem:[%s4300_s25 + $0x10c] sm:$0xff] }
  0x4f   : > { %3615 = vmatprep.mubr.msk.bf16.mxu1 %vm303_vm1, %v299_v51  ;;  %3785 = vmatprep.mubr.msk.bf16.mxu0 %vm303_vm1, %v4439_v52  ;;  %v208_v51 = vld [vmem:[%s4300_s25 + $0x80] sm:$0xff]  ;;  %v4536_v57 = vpack.c.bf16 %v1782_v49, %v1781_v48  ;;  %v786_v49 = vld [vmem:[%s4300_s25 + $0x6a] sm:$0xff] }
  0x50   : > { %v236_v58 = vpack.c.bf16 %v209_v53, %v208_v51  ;;  %v784_v48 = vld [vmem:[%s4300_s25 + $0x5a] sm:$0xff] }
  0x56   : > { %3616 = vmatmul.mubr.msk.bf16.gmra.mrb[32].mxu1 %vm303_vm1, %v300_v61  ;;  %3786 = vmatmul.mubr.msk.bf16.gmra.mrb[12].mxu0 %vm303_vm1, %v4455_v62  ;;  %v211_v61 = vld [vmem:[%s4300_s25 + $0x98] sm:$0xff] }
  0x57   : > { %3621 = vmatprep.mubr.msk.bf16.mxu1 %vm303_vm1, %v228_v63  ;;  %3789 = vmatprep.mubr.msk.bf16.mxu0 %vm303_vm1, %v4457_v1  ;;  %v1785_v63 = vld [vmem:[%s4300_s25 + $0x124] sm:$0xff]  ;;  %v237_v6 = vpack.c.bf16 %v211_v61, %v210_v60  ;;  %v792_v60 = vld [vmem:[%s4300_s25 + $0x9a] sm:$0xff] }
  0x58   : > { %v4552_v7 = vpack.c.bf16 %v1786_v3, %v1785_v63  ;;  %v2112_v61 = vld [vmem:[%s4300_s25 + $0x13c] sm:$0xff]  ;;  %v794_v3 = vld [vmem:[%s4300_s25 + $0xaa] sm:$0xff] }
  0x59   : > { %v793_v63 = vld [vmem:[%s4300_s25 + $0xa2] sm:$0xff] }
  0x5e   : > { %3622 = vmatmul.mubr.msk.bf16.vlgmr.msra.gmra.mrb[0].mxu1 %vm303_vm1, %v229_v11  ;;  %3790 = vmatmul.mubr.msk.bf16.gmra.mrb[16].mxu0 %vm303_vm1, %v4473_v12  ;;  %v216_v11 = vld [vmem:[%s4300_s25 + $0xc0] sm:$0xff] }
  0x5f   : > { %3625 = vmatprep.mubr.msk.bf16.mxu1 %vm303_vm1, %v230_v13  ;;  %3793 = vmatprep.mubr.msk.bf16.mxu0 %vm303_vm1, %v4475_v14  ;;  %v217_v13 = vld [vmem:[%s4300_s25 + $0xc8] sm:$0xff] }
  0x60   : > { %3658 = vmatpush3.bf16.msra.mxu1 %v884_v15  ;;  %v239_v15 = vpack.c.bf16 %v215_v10, %v214_v9  ;;  %v240_v17 = vpack.c.bf16 %v217_v13, %v216_v11  ;;  %v796_v10 = vld [vmem:[%s4300_s25 + $0xba] sm:$0xff] }
  0x61   : > { %4216 = vmatprep.subr.msk.bf16.mxu1 %vm358_vm0, %v4483_v16  ;;  %v2405_v11 = vld [vmem:[%s4300_s25 + $0x35] sm:$0xff]  ;;  %v2406_v13 = vld [vmem:[%s4300_s25 + $0x3d] sm:$0xff] }
  0x62   : > { %v2440_v29 = vpack.c.bf16 %v2406_v13, %v2405_v11 }
  0x66   : > { %3626 = vmatmul.mubr.msk.bf16.gmra.mrb[4].mxu1 %vm303_vm1, %v231_v28  ;;  %3794 = vmatmul.mubr.msk.bf16.gmra.mrb[20].mxu0 %vm303_vm1, %v4500_v30  ;;  %v225_v28 = vld [vmem:[%s4300_s25 + $0x108] sm:$0xff] }
  0x67   : > { %3629 = vmatprep.mubr.msk.bf16.mxu1 %vm303_vm1, %v232_v31  ;;  %3797 = vmatprep.mubr.msk.bf16.mxu0 %vm303_vm1, %v4502_v32  ;;  %v244_v26 = vpack.c.bf16 %v225_v28, %v224_v24  ;;  %v2409_v24 = vld [vmem:[%s4300_s25 + $0x55] sm:$0xff]  ;;  %v2410_v28 = vld [vmem:[%s4300_s25 + $0x5d] sm:$0xff] }
  0x6e   : > { %3630 = vmatmul.mubr.msk.bf16.gmra.mrb[8].mxu1 %vm303_vm1, %v233_v42  ;;  %3798 = vmatmul.mubr.msk.bf16.gmra.mrb[24].mxu0 %vm303_vm1, %v4518_v43 }
  0x6f   : > { %3633 = vmatprep.mubr.msk.bf16.mxu1 %vm303_vm1, %v234_v44  ;;  %3801 = vmatprep.mubr.msk.bf16.mxu0 %vm303_vm1, %v4520_v45  ;;  %v1210_v44 = vsel %vm358_vm0, %v4483_v16, 0  ;;  %v781_v16 = vld [vmem:[%s4300_s25 + $0x42] sm:$0xff] }
  0x76   : > { %3634 = vmatmul.mubr.msk.bf16.gmra.mrb[12].mxu1 %vm303_vm1, %v235_v56  ;;  %3802 = vmatmul.mubr.msk.bf16.gmra.mrb[28].mxu0 %vm303_vm1, %v4536_v57 }
  0x77   : > { %3637 = vmatprep.mubr.msk.bf16.mxu1 %vm303_vm1, %v236_v58  ;;  %3805 = vmatprep.mubr.msk.bf16.mxu0 %vm303_vm1, %v4538_v59  ;;  %v4667_v58 = vpack.c.bf16 %v790_v55, %v789_v54  ;;  %v2419_v54 = vld [vmem:[%s4300_s25 + $0xa5] sm:$0xff]  ;;  %v2420_v55 = vld [vmem:[%s4300_s25 + $0xad] sm:$0xff] }
  0x7e   : > { %3638 = vmatmul.mubr.msk.bf16.gmra.mrb[16].mxu1 %vm303_vm1, %v237_v6  ;;  %3806 = vmatmul.mubr.msk.bf16.gmra.mrb[32].mxu0 %vm303_vm1, %v4552_v7 }
  0x7f   : > { %3641 = vmatprep.mubr.msk.bf16.mxu1 %vm303_vm1, %v238_v8  ;;  %3811 = vmatprep.mubr.msk.bf16.mxu0 %vm303_vm1, %v4392_v23  ;;  %v218_v23 = vld [vmem:[%s4300_s25 + $0xd0] sm:$0xff]  ;;  %v4687_v8 = vpack.c.bf16 %v794_v3, %v793_v63  ;;  %v2422_v63 = vld [vmem:[%s4300_s25 + $0xbd] sm:$0xff]  ;;  %v2423_v3 = vld [vmem:[%s4300_s25 + $0xc5] sm:$0xff] }
  0x80   : > { %v241_v21 = vpack.c.bf16 %v219_v27, %v218_v23  ;;  %v2408_v23 = vld [vmem:[%s4300_s25 + $0x4d] sm:$0xff] }
  0x86   : > { %3642 = vmatmul.mubr.msk.bf16.gmra.mrb[20].mxu1 %vm303_vm1, %v239_v15  ;;  %3812 = vmatmul.mubr.msk.bf16.vlgmr.msra.gmra.mrb[0].mxu0 %vm303_vm1, %v4394_v25  ;;  %v222_v25 = vld [vmem:[%s4300_s25 + $0xf0] sm:$0xff]  ;;  %v797_v15 = vld [vmem:[%s4300_s25 + $0xc2] sm:$0xff] }
  0x87   : > { %3645 = vmatprep.mubr.msk.bf16.mxu1 %vm303_vm1, %v240_v17  ;;  %3848 = vmatpush3.bf16.msra.mxu0 %v2514_v18  ;;  %v798_v17 = vld [vmem:[%s4300_s25 + $0xca] sm:$0xff] }
  0x88   : > { %3815 = vmatprep.mubr.msk.bf16.mxu0 %vm303_vm1, %v4419_v38  ;;  %4222 = vmatprep.subr.msk.bf16.mxu0 %vm358_vm0, %v4570_v19  ;;  %v223_v38 = vld [vmem:[%s4300_s25 + $0xf8] sm:$0xff]  ;;  %v2407_v18 = vld [vmem:[%s4300_s25 + $0x45] sm:$0xff]  ;;  %v4705_v20 = vpack.c.bf16 %v798_v17, %v797_v15  ;;  %v2432_v15 = vld [vmem:[%s4300_s25 + $0x10d] sm:$0xff] }
  0x89   : > { %v243_v31 = vpack.c.bf16 %v223_v38, %v222_v25  ;;  %v799_v25 = vld [vmem:[%s4300_s25 + $0xd2] sm:$0xff]  ;;  %v800_v38 = vld [vmem:[%s4300_s25 + $0xda] sm:$0xff] }
  0x8e   : > { %3646 = vmatmul.mubr.msk.bf16.gmra.mrb[24].mxu1 %vm303_vm1, %v241_v21  ;;  %3816 = vmatmul.mubr.msk.bf16.gmra.mrb[4].mxu0 %vm303_vm1, %v4421_v40  ;;  %v226_v40 = vld [vmem:[%s4300_s25 + $0x110] sm:$0xff]  ;;  %v2441_v21 = vpack.c.bf16 %v2408_v23, %v2407_v18  ;;  %v2435_v23 = vld [vmem:[%s4300_s25 + $0x125] sm:$0xff] }
  0x8f   : > { %3649 = vmatprep.mubr.msk.bf16.mxu1 %vm303_vm1, %v242_v22  ;;  %3819 = vmatprep.mubr.msk.bf16.mxu0 %vm303_vm1, %v4437_v50  ;;  %v773_v50 = vld [vmem:[%s4300_s25 + $0x2] sm:$0xff]  ;;  %v245_v35 = vpack.c.bf16 %v227_v33, %v226_v40  ;;  %v2840_v22 = vsel %vm358_vm0, %v4570_v19, 0  ;;  %v2412_v40 = vld [vmem:[%s4300_s25 + $0x6d] sm:$0xff]  ;;  %v4723_v33 = vpack.c.bf16 %v800_v38, %v799_v25 }
  0x90   : > { %v809_v36 = vpack.c.bf16 %v774_v34, %v773_v50  ;;  %v801_v19 = vld [vmem:[%s4300_s25 + $0xe2] sm:$0xff]  ;;  %v2442_v50 = vpack.c.bf16 %v2410_v28, %v2409_v24  ;;  %v2730_v38 = vld [vmem:[%s4300_s25 + $0x2e] sm:$0xff] }
  0x91   : > { %v2729_v25 = vld [vmem:[%s4300_s25 + $0x26] sm:$0xff] }
  0x92   : > { %v2765_v28 = vpack.c.bf16 %v2730_v38, %v2729_v25  ;;  %v2757_v25 = vld [vmem:[%s4300_s25 + $0x106] sm:$0xff]  ;;  %v2758_v38 = vld [vmem:[%s4300_s25 + $0x10e] sm:$0xff] }
  0x96   : > { %3650 = vmatmul.mubr.msk.bf16.gmra.mrb[28].mxu1 %vm303_vm1, %v243_v31  ;;  %3820 = vmatmul.mubr.msk.bf16.gmra.mrb[8].mxu0 %vm303_vm1, %v4439_v52  ;;  %v775_v52 = vld [vmem:[%s4300_s25 + $0x12] sm:$0xff]  ;;  %v802_v31 = vld [vmem:[%s4300_s25 + $0xea] sm:$0xff] }
  0x97   : > { %3653 = vmatprep.mubr.msk.bf16.mxu1 %vm303_vm1, %v244_v26  ;;  %3823 = vmatprep.mubr.msk.bf16.mxu0 %vm303_vm1, %v4455_v62  ;;  %v777_v62 = vld [vmem:[%s4300_s25 + $0x22] sm:$0xff]  ;;  %v4613_v41 = vpack.c.bf16 %v776_v37, %v775_v52  ;;  %v4725_v34 = vpack.c.bf16 %v802_v31, %v801_v19  ;;  %v804_v52 = vld [vmem:[%s4300_s25 + $0xfa] sm:$0xff]  ;;  %v2734_v31 = vld [vmem:[%s4300_s25 + $0x4e] sm:$0xff] }
  0x98   : > { %v4615_v42 = vpack.c.bf16 %v778_v39, %v777_v62  ;;  %v2411_v26 = vld [vmem:[%s4300_s25 + $0x65] sm:$0xff]  ;;  %v2413_v37 = vld [vmem:[%s4300_s25 + $0x75] sm:$0xff]  ;;  %v2414_v62 = vld [vmem:[%s4300_s25 + $0x7d] sm:$0xff] }
  0x99   : > { %v805_v39 = vld [vmem:[%s4300_s25 + $0x102] sm:$0xff] }
  0x9a   : > { %v2733_v19 = vld [vmem:[%s4300_s25 + $0x46] sm:$0xff] }
  0x9e   : > { %3654 = vmatmul.mubr.msk.bf16.gmra.mrb[32].mxu1 %vm303_vm1, %v245_v35  ;;  %3824 = vmatmul.mubr.msk.bf16.gmra.mrb[12].mxu0 %vm303_vm1, %v4457_v1  ;;  %v779_v1 = vld [vmem:[%s4300_s25 + $0x32] sm:$0xff]  ;;  %v2443_v35 = vpack.c.bf16 %v2412_v40, %v2411_v26  ;;  %v2767_v40 = vpack.c.bf16 %v2734_v31, %v2733_v19  ;;  %v1459_v19 = vld [vmem:[%s4300_s25 + $0x123] sm:$0xff] }
  0x9f   : > { %3659 = vmatprep.mubr.msk.bf16.mxu1 %vm303_vm1, %v809_v36  ;;  %3827 = vmatprep.mubr.msk.bf16.mxu0 %vm303_vm1, %v4473_v12  ;;  %v780_v12 = vld [vmem:[%s4300_s25 + $0x3a] sm:$0xff]  ;;  %v803_v36 = vld [vmem:[%s4300_s25 + $0xf2] sm:$0xff] }
  0xa0   : > { %v4633_v47 = vpack.c.bf16 %v780_v12, %v779_v1  ;;  %v2415_v1 = vld [vmem:[%s4300_s25 + $0x85] sm:$0xff]  ;;  %v2416_v12 = vld [vmem:[%s4300_s25 + $0x8d] sm:$0xff] }
  0xa1   : > { %v1460_v31 = vld [vmem:[%s4300_s25 + $0x12b] sm:$0xff] }
  0xa6   : > { %3660 = vmatmul.mubr.msk.bf16.vlgmr.msra.gmra.mrb[0].mxu1 %vm303_vm1, %v4613_v41  ;;  %3828 = vmatmul.mubr.msk.bf16.gmra.mrb[16].mxu0 %vm303_vm1, %v4475_v14  ;;  %v4635_v14 = vpack.c.bf16 %v782_v46, %v781_v16  ;;  %v4741_v16 = vpack.c.bf16 %v804_v52, %v803_v36  ;;  %v2444_v46 = vpack.c.bf16 %v2414_v62, %v2413_v37  ;;  %v2741_v37 = vld [vmem:[%s4300_s25 + $0x86] sm:$0xff]  ;;  %v2742_v62 = vld [vmem:[%s4300_s25 + $0x8e] sm:$0xff] }
  0xa7   : > { %3663 = vmatprep.mubr.msk.bf16.mxu1 %vm303_vm1, %v4615_v42  ;;  %3831 = vmatprep.mubr.msk.bf16.mxu0 %vm303_vm1, %v4500_v30  ;;  %v783_v30 = vld [vmem:[%s4300_s25 + $0x52] sm:$0xff] }
  0xa8   : > { %3696 = vmatpush3.bf16.msra.mxu1 %v1210_v44  ;;  %v4649_v51 = vpack.c.bf16 %v784_v48, %v783_v30  ;;  %v806_v44 = vld [vmem:[%s4300_s25 + $0x10a] sm:$0xff]  ;;  %v2445_v48 = vpack.c.bf16 %v2416_v12, %v2415_v1  ;;  %v2743_v12 = vld [vmem:[%s4300_s25 + $0x96] sm:$0xff] }
  0xa9   : > { %4218 = vmatprep.subr.msk.bf16.mxu1 %vm358_vm0, %v4272_v0  ;;  %v785_v0 = vld [vmem:[%s4300_s25 + $0x62] sm:$0xff]  ;;  %v4743_v30 = vpack.c.bf16 %v806_v44, %v805_v39  ;;  %v2771_v44 = vpack.c.bf16 %v2742_v62, %v2741_v37  ;;  %v1134_v1 = vld [vmem:[%s4300_s25 + $0x12a] sm:$0xff] }
  0xaa   : > { %v4651_v53 = vpack.c.bf16 %v786_v49, %v785_v0  ;;  %v807_v0 = vld [vmem:[%s4300_s25 + $0x112] sm:$0xff]  ;;  %v808_v49 = vld [vmem:[%s4300_s25 + $0x11a] sm:$0xff] }
  0xae   : > { %3664 = vmatmul.mubr.msk.bf16.gmra.mrb[4].mxu1 %vm303_vm1, %v4633_v47  ;;  %3832 = vmatmul.mubr.msk.bf16.gmra.mrb[20].mxu0 %vm303_vm1, %v4502_v32  ;;  %v787_v32 = vld [vmem:[%s4300_s25 + $0x72] sm:$0xff] }
  0xaf   : > { %3667 = vmatprep.mubr.msk.bf16.mxu1 %vm303_vm1, %v4635_v14  ;;  %3835 = vmatprep.mubr.msk.bf16.mxu0 %vm303_vm1, %v4518_v43  ;;  %v788_v43 = vld [vmem:[%s4300_s25 + $0x7a] sm:$0xff] }
  0xb0   : > { %v4665_v56 = vpack.c.bf16 %v788_v43, %v787_v32  ;;  %v2417_v32 = vld [vmem:[%s4300_s25 + $0x95] sm:$0xff]  ;;  %v2418_v43 = vld [vmem:[%s4300_s25 + $0x9d] sm:$0xff] }
  0xb6   : > { %3668 = vmatmul.mubr.msk.bf16.gmra.mrb[8].mxu1 %vm303_vm1, %v4649_v51  ;;  %3836 = vmatmul.mubr.msk.bf16.gmra.mrb[24].mxu0 %vm303_vm1, %v4520_v45  ;;  %v791_v45 = vld [vmem:[%s4300_s25 + $0x92] sm:$0xff] }
  0xb7   : > { %3671 = vmatprep.mubr.msk.bf16.mxu1 %vm303_vm1, %v4651_v53  ;;  %3839 = vmatprep.mubr.msk.bf16.mxu0 %vm303_vm1, %v4536_v57  ;;  %v2111_v57 = vld [vmem:[%s4300_s25 + $0x134] sm:$0xff]  ;;  %v4685_v5 = vpack.c.bf16 %v792_v60, %v791_v45  ;;  %v4757_v45 = vpack.c.bf16 %v808_v49, %v807_v0  ;;  %v2446_v60 = vpack.c.bf16 %v2418_v43, %v2417_v32 }
  0xb8   : > { %v2130_v6 = vpack.c.bf16 %v2112_v61, %v2111_v57  ;;  %v2447_v57 = vpack.c.bf16 %v2420_v55, %v2419_v54  ;;  %v2421_v61 = vld [vmem:[%s4300_s25 + $0xb5] sm:$0xff]  ;;  %v1447_v55 = vld [vmem:[%s4300_s25 + $0xc3] sm:$0xff] }
  0xb9   : > { %v2746_v0 = vld [vmem:[%s4300_s25 + $0xae] sm:$0xff] }
  0xbe   : > { %3672 = vmatmul.mubr.msk.bf16.gmra.mrb[12].mxu1 %vm303_vm1, %v4665_v56  ;;  %3840 = vmatmul.mubr.msk.bf16.gmra.mrb[28].mxu0 %vm303_vm1, %v4538_v59  ;;  %v2404_v59 = vld [vmem:[%s4300_s25 + $0x2d] sm:$0xff] }
  0xbf   : > { %3675 = vmatprep.mubr.msk.bf16.mxu1 %vm303_vm1, %v4667_v58  ;;  %3843 = vmatprep.mubr.msk.bf16.mxu0 %vm303_vm1, %v4552_v7  ;;  %v2439_v9 = vpack.c.bf16 %v2404_v59, %v2403_v4  ;;  %v795_v7 = vld [vmem:[%s4300_s25 + $0xb2] sm:$0xff]  ;;  %v2448_v59 = vpack.c.bf16 %v2422_v63, %v2421_v61  ;;  %v1450_v63 = vld [vmem:[%s4300_s25 + $0xdb] sm:$0xff] }
  0xc0   : > { %v4703_v27 = vpack.c.bf16 %v796_v10, %v795_v7  ;;  %v2424_v4 = vld [vmem:[%s4300_s25 + $0xcd] sm:$0xff]  ;;  %v2427_v7 = vld [vmem:[%s4300_s25 + $0xe5] sm:$0xff] }
  0xc1   : > { %v2428_v10 = vld [vmem:[%s4300_s25 + $0xed] sm:$0xff] }
  0xc2   : > { %v2451_v13 = vpack.c.bf16 %v2428_v10, %v2427_v7  ;;  %v1449_v61 = vld [vmem:[%s4300_s25 + $0xd3] sm:$0xff]  ;;  %v1451_v7 = vld [vmem:[%s4300_s25 + $0xe3] sm:$0xff]  ;;  %v1452_v10 = vld [vmem:[%s4300_s25 + $0xeb] sm:$0xff] }
  0xc6   : > { %3676 = vmatmul.mubr.msk.bf16.gmra.mrb[16].mxu1 %vm303_vm1, %v4685_v5  ;;  %3844 = vmatmul.mubr.msk.bf16.gmra.mrb[32].mxu0 %vm303_vm1, %v2130_v6  ;;  %v2449_v6 = vpack.c.bf16 %v2424_v4, %v2423_v3  ;;  %v2749_v3 = vld [vmem:[%s4300_s25 + $0xc6] sm:$0xff]  ;;  %v2750_v4 = vld [vmem:[%s4300_s25 + $0xce] sm:$0xff] }
  0xc7   : > { %3679 = vmatprep.mubr.msk.bf16.mxu1 %vm303_vm1, %v4687_v8  ;;  %3849 = vmatprep.mubr.msk.bf16.mxu0 %vm303_vm1, %v2439_v9  ;;  %v2426_v9 = vld [vmem:[%s4300_s25 + $0xdd] sm:$0xff] }
  0xce   : > { %3680 = vmatmul.mubr.msk.bf16.gmra.mrb[20].mxu1 %vm303_vm1, %v4703_v27  ;;  %3850 = vmatmul.mubr.msk.bf16.vlgmr.msra.gmra.mrb[0].mxu0 %vm303_vm1, %v2440_v29  ;;  %v2436_v29 = vld [vmem:[%s4300_s25 + $0x12d] sm:$0xff] }
  0xcf   : > { %3683 = vmatprep.mubr.msk.bf16.mxu1 %vm303_vm1, %v4705_v20  ;;  %3886 = vmatpush3.bf16.msra.mxu0 %v2840_v22  ;;  %v2455_v22 = vpack.c.bf16 %v2436_v29, %v2435_v23  ;;  %v1455_v23 = vld [vmem:[%s4300_s25 + $0x103] sm:$0xff]  ;;  %v1456_v29 = vld [vmem:[%s4300_s25 + $0x10b] sm:$0xff] }
  0xd0   : > { %3853 = vmatprep.mubr.msk.bf16.mxu0 %vm303_vm1, %v2441_v21 }
  0xd6   : > { %3684 = vmatmul.mubr.msk.bf16.gmra.mrb[24].mxu1 %vm303_vm1, %v4723_v33  ;;  %3854 = vmatmul.mubr.msk.bf16.gmra.mrb[4].mxu0 %vm303_vm1, %v2442_v50  ;;  %v2737_v50 = vld [vmem:[%s4300_s25 + $0x66] sm:$0xff] }
  0xd7   : > { %3687 = vmatprep.mubr.msk.bf16.mxu1 %vm303_vm1, %v4725_v34  ;;  %3857 = vmatprep.mubr.msk.bf16.mxu0 %vm303_vm1, %v2443_v35  ;;  %v2738_v35 = vld [vmem:[%s4300_s25 + $0x6e] sm:$0xff] }
  0xd8   : > { %v2769_v52 = vpack.c.bf16 %v2738_v35, %v2737_v50  ;;  %v1478_v50 = vpack.c.bf16 %v1460_v31, %v1459_v19  ;;  %v3065_v31 = vld [vmem:[%s4928_s14 + $0x50] sm:$0xff] }
  0xde   : > { %3688 = vmatmul.mubr.msk.bf16.gmra.mrb[28].mxu1 %vm303_vm1, %v4741_v16  ;;  %3858 = vmatmul.mubr.msk.bf16.gmra.mrb[8].mxu0 %vm303_vm1, %v2444_v46  ;;  %v1445_v46 = vld [vmem:[%s4300_s25 + $0xb3] sm:$0xff] }
  0xdf   : > { %3691 = vmatprep.mubr.msk.bf16.mxu1 %vm303_vm1, %v4743_v30  ;;  %3861 = vmatprep.mubr.msk.bf16.mxu0 %vm303_vm1, %v2445_v48  ;;  %v1446_v48 = vld [vmem:[%s4300_s25 + $0xbb] sm:$0xff] }
  0xe0   : > { %v1471_v43 = vpack.c.bf16 %v1446_v48, %v1445_v46 }
  0xe6   : > { %3692 = vmatmul.mubr.msk.bf16.gmra.mrb[32].mxu1 %vm303_vm1, %v4757_v45  ;;  %3862 = vmatmul.mubr.msk.bf16.gmra.mrb[12].mxu0 %vm303_vm1, %v2446_v60  ;;  %v2747_v60 = vld [vmem:[%s4300_s25 + $0xb6] sm:$0xff] }
  0xe7   : > { %3697 = vmatprep.mubr.msk.bf16.mxu1 %vm303_vm1, %v4613_v41  ;;  %3865 = vmatprep.mubr.msk.bf16.mxu0 %vm303_vm1, %v2447_v57  ;;  %v2425_v41 = vld [vmem:[%s4300_s25 + $0xd5] sm:$0xff]  ;;  %v2748_v57 = vld [vmem:[%s4300_s25 + $0xbe] sm:$0xff] }
  0xe8   : > { %v2450_v11 = vpack.c.bf16 %v2426_v9, %v2425_v41  ;;  %v1473_v41 = vpack.c.bf16 %v1450_v63, %v1449_v61  ;;  %v2775_v9 = vpack.c.bf16 %v2750_v4, %v2749_v3  ;;  %v3057_v63 = vld [vmem:[%s4928_s14 + $0x10] sm:$0xff] }
  0xee   : > { %3698 = vmatmul.mubr.msk.bf16.vlgmr.msra.gmra.mrb[0].mxu1 %vm303_vm1, %v4615_v42  ;;  %3866 = vmatmul.mubr.msk.bf16.gmra.mrb[16].mxu0 %vm303_vm1, %v2448_v59  ;;  %v2430_v42 = vld [vmem:[%s4300_s25 + $0xfd] sm:$0xff] }
  0xef   : > { %3701 = vmatprep.mubr.msk.bf16.mxu1 %vm303_vm1, %v4633_v47  ;;  %3869 = vmatprep.mubr.msk.bf16.mxu0 %vm303_vm1, %v2449_v6  ;;  %v2431_v47 = vld [vmem:[%s4300_s25 + $0x105] sm:$0xff]  ;;  %v2774_v6 = vpack.c.bf16 %v2748_v57, %v2747_v60 }
  0xf0   : > { %3924 = vmatpush3.bf16.msra.mxu1 %v4282_v2  ;;  %v2429_v2 = vld [vmem:[%s4300_s25 + $0xf5] sm:$0xff]  ;;  %v2453_v18 = vpack.c.bf16 %v2432_v15, %v2431_v47  ;;  %v2753_v47 = vld [vmem:[%s4300_s25 + $0xe6] sm:$0xff] }
  0xf1   : > { %v2452_v17 = vpack.c.bf16 %v2430_v42, %v2429_v2  ;;  %v1453_v2 = vld [vmem:[%s4300_s25 + $0xf3] sm:$0xff]  ;;  %v1454_v42 = vld [vmem:[%s4300_s25 + $0xfb] sm:$0xff] }
  0xf2   : > { %v2754_v15 = vld [vmem:[%s4300_s25 + $0xee] sm:$0xff] }
  0xf6   : > { %3702 = vmatmul.mubr.msk.bf16.gmra.mrb[4].mxu1 %vm303_vm1, %v4635_v14  ;;  %3870 = vmatmul.mubr.msk.bf16.gmra.mrb[20].mxu0 %vm303_vm1, %v2450_v11  ;;  %v2433_v14 = vld [vmem:[%s4300_s25 + $0x115] sm:$0xff] }
  0xf7   : > { %3705 = vmatprep.mubr.msk.bf16.mxu1 %vm303_vm1, %v4649_v51  ;;  %3873 = vmatprep.mubr.msk.bf16.mxu0 %vm303_vm1, %v2451_v13  ;;  %v2434_v51 = vld [vmem:[%s4300_s25 + $0x11d] sm:$0xff] }
  0xf8   : > { %v2454_v21 = vpack.c.bf16 %v2434_v51, %v2433_v14  ;;  %v2751_v11 = vld [vmem:[%s4300_s25 + $0xd6] sm:$0xff]  ;;  %v2752_v13 = vld [vmem:[%s4300_s25 + $0xde] sm:$0xff]  ;;  %v1475_v14 = vpack.c.bf16 %v1454_v42, %v1453_v2  ;;  %v2777_v51 = vpack.c.bf16 %v2754_v15, %v2753_v47 }
  0xfe   : > { %3706 = vmatmul.mubr.msk.bf16.gmra.mrb[8].mxu1 %vm303_vm1, %v4651_v53  ;;  %3874 = vmatmul.mubr.msk.bf16.gmra.mrb[24].mxu0 %vm303_vm1, %v2452_v17  ;;  %v2437_v53 = vld [vmem:[%s4300_s25 + $0x135] sm:$0xff]  ;;  %v1474_v17 = vpack.c.bf16 %v1452_v10, %v1451_v7 }
  0xff   : > { %3709 = vmatprep.mubr.msk.bf16.mxu1 %vm303_vm1, %v4665_v56  ;;  %3877 = vmatprep.mubr.msk.bf16.mxu0 %vm303_vm1, %v2453_v18  ;;  %v2438_v56 = vld [vmem:[%s4300_s25 + $0x13d] sm:$0xff]  ;;  %v2776_v18 = vpack.c.bf16 %v2752_v13, %v2751_v11  ;;  %v3056_v13 = vld [vmem:[%s4928_s14 + $0x8] sm:$0xff] }
 0x100   : > { %v2456_v24 = vpack.c.bf16 %v2438_v56, %v2437_v53  ;;  %v1457_v53 = vld [vmem:[%s4300_s25 + $0x113] sm:$0xff]  ;;  %v1458_v56 = vld [vmem:[%s4300_s25 + $0x11b] sm:$0xff] }
 0x106   : > { %3710 = vmatmul.mubr.msk.bf16.gmra.mrb[12].mxu1 %vm303_vm1, %v4667_v58  ;;  %3878 = vmatmul.mubr.msk.bf16.gmra.mrb[28].mxu0 %vm303_vm1, %v2454_v21  ;;  %v2731_v58 = vld [vmem:[%s4300_s25 + $0x36] sm:$0xff] }
 0x107   : > { %3713 = vmatprep.mubr.msk.bf16.mxu1 %vm303_vm1, %v4685_v5  ;;  %3881 = vmatprep.mubr.msk.bf16.mxu0 %vm303_vm1, %v2455_v22  ;;  %v2732_v5 = vld [vmem:[%s4300_s25 + $0x3e] sm:$0xff]  ;;  %v2755_v21 = vld [vmem:[%s4300_s25 + $0xf6] sm:$0xff] }
 0x108   : > { %v2766_v26 = vpack.c.bf16 %v2732_v5, %v2731_v58  ;;  %v2756_v22 = vld [vmem:[%s4300_s25 + $0xfe] sm:$0xff]  ;;  %v1477_v58 = vpack.c.bf16 %v1458_v56, %v1457_v53  ;;  %v2779_v5 = vpack.c.bf16 %v2758_v38, %v2757_v25  ;;  %v3060_v38 = vld [vmem:[%s4928_s14 + $0x28] sm:$0xff] }
 0x10e   : > { %3714 = vmatmul.mubr.msk.bf16.gmra.mrb[16].mxu1 %vm303_vm1, %v4687_v8  ;;  %3882 = vmatmul.mubr.msk.bf16.gmra.mrb[32].mxu0 %vm303_vm1, %v2456_v24  ;;  %v2735_v8 = vld [vmem:[%s4300_s25 + $0x56] sm:$0xff]  ;;  %v1476_v24 = vpack.c.bf16 %v1456_v29, %v1455_v23  ;;  %v3059_v23 = vld [vmem:[%s4928_s14 + $0x20] sm:$0xff] }
 0x10f   : > { %3717 = vmatprep.mubr.msk.bf16.mxu1 %vm303_vm1, %v4703_v27  ;;  %3887 = vmatprep.mubr.msk.bf16.mxu0 %vm303_vm1, %v2765_v28  ;;  %v2736_v27 = vld [vmem:[%s4300_s25 + $0x5e] sm:$0xff]  ;;  %v2778_v28 = vpack.c.bf16 %v2756_v22, %v2755_v21 }
 0x110   : > { %v2768_v36 = vpack.c.bf16 %v2736_v27, %v2735_v8  ;;  %v2761_v8 = vld [vmem:[%s4300_s25 + $0x126] sm:$0xff]  ;;  %v2762_v27 = vld [vmem:[%s4300_s25 + $0x12e] sm:$0xff]  ;;  %v3062_v22 = vld [vmem:[%s4928_s14 + $0x38] sm:$0xff] }
 0x116   : > { %3718 = vmatmul.mubr.msk.bf16.gmra.mrb[20].mxu1 %vm303_vm1, %v4705_v20  ;;  %3888 = vmatmul.mubr.msk.bf16.vlgmr.msra.gmra.mrb[0].mxu0 %vm303_vm1, %v2766_v26  ;;  %v2739_v20 = vld [vmem:[%s4300_s25 + $0x76] sm:$0xff] }
 0x117   : > { %3721 = vmatprep.mubr.msk.bf16.mxu1 %vm303_vm1, %v4723_v33  ;;  %3891 = vmatprep.mubr.msk.bf16.mxu0 %vm303_vm1, %v2767_v40  ;;  %v2740_v33 = vld [vmem:[%s4300_s25 + $0x7e] sm:$0xff]  ;;  %v2759_v26 = vld [vmem:[%s4300_s25 + $0x116] sm:$0xff] }
 0x118   : > { %v2770_v39 = vpack.c.bf16 %v2740_v33, %v2739_v20  ;;  %v2760_v40 = vld [vmem:[%s4300_s25 + $0x11e] sm:$0xff] }
 0x119   : > { %v2780_v35 = vpack.c.bf16 %v2760_v40, %v2759_v26  ;;  %v2764_v20 = vld [vmem:[%s4300_s25 + $0x13e] sm:$0xff] }
 0x11e   : > { %3722 = vmatmul.mubr.msk.bf16.gmra.mrb[24].mxu1 %vm303_vm1, %v4725_v34  ;;  %3892 = vmatmul.mubr.msk.bf16.gmra.mrb[4].mxu0 %vm303_vm1, %v2768_v36  ;;  %v1133_v34 = vld [vmem:[%s4300_s25 + $0x122] sm:$0xff]  ;;  %v2781_v36 = vpack.c.bf16 %v2762_v27, %v2761_v8 }
 0x11f   : > { %3725 = vmatprep.mubr.msk.bf16.mxu1 %vm303_vm1, %v4741_v16  ;;  %3895 = vmatprep.mubr.msk.bf16.mxu0 %vm303_vm1, %v2769_v52  ;;  %v2744_v16 = vld [vmem:[%s4300_s25 + $0x9e] sm:$0xff]  ;;  %v1152_v49 = vpack.c.bf16 %v1134_v1, %v1133_v34  ;;  %v2763_v52 = vld [vmem:[%s4300_s25 + $0x136] sm:$0xff] }
 0x120   : > { %v2772_v32 = vpack.c.bf16 %v2744_v16, %v2743_v12  ;;  %v2782_v33 = vpack.c.bf16 %v2764_v20, %v2763_v52  ;;  %v3063_v8 = vld [vmem:[%s4928_s14 + $0x40] sm:$0xff] }
 0x126   : > { %3726 = vmatmul.mubr.msk.bf16.gmra.mrb[28].mxu1 %vm303_vm1, %v4743_v30  ;;  %3896 = vmatmul.mubr.msk.bf16.gmra.mrb[8].mxu0 %vm303_vm1, %v2770_v39  ;;  %v2745_v30 = vld [vmem:[%s4300_s25 + $0xa6] sm:$0xff] }
 0x127   : > { %3729 = vmatprep.mubr.msk.bf16.mxu1 %vm303_vm1, %v4757_v45  ;;  %3899 = vmatprep.mubr.msk.bf16.mxu0 %vm303_vm1, %v2771_v44  ;;  %v2773_v54 = vpack.c.bf16 %v2746_v0, %v2745_v30  ;;  %v1448_v45 = vld [vmem:[%s4300_s25 + $0xcb] sm:$0xff] }
 0x128   : > { %v1472_v59 = vpack.c.bf16 %v1448_v45, %v1447_v55 }
 0x12e   : > { %3730 = vmatmul.mubr.msk.bf16.gmra.mrb[32].mxu1 %vm303_vm1, %v1152_v49  ;;  %3900 = vmatmul.mubr.msk.bf16.gmra.mrb[12].mxu0 %vm303_vm1, %v2772_v32 }
 0x12f   : > { %3755 = vmatprep.mubr.msk.bf16.mxu1 %vm303_vm1, %v1471_v43  ;;  %3903 = vmatprep.mubr.msk.bf16.mxu0 %vm303_vm1, %v2773_v54 }
 0x136   : > { %3756 = vmatmul.mubr.msk.bf16.vlgmr.msra.gmra.mrb[20].mxu1 %vm303_vm1, %v1472_v59  ;;  %3904 = vmatmul.mubr.msk.bf16.gmra.mrb[16].mxu0 %vm303_vm1, %v2774_v6  ;;  %v3055_v59 = vld [vmem:[%s4928_s14] sm:$0xff] }
 0x137   : > { %3759 = vmatprep.mubr.msk.bf16.mxu1 %vm303_vm1, %v1473_v41  ;;  %3907 = vmatprep.mubr.msk.bf16.mxu0 %vm303_vm1, %v2775_v9  ;;  %v3058_v9 = vld [vmem:[%s4928_s14 + $0x18] sm:$0xff] }
 0x13e   : > { %3760 = vmatmul.mubr.msk.bf16.gmra.mrb[24].mxu1 %vm303_vm1, %v1474_v17  ;;  %3908 = vmatmul.mubr.msk.bf16.gmra.mrb[20].mxu0 %vm303_vm1, %v2776_v18  ;;  %v3061_v18 = vld [vmem:[%s4928_s14 + $0x30] sm:$0xff] }
 0x13f   : > { %3763 = vmatprep.mubr.msk.bf16.mxu1 %vm303_vm1, %v1475_v14  ;;  %3911 = vmatprep.mubr.msk.bf16.mxu0 %vm303_vm1, %v2777_v51 }
 0x146   : > { %3764 = vmatmul.mubr.msk.bf16.gmra.mrb[28].mxu1 %vm303_vm1, %v1476_v24  ;;  %3912 = vmatmul.mubr.msk.bf16.gmra.mrb[24].mxu0 %vm303_vm1, %v2778_v28 }
 0x147   : > { %3767 = vmatprep.mubr.msk.bf16.mxu1 %vm303_vm1, %v1477_v58  ;;  %3915 = vmatprep.mubr.msk.bf16.mxu0 %vm303_vm1, %v2779_v5 }
 0x14e   : > { %3768 = vmatmul.mubr.msk.bf16.gmra.mrb[32].mxu1 %vm303_vm1, %v1478_v50  ;;  %3916 = vmatmul.mubr.msk.bf16.gmra.mrb[28].mxu0 %vm303_vm1, %v2780_v35  ;;  %v3066_v35 = vld [vmem:[%s4928_s14 + $0x58] sm:$0xff] }
 0x14f   : > { %3919 = vmatprep.mubr.msk.bf16.mxu0 %vm303_vm1, %v2781_v36 }
 0x156   : > { %3920 = vmatmul.mubr.msk.bf16.gmra.mrb[32].mxu0 %vm303_vm1, %v2782_v33  ;;  %v3064_v33 = vld [vmem:[%s4928_s14 + $0x48] sm:$0xff] }
 0x1c1   : > { %v3699_v37 = vpop.f32.mrb[0].mxu1 }
 0x1c2   : > { %v1246_v62 = vpop.f32.mrb[1].mxu1 }
 0x1c3   : > { %v3700_v39 = vpop.f32.mrb[2].mxu1 }
 0x1c4   : > { %v1249_v44 = vpop.f32.mrb[3].mxu1 }
 0x1c9   : > { %v3703_v34 = vpop.f32.mrb[4].mxu1 }
 0x1ca   : > { %v1262_v1 = vpop.f32.mrb[5].mxu1 }
 0x1cb   : > { %v3704_v12 = vpop.f32.mrb[6].mxu1 }
 0x1cc   : > { %v1265_v16 = vpop.f32.mrb[7].mxu1 }
 0x1d1   : > { %v3707_v46 = vpop.f32.mrb[8].mxu1 }
 0x1d2   : > { %v1278_v48 = vpop.f32.mrb[9].mxu1 }
 0x1d3   : > { %v3708_v30 = vpop.f32.mrb[10].mxu1 }
 0x1d4   : > { %v4906_v0 = vpop.f32.mrb[11].mxu1 }
 0x1d9   : > { %v4908_v49 = vpop.f32.mrb[12].mxu1 }
 0x1da   : > { %v4910_v32 = vpop.f32.mrb[13].mxu1 }
 0x1db   : > { %v4912_v43 = vpop.f32.mrb[14].mxu1 }
 0x1dc   : > { %v4914_v54 = vpop.f32.mrb[15].mxu1 }
 0x1e1   : > { %v4916_v55 = vpop.f32.mrb[16].mxu1 }
 0x1e2   : > { %v4918_v45 = vpop.f32.mrb[17].mxu1 }
 0x1e3   : > { %v4920_v60 = vpop.f32.mrb[18].mxu1 }
 0x1e4   : > { %v4923_v57 = vpop.f32.mrb[19].mxu1 }
 0x1e9   : > { %v3889_v61 = vpop.f32.mrb[0].mxu0 }
 0x1ea   : > { %v3925_v3 = vadd.f32 %v3889_v61, %v3699_v37  ;;  %v2876_v4 = vpop.f32.mrb[1].mxu0 }
 0x1eb   : > { %v3926_v6 = vadd.f32 %v2876_v4, %v1246_v62  ;;  %v3890_v41 = vpop.f32.mrb[2].mxu0  ;;  %v3068_v4 = vld [vmem:[%s4928_s14 + $0x68] sm:$0xff] }
 0x1ec   : > { %v3093_v7 = vadd.f32 %v3925_v3, %v3057_v63  ;;  %v3927_v10 = vadd.f32 %v3890_v41, %v3700_v39  ;;  %v2879_v11 = vpop.f32.mrb[3].mxu0 }
 0x1ed   : > { %v3091_v2 = vadd.f32 %v3926_v6, %v3055_v59  ;;  %v3928_v42 = vadd.f32 %v2879_v11, %v1249_v44  ;;  %v3071_v11 = vld [vmem:[%s4928_s14 + $0x80] sm:$0xff] }
 0x1ee   : > { %3129 = vst.msk [vmem:[%s4935_s13 + $0x10] sm:$0xff] %vm303_vm1, %v3093_v7  ;;  %v3094_v47 = vadd.f32 %v3927_v10, %v3058_v9  ;;  %v3073_v9 = vld [vmem:[%s4928_s14 + $0x90] sm:$0xff] }
 0x1ef   : > { %3127 = vst.msk [vmem:[%s4935_s13] sm:$0xff] %vm303_vm1, %v3091_v2  ;;  %v3092_v15 = vadd.f32 %v3928_v42, %v3056_v13 }
 0x1f0   : > { %3130 = vst.msk [vmem:[%s4935_s13 + $0x18] sm:$0xff] %vm303_vm1, %v3094_v47  ;;  %v3074_v47 = vld [vmem:[%s4928_s14 + $0x98] sm:$0xff] }
 0x1f1   : > { %3128 = vst.msk [vmem:[%s4935_s13 + $0x8] sm:$0xff] %vm303_vm1, %v3092_v15  ;;  %v3893_v17 = vpop.f32.mrb[4].mxu0 }
 0x1f2   : > { %v3929_v14 = vadd.f32 %v3893_v17, %v3703_v34  ;;  %v2892_v51 = vpop.f32.mrb[5].mxu0 }
 0x1f3   : > { %v3930_v29 = vadd.f32 %v2892_v51, %v1262_v1  ;;  %v3894_v21 = vpop.f32.mrb[6].mxu0  ;;  %v3069_v1 = vld [vmem:[%s4928_s14 + $0x70] sm:$0xff]  ;;  %v3072_v51 = vld [vmem:[%s4928_s14 + $0x88] sm:$0xff] }
 0x1f4   : > { %v3097_v53 = vadd.f32 %v3929_v14, %v3061_v18  ;;  %v3931_v56 = vadd.f32 %v3894_v21, %v3704_v12  ;;  %v2895_v25 = vpop.f32.mrb[7].mxu0 }
 0x1f5   : > { %v3095_v24 = vadd.f32 %v3930_v29, %v3059_v23  ;;  %v3932_v28 = vadd.f32 %v2895_v25, %v1265_v16  ;;  %v3075_v25 = vld [vmem:[%s4928_s14 + $0xa0] sm:$0xff] }
 0x1f6   : > { %3133 = vst.msk [vmem:[%s4935_s13 + $0x30] sm:$0xff] %vm303_vm1, %v3097_v53  ;;  %v3098_v58 = vadd.f32 %v3931_v56, %v3062_v22  ;;  %v3077_v22 = vld [vmem:[%s4928_s14 + $0xb0] sm:$0xff] }
 0x1f7   : > { %3131 = vst.msk [vmem:[%s4935_s13 + $0x20] sm:$0xff] %vm303_vm1, %v3095_v24  ;;  %v3096_v5 = vadd.f32 %v3932_v28, %v3060_v38 }
 0x1f8   : > { %3134 = vst.msk [vmem:[%s4935_s13 + $0x38] sm:$0xff] %vm303_vm1, %v3098_v58  ;;  %v3078_v58 = vld [vmem:[%s4928_s14 + $0xb8] sm:$0xff] }
 0x1f9   : > { %3132 = vst.msk [vmem:[%s4935_s13 + $0x28] sm:$0xff] %vm303_vm1, %v3096_v5  ;;  %v3897_v19 = vpop.f32.mrb[8].mxu0 }
 0x1fa   : > { %v3933_v26 = vadd.f32 %v3897_v19, %v3707_v46  ;;  %v2908_v40 = vpop.f32.mrb[9].mxu0  ;;  %v3067_v46 = vld [vmem:[%s4928_s14 + $0x60] sm:$0xff] }
 0x1fb   : > { %v3934_v27 = vadd.f32 %v2908_v40, %v1278_v48  ;;  %v3898_v50 = vpop.f32.mrb[10].mxu0  ;;  %v3076_v40 = vld [vmem:[%s4928_s14 + $0xa8] sm:$0xff] }
 0x1fc   : > { %v3101_v36 = vadd.f32 %v3933_v26, %v3065_v31  ;;  %v3935_v52 = vadd.f32 %v3898_v50, %v3708_v30  ;;  %v2911_v20 = vpop.f32.mrb[11].mxu0 }
 0x1fd   : > { %v3099_v37 = vadd.f32 %v3934_v27, %v3063_v8  ;;  %v3936_v62 = vadd.f32 %v2911_v20, %v4906_v0  ;;  %v3070_v0 = vld [vmem:[%s4928_s14 + $0x78] sm:$0xff]  ;;  %v3081_v20 = vld [vmem:[%s4928_s14 + $0xd0] sm:$0xff] }
 0x1fe   : > { %3137 = vst.msk [vmem:[%s4935_s13 + $0x50] sm:$0xff] %vm303_vm1, %v3101_v36  ;;  %v3102_v39 = vadd.f32 %v3935_v52, %v3066_v35 }
 0x1ff   : > { %3135 = vst.msk [vmem:[%s4935_s13 + $0x40] sm:$0xff] %vm303_vm1, %v3099_v37  ;;  %v3100_v44 = vadd.f32 %v3936_v62, %v3064_v33 }
 0x200   : > { %3138 = vst.msk [vmem:[%s4935_s13 + $0x58] sm:$0xff] %vm303_vm1, %v3102_v39  ;;  %v3079_v39 = vld [vmem:[%s4928_s14 + $0xc0] sm:$0xff] }
 0x201   : > { %3136 = vst.msk [vmem:[%s4935_s13 + $0x48] sm:$0xff] %vm303_vm1, %v3100_v44  ;;  %v3901_v34 = vpop.f32.mrb[12].mxu0 }
 0x202   : > { %v3937_v12 = vadd.f32 %v3901_v34, %v4908_v49  ;;  %v2924_v16 = vpop.f32.mrb[13].mxu0 }
 0x203   : > { %v3938_v48 = vadd.f32 %v2924_v16, %v4910_v32  ;;  %v3902_v30 = vpop.f32.mrb[14].mxu0 }
 0x204   : > { %v3105_v61 = vadd.f32 %v3937_v12, %v3069_v1  ;;  %v3939_v63 = vadd.f32 %v3902_v30, %v4912_v43  ;;  %v2927_v3 = vpop.f32.mrb[15].mxu0  ;;  %v3082_v12 = vld [vmem:[%s4928_s14 + $0xd8] sm:$0xff] }
 0x205   : > { %v3103_v59 = vadd.f32 %v3938_v48, %v3067_v46  ;;  %v3940_v6 = vadd.f32 %v2927_v3, %v4914_v54 }
 0x206   : > { %3141 = vst.msk [vmem:[%s4935_s13 + $0x70] sm:$0xff] %vm303_vm1, %v3105_v61  ;;  %v3106_v49 = vadd.f32 %v3939_v63, %v3070_v0  ;;  %v3080_v0 = vld [vmem:[%s4928_s14 + $0xc8] sm:$0xff] }
 0x207   : > { %3139 = vst.msk [vmem:[%s4935_s13 + $0x60] sm:$0xff] %vm303_vm1, %v3103_v59  ;;  %v3104_v41 = vadd.f32 %v3940_v6, %v3068_v4 }
 0x208   : > { %3142 = vst.msk [vmem:[%s4935_s13 + $0x78] sm:$0xff] %vm303_vm1, %v3106_v49  ;;  %v3085_v49 = vld [vmem:[%s4928_s14 + $0xf0] sm:$0xff] }
 0x209   : > { %v3757_v32 = vpop.f32.mrb[20].mxu1  ;;  %3140 = vst.msk [vmem:[%s4935_s13 + $0x68] sm:$0xff] %vm303_vm1, %v3104_v41  ;;  %v3905_v43 = vpop.f32.mrb[16].mxu0 }
 0x20a   : > { %v1652_v7 = vpop.f32.mrb[21].mxu1  ;;  %v3941_v10 = vadd.f32 %v3905_v43, %v4916_v55  ;;  %v2940_v54 = vpop.f32.mrb[17].mxu0 }
 0x20b   : > { %v3758_v13 = vpop.f32.mrb[22].mxu1  ;;  %v3942_v2 = vadd.f32 %v2940_v54, %v4918_v45  ;;  %v3906_v42 = vpop.f32.mrb[18].mxu0 }
 0x20c   : > { %v1655_v15 = vpop.f32.mrb[23].mxu1  ;;  %v3109_v17 = vadd.f32 %v3941_v10, %v3073_v9  ;;  %v3943_v18 = vadd.f32 %v3906_v42, %v4920_v60  ;;  %v2943_v14 = vpop.f32.mrb[19].mxu0  ;;  %v3083_v9 = vld [vmem:[%s4928_s14 + $0xe0] sm:$0xff] }
 0x20d   : > { %v3107_v23 = vadd.f32 %v3942_v2, %v3071_v11  ;;  %v3944_v55 = vadd.f32 %v2943_v14, %v4923_v57  ;;  %v3086_v11 = vld [vmem:[%s4928_s14 + $0xf8] sm:$0xff] }
 0x20e   : > { %3145 = vst.msk [vmem:[%s4935_s13 + $0x90] sm:$0xff] %vm303_vm1, %v3109_v17  ;;  %v3110_v29 = vadd.f32 %v3943_v18, %v3074_v47 }
 0x20f   : > { %3143 = vst.msk [vmem:[%s4935_s13 + $0x80] sm:$0xff] %vm303_vm1, %v3107_v23  ;;  %v3108_v45 = vadd.f32 %v3944_v55, %v3072_v51  ;;  %v3089_v55 = vld [vmem:[%s4928_s14 + $0x110] sm:$0xff] }
 0x210   : > { %3146 = vst.msk [vmem:[%s4935_s13 + $0x98] sm:$0xff] %vm303_vm1, %v3110_v29 }
 0x211   : > { %v3761_v21 = vpop.f32.mrb[24].mxu1  ;;  %3144 = vst.msk [vmem:[%s4935_s13 + $0x88] sm:$0xff] %vm303_vm1, %v3108_v45  ;;  %v3909_v60 = vpop.f32.mrb[20].mxu0 }
 0x212   : > { %v1668_v53 = vpop.f32.mrb[25].mxu1  ;;  %v3945_v56 = vadd.f32 %v3909_v60, %v3757_v32  ;;  %v2956_v57 = vpop.f32.mrb[21].mxu0 }
 0x213   : > { %v3762_v38 = vpop.f32.mrb[26].mxu1  ;;  %v3946_v24 = vadd.f32 %v2956_v57, %v1652_v7  ;;  %v3910_v28 = vpop.f32.mrb[22].mxu0 }
 0x214   : > { %v1671_v5 = vpop.f32.mrb[27].mxu1  ;;  %v3113_v19 = vadd.f32 %v3945_v56, %v3077_v22  ;;  %v3947_v31 = vadd.f32 %v3910_v28, %v3758_v13  ;;  %v2959_v26 = vpop.f32.mrb[23].mxu0 }
 0x215   : > { %v3111_v8 = vadd.f32 %v3946_v24, %v3075_v25  ;;  %v3948_v27 = vadd.f32 %v2959_v26, %v1655_v15  ;;  %v3084_v15 = vld [vmem:[%s4928_s14 + $0xe8] sm:$0xff] }
 0x216   : > { %3149 = vst.msk [vmem:[%s4935_s13 + $0xb0] sm:$0xff] %vm303_vm1, %v3113_v19  ;;  %v3114_v50 = vadd.f32 %v3947_v31, %v3078_v58 }
 0x217   : > { %3147 = vst.msk [vmem:[%s4935_s13 + $0xa0] sm:$0xff] %vm303_vm1, %v3111_v8  ;;  %v3112_v35 = vadd.f32 %v3948_v27, %v3076_v40 }
 0x218   : > { %3150 = vst.msk [vmem:[%s4935_s13 + $0xb8] sm:$0xff] %vm303_vm1, %v3114_v50 }
 0x219   : > { %v3765_v36 = vpop.f32.mrb[28].mxu1  ;;  %3148 = vst.msk [vmem:[%s4935_s13 + $0xa8] sm:$0xff] %vm303_vm1, %v3112_v35  ;;  %v3913_v52 = vpop.f32.mrb[24].mxu0 }
 0x21a   : > { %v1684_v33 = vpop.f32.mrb[29].mxu1  ;;  %v3949_v37 = vadd.f32 %v3913_v52, %v3761_v21  ;;  %v2972_v62 = vpop.f32.mrb[25].mxu0  ;;  %v3087_v21 = vld [vmem:[%s4928_s14 + $0x100] sm:$0xff] }
 0x21b   : > { %v3766_v44 = vpop.f32.mrb[30].mxu1  ;;  %v3950_v34 = vadd.f32 %v2972_v62, %v1668_v53  ;;  %v3914_v1 = vpop.f32.mrb[26].mxu0  ;;  %v3090_v53 = vld [vmem:[%s4928_s14 + $0x118] sm:$0xff] }
 0x21c   : > { %v1687_v16 = vpop.f32.mrb[31].mxu1  ;;  %v3117_v46 = vadd.f32 %v3949_v37, %v3081_v20  ;;  %v3951_v48 = vadd.f32 %v3914_v1, %v3762_v38  ;;  %v2975_v30 = vpop.f32.mrb[27].mxu0  ;;  %v3088_v38 = vld [vmem:[%s4928_s14 + $0x108] sm:$0xff] }
 0x21d   : > { %v3115_v61 = vadd.f32 %v3950_v34, %v3079_v39  ;;  %v3952_v63 = vadd.f32 %v2975_v30, %v1671_v5 }
 0x21e   : > { %3153 = vst.msk [vmem:[%s4935_s13 + $0xd0] sm:$0xff] %vm303_vm1, %v3117_v46  ;;  %v3118_v3 = vadd.f32 %v3951_v48, %v3082_v12 }
 0x21f   : > { %3151 = vst.msk [vmem:[%s4935_s13 + $0xc0] sm:$0xff] %vm303_vm1, %v3115_v61  ;;  %v3116_v4 = vadd.f32 %v3952_v63, %v3080_v0 }
 0x220   : > { %3154 = vst.msk [vmem:[%s4935_s13 + $0xd8] sm:$0xff] %vm303_vm1, %v3118_v3 }
 0x221   : > { %v3769_v59 = vpop.f32.mrb[32].mxu1  ;;  %3152 = vst.msk [vmem:[%s4935_s13 + $0xc8] sm:$0xff] %vm303_vm1, %v3116_v4  ;;  %v3917_v6 = vpop.f32.mrb[28].mxu0 }
 0x222   : > { %v1700_v41 = vpop.f32.mrb[33].mxu1  ;;  %v3953_v32 = vadd.f32 %v3917_v6, %v3765_v36  ;;  %v2988_v43 = vpop.f32.mrb[29].mxu0 }
 0x223   : > { %v3770_v7 = vpop.f32.mrb[34].mxu1  ;;  %v3954_v10 = vadd.f32 %v2988_v43, %v1684_v33  ;;  %v3918_v54 = vpop.f32.mrb[30].mxu0 }
 0x224   : > { %v1703_v13 = vpop.f32.mrb[35].mxu1  ;;  %v3121_v2 = vadd.f32 %v3953_v32, %v3085_v49  ;;  %v3955_v42 = vadd.f32 %v3918_v54, %v3766_v44  ;;  %v2991_v47 = vpop.f32.mrb[31].mxu0 }
 0x225   : > { %v3119_v17 = vadd.f32 %v3954_v10, %v3083_v9  ;;  %v3956_v18 = vadd.f32 %v2991_v47, %v1687_v16 }
 0x226   : > { %3157 = vst.msk [vmem:[%s4935_s13 + $0xf0] sm:$0xff] %vm303_vm1, %v3121_v2  ;;  %v3122_v14 = vadd.f32 %v3955_v42, %v3086_v11 }
 0x227   : > { %3155 = vst.msk [vmem:[%s4935_s13 + $0xe0] sm:$0xff] %vm303_vm1, %v3119_v17  ;;  %v3120_v51 = vadd.f32 %v3956_v18, %v3084_v15 }
 0x228   : > { %3158 = vst.msk [vmem:[%s4935_s13 + $0xf8] sm:$0xff] %vm303_vm1, %v3122_v14 }
 0x229   : > { %3156 = vst.msk [vmem:[%s4935_s13 + $0xe8] sm:$0xff] %vm303_vm1, %v3120_v51  ;;  %v3921_v23 = vpop.f32.mrb[32].mxu0 }
 0x22a   : > { %v3957_v29 = vadd.f32 %v3921_v23, %v3769_v59  ;;  %v3004_v45 = vpop.f32.mrb[33].mxu0 }
 0x22b   : > { %v3958_v60 = vadd.f32 %v3004_v45, %v1700_v41  ;;  %v3922_v22 = vpop.f32.mrb[34].mxu0 }
 0x22c   : > { %v3125_v56 = vadd.f32 %v3957_v29, %v3089_v55  ;;  %v3959_v57 = vadd.f32 %v3922_v22, %v3770_v7  ;;  %v3007_v25 = vpop.f32.mrb[35].mxu0 }
 0x22d   : > { %v3123_v24 = vadd.f32 %v3958_v60, %v3087_v21  ;;  %v3960_v28 = vadd.f32 %v3007_v25, %v1703_v13 }
 0x22e   : > { %3161 = vst.msk [vmem:[%s4935_s13 + $0x110] sm:$0xff] %vm303_vm1, %v3125_v56  ;;  %v3126_v58 = vadd.f32 %v3959_v57, %v3090_v53 }
 0x22f   : > { %3159 = vst.msk [vmem:[%s4935_s13 + $0x100] sm:$0xff] %vm303_vm1, %v3123_v24  ;;  %v3124_v5 = vadd.f32 %v3960_v28, %v3088_v38 }
 0x230   : > { %3162 = vst.msk [vmem:[%s4935_s13 + $0x118] sm:$0xff] %vm303_vm1, %v3126_v58 }
 0x231   : > { %3160 = vst.msk [vmem:[%s4935_s13 + $0x108] sm:$0xff] %vm303_vm1, %v3124_v5 }
 0x232 PF: > { %s13_s12 = sadd.s32 1, %s4239_s12  }
 0x233   : > { %p10_p4 = scmp.ge.s32.totalorder %s13_s12, 4  }
 0x235   :  { %12 = sbr.rel (!%p10_p4) target bundleno = 1 (0x1), region = 73 }

// kernel: _lambda_.28
= control target key start
LH: loop header
LB: loop body
LE: loop exit
PB: predicated region body
PF: predicated region fallthrough
CT: control target
= control target key end

     0   :  { %vm164_vm0 = vcmask 31744   ;;  %s519_s0 = inlined_call_operand.vmem [shape: f32[128,4], index: 0, kind: input, shape index: {}]   ;;  %s520_s1 = inlined_call_operand.vmem [shape: f32[128,4], index: 1, kind: input, shape index: {}]   ;;  %s521_s2 = inlined_call_operand.vmem [shape: f32[128,4], index: 2, kind: input, shape index: {}]   ;;  %s522_s3 = inlined_call_operand.vmem [shape: f32[128,4], index: 3, kind: input, shape index: {}]   ;;  %s523_s4 = inlined_call_operand.vmem [shape: f32[128,4], index: 4, kind: input, shape index: {}]   ;;  %s524_s5 = inlined_call_operand.vmem [shape: f32[128,4], index: 5, kind: output, shape index: {}]  }
   0x1   :  { %v20_v0 = vld [vmem:[%s519_s0] sm:$0xff]  ;;  %v21_v4 = vld [vmem:[%s519_s0 + $0x8] sm:$0xff]  ;;  %v22_v11 = vld [vmem:[%s519_s0 + $0x10] sm:$0xff] }
   0x2   :  { %v36_v1 = vld [vmem:[%s520_s1] sm:$0xff]  ;;  %v37_v6 = vld [vmem:[%s520_s1 + $0x8] sm:$0xff]  ;;  %v38_v12 = vld [vmem:[%s520_s1 + $0x10] sm:$0xff] }
   0x3   :  { %v68_v2 = vld [vmem:[%s521_s2] sm:$0xff]  ;;  %v52_v3 = vmax.f32 %v20_v0, %v36_v1  ;;  %v69_v7 = vld [vmem:[%s521_s2 + $0x8] sm:$0xff]  ;;  %v53_v10 = vmax.f32 %v21_v4, %v37_v6  ;;  %v54_v14 = vmax.f32 %v22_v11, %v38_v12  ;;  %v70_v15 = vld [vmem:[%s521_s2 + $0x10] sm:$0xff] }
   0x4   :  { %v100_v5 = vld [vmem:[%s522_s3] sm:$0xff]  ;;  %v101_v13 = vld [vmem:[%s522_s3 + $0x8] sm:$0xff]  ;;  %v102_v16 = vld [vmem:[%s522_s3 + $0x10] sm:$0xff] }
   0x5   :  { %v84_v8 = vmax.f32 %v52_v3, %v68_v2  ;;  %v132_v9 = vld [vmem:[%s523_s4] sm:$0xff]  ;;  %v85_v18 = vmax.f32 %v53_v10, %v69_v7  ;;  %v23_v19 = vld [vmem:[%s519_s0 + $0x18] sm:$0xff]  ;;  %v133_v22 = vld [vmem:[%s523_s4 + $0x8] sm:$0xff]  ;;  %v86_v23 = vmax.f32 %v54_v14, %v70_v15 }
   0x6   :  { %v39_v20 = vld [vmem:[%s520_s1 + $0x18] sm:$0xff]  ;;  %v134_v24 = vld [vmem:[%s523_s4 + $0x10] sm:$0xff]  ;;  %v24_v26 = vld [vmem:[%s519_s0 + $0x20] sm:$0xff] }
   0x7   :  { %v116_v17 = vmax.f32 %v84_v8, %v100_v5  ;;  %v71_v21 = vld [vmem:[%s521_s2 + $0x18] sm:$0xff]  ;;  %v55_v25 = vmax.f32 %v23_v19, %v39_v20  ;;  %v117_v28 = vmax.f32 %v85_v18, %v101_v13  ;;  %v40_v30 = vld [vmem:[%s520_s1 + $0x20] sm:$0xff]  ;;  %v118_v32 = vmax.f32 %v86_v23, %v102_v16  ;;  %v25_v36 = vld [vmem:[%s519_s0 + $0x28] sm:$0xff] }
   0x8   :  { %v103_v29 = vld [vmem:[%s522_s3 + $0x18] sm:$0xff]  ;;  %v72_v31 = vld [vmem:[%s521_s2 + $0x20] sm:$0xff]  ;;  %v56_v35 = vmax.f32 %v24_v26, %v40_v30  ;;  %v41_v37 = vld [vmem:[%s520_s1 + $0x28] sm:$0xff] }
   0x9   :  { %v148_v27 = vmax.f32 %v116_v17, %v132_v9  ;;  %v87_v33 = vmax.f32 %v55_v25, %v71_v21  ;;  %v135_v34 = vld [vmem:[%s523_s4 + $0x18] sm:$0xff]  ;;  %v149_v38 = vmax.f32 %v117_v28, %v133_v22  ;;  %v104_v39 = vld [vmem:[%s522_s3 + $0x20] sm:$0xff]  ;;  %v57_v40 = vmax.f32 %v25_v36, %v41_v37  ;;  %v73_v41 = vld [vmem:[%s521_s2 + $0x28] sm:$0xff] }
   0xa   :  { %v105_v42 = vld [vmem:[%s522_s3 + $0x28] sm:$0xff]  ;;  %v150_v43 = vmax.f32 %v118_v32, %v134_v24  ;;  %v88_v45 = vmax.f32 %v56_v35, %v72_v31  ;;  %v26_v46 = vld [vmem:[%s519_s0 + $0x30] sm:$0xff]  ;;  %v136_v49 = vld [vmem:[%s523_s4 + $0x20] sm:$0xff] }
   0xb   :  { %165 = vst.msk [vmem:[%s524_s5] sm:$0xff] %vm164_vm0, %v148_v27  ;;  %v119_v44 = vmax.f32 %v87_v33, %v103_v29  ;;  %v42_v47 = vld [vmem:[%s520_s1 + $0x30] sm:$0xff]  ;;  %166 = vst.msk [vmem:[%s524_s5 + $0x8] sm:$0xff] %vm164_vm0, %v149_v38  ;;  %v89_v50 = vmax.f32 %v57_v40, %v73_v41  ;;  %v137_v51 = vld [vmem:[%s523_s4 + $0x28] sm:$0xff] }
   0xc   :  { %v74_v48 = vld [vmem:[%s521_s2 + $0x30] sm:$0xff]  ;;  %v58_v52 = vmax.f32 %v26_v46, %v42_v47  ;;  %v27_v53 = vld [vmem:[%s519_s0 + $0x38] sm:$0xff]  ;;  %167 = vst.msk [vmem:[%s524_s5 + $0x10] sm:$0xff] %vm164_vm0, %v150_v43  ;;  %v120_v55 = vmax.f32 %v88_v45, %v104_v39  ;;  %v28_v63 = vld [vmem:[%s519_s0 + $0x40] sm:$0xff] }
   0xd   :  { %v151_v54 = vmax.f32 %v119_v44, %v135_v34  ;;  %v106_v56 = vld [vmem:[%s522_s3 + $0x30] sm:$0xff]  ;;  %v43_v57 = vld [vmem:[%s520_s1 + $0x38] sm:$0xff]  ;;  %v121_v59 = vmax.f32 %v89_v50, %v105_v42  ;;  %v44_v0 = vld [vmem:[%s520_s1 + $0x40] sm:$0xff] }
   0xe   :  { %v75_v58 = vld [vmem:[%s521_s2 + $0x38] sm:$0xff]  ;;  %v90_v60 = vmax.f32 %v58_v52, %v74_v48  ;;  %v138_v61 = vld [vmem:[%s523_s4 + $0x30] sm:$0xff]  ;;  %v59_v62 = vmax.f32 %v27_v53, %v43_v57  ;;  %v152_v1 = vmax.f32 %v120_v55, %v136_v49  ;;  %v60_v3 = vmax.f32 %v28_v63, %v44_v0  ;;  %v76_v4 = vld [vmem:[%s521_s2 + $0x40] sm:$0xff] }
   0xf   :  { %168 = vst.msk [vmem:[%s524_s5 + $0x18] sm:$0xff] %vm164_vm0, %v151_v54  ;;  %v107_v2 = vld [vmem:[%s522_s3 + $0x38] sm:$0xff]  ;;  %v108_v5 = vld [vmem:[%s522_s3 + $0x40] sm:$0xff]  ;;  %v153_v6 = vmax.f32 %v121_v59, %v137_v51  ;;  %v29_v9 = vld [vmem:[%s519_s0 + $0x48] sm:$0xff] }
  0x10   :  { %v122_v7 = vmax.f32 %v90_v60, %v106_v56  ;;  %v91_v8 = vmax.f32 %v59_v62, %v75_v58  ;;  %v45_v10 = vld [vmem:[%s520_s1 + $0x48] sm:$0xff]  ;;  %169 = vst.msk [vmem:[%s524_s5 + $0x20] sm:$0xff] %vm164_vm0, %v152_v1  ;;  %v139_v12 = vld [vmem:[%s523_s4 + $0x38] sm:$0xff]  ;;  %v92_v13 = vmax.f32 %v60_v3, %v76_v4  ;;  %v140_v14 = vld [vmem:[%s523_s4 + $0x40] sm:$0xff] }
  0x11   :  { %v77_v11 = vld [vmem:[%s521_s2 + $0x48] sm:$0xff]  ;;  %v61_v15 = vmax.f32 %v29_v9, %v45_v10  ;;  %v30_v16 = vld [vmem:[%s519_s0 + $0x50] sm:$0xff]  ;;  %170 = vst.msk [vmem:[%s524_s5 + $0x28] sm:$0xff] %vm164_vm0, %v153_v6  ;;  %v31_v26 = vld [vmem:[%s519_s0 + $0x58] sm:$0xff] }
  0x12   :  { %v154_v17 = vmax.f32 %v122_v7, %v138_v61  ;;  %v123_v18 = vmax.f32 %v91_v8, %v107_v2  ;;  %v109_v19 = vld [vmem:[%s522_s3 + $0x48] sm:$0xff]  ;;  %v46_v20 = vld [vmem:[%s520_s1 + $0x50] sm:$0xff]  ;;  %v124_v22 = vmax.f32 %v92_v13, %v108_v5  ;;  %v47_v27 = vld [vmem:[%s520_s1 + $0x58] sm:$0xff] }
  0x13   :  { %v78_v21 = vld [vmem:[%s521_s2 + $0x50] sm:$0xff]  ;;  %v93_v23 = vmax.f32 %v61_v15, %v77_v11  ;;  %v141_v24 = vld [vmem:[%s523_s4 + $0x48] sm:$0xff]  ;;  %v62_v25 = vmax.f32 %v30_v16, %v46_v20  ;;  %v63_v30 = vmax.f32 %v31_v26, %v47_v27  ;;  %v79_v31 = vld [vmem:[%s521_s2 + $0x58] sm:$0xff] }
  0x14   :  { %171 = vst.msk [vmem:[%s524_s5 + $0x30] sm:$0xff] %vm164_vm0, %v154_v17  ;;  %v155_v28 = vmax.f32 %v123_v18, %v139_v12  ;;  %v110_v29 = vld [vmem:[%s522_s3 + $0x50] sm:$0xff]  ;;  %v111_v32 = vld [vmem:[%s522_s3 + $0x58] sm:$0xff]  ;;  %v156_v33 = vmax.f32 %v124_v22, %v140_v14  ;;  %v32_v36 = vld [vmem:[%s519_s0 + $0x60] sm:$0xff] }
  0x15   :  { %v125_v34 = vmax.f32 %v93_v23, %v109_v19  ;;  %v94_v35 = vmax.f32 %v62_v25, %v78_v21  ;;  %v48_v37 = vld [vmem:[%s520_s1 + $0x60] sm:$0xff]  ;;  %v142_v39 = vld [vmem:[%s523_s4 + $0x50] sm:$0xff]  ;;  %v95_v40 = vmax.f32 %v63_v30, %v79_v31  ;;  %v143_v41 = vld [vmem:[%s523_s4 + $0x58] sm:$0xff] }
  0x16   :  { %v80_v38 = vld [vmem:[%s521_s2 + $0x60] sm:$0xff]  ;;  %172 = vst.msk [vmem:[%s524_s5 + $0x38] sm:$0xff] %vm164_vm0, %v155_v28  ;;  %v64_v42 = vmax.f32 %v32_v36, %v48_v37  ;;  %v33_v43 = vld [vmem:[%s519_s0 + $0x68] sm:$0xff]  ;;  %173 = vst.msk [vmem:[%s524_s5 + $0x40] sm:$0xff] %vm164_vm0, %v156_v33 }
  0x17   :  { %v157_v44 = vmax.f32 %v125_v34, %v141_v24  ;;  %v126_v45 = vmax.f32 %v94_v35, %v110_v29  ;;  %v112_v46 = vld [vmem:[%s522_s3 + $0x60] sm:$0xff]  ;;  %v49_v47 = vld [vmem:[%s520_s1 + $0x68] sm:$0xff]  ;;  %v127_v49 = vmax.f32 %v95_v40, %v111_v32  ;;  %v34_v53 = vld [vmem:[%s519_s0 + $0x70] sm:$0xff] }
  0x18   :  { %v81_v48 = vld [vmem:[%s521_s2 + $0x68] sm:$0xff]  ;;  %v96_v50 = vmax.f32 %v64_v42, %v80_v38  ;;  %v144_v51 = vld [vmem:[%s523_s4 + $0x60] sm:$0xff]  ;;  %v65_v52 = vmax.f32 %v33_v43, %v49_v47  ;;  %v50_v54 = vld [vmem:[%s520_s1 + $0x70] sm:$0xff] }
  0x19   :  { %174 = vst.msk [vmem:[%s524_s5 + $0x48] sm:$0xff] %vm164_vm0, %v157_v44  ;;  %v158_v55 = vmax.f32 %v126_v45, %v142_v39  ;;  %v113_v56 = vld [vmem:[%s522_s3 + $0x68] sm:$0xff]  ;;  %v66_v57 = vmax.f32 %v34_v53, %v50_v54  ;;  %v82_v58 = vld [vmem:[%s521_s2 + $0x70] sm:$0xff]  ;;  %v159_v60 = vmax.f32 %v127_v49, %v143_v41  ;;  %v35_v63 = vld [vmem:[%s519_s0 + $0x78] sm:$0xff] }
  0x1a   :  { %v114_v59 = vld [vmem:[%s522_s3 + $0x70] sm:$0xff]  ;;  %v128_v61 = vmax.f32 %v96_v50, %v112_v46  ;;  %v97_v62 = vmax.f32 %v65_v52, %v81_v48  ;;  %v51_v0 = vld [vmem:[%s520_s1 + $0x78] sm:$0xff]  ;;  %v145_v2 = vld [vmem:[%s523_s4 + $0x68] sm:$0xff] }
  0x1b   :  { %v83_v1 = vld [vmem:[%s521_s2 + $0x78] sm:$0xff]  ;;  %175 = vst.msk [vmem:[%s524_s5 + $0x50] sm:$0xff] %vm164_vm0, %v158_v55  ;;  %v98_v3 = vmax.f32 %v66_v57, %v82_v58  ;;  %v67_v4 = vmax.f32 %v35_v63, %v51_v0  ;;  %176 = vst.msk [vmem:[%s524_s5 + $0x58] sm:$0xff] %vm164_vm0, %v159_v60  ;;  %v146_v7 = vld [vmem:[%s523_s4 + $0x70] sm:$0xff] }
  0x1c   :  { %v160_v5 = vmax.f32 %v128_v61, %v144_v51  ;;  %v129_v6 = vmax.f32 %v97_v62, %v113_v56  ;;  %v115_v8 = vld [vmem:[%s522_s3 + $0x78] sm:$0xff] }
  0x1d   :  { %v130_v9 = vmax.f32 %v98_v3, %v114_v59  ;;  %v99_v10 = vmax.f32 %v67_v4, %v83_v1  ;;  %v147_v12 = vld [vmem:[%s523_s4 + $0x78] sm:$0xff] }
  0x1e   :  { %177 = vst.msk [vmem:[%s524_s5 + $0x60] sm:$0xff] %vm164_vm0, %v160_v5  ;;  %v161_v11 = vmax.f32 %v129_v6, %v145_v2 }
  0x1f   :  { %v162_v13 = vmax.f32 %v130_v9, %v146_v7  ;;  %v131_v14 = vmax.f32 %v99_v10, %v115_v8 }
  0x20   :  { %178 = vst.msk [vmem:[%s524_s5 + $0x68] sm:$0xff] %vm164_vm0, %v161_v11 }
  0x21   :  { %179 = vst.msk [vmem:[%s524_s5 + $0x70] sm:$0xff] %vm164_vm0, %v162_v13  ;;  %v163_v15 = vmax.f32 %v131_v14, %v147_v12 }
  0x23   :  { %180 = vst.msk [vmem:[%s524_s5 + $0x78] sm:$0xff] %vm164_vm0, %v163_v15 }

// kernel: _lambda_.29
= control target key start
LH: loop header
LB: loop body
LE: loop exit
PB: predicated region body
PF: predicated region fallthrough
CT: control target
= control target key end

     0   :  { %vm56_vm0 = vcmask 31744   ;;  %s171_s0 = inlined_call_operand.vmem [shape: f32[32,4], index: 0, kind: input, shape index: {}]   ;;  %s172_s1 = inlined_call_operand.vmem [shape: f32[32,4], index: 1, kind: input, shape index: {}]   ;;  %s173_s2 = inlined_call_operand.vmem [shape: f32[32,4], index: 2, kind: input, shape index: {}]   ;;  %s174_s3 = inlined_call_operand.vmem [shape: f32[32,4], index: 3, kind: input, shape index: {}]   ;;  %s175_s4 = inlined_call_operand.vmem [shape: f32[32,4], index: 4, kind: input, shape index: {}]   ;;  %s176_s5 = inlined_call_operand.vmem [shape: f32[32,4], index: 5, kind: output, shape index: {}]  }
   0x1   :  { %v20_v0 = vld [vmem:[%s171_s0] sm:$0xff]  ;;  %v21_v4 = vld [vmem:[%s171_s0 + $0x8] sm:$0xff]  ;;  %v22_v11 = vld [vmem:[%s171_s0 + $0x10] sm:$0xff] }
   0x2   :  { %v24_v1 = vld [vmem:[%s172_s1] sm:$0xff]  ;;  %v25_v6 = vld [vmem:[%s172_s1 + $0x8] sm:$0xff]  ;;  %v26_v12 = vld [vmem:[%s172_s1 + $0x10] sm:$0xff] }
   0x3   :  { %v32_v2 = vld [vmem:[%s173_s2] sm:$0xff]  ;;  %v28_v3 = vmax.f32 %v20_v0, %v24_v1  ;;  %v33_v7 = vld [vmem:[%s173_s2 + $0x8] sm:$0xff]  ;;  %v29_v10 = vmax.f32 %v21_v4, %v25_v6  ;;  %v30_v14 = vmax.f32 %v22_v11, %v26_v12  ;;  %v34_v15 = vld [vmem:[%s173_s2 + $0x10] sm:$0xff] }
   0x4   :  { %v40_v5 = vld [vmem:[%s174_s3] sm:$0xff]  ;;  %v41_v13 = vld [vmem:[%s174_s3 + $0x8] sm:$0xff]  ;;  %v42_v16 = vld [vmem:[%s174_s3 + $0x10] sm:$0xff] }
   0x5   :  { %v36_v8 = vmax.f32 %v28_v3, %v32_v2  ;;  %v48_v9 = vld [vmem:[%s175_s4] sm:$0xff]  ;;  %v37_v18 = vmax.f32 %v29_v10, %v33_v7  ;;  %v23_v19 = vld [vmem:[%s171_s0 + $0x18] sm:$0xff]  ;;  %v49_v22 = vld [vmem:[%s175_s4 + $0x8] sm:$0xff]  ;;  %v38_v23 = vmax.f32 %v30_v14, %v34_v15 }
   0x6   :  { %v27_v20 = vld [vmem:[%s172_s1 + $0x18] sm:$0xff]  ;;  %v50_v27 = vld [vmem:[%s175_s4 + $0x10] sm:$0xff] }
   0x7   :  { %v44_v17 = vmax.f32 %v36_v8, %v40_v5  ;;  %v35_v21 = vld [vmem:[%s173_s2 + $0x18] sm:$0xff]  ;;  %v31_v24 = vmax.f32 %v23_v19, %v27_v20  ;;  %v45_v26 = vmax.f32 %v37_v18, %v41_v13  ;;  %v46_v29 = vmax.f32 %v38_v23, %v42_v16 }
   0x8   :  { %v43_v28 = vld [vmem:[%s174_s3 + $0x18] sm:$0xff] }
   0x9   :  { %v52_v25 = vmax.f32 %v44_v17, %v48_v9  ;;  %v39_v30 = vmax.f32 %v31_v24, %v35_v21  ;;  %v53_v31 = vmax.f32 %v45_v26, %v49_v22  ;;  %v51_v32 = vld [vmem:[%s175_s4 + $0x18] sm:$0xff]  ;;  %v54_v33 = vmax.f32 %v46_v29, %v50_v27 }
   0xb   :  { %57 = vst.msk [vmem:[%s176_s5] sm:$0xff] %vm56_vm0, %v52_v25  ;;  %v47_v34 = vmax.f32 %v39_v30, %v43_v28  ;;  %58 = vst.msk [vmem:[%s176_s5 + $0x8] sm:$0xff] %vm56_vm0, %v53_v31 }
   0xc   :  { %59 = vst.msk [vmem:[%s176_s5 + $0x10] sm:$0xff] %vm56_vm0, %v54_v33 }
   0xd   :  { %v55_v35 = vmax.f32 %v47_v34, %v51_v32 }
   0xf   :  { %60 = vst.msk [vmem:[%s176_s5 + $0x18] sm:$0xff] %vm56_vm0, %v55_v35 }

// kernel: _lambda_.26
= control target key start
LH: loop header
LB: loop body
LE: loop exit
PB: predicated region body
PF: predicated region fallthrough
CT: control target
= control target key end

     0   :  { %vm94_vm0 = vcmask 31744   ;;  %s343_s0 = inlined_call_operand.vmem [shape: f32[128,4], index: 0, kind: input, shape index: {}]   ;;  %s344_s1 = inlined_call_operand.vmem [shape: f32[128,4], index: 1, kind: input, shape index: {}]   ;;  %s345_s2 = inlined_call_operand.vmem [shape: f32[128,4], index: 2, kind: input, shape index: {}]   ;;  %s346_s3 = inlined_call_operand.vmem [shape: f32[128,4], index: 3, kind: output, shape index: {}]  }
   0x1   :  { %v14_v0 = vld [vmem:[%s343_s0] sm:$0xff]  ;;  %v15_v4 = vld [vmem:[%s343_s0 + $0x8] sm:$0xff]  ;;  %v16_v8 = vld [vmem:[%s343_s0 + $0x10] sm:$0xff] }
   0x2   :  { %v30_v1 = vld [vmem:[%s344_s1] sm:$0xff]  ;;  %v31_v5 = vld [vmem:[%s344_s1 + $0x8] sm:$0xff]  ;;  %v32_v9 = vld [vmem:[%s344_s1 + $0x10] sm:$0xff] }
   0x3   :  { %v62_v2 = vld [vmem:[%s345_s2] sm:$0xff]  ;;  %v46_v3 = vmax.f32 %v14_v0, %v30_v1  ;;  %v63_v6 = vld [vmem:[%s345_s2 + $0x8] sm:$0xff]  ;;  %v47_v7 = vmax.f32 %v15_v4, %v31_v5  ;;  %v64_v10 = vld [vmem:[%s345_s2 + $0x10] sm:$0xff]  ;;  %v48_v12 = vmax.f32 %v16_v8, %v32_v9 }
   0x4   :  { %v17_v13 = vld [vmem:[%s343_s0 + $0x18] sm:$0xff]  ;;  %v18_v18 = vld [vmem:[%s343_s0 + $0x20] sm:$0xff]  ;;  %v19_v23 = vld [vmem:[%s343_s0 + $0x28] sm:$0xff] }
   0x5   :  { %v78_v11 = vmax.f32 %v46_v3, %v62_v2  ;;  %v33_v14 = vld [vmem:[%s344_s1 + $0x18] sm:$0xff]  ;;  %v79_v16 = vmax.f32 %v47_v7, %v63_v6  ;;  %v34_v19 = vld [vmem:[%s344_s1 + $0x20] sm:$0xff]  ;;  %v80_v21 = vmax.f32 %v48_v12, %v64_v10  ;;  %v35_v24 = vld [vmem:[%s344_s1 + $0x28] sm:$0xff] }
   0x6   :  { %v65_v15 = vld [vmem:[%s345_s2 + $0x18] sm:$0xff]  ;;  %v49_v17 = vmax.f32 %v17_v13, %v33_v14  ;;  %v66_v20 = vld [vmem:[%s345_s2 + $0x20] sm:$0xff]  ;;  %v50_v22 = vmax.f32 %v18_v18, %v34_v19  ;;  %v67_v25 = vld [vmem:[%s345_s2 + $0x28] sm:$0xff]  ;;  %v51_v27 = vmax.f32 %v19_v23, %v35_v24 }
   0x7   :  { %95 = vst.msk [vmem:[%s346_s3] sm:$0xff] %vm94_vm0, %v78_v11  ;;  %96 = vst.msk [vmem:[%s346_s3 + $0x8] sm:$0xff] %vm94_vm0, %v79_v16  ;;  %v20_v28 = vld [vmem:[%s343_s0 + $0x30] sm:$0xff]  ;;  %v21_v33 = vld [vmem:[%s343_s0 + $0x38] sm:$0xff] }
   0x8   :  { %v81_v26 = vmax.f32 %v49_v17, %v65_v15  ;;  %v36_v29 = vld [vmem:[%s344_s1 + $0x30] sm:$0xff]  ;;  %97 = vst.msk [vmem:[%s346_s3 + $0x10] sm:$0xff] %vm94_vm0, %v80_v21  ;;  %v82_v31 = vmax.f32 %v50_v22, %v66_v20  ;;  %v37_v34 = vld [vmem:[%s344_s1 + $0x38] sm:$0xff]  ;;  %v83_v36 = vmax.f32 %v51_v27, %v67_v25  ;;  %v22_v38 = vld [vmem:[%s343_s0 + $0x40] sm:$0xff] }
   0x9   :  { %v68_v30 = vld [vmem:[%s345_s2 + $0x30] sm:$0xff]  ;;  %v52_v32 = vmax.f32 %v20_v28, %v36_v29  ;;  %v69_v35 = vld [vmem:[%s345_s2 + $0x38] sm:$0xff]  ;;  %v53_v37 = vmax.f32 %v21_v33, %v37_v34  ;;  %v38_v39 = vld [vmem:[%s344_s1 + $0x40] sm:$0xff] }
   0xa   :  { %98 = vst.msk [vmem:[%s346_s3 + $0x18] sm:$0xff] %vm94_vm0, %v81_v26  ;;  %v70_v40 = vld [vmem:[%s345_s2 + $0x40] sm:$0xff]  ;;  %99 = vst.msk [vmem:[%s346_s3 + $0x20] sm:$0xff] %vm94_vm0, %v82_v31  ;;  %v54_v42 = vmax.f32 %v22_v38, %v38_v39  ;;  %v23_v43 = vld [vmem:[%s343_s0 + $0x48] sm:$0xff] }
   0xb   :  { %v84_v41 = vmax.f32 %v52_v32, %v68_v30  ;;  %v39_v44 = vld [vmem:[%s344_s1 + $0x48] sm:$0xff]  ;;  %100 = vst.msk [vmem:[%s346_s3 + $0x28] sm:$0xff] %vm94_vm0, %v83_v36  ;;  %v85_v46 = vmax.f32 %v53_v37, %v69_v35  ;;  %v24_v48 = vld [vmem:[%s343_s0 + $0x50] sm:$0xff]  ;;  %v25_v53 = vld [vmem:[%s343_s0 + $0x58] sm:$0xff] }
   0xc   :  { %v71_v45 = vld [vmem:[%s345_s2 + $0x48] sm:$0xff]  ;;  %v55_v47 = vmax.f32 %v23_v43, %v39_v44  ;;  %v40_v49 = vld [vmem:[%s344_s1 + $0x50] sm:$0xff]  ;;  %v86_v51 = vmax.f32 %v54_v42, %v70_v40  ;;  %v41_v54 = vld [vmem:[%s344_s1 + $0x58] sm:$0xff] }
   0xd   :  { %v72_v50 = vld [vmem:[%s345_s2 + $0x50] sm:$0xff]  ;;  %101 = vst.msk [vmem:[%s346_s3 + $0x30] sm:$0xff] %vm94_vm0, %v84_v41  ;;  %v56_v52 = vmax.f32 %v24_v48, %v40_v49  ;;  %v73_v55 = vld [vmem:[%s345_s2 + $0x58] sm:$0xff]  ;;  %102 = vst.msk [vmem:[%s346_s3 + $0x38] sm:$0xff] %vm94_vm0, %v85_v46  ;;  %v57_v57 = vmax.f32 %v25_v53, %v41_v54 }
   0xe   :  { %v87_v56 = vmax.f32 %v55_v47, %v71_v45  ;;  %v26_v58 = vld [vmem:[%s343_s0 + $0x60] sm:$0xff]  ;;  %103 = vst.msk [vmem:[%s346_s3 + $0x40] sm:$0xff] %vm94_vm0, %v86_v51  ;;  %v27_v63 = vld [vmem:[%s343_s0 + $0x68] sm:$0xff]  ;;  %v28_v4 = vld [vmem:[%s343_s0 + $0x70] sm:$0xff] }
   0xf   :  { %v42_v59 = vld [vmem:[%s344_s1 + $0x60] sm:$0xff]  ;;  %v88_v61 = vmax.f32 %v56_v52, %v72_v50  ;;  %v43_v0 = vld [vmem:[%s344_s1 + $0x68] sm:$0xff]  ;;  %v89_v2 = vmax.f32 %v57_v57, %v73_v55  ;;  %v44_v5 = vld [vmem:[%s344_s1 + $0x70] sm:$0xff] }
  0x10   :  { %v74_v60 = vld [vmem:[%s345_s2 + $0x60] sm:$0xff]  ;;  %v58_v62 = vmax.f32 %v26_v58, %v42_v59  ;;  %v75_v1 = vld [vmem:[%s345_s2 + $0x68] sm:$0xff]  ;;  %104 = vst.msk [vmem:[%s346_s3 + $0x48] sm:$0xff] %vm94_vm0, %v87_v56  ;;  %v59_v3 = vmax.f32 %v27_v63, %v43_v0  ;;  %v76_v6 = vld [vmem:[%s345_s2 + $0x70] sm:$0xff]  ;;  %v60_v8 = vmax.f32 %v28_v4, %v44_v5 }
  0x11   :  { %105 = vst.msk [vmem:[%s346_s3 + $0x50] sm:$0xff] %vm94_vm0, %v88_v61  ;;  %v29_v9 = vld [vmem:[%s343_s0 + $0x78] sm:$0xff]  ;;  %106 = vst.msk [vmem:[%s346_s3 + $0x58] sm:$0xff] %vm94_vm0, %v89_v2 }
  0x12   :  { %v90_v7 = vmax.f32 %v58_v62, %v74_v60  ;;  %v45_v10 = vld [vmem:[%s344_s1 + $0x78] sm:$0xff]  ;;  %v91_v12 = vmax.f32 %v59_v3, %v75_v1  ;;  %v92_v14 = vmax.f32 %v60_v8, %v76_v6 }
  0x13   :  { %v77_v11 = vld [vmem:[%s345_s2 + $0x78] sm:$0xff]  ;;  %v61_v13 = vmax.f32 %v29_v9, %v45_v10 }
  0x14   :  { %107 = vst.msk [vmem:[%s346_s3 + $0x60] sm:$0xff] %vm94_vm0, %v90_v7  ;;  %108 = vst.msk [vmem:[%s346_s3 + $0x68] sm:$0xff] %vm94_vm0, %v91_v12 }
  0x15   :  { %v93_v15 = vmax.f32 %v61_v13, %v77_v11  ;;  %109 = vst.msk [vmem:[%s346_s3 + $0x70] sm:$0xff] %vm94_vm0, %v92_v14 }
  0x17   :  { %110 = vst.msk [vmem:[%s346_s3 + $0x78] sm:$0xff] %vm94_vm0, %v93_v15 }

// kernel: _lambda_.25
= control target key start
LH: loop header
LB: loop body
LE: loop exit
PB: predicated region body
PF: predicated region fallthrough
CT: control target
= control target key end

     0   :  { %vm174_vm0 = vcmask 31744   ;;  %s647_s0 = inlined_call_operand.vmem [shape: f32[256,4], index: 0, kind: input, shape index: {}]   ;;  %s648_s1 = inlined_call_operand.vmem [shape: f32[256,4], index: 1, kind: input, shape index: {}]   ;;  %s649_s2 = inlined_call_operand.vmem [shape: f32[256,4], index: 2, kind: input, shape index: {}]   ;;  %s650_s3 = inlined_call_operand.vmem [shape: f32[256,4], index: 3, kind: output, shape index: {}]  }
   0x1   :  { %v14_v0 = vld [vmem:[%s647_s0] sm:$0xff]  ;;  %v15_v4 = vld [vmem:[%s647_s0 + $0x8] sm:$0xff]  ;;  %v16_v8 = vld [vmem:[%s647_s0 + $0x10] sm:$0xff] }
   0x2   :  { %v46_v1 = vld [vmem:[%s648_s1] sm:$0xff]  ;;  %v47_v5 = vld [vmem:[%s648_s1 + $0x8] sm:$0xff]  ;;  %v48_v9 = vld [vmem:[%s648_s1 + $0x10] sm:$0xff] }
   0x3   :  { %v110_v2 = vld [vmem:[%s649_s2] sm:$0xff]  ;;  %v78_v3 = vmax.f32 %v14_v0, %v46_v1  ;;  %v111_v6 = vld [vmem:[%s649_s2 + $0x8] sm:$0xff]  ;;  %v79_v7 = vmax.f32 %v15_v4, %v47_v5  ;;  %v112_v10 = vld [vmem:[%s649_s2 + $0x10] sm:$0xff]  ;;  %v80_v12 = vmax.f32 %v16_v8, %v48_v9 }
   0x4   :  { %v17_v13 = vld [vmem:[%s647_s0 + $0x18] sm:$0xff]  ;;  %v18_v18 = vld [vmem:[%s647_s0 + $0x20] sm:$0xff]  ;;  %v19_v23 = vld [vmem:[%s647_s0 + $0x28] sm:$0xff] }
   0x5   :  { %v142_v11 = vmax.f32 %v78_v3, %v110_v2  ;;  %v49_v14 = vld [vmem:[%s648_s1 + $0x18] sm:$0xff]  ;;  %v143_v16 = vmax.f32 %v79_v7, %v111_v6  ;;  %v50_v19 = vld [vmem:[%s648_s1 + $0x20] sm:$0xff]  ;;  %v144_v21 = vmax.f32 %v80_v12, %v112_v10  ;;  %v51_v24 = vld [vmem:[%s648_s1 + $0x28] sm:$0xff] }
   0x6   :  { %v113_v15 = vld [vmem:[%s649_s2 + $0x18] sm:$0xff]  ;;  %v81_v17 = vmax.f32 %v17_v13, %v49_v14  ;;  %v114_v20 = vld [vmem:[%s649_s2 + $0x20] sm:$0xff]  ;;  %v82_v22 = vmax.f32 %v18_v18, %v50_v19  ;;  %v115_v25 = vld [vmem:[%s649_s2 + $0x28] sm:$0xff]  ;;  %v83_v27 = vmax.f32 %v19_v23, %v51_v24 }
   0x7   :  { %175 = vst.msk [vmem:[%s650_s3] sm:$0xff] %vm174_vm0, %v142_v11  ;;  %176 = vst.msk [vmem:[%s650_s3 + $0x8] sm:$0xff] %vm174_vm0, %v143_v16  ;;  %v20_v28 = vld [vmem:[%s647_s0 + $0x30] sm:$0xff]  ;;  %v21_v33 = vld [vmem:[%s647_s0 + $0x38] sm:$0xff] }
   0x8   :  { %v145_v26 = vmax.f32 %v81_v17, %v113_v15  ;;  %v52_v29 = vld [vmem:[%s648_s1 + $0x30] sm:$0xff]  ;;  %177 = vst.msk [vmem:[%s650_s3 + $0x10] sm:$0xff] %vm174_vm0, %v144_v21  ;;  %v146_v31 = vmax.f32 %v82_v22, %v114_v20  ;;  %v53_v34 = vld [vmem:[%s648_s1 + $0x38] sm:$0xff]  ;;  %v147_v36 = vmax.f32 %v83_v27, %v115_v25  ;;  %v22_v38 = vld [vmem:[%s647_s0 + $0x40] sm:$0xff] }
   0x9   :  { %v116_v30 = vld [vmem:[%s649_s2 + $0x30] sm:$0xff]  ;;  %v84_v32 = vmax.f32 %v20_v28, %v52_v29  ;;  %v117_v35 = vld [vmem:[%s649_s2 + $0x38] sm:$0xff]  ;;  %v85_v37 = vmax.f32 %v21_v33, %v53_v34  ;;  %v54_v39 = vld [vmem:[%s648_s1 + $0x40] sm:$0xff] }
   0xa   :  { %178 = vst.msk [vmem:[%s650_s3 + $0x18] sm:$0xff] %vm174_vm0, %v145_v26  ;;  %v118_v40 = vld [vmem:[%s649_s2 + $0x40] sm:$0xff]  ;;  %179 = vst.msk [vmem:[%s650_s3 + $0x20] sm:$0xff] %vm174_vm0, %v146_v31  ;;  %v86_v42 = vmax.f32 %v22_v38, %v54_v39  ;;  %v23_v43 = vld [vmem:[%s647_s0 + $0x48] sm:$0xff] }
   0xb   :  { %v148_v41 = vmax.f32 %v84_v32, %v116_v30  ;;  %v55_v44 = vld [vmem:[%s648_s1 + $0x48] sm:$0xff]  ;;  %180 = vst.msk [vmem:[%s650_s3 + $0x28] sm:$0xff] %vm174_vm0, %v147_v36  ;;  %v149_v46 = vmax.f32 %v85_v37, %v117_v35  ;;  %v24_v48 = vld [vmem:[%s647_s0 + $0x50] sm:$0xff]  ;;  %v25_v53 = vld [vmem:[%s647_s0 + $0x58] sm:$0xff] }
   0xc   :  { %v119_v45 = vld [vmem:[%s649_s2 + $0x48] sm:$0xff]  ;;  %v87_v47 = vmax.f32 %v23_v43, %v55_v44  ;;  %v56_v49 = vld [vmem:[%s648_s1 + $0x50] sm:$0xff]  ;;  %v150_v51 = vmax.f32 %v86_v42, %v118_v40  ;;  %v57_v54 = vld [vmem:[%s648_s1 + $0x58] sm:$0xff] }
   0xd   :  { %v120_v50 = vld [vmem:[%s649_s2 + $0x50] sm:$0xff]  ;;  %181 = vst.msk [vmem:[%s650_s3 + $0x30] sm:$0xff] %vm174_vm0, %v148_v41  ;;  %v88_v52 = vmax.f32 %v24_v48, %v56_v49  ;;  %v121_v55 = vld [vmem:[%s649_s2 + $0x58] sm:$0xff]  ;;  %182 = vst.msk [vmem:[%s650_s3 + $0x38] sm:$0xff] %vm174_vm0, %v149_v46  ;;  %v89_v57 = vmax.f32 %v25_v53, %v57_v54 }
   0xe   :  { %v151_v56 = vmax.f32 %v87_v47, %v119_v45  ;;  %v26_v58 = vld [vmem:[%s647_s0 + $0x60] sm:$0xff]  ;;  %183 = vst.msk [vmem:[%s650_s3 + $0x40] sm:$0xff] %vm174_vm0, %v150_v51  ;;  %v27_v63 = vld [vmem:[%s647_s0 + $0x68] sm:$0xff]  ;;  %v28_v4 = vld [vmem:[%s647_s0 + $0x70] sm:$0xff] }
   0xf   :  { %v58_v59 = vld [vmem:[%s648_s1 + $0x60] sm:$0xff]  ;;  %v152_v61 = vmax.f32 %v88_v52, %v120_v50  ;;  %v59_v0 = vld [vmem:[%s648_s1 + $0x68] sm:$0xff]  ;;  %v153_v2 = vmax.f32 %v89_v57, %v121_v55  ;;  %v60_v5 = vld [vmem:[%s648_s1 + $0x70] sm:$0xff] }
  0x10   :  { %v122_v60 = vld [vmem:[%s649_s2 + $0x60] sm:$0xff]  ;;  %v90_v62 = vmax.f32 %v26_v58, %v58_v59  ;;  %v123_v1 = vld [vmem:[%s649_s2 + $0x68] sm:$0xff]  ;;  %184 = vst.msk [vmem:[%s650_s3 + $0x48] sm:$0xff] %vm174_vm0, %v151_v56  ;;  %v91_v3 = vmax.f32 %v27_v63, %v59_v0  ;;  %v124_v6 = vld [vmem:[%s649_s2 + $0x70] sm:$0xff]  ;;  %v92_v8 = vmax.f32 %v28_v4, %v60_v5 }
  0x11   :  { %185 = vst.msk [vmem:[%s650_s3 + $0x50] sm:$0xff] %vm174_vm0, %v152_v61  ;;  %v29_v9 = vld [vmem:[%s647_s0 + $0x78] sm:$0xff]  ;;  %186 = vst.msk [vmem:[%s650_s3 + $0x58] sm:$0xff] %vm174_vm0, %v153_v2  ;;  %v30_v14 = vld [vmem:[%s647_s0 + $0x80] sm:$0xff] }
  0x12   :  { %v154_v7 = vmax.f32 %v90_v62, %v122_v60  ;;  %v61_v10 = vld [vmem:[%s648_s1 + $0x78] sm:$0xff]  ;;  %v155_v12 = vmax.f32 %v91_v3, %v123_v1  ;;  %v62_v15 = vld [vmem:[%s648_s1 + $0x80] sm:$0xff]  ;;  %v156_v17 = vmax.f32 %v92_v8, %v124_v6  ;;  %v31_v19 = vld [vmem:[%s647_s0 + $0x88] sm:$0xff] }
  0x13   :  { %v125_v11 = vld [vmem:[%s649_s2 + $0x78] sm:$0xff]  ;;  %v93_v13 = vmax.f32 %v29_v9, %v61_v10  ;;  %v126_v16 = vld [vmem:[%s649_s2 + $0x80] sm:$0xff]  ;;  %v94_v18 = vmax.f32 %v30_v14, %v62_v15  ;;  %v63_v20 = vld [vmem:[%s648_s1 + $0x88] sm:$0xff] }
  0x14   :  { %187 = vst.msk [vmem:[%s650_s3 + $0x60] sm:$0xff] %vm174_vm0, %v154_v7  ;;  %v127_v21 = vld [vmem:[%s649_s2 + $0x88] sm:$0xff]  ;;  %188 = vst.msk [vmem:[%s650_s3 + $0x68] sm:$0xff] %vm174_vm0, %v155_v12  ;;  %v95_v23 = vmax.f32 %v31_v19, %v63_v20  ;;  %v32_v24 = vld [vmem:[%s647_s0 + $0x90] sm:$0xff] }
  0x15   :  { %v157_v22 = vmax.f32 %v93_v13, %v125_v11  ;;  %v64_v25 = vld [vmem:[%s648_s1 + $0x90] sm:$0xff]  ;;  %189 = vst.msk [vmem:[%s650_s3 + $0x70] sm:$0xff] %vm174_vm0, %v156_v17  ;;  %v158_v27 = vmax.f32 %v94_v18, %v126_v16  ;;  %v33_v29 = vld [vmem:[%s647_s0 + $0x98] sm:$0xff]  ;;  %v34_v34 = vld [vmem:[%s647_s0 + $0xa0] sm:$0xff] }
  0x16   :  { %v128_v26 = vld [vmem:[%s649_s2 + $0x90] sm:$0xff]  ;;  %v96_v28 = vmax.f32 %v32_v24, %v64_v25  ;;  %v65_v30 = vld [vmem:[%s648_s1 + $0x98] sm:$0xff]  ;;  %v159_v32 = vmax.f32 %v95_v23, %v127_v21  ;;  %v66_v35 = vld [vmem:[%s648_s1 + $0xa0] sm:$0xff] }
  0x17   :  { %v129_v31 = vld [vmem:[%s649_s2 + $0x98] sm:$0xff]  ;;  %190 = vst.msk [vmem:[%s650_s3 + $0x78] sm:$0xff] %vm174_vm0, %v157_v22  ;;  %v97_v33 = vmax.f32 %v33_v29, %v65_v30  ;;  %v130_v36 = vld [vmem:[%s649_s2 + $0xa0] sm:$0xff]  ;;  %191 = vst.msk [vmem:[%s650_s3 + $0x80] sm:$0xff] %vm174_vm0, %v158_v27  ;;  %v98_v38 = vmax.f32 %v34_v34, %v66_v35 }
  0x18   :  { %v160_v37 = vmax.f32 %v96_v28, %v128_v26  ;;  %v35_v39 = vld [vmem:[%s647_s0 + $0xa8] sm:$0xff]  ;;  %192 = vst.msk [vmem:[%s650_s3 + $0x88] sm:$0xff] %vm174_vm0, %v159_v32  ;;  %v36_v44 = vld [vmem:[%s647_s0 + $0xb0] sm:$0xff]  ;;  %v37_v49 = vld [vmem:[%s647_s0 + $0xb8] sm:$0xff] }
  0x19   :  { %v67_v40 = vld [vmem:[%s648_s1 + $0xa8] sm:$0xff]  ;;  %v161_v42 = vmax.f32 %v97_v33, %v129_v31  ;;  %v68_v45 = vld [vmem:[%s648_s1 + $0xb0] sm:$0xff]  ;;  %v162_v47 = vmax.f32 %v98_v38, %v130_v36  ;;  %v69_v50 = vld [vmem:[%s648_s1 + $0xb8] sm:$0xff] }
  0x1a   :  { %v131_v41 = vld [vmem:[%s649_s2 + $0xa8] sm:$0xff]  ;;  %v99_v43 = vmax.f32 %v35_v39, %v67_v40  ;;  %v132_v46 = vld [vmem:[%s649_s2 + $0xb0] sm:$0xff]  ;;  %193 = vst.msk [vmem:[%s650_s3 + $0x90] sm:$0xff] %vm174_vm0, %v160_v37  ;;  %v100_v48 = vmax.f32 %v36_v44, %v68_v45  ;;  %v133_v51 = vld [vmem:[%s649_s2 + $0xb8] sm:$0xff]  ;;  %v101_v53 = vmax.f32 %v37_v49, %v69_v50 }
  0x1b   :  { %194 = vst.msk [vmem:[%s650_s3 + $0x98] sm:$0xff] %vm174_vm0, %v161_v42  ;;  %v38_v54 = vld [vmem:[%s647_s0 + $0xc0] sm:$0xff]  ;;  %195 = vst.msk [vmem:[%s650_s3 + $0xa0] sm:$0xff] %vm174_vm0, %v162_v47  ;;  %v39_v59 = vld [vmem:[%s647_s0 + $0xc8] sm:$0xff] }
  0x1c   :  { %v163_v52 = vmax.f32 %v99_v43, %v131_v41  ;;  %v70_v55 = vld [vmem:[%s648_s1 + $0xc0] sm:$0xff]  ;;  %v164_v57 = vmax.f32 %v100_v48, %v132_v46  ;;  %v71_v60 = vld [vmem:[%s648_s1 + $0xc8] sm:$0xff]  ;;  %v165_v62 = vmax.f32 %v101_v53, %v133_v51  ;;  %v40_v0 = vld [vmem:[%s647_s0 + $0xd0] sm:$0xff] }
  0x1d   :  { %v134_v56 = vld [vmem:[%s649_s2 + $0xc0] sm:$0xff]  ;;  %v102_v58 = vmax.f32 %v38_v54, %v70_v55  ;;  %v135_v61 = vld [vmem:[%s649_s2 + $0xc8] sm:$0xff]  ;;  %v103_v63 = vmax.f32 %v39_v59, %v71_v60  ;;  %v72_v1 = vld [vmem:[%s648_s1 + $0xd0] sm:$0xff] }
  0x1e   :  { %196 = vst.msk [vmem:[%s650_s3 + $0xa8] sm:$0xff] %vm174_vm0, %v163_v52  ;;  %v136_v2 = vld [vmem:[%s649_s2 + $0xd0] sm:$0xff]  ;;  %197 = vst.msk [vmem:[%s650_s3 + $0xb0] sm:$0xff] %vm174_vm0, %v164_v57  ;;  %v104_v4 = vmax.f32 %v40_v0, %v72_v1  ;;  %v41_v5 = vld [vmem:[%s647_s0 + $0xd8] sm:$0xff] }
  0x1f   :  { %v166_v3 = vmax.f32 %v102_v58, %v134_v56  ;;  %v73_v6 = vld [vmem:[%s648_s1 + $0xd8] sm:$0xff]  ;;  %198 = vst.msk [vmem:[%s650_s3 + $0xb8] sm:$0xff] %vm174_vm0, %v165_v62  ;;  %v167_v8 = vmax.f32 %v103_v63, %v135_v61  ;;  %v42_v10 = vld [vmem:[%s647_s0 + $0xe0] sm:$0xff]  ;;  %v43_v15 = vld [vmem:[%s647_s0 + $0xe8] sm:$0xff] }
  0x20   :  { %v137_v7 = vld [vmem:[%s649_s2 + $0xd8] sm:$0xff]  ;;  %v105_v9 = vmax.f32 %v41_v5, %v73_v6  ;;  %v74_v11 = vld [vmem:[%s648_s1 + $0xe0] sm:$0xff]  ;;  %v168_v13 = vmax.f32 %v104_v4, %v136_v2  ;;  %v75_v16 = vld [vmem:[%s648_s1 + $0xe8] sm:$0xff] }
  0x21   :  { %v138_v12 = vld [vmem:[%s649_s2 + $0xe0] sm:$0xff]  ;;  %199 = vst.msk [vmem:[%s650_s3 + $0xc0] sm:$0xff] %vm174_vm0, %v166_v3  ;;  %v106_v14 = vmax.f32 %v42_v10, %v74_v11  ;;  %v139_v17 = vld [vmem:[%s649_s2 + $0xe8] sm:$0xff]  ;;  %200 = vst.msk [vmem:[%s650_s3 + $0xc8] sm:$0xff] %vm174_vm0, %v167_v8  ;;  %v107_v19 = vmax.f32 %v43_v15, %v75_v16 }
  0x22   :  { %v169_v18 = vmax.f32 %v105_v9, %v137_v7  ;;  %v44_v20 = vld [vmem:[%s647_s0 + $0xf0] sm:$0xff]  ;;  %201 = vst.msk [vmem:[%s650_s3 + $0xd0] sm:$0xff] %vm174_vm0, %v168_v13  ;;  %v45_v25 = vld [vmem:[%s647_s0 + $0xf8] sm:$0xff] }
  0x23   :  { %v76_v21 = vld [vmem:[%s648_s1 + $0xf0] sm:$0xff]  ;;  %v170_v23 = vmax.f32 %v106_v14, %v138_v12  ;;  %v77_v26 = vld [vmem:[%s648_s1 + $0xf8] sm:$0xff]  ;;  %v171_v28 = vmax.f32 %v107_v19, %v139_v17 }
  0x24   :  { %v140_v22 = vld [vmem:[%s649_s2 + $0xf0] sm:$0xff]  ;;  %v108_v24 = vmax.f32 %v44_v20, %v76_v21  ;;  %v141_v27 = vld [vmem:[%s649_s2 + $0xf8] sm:$0xff]  ;;  %202 = vst.msk [vmem:[%s650_s3 + $0xd8] sm:$0xff] %vm174_vm0, %v169_v18  ;;  %v109_v29 = vmax.f32 %v45_v25, %v77_v26 }
  0x25   :  { %203 = vst.msk [vmem:[%s650_s3 + $0xe0] sm:$0xff] %vm174_vm0, %v170_v23  ;;  %204 = vst.msk [vmem:[%s650_s3 + $0xe8] sm:$0xff] %vm174_vm0, %v171_v28 }
  0x26   :  { %v172_v30 = vmax.f32 %v108_v24, %v140_v22  ;;  %v173_v31 = vmax.f32 %v109_v29, %v141_v27 }
  0x28   :  { %205 = vst.msk [vmem:[%s650_s3 + $0xf0] sm:$0xff] %vm174_vm0, %v172_v30  ;;  %206 = vst.msk [vmem:[%s650_s3 + $0xf8] sm:$0xff] %vm174_vm0, %v173_v31 }

// kernel: _lambda_.30
= control target key start
LH: loop header
LB: loop body
LE: loop exit
PB: predicated region body
PF: predicated region fallthrough
CT: control target
= control target key end

     0   :  { %s2038_s27 = smov 0   ;;  %s2710_s0 = inlined_call_operand.vmem [shape: f32[512,4], index: 0, kind: input, shape index: {}]   ;;  %s2711_s1 = inlined_call_operand.vmem [shape: f32[512,4], index: 1, kind: input, shape index: {}]   ;;  %s2712_s2 = inlined_call_operand.vmem [shape: f32[512,4], index: 2, kind: input, shape index: {}]   ;;  %s2713_s3 = inlined_call_operand.vmem [shape: f32[512,4], index: 3, kind: input, shape index: {}]   ;;  %s2714_s4 = inlined_call_operand.vmem [shape: f32[512,1], index: 4, kind: input, shape index: {}]   ;;  %s2715_s5 = inlined_call_operand.vmem [shape: f32[512,1], index: 5, kind: input, shape index: {}]   ;;  %s2716_s6 = inlined_call_operand.vmem [shape: f32[512,1], index: 6, kind: input, shape index: {}]   ;;  %s2717_s7 = inlined_call_operand.vmem [shape: f32[512,1], index: 7, kind: input, shape index: {}]   ;;  %s2718_s8 = inlined_call_operand.vmem [shape: bf16[512,4], index: 8, kind: output, shape index: {}]  }
   0x1 LB: > { %s1884_s28 = sadd.s32 4294967295, %s1990_s27   ;;  %p1888_p0 = scmp.ge.s32.totalorder %s1990_s27, 1  ;;  %s1990_s27 = sphi %s2038_s27, %s18_s27  }
   0x2   : > { %p340_p1 = scmp.lt.s32.totalorder %s1990_s27, 3 }
   0x4   : > { %p341_p2 = pnand %p1888_p0, %p340_p1 }
   0x6   : > { %344 = sbr.rel (%p341_p2) target bundleno = 407 (0x197), region = 52 }
   0xd   : > { %s1889_s29 = sshll.u32 %s1884_s28, 5  ;;  %v1992_v0 = vmov 0   ;;  %vm1711_vm0 = vcmask 27648  }
   0xe   : > { %1983 = vset.pattern.permute.xlu1 %v1992_v0  ;;  %1982 = vset.pattern.permute.xlu0 %v1992_v0  ;;  %p410_p3 = scmp.lt.s32.totalorder %s1889_s29, 63 }
  0x10   : > { %s2820_s29 = smov (!%p410_p3, %s1889_s29), 63 }
  0x11   : > { %s2049_s30 = sshll.u32 %s2820_s29, 3 }
  0x12   : > { %s2055_s11 = scalar_lea.vmem %s2714_s4, %s2049_s30  ;;  %s2093_s14 = scalar_lea.vmem %s2715_s5, %s2049_s30 }
  0x13   : > { %v497_v1 = vld [vmem:[%s2055_s11 + $0x10] sm:$0xff]  ;;  %v495_v2 = vld [vmem:[%s2055_s11] sm:$0xff]  ;;  %v498_v3 = vld [vmem:[%s2055_s11 + $0x18] sm:$0xff]  ;;  %s2131_s17 = scalar_lea.vmem %s2716_s6, %s2049_s30  ;;  %s2229_s20 = scalar_lea.vmem %s2717_s7, %s2049_s30 }
  0x14   : > { %539 = vperm.xlu1 %1983, %v497_v1   ;;  %529 = vperm.xlu0 %1982, %v495_v2   ;;  %v496_v4 = vld [vmem:[%s2055_s11 + $0x8] sm:$0xff]  ;;  %v499_v6 = vld [vmem:[%s2055_s11 + $0x20] sm:$0xff]  ;;  %v502_v7 = vld [vmem:[%s2055_s11 + $0x38] sm:$0xff]  ;;  %s2325_s23 = scalar_lea.vmem %s2710_s0, %s2049_s30  ;;  %s2331_s26 = scalar_lea.vmem %s2711_s1, %s2049_s30 }
  0x15   : > { %v500_v5 = vld [vmem:[%s2055_s11 + $0x28] sm:$0xff]  ;;  %v501_v8 = vld [vmem:[%s2055_s11 + $0x30] sm:$0xff]  ;;  %v503_v10 = vld [vmem:[%s2055_s11 + $0x40] sm:$0xff]  ;;  %s2405_s10 = scalar_lea.vmem %s2712_s2, %s2049_s30  ;;  %s2425_s13 = scalar_lea.vmem %s2713_s3, %s2049_s30 }
  0x16   : > { %v504_v9 = vld [vmem:[%s2055_s11 + $0x48] sm:$0xff]  ;;  %v506_v11 = vld [vmem:[%s2055_s11 + $0x58] sm:$0xff]  ;;  %v505_v12 = vld [vmem:[%s2055_s11 + $0x50] sm:$0xff]  ;;  %s1906_s30 = sshll.u32 %s2820_s29, 2 }
  0x17   : > { %v508_v13 = vld [vmem:[%s2055_s11 + $0x68] sm:$0xff]  ;;  %v507_v14 = vld [vmem:[%s2055_s11 + $0x60] sm:$0xff]  ;;  %v510_v15 = vld [vmem:[%s2055_s11 + $0x78] sm:$0xff]  ;;  %s2467_s15 = scalar_lea.vmem %s2718_s8, %s1906_s30 }
  0x18   : > { %544 = vperm.xlu1 %1983, %v498_v3   ;;  %534 = vperm.xlu0 %1982, %v496_v4   ;;  %v509_v16 = vld [vmem:[%s2055_s11 + $0x70] sm:$0xff]  ;;  %v512_v17 = vld [vmem:[%s2055_s11 + $0x88] sm:$0xff]  ;;  %v511_v18 = vld [vmem:[%s2055_s11 + $0x80] sm:$0xff] }
  0x19   : > { %v514_v19 = vld [vmem:[%s2055_s11 + $0x98] sm:$0xff]  ;;  %v513_v20 = vld [vmem:[%s2055_s11 + $0x90] sm:$0xff]  ;;  %v516_v21 = vld [vmem:[%s2055_s11 + $0xa8] sm:$0xff] }
  0x1a   : > { %v515_v22 = vld [vmem:[%s2055_s11 + $0xa0] sm:$0xff]  ;;  %v518_v23 = vld [vmem:[%s2055_s11 + $0xb8] sm:$0xff]  ;;  %v517_v24 = vld [vmem:[%s2055_s11 + $0xb0] sm:$0xff] }
  0x1b   : > { %v520_v25 = vld [vmem:[%s2055_s11 + $0xc8] sm:$0xff]  ;;  %v519_v26 = vld [vmem:[%s2055_s11 + $0xc0] sm:$0xff]  ;;  %v522_v27 = vld [vmem:[%s2055_s11 + $0xd8] sm:$0xff] }
  0x1c   : > { %554 = vperm.xlu1 %1983, %v500_v5   ;;  %549 = vperm.xlu0 %1982, %v499_v6   ;;  %v521_v28 = vld [vmem:[%s2055_s11 + $0xd0] sm:$0xff]  ;;  %v524_v29 = vld [vmem:[%s2055_s11 + $0xe8] sm:$0xff]  ;;  %v523_v30 = vld [vmem:[%s2055_s11 + $0xe0] sm:$0xff] }
  0x1d   : > { %v526_v31 = vld [vmem:[%s2055_s11 + $0xf8] sm:$0xff]  ;;  %v525_v32 = vld [vmem:[%s2055_s11 + $0xf0] sm:$0xff]  ;;  %v752_v33 = vld [vmem:[%s2093_s14 + $0x8] sm:$0xff] }
  0x1e   : > { %v751_v34 = vld [vmem:[%s2093_s14] sm:$0xff]  ;;  %v754_v35 = vld [vmem:[%s2093_s14 + $0x18] sm:$0xff]  ;;  %v753_v36 = vld [vmem:[%s2093_s14 + $0x10] sm:$0xff] }
  0x1f   : > { %v756_v37 = vld [vmem:[%s2093_s14 + $0x28] sm:$0xff]  ;;  %v755_v38 = vld [vmem:[%s2093_s14 + $0x20] sm:$0xff]  ;;  %v758_v39 = vld [vmem:[%s2093_s14 + $0x38] sm:$0xff] }
  0x20   : > { %564 = vperm.xlu1 %1983, %v502_v7   ;;  %559 = vperm.xlu0 %1982, %v501_v8   ;;  %v757_v40 = vld [vmem:[%s2093_s14 + $0x30] sm:$0xff]  ;;  %v760_v41 = vld [vmem:[%s2093_s14 + $0x48] sm:$0xff]  ;;  %v759_v42 = vld [vmem:[%s2093_s14 + $0x40] sm:$0xff] }
  0x21   : > { %v762_v43 = vld [vmem:[%s2093_s14 + $0x58] sm:$0xff]  ;;  %v761_v44 = vld [vmem:[%s2093_s14 + $0x50] sm:$0xff]  ;;  %v764_v45 = vld [vmem:[%s2093_s14 + $0x68] sm:$0xff] }
  0x22   : > { %v763_v46 = vld [vmem:[%s2093_s14 + $0x60] sm:$0xff]  ;;  %v766_v47 = vld [vmem:[%s2093_s14 + $0x78] sm:$0xff]  ;;  %v765_v48 = vld [vmem:[%s2093_s14 + $0x70] sm:$0xff] }
  0x23   : > { %v768_v49 = vld [vmem:[%s2093_s14 + $0x88] sm:$0xff]  ;;  %v767_v50 = vld [vmem:[%s2093_s14 + $0x80] sm:$0xff]  ;;  %v770_v51 = vld [vmem:[%s2093_s14 + $0x98] sm:$0xff] }
  0x24   : > { %574 = vperm.xlu1 %1983, %v504_v9   ;;  %569 = vperm.xlu0 %1982, %v503_v10   ;;  %v769_v52 = vld [vmem:[%s2093_s14 + $0x90] sm:$0xff]  ;;  %v772_v53 = vld [vmem:[%s2093_s14 + $0xa8] sm:$0xff]  ;;  %v771_v54 = vld [vmem:[%s2093_s14 + $0xa0] sm:$0xff] }
  0x25   : > { %v774_v55 = vld [vmem:[%s2093_s14 + $0xb8] sm:$0xff]  ;;  %v773_v56 = vld [vmem:[%s2093_s14 + $0xb0] sm:$0xff]  ;;  %v776_v57 = vld [vmem:[%s2093_s14 + $0xc8] sm:$0xff] }
  0x26   : > { %v775_v58 = vld [vmem:[%s2093_s14 + $0xc0] sm:$0xff]  ;;  %v778_v59 = vld [vmem:[%s2093_s14 + $0xd8] sm:$0xff]  ;;  %v777_v60 = vld [vmem:[%s2093_s14 + $0xd0] sm:$0xff] }
  0x27   : > { %v780_v61 = vld [vmem:[%s2093_s14 + $0xe8] sm:$0xff]  ;;  %v779_v62 = vld [vmem:[%s2093_s14 + $0xe0] sm:$0xff]  ;;  %v782_v63 = vld [vmem:[%s2093_s14 + $0xf8] sm:$0xff] }
  0x28   : > { %584 = vperm.xlu1 %1983, %v506_v11   ;;  %579 = vperm.xlu0 %1982, %v505_v12   ;;  %v781_v0 = vld [vmem:[%s2093_s14 + $0xf0] sm:$0xff]  ;;  %v1040_v1 = vld [vmem:[%s2131_s17 + $0x8] sm:$0xff]  ;;  %v1039_v2 = vld [vmem:[%s2131_s17] sm:$0xff] }
  0x29   : > { %v1042_v5 = vld [vmem:[%s2131_s17 + $0x18] sm:$0xff]  ;;  %v1041_v6 = vld [vmem:[%s2131_s17 + $0x10] sm:$0xff]  ;;  %v1044_v9 = vld [vmem:[%s2131_s17 + $0x28] sm:$0xff] }
  0x2a   : > { %v1043_v10 = vld [vmem:[%s2131_s17 + $0x20] sm:$0xff] }
  0x2c   : > { %594 = vperm.xlu1 %1983, %v508_v13   ;;  %589 = vperm.xlu0 %1982, %v507_v14   ;;  %v1046_v13 = vld [vmem:[%s2131_s17 + $0x38] sm:$0xff]  ;;  %v1045_v14 = vld [vmem:[%s2131_s17 + $0x30] sm:$0xff] }
  0x30   : > { %604 = vperm.xlu1 %1983, %v510_v15   ;;  %599 = vperm.xlu0 %1982, %v509_v16  }
  0x34   : > { %614 = vperm.xlu1 %1983, %v512_v17   ;;  %609 = vperm.xlu0 %1982, %v511_v18   ;;  %v1048_v17 = vld [vmem:[%s2131_s17 + $0x48] sm:$0xff]  ;;  %v1047_v18 = vld [vmem:[%s2131_s17 + $0x40] sm:$0xff] }
  0x38   : > { %624 = vperm.xlu1 %1983, %v514_v19   ;;  %619 = vperm.xlu0 %1982, %v513_v20  }
  0x3c   : > { %634 = vperm.xlu1 %1983, %v516_v21   ;;  %629 = vperm.xlu0 %1982, %v515_v22   ;;  %v1050_v21 = vld [vmem:[%s2131_s17 + $0x58] sm:$0xff]  ;;  %v1049_v22 = vld [vmem:[%s2131_s17 + $0x50] sm:$0xff] }
  0x40   : > { %644 = vperm.xlu1 %1983, %v518_v23   ;;  %639 = vperm.xlu0 %1982, %v517_v24  }
  0x44   : > { %654 = vperm.xlu1 %1983, %v520_v25   ;;  %649 = vperm.xlu0 %1982, %v519_v26   ;;  %v1052_v25 = vld [vmem:[%s2131_s17 + $0x68] sm:$0xff]  ;;  %v1051_v26 = vld [vmem:[%s2131_s17 + $0x60] sm:$0xff] }
  0x48   : > { %664 = vperm.xlu1 %1983, %v522_v27   ;;  %659 = vperm.xlu0 %1982, %v521_v28  }
  0x4c   : > { %674 = vperm.xlu1 %1983, %v524_v29   ;;  %669 = vperm.xlu0 %1982, %v523_v30   ;;  %v1054_v29 = vld [vmem:[%s2131_s17 + $0x78] sm:$0xff]  ;;  %v1053_v30 = vld [vmem:[%s2131_s17 + $0x70] sm:$0xff] }
  0x50   : > { %684 = vperm.xlu1 %1983, %v526_v31   ;;  %679 = vperm.xlu0 %1982, %v525_v32  }
  0x54   : > { %790 = vperm.xlu1 %1983, %v752_v33   ;;  %785 = vperm.xlu0 %1982, %v751_v34   ;;  %v1056_v33 = vld [vmem:[%s2131_s17 + $0x88] sm:$0xff]  ;;  %v1055_v34 = vld [vmem:[%s2131_s17 + $0x80] sm:$0xff] }
  0x58   : > { %800 = vperm.xlu1 %1983, %v754_v35   ;;  %795 = vperm.xlu0 %1982, %v753_v36  }
  0x5c   : > { %810 = vperm.xlu1 %1983, %v756_v37   ;;  %805 = vperm.xlu0 %1982, %v755_v38   ;;  %v1058_v37 = vld [vmem:[%s2131_s17 + $0x98] sm:$0xff]  ;;  %v1057_v38 = vld [vmem:[%s2131_s17 + $0x90] sm:$0xff] }
  0x60   : > { %820 = vperm.xlu1 %1983, %v758_v39   ;;  %815 = vperm.xlu0 %1982, %v757_v40  }
  0x64   : > { %830 = vperm.xlu1 %1983, %v760_v41   ;;  %825 = vperm.xlu0 %1982, %v759_v42   ;;  %v1060_v41 = vld [vmem:[%s2131_s17 + $0xa8] sm:$0xff]  ;;  %v1059_v42 = vld [vmem:[%s2131_s17 + $0xa0] sm:$0xff] }
  0x68   : > { %840 = vperm.xlu1 %1983, %v762_v43   ;;  %835 = vperm.xlu0 %1982, %v761_v44  }
  0x6c   : > { %850 = vperm.xlu1 %1983, %v764_v45   ;;  %845 = vperm.xlu0 %1982, %v763_v46   ;;  %v1062_v45 = vld [vmem:[%s2131_s17 + $0xb8] sm:$0xff]  ;;  %v1061_v46 = vld [vmem:[%s2131_s17 + $0xb0] sm:$0xff] }
  0x70   : > { %860 = vperm.xlu1 %1983, %v766_v47   ;;  %855 = vperm.xlu0 %1982, %v765_v48  }
  0x74   : > { %870 = vperm.xlu1 %1983, %v768_v49   ;;  %865 = vperm.xlu0 %1982, %v767_v50   ;;  %v1064_v49 = vld [vmem:[%s2131_s17 + $0xc8] sm:$0xff]  ;;  %v1063_v50 = vld [vmem:[%s2131_s17 + $0xc0] sm:$0xff] }
  0x78   : > { %880 = vperm.xlu1 %1983, %v770_v51   ;;  %875 = vperm.xlu0 %1982, %v769_v52  }
  0x7c   : > { %890 = vperm.xlu1 %1983, %v772_v53   ;;  %885 = vperm.xlu0 %1982, %v771_v54   ;;  %v1066_v53 = vld [vmem:[%s2131_s17 + $0xd8] sm:$0xff]  ;;  %v1065_v54 = vld [vmem:[%s2131_s17 + $0xd0] sm:$0xff] }
  0x80   : > { %900 = vperm.xlu1 %1983, %v774_v55   ;;  %895 = vperm.xlu0 %1982, %v773_v56  }
  0x84   : > { %910 = vperm.xlu1 %1983, %v776_v57   ;;  %905 = vperm.xlu0 %1982, %v775_v58   ;;  %v1068_v57 = vld [vmem:[%s2131_s17 + $0xe8] sm:$0xff]  ;;  %v1067_v58 = vld [vmem:[%s2131_s17 + $0xe0] sm:$0xff] }
  0x88   : > { %920 = vperm.xlu1 %1983, %v778_v59   ;;  %915 = vperm.xlu0 %1982, %v777_v60  }
  0x8c   : > { %930 = vperm.xlu1 %1983, %v780_v61   ;;  %925 = vperm.xlu0 %1982, %v779_v62   ;;  %v1070_v61 = vld [vmem:[%s2131_s17 + $0xf8] sm:$0xff]  ;;  %v1069_v62 = vld [vmem:[%s2131_s17 + $0xf0] sm:$0xff] }
  0x90   : > { %940 = vperm.xlu1 %1983, %v782_v63   ;;  %935 = vperm.xlu0 %1982, %v781_v0  }
  0x93   : > { %v2135_v3 = vpop.permute.xlu1 %539  ;;  %v2137_v4 = vpop.permute.xlu0 %529 }
  0x94   : > { %1078 = vperm.xlu1 %1983, %v1040_v1   ;;  %1073 = vperm.xlu0 %1982, %v1039_v2   ;;  %v1328_v1 = vld [vmem:[%s2229_s20 + $0x8] sm:$0xff]  ;;  %v1327_v2 = vld [vmem:[%s2229_s20] sm:$0xff] }
  0x97   : > { %v2141_v7 = vpop.permute.xlu1 %544  ;;  %v2143_v8 = vpop.permute.xlu0 %534 }
  0x98   : > { %1088 = vperm.xlu1 %1983, %v1042_v5   ;;  %1083 = vperm.xlu0 %1982, %v1041_v6  }
  0x9b   : > { %v2147_v11 = vpop.permute.xlu1 %554  ;;  %v2149_v12 = vpop.permute.xlu0 %549 }
  0x9c   : > { %1098 = vperm.xlu1 %1983, %v1044_v9   ;;  %1093 = vperm.xlu0 %1982, %v1043_v10   ;;  %v1330_v9 = vld [vmem:[%s2229_s20 + $0x18] sm:$0xff]  ;;  %v1329_v10 = vld [vmem:[%s2229_s20 + $0x10] sm:$0xff] }
  0x9f   : > { %v2153_v15 = vpop.permute.xlu1 %564  ;;  %v2155_v16 = vpop.permute.xlu0 %559 }
  0xa0   : > { %1108 = vperm.xlu1 %1983, %v1046_v13   ;;  %1103 = vperm.xlu0 %1982, %v1045_v14  }
  0xa3   : > { %v2159_v19 = vpop.permute.xlu1 %574  ;;  %v2161_v20 = vpop.permute.xlu0 %569 }
  0xa4   : > { %1118 = vperm.xlu1 %1983, %v1048_v17   ;;  %1113 = vperm.xlu0 %1982, %v1047_v18   ;;  %v1332_v17 = vld [vmem:[%s2229_s20 + $0x28] sm:$0xff]  ;;  %v1331_v18 = vld [vmem:[%s2229_s20 + $0x20] sm:$0xff] }
  0xa7   : > { %v2165_v23 = vpop.permute.xlu1 %584  ;;  %v2167_v24 = vpop.permute.xlu0 %579 }
  0xa8   : > { %1128 = vperm.xlu1 %1983, %v1050_v21   ;;  %1123 = vperm.xlu0 %1982, %v1049_v22  }
  0xab   : > { %v2171_v27 = vpop.permute.xlu1 %594  ;;  %v2173_v28 = vpop.permute.xlu0 %589 }
  0xac   : > { %1138 = vperm.xlu1 %1983, %v1052_v25   ;;  %1133 = vperm.xlu0 %1982, %v1051_v26   ;;  %v1334_v25 = vld [vmem:[%s2229_s20 + $0x38] sm:$0xff]  ;;  %v1333_v26 = vld [vmem:[%s2229_s20 + $0x30] sm:$0xff] }
  0xaf   : > { %v2177_v31 = vpop.permute.xlu1 %604  ;;  %v2179_v32 = vpop.permute.xlu0 %599 }
  0xb0   : > { %2719 = vst [vmem:[#allocation2_spill] sm:$0xff] %v2177_v31  ;;  %2720 = vst [vmem:[#allocation3_spill] sm:$0xff] %v2179_v32  ;;  %1148 = vperm.xlu1 %1983, %v1054_v29   ;;  %1143 = vperm.xlu0 %1982, %v1053_v30   ;;  %v1296_v31 = vld [vmem:[%s2425_s13 + $0x8] sm:$0xff] }
  0xb3   : > { %v2183_v35 = vpop.permute.xlu1 %614  ;;  %v2185_v36 = vpop.permute.xlu0 %609 }
  0xb4   : > { %2721 = vst [vmem:[#allocation4_spill] sm:$0xff] %v2183_v35  ;;  %2722 = vst [vmem:[#allocation5_spill] sm:$0xff] %v2185_v36  ;;  %1158 = vperm.xlu1 %1983, %v1056_v33   ;;  %1153 = vperm.xlu0 %1982, %v1055_v34   ;;  %v1336_v33 = vld [vmem:[%s2229_s20 + $0x48] sm:$0xff]  ;;  %v1335_v34 = vld [vmem:[%s2229_s20 + $0x40] sm:$0xff] }
  0xb7   : > { %v2189_v39 = vpop.permute.xlu1 %624  ;;  %v2191_v40 = vpop.permute.xlu0 %619 }
  0xb8   : > { %2723 = vst [vmem:[#allocation6_spill] sm:$0xff] %v2189_v39  ;;  %2724 = vst [vmem:[#allocation7_spill] sm:$0xff] %v2191_v40  ;;  %1168 = vperm.xlu1 %1983, %v1058_v37   ;;  %1163 = vperm.xlu0 %1982, %v1057_v38  }
  0xbb   : > { %v2195_v43 = vpop.permute.xlu1 %634  ;;  %v2197_v44 = vpop.permute.xlu0 %629 }
  0xbc   : > { %2725 = vst [vmem:[#allocation8_spill] sm:$0xff] %v2195_v43  ;;  %2726 = vst [vmem:[#allocation9_spill] sm:$0xff] %v2197_v44  ;;  %1178 = vperm.xlu1 %1983, %v1060_v41   ;;  %1173 = vperm.xlu0 %1982, %v1059_v42   ;;  %v1338_v41 = vld [vmem:[%s2229_s20 + $0x58] sm:$0xff]  ;;  %v1337_v42 = vld [vmem:[%s2229_s20 + $0x50] sm:$0xff] }
  0xbf   : > { %v2201_v47 = vpop.permute.xlu1 %644  ;;  %v2203_v48 = vpop.permute.xlu0 %639 }
  0xc0   : > { %2727 = vst [vmem:[#allocation10_spill] sm:$0xff] %v2201_v47  ;;  %2728 = vst [vmem:[#allocation11_spill] sm:$0xff] %v2203_v48  ;;  %1188 = vperm.xlu1 %1983, %v1062_v45   ;;  %1183 = vperm.xlu0 %1982, %v1061_v46  }
  0xc3   : > { %v2207_v51 = vpop.permute.xlu1 %654  ;;  %v2209_v52 = vpop.permute.xlu0 %649 }
  0xc4   : > { %2729 = vst [vmem:[#allocation12_spill] sm:$0xff] %v2207_v51  ;;  %2730 = vst [vmem:[#allocation13_spill] sm:$0xff] %v2209_v52  ;;  %1198 = vperm.xlu1 %1983, %v1064_v49   ;;  %1193 = vperm.xlu0 %1982, %v1063_v50   ;;  %v1340_v49 = vld [vmem:[%s2229_s20 + $0x68] sm:$0xff]  ;;  %v1339_v50 = vld [vmem:[%s2229_s20 + $0x60] sm:$0xff] }
  0xc7   : > { %v2213_v55 = vpop.permute.xlu1 %664  ;;  %v2215_v56 = vpop.permute.xlu0 %659 }
  0xc8   : > { %2731 = vst [vmem:[#allocation14_spill] sm:$0xff] %v2213_v55  ;;  %2732 = vst [vmem:[#allocation15_spill] sm:$0xff] %v2215_v56  ;;  %1208 = vperm.xlu1 %1983, %v1066_v53   ;;  %1203 = vperm.xlu0 %1982, %v1065_v54   ;;  %v750_v56 = vld [vmem:[%s2331_s26 + $0xf8] sm:$0xff]  ;;  %v749_v55 = vld [vmem:[%s2331_s26 + $0xf0] sm:$0xff] }
  0xcb   : > { %v2219_v59 = vpop.permute.xlu1 %674  ;;  %v2221_v60 = vpop.permute.xlu0 %669 }
  0xcc   : > { %2733 = vst [vmem:[#allocation16_spill] sm:$0xff] %v2219_v59  ;;  %2734 = vst [vmem:[#allocation17_spill] sm:$0xff] %v2221_v60  ;;  %1218 = vperm.xlu1 %1983, %v1068_v57   ;;  %1213 = vperm.xlu0 %1982, %v1067_v58   ;;  %v1342_v57 = vld [vmem:[%s2229_s20 + $0x78] sm:$0xff]  ;;  %v1341_v58 = vld [vmem:[%s2229_s20 + $0x70] sm:$0xff] }
  0xcf   : > { %v2231_v63 = vpop.permute.xlu1 %684  ;;  %v2233_v0 = vpop.permute.xlu0 %679 }
  0xd0   : > { %1228 = vperm.xlu1 %1983, %v1070_v61   ;;  %1223 = vperm.xlu0 %1982, %v1069_v62  }
  0xd3   : > { %v2237_v5 = vpop.permute.xlu1 %790  ;;  %v2239_v6 = vpop.permute.xlu0 %785 }
  0xd4   : > { %1366 = vperm.xlu1 %1983, %v1328_v1   ;;  %1361 = vperm.xlu0 %1982, %v1327_v2   ;;  %v1344_v1 = vld [vmem:[%s2229_s20 + $0x88] sm:$0xff]  ;;  %v1343_v2 = vld [vmem:[%s2229_s20 + $0x80] sm:$0xff] }
  0xd7   : > { %v2243_v13 = vpop.permute.xlu1 %800  ;;  %v2245_v14 = vpop.permute.xlu0 %795 }
  0xd8   : > { %1376 = vperm.xlu1 %1983, %v1330_v9   ;;  %1371 = vperm.xlu0 %1982, %v1329_v10  }
  0xdb   : > { %v2249_v21 = vpop.permute.xlu1 %810  ;;  %v2251_v22 = vpop.permute.xlu0 %805 }
  0xdc   : > { %1386 = vperm.xlu1 %1983, %v1332_v17   ;;  %1381 = vperm.xlu0 %1982, %v1331_v18   ;;  %v1346_v17 = vld [vmem:[%s2229_s20 + $0x98] sm:$0xff]  ;;  %v1345_v18 = vld [vmem:[%s2229_s20 + $0x90] sm:$0xff] }
  0xdf   : > { %v2255_v29 = vpop.permute.xlu1 %820  ;;  %v2257_v30 = vpop.permute.xlu0 %815 }
  0xe0   : > { %1396 = vperm.xlu1 %1983, %v1334_v25   ;;  %1391 = vperm.xlu0 %1982, %v1333_v26  }
  0xe3   : > { %v2261_v37 = vpop.permute.xlu1 %830  ;;  %v2263_v38 = vpop.permute.xlu0 %825 }
  0xe4   : > { %1406 = vperm.xlu1 %1983, %v1336_v33   ;;  %1401 = vperm.xlu0 %1982, %v1335_v34   ;;  %v1348_v33 = vld [vmem:[%s2229_s20 + $0xa8] sm:$0xff]  ;;  %v1347_v34 = vld [vmem:[%s2229_s20 + $0xa0] sm:$0xff] }
  0xe7   : > { %v2267_v45 = vpop.permute.xlu1 %840  ;;  %v2269_v46 = vpop.permute.xlu0 %835 }
  0xe8   : > { %1416 = vperm.xlu1 %1983, %v1338_v41   ;;  %1411 = vperm.xlu0 %1982, %v1337_v42  }
  0xeb   : > { %v2273_v53 = vpop.permute.xlu1 %850  ;;  %v2275_v54 = vpop.permute.xlu0 %845 }
  0xec   : > { %1426 = vperm.xlu1 %1983, %v1340_v49   ;;  %1421 = vperm.xlu0 %1982, %v1339_v50   ;;  %v1350_v49 = vld [vmem:[%s2229_s20 + $0xb8] sm:$0xff]  ;;  %v1349_v50 = vld [vmem:[%s2229_s20 + $0xb0] sm:$0xff] }
  0xef   : > { %v2279_v61 = vpop.permute.xlu1 %860  ;;  %v2281_v62 = vpop.permute.xlu0 %855 }
  0xf0   : > { %1436 = vperm.xlu1 %1983, %v1342_v57   ;;  %1431 = vperm.xlu0 %1982, %v1341_v58  }
  0xf3   : > { %v2285_v9 = vpop.permute.xlu1 %870  ;;  %v2287_v10 = vpop.permute.xlu0 %865 }
  0xf4   : > { %2735 = vst [vmem:[#allocation18_spill] sm:$0xff] %v2285_v9  ;;  %2736 = vst [vmem:[#allocation19_spill] sm:$0xff] %v2287_v10  ;;  %1446 = vperm.xlu1 %1983, %v1344_v1   ;;  %1441 = vperm.xlu0 %1982, %v1343_v2   ;;  %v1352_v1 = vld [vmem:[%s2229_s20 + $0xc8] sm:$0xff]  ;;  %v1351_v2 = vld [vmem:[%s2229_s20 + $0xc0] sm:$0xff] }
  0xf5   : > { %v1010_v9 = vld [vmem:[%s2405_s10 + $0x18] sm:$0xff] }
  0xf7   : > { %v2291_v25 = vpop.permute.xlu1 %880  ;;  %v2293_v26 = vpop.permute.xlu0 %875 }
  0xf8   : > { %2737 = vst [vmem:[#allocation20_spill] sm:$0xff] %v2291_v25  ;;  %2738 = vst [vmem:[#allocation21_spill] sm:$0xff] %v2293_v26  ;;  %1456 = vperm.xlu1 %1983, %v1346_v17   ;;  %1451 = vperm.xlu0 %1982, %v1345_v18  }
  0xfb   : > { %v2297_v41 = vpop.permute.xlu1 %890  ;;  %v2299_v42 = vpop.permute.xlu0 %885 }
  0xfc   : > { %2739 = vst [vmem:[#allocation22_spill] sm:$0xff] %v2297_v41  ;;  %2740 = vst [vmem:[#allocation23_spill] sm:$0xff] %v2299_v42  ;;  %1466 = vperm.xlu1 %1983, %v1348_v33   ;;  %1461 = vperm.xlu0 %1982, %v1347_v34   ;;  %v1354_v33 = vld [vmem:[%s2229_s20 + $0xd8] sm:$0xff]  ;;  %v1353_v34 = vld [vmem:[%s2229_s20 + $0xd0] sm:$0xff] }
  0xff   : > { %v2303_v57 = vpop.permute.xlu1 %900  ;;  %v2305_v58 = vpop.permute.xlu0 %895 }
 0x100   : > { %2741 = vst [vmem:[#allocation24_spill] sm:$0xff] %v2303_v57  ;;  %2742 = vst [vmem:[#allocation25_spill] sm:$0xff] %v2305_v58  ;;  %1476 = vperm.xlu1 %1983, %v1350_v49   ;;  %1471 = vperm.xlu0 %1982, %v1349_v50   ;;  %v1356_v49 = vld [vmem:[%s2229_s20 + $0xe8] sm:$0xff]  ;;  %v1355_v50 = vld [vmem:[%s2229_s20 + $0xe0] sm:$0xff] }
 0x103   : > { %v2309_v17 = vpop.permute.xlu1 %910  ;;  %v2311_v18 = vpop.permute.xlu0 %905 }
 0x104   : > { %2743 = vst [vmem:[#allocation26_spill] sm:$0xff] %v2309_v17  ;;  %2744 = vst [vmem:[#allocation27_spill] sm:$0xff] %v2311_v18  ;;  %1486 = vperm.xlu1 %1983, %v1352_v1   ;;  %1481 = vperm.xlu0 %1982, %v1351_v2  }
 0x107   : > { %v2315_v60 = vpop.permute.xlu1 %920  ;;  %v2317_v59 = vpop.permute.xlu0 %915 }
 0x108   : > { %2745 = vst [vmem:[#allocation28_spill] sm:$0xff] %v2315_v60  ;;  %2746 = vst [vmem:[#allocation29_spill] sm:$0xff] %v2317_v59  ;;  %1496 = vperm.xlu1 %1983, %v1354_v33   ;;  %1491 = vperm.xlu0 %1982, %v1353_v34   ;;  %v494_v33 = vld [vmem:[%s2325_s23 + $0xf8] sm:$0xff]  ;;  %v493_v34 = vld [vmem:[%s2325_s23 + $0xf0] sm:$0xff] }
 0x109   : > { %v1358_v59 = vld [vmem:[%s2229_s20 + $0xf8] sm:$0xff]  ;;  %v1357_v60 = vld [vmem:[%s2229_s20 + $0xf0] sm:$0xff]  ;;  %v718_v52 = vmul.f32 %v2231_v63, %v494_v33  ;;  %v717_v17 = vmul.f32 %v2233_v0, %v493_v34 }
 0x10b   : > { %v2333_v1 = vpop.permute.xlu1 %930  ;;  %v2335_v2 = vpop.permute.xlu0 %925 }
 0x10c   : > { %2747 = vst [vmem:[#allocation30_spill] sm:$0xff] %v2333_v1  ;;  %2748 = vst [vmem:[#allocation31_spill] sm:$0xff] %v2335_v2  ;;  %1506 = vperm.xlu1 %1983, %v1356_v49   ;;  %1501 = vperm.xlu0 %1982, %v1355_v50  }
 0x10f   : > { %v941_v51 = vpop.permute.xlu1 %940  ;;  %v936_v18 = vpop.permute.xlu0 %935 }
 0x110   : > { %v974_v48 = vmul.f32 %v941_v51, %v750_v56  ;;  %v973_v47 = vmul.f32 %v936_v18, %v749_v55  ;;  %1516 = vperm.xlu1 %1983, %v1358_v59   ;;  %1511 = vperm.xlu0 %1982, %v1357_v60  }
 0x112   : > { %v2345_v1 = vadd.f32 %v974_v48, %v718_v52  ;;  %v2347_v2 = vadd.f32 %v973_v47, %v717_v17 }
 0x113   : > { %v1079_v49 = vpop.permute.xlu1 %1078  ;;  %v1074_v50 = vpop.permute.xlu0 %1073 }
 0x114   : > { %2749 = vst [vmem:[#allocation32_spill] sm:$0xff] %v2345_v1  ;;  %2750 = vst [vmem:[#allocation33_spill] sm:$0xff] %v2347_v2 }
 0x117   : > { %v2349_v58 = vpop.permute.xlu1 %1088  ;;  %v2351_v57 = vpop.permute.xlu0 %1083 }
 0x11b   : > { %v2353_v44 = vpop.permute.xlu1 %1098  ;;  %v2355_v63 = vpop.permute.xlu0 %1093 }
 0x11f   : > { %v2357_v33 = vpop.permute.xlu1 %1108  ;;  %v2359_v51 = vpop.permute.xlu0 %1103 }
 0x123   : > { %v2361_v55 = vpop.permute.xlu1 %1118  ;;  %v2363_v48 = vpop.permute.xlu0 %1113 }
 0x127   : > { %v2365_v47 = vpop.permute.xlu1 %1128  ;;  %v2367_v52 = vpop.permute.xlu0 %1123 }
 0x12b   : > { %v2369_v56 = vpop.permute.xlu1 %1138  ;;  %v2371_v59 = vpop.permute.xlu0 %1133 }
 0x12f   : > { %v2373_v60 = vpop.permute.xlu1 %1148  ;;  %v2375_v0 = vpop.permute.xlu0 %1143 }
 0x130   : > { %2751 = vst [vmem:[#allocation34_spill] sm:$0xff] %v2373_v60  ;;  %2752 = vst [vmem:[#allocation35_spill] sm:$0xff] %v2375_v0  ;;  %v1009_v0 = vld [vmem:[%s2405_s10 + $0x10] sm:$0xff] }
 0x133   : > { %v2377_v17 = vpop.permute.xlu1 %1158  ;;  %v2379_v18 = vpop.permute.xlu0 %1153 }
 0x134   : > { %2753 = vst [vmem:[#allocation36_spill] sm:$0xff] %v2377_v17  ;;  %2754 = vst [vmem:[#allocation37_spill] sm:$0xff] %v2379_v18  ;;  %v722_v18 = vld [vmem:[%s2331_s26 + $0x18] sm:$0xff]  ;;  %v721_v17 = vld [vmem:[%s2331_s26 + $0x10] sm:$0xff] }
 0x135   : > { %v946_v60 = vmul.f32 %v2243_v13, %v722_v18  ;;  %v945_v32 = vmul.f32 %v2245_v14, %v721_v17  ;;  %v1234_v13 = vmul.f32 %v2349_v58, %v1010_v9  ;;  %v1233_v14 = vmul.f32 %v2351_v57, %v1009_v0  ;;  %v1298_v57 = vld [vmem:[%s2425_s13 + $0x18] sm:$0xff]  ;;  %v1297_v0 = vld [vmem:[%s2425_s13 + $0x10] sm:$0xff] }
 0x137   : > { %v2381_v34 = vpop.permute.xlu1 %1168  ;;  %v2383_v2 = vpop.permute.xlu0 %1163 }
 0x138   : > { %2755 = vst [vmem:[#allocation38_spill] sm:$0xff] %v2381_v34  ;;  %2756 = vst [vmem:[#allocation39_spill] sm:$0xff] %v2383_v2 }
 0x13b   : > { %v2385_v1 = vpop.permute.xlu1 %1178  ;;  %v2387_v43 = vpop.permute.xlu0 %1173 }
 0x13c   : > { %2757 = vst [vmem:[#allocation40_spill] sm:$0xff] %v2385_v1  ;;  %2758 = vst [vmem:[#allocation41_spill] sm:$0xff] %v2387_v43  ;;  %v1008_v1 = vld [vmem:[%s2405_s10 + $0x8] sm:$0xff] }
 0x13f   : > { %v2389_v42 = vpop.permute.xlu1 %1188  ;;  %v2391_v41 = vpop.permute.xlu0 %1183 }
 0x140   : > { %2759 = vst [vmem:[#allocation42_spill] sm:$0xff] %v2389_v42  ;;  %2760 = vst [vmem:[#allocation43_spill] sm:$0xff] %v2391_v41  ;;  %v720_v41 = vld [vmem:[%s2331_s26 + $0x8] sm:$0xff]  ;;  %v719_v42 = vld [vmem:[%s2331_s26] sm:$0xff] }
 0x141   : > { %v944_v2 = vmul.f32 %v2237_v5, %v720_v41  ;;  %v943_v25 = vmul.f32 %v2239_v6, %v719_v42  ;;  %v468_v41 = vld [vmem:[%s2325_s23 + $0x28] sm:$0xff]  ;;  %v1232_v42 = vmul.f32 %v1079_v49, %v1008_v1 }
 0x142   : > { %v692_v49 = vmul.f32 %v2147_v11, %v468_v41 }
 0x143   : > { %v2393_v40 = vpop.permute.xlu1 %1198  ;;  %v2395_v39 = vpop.permute.xlu0 %1193 }
 0x144   : > { %2761 = vst [vmem:[#allocation44_spill] sm:$0xff] %v2393_v40  ;;  %2762 = vst [vmem:[#allocation45_spill] sm:$0xff] %v2395_v39  ;;  %v463_v39 = vld [vmem:[%s2325_s23] sm:$0xff] }
 0x145   : > { %v687_v5 = vmul.f32 %v2137_v4, %v463_v39 }
 0x147   : > { %v2397_v26 = vpop.permute.xlu1 %1208  ;;  %v2399_v34 = vpop.permute.xlu0 %1203  ;;  %v975_v39 = vadd.f32 %v943_v25, %v687_v5  ;;  %v1012_v25 = vld [vmem:[%s2405_s10 + $0x28] sm:$0xff] }
 0x148   : > { %2763 = vst [vmem:[#allocation46_spill] sm:$0xff] %v2397_v26  ;;  %2764 = vst [vmem:[#allocation47_spill] sm:$0xff] %v2399_v34  ;;  %v464_v26 = vld [vmem:[%s2325_s23 + $0x8] sm:$0xff]  ;;  %v1007_v34 = vld [vmem:[%s2405_s10] sm:$0xff] }
 0x149   : > { %v688_v6 = vmul.f32 %v2143_v8, %v464_v26  ;;  %v1231_v10 = vmul.f32 %v1074_v50, %v1007_v34  ;;  %v724_v8 = vld [vmem:[%s2331_s26 + $0x28] sm:$0xff]  ;;  %v723_v26 = vld [vmem:[%s2331_s26 + $0x20] sm:$0xff] }
 0x14a   : > { %v467_v50 = vld [vmem:[%s2325_s23 + $0x20] sm:$0xff]  ;;  %v948_v9 = vmul.f32 %v2249_v21, %v724_v8  ;;  %v947_v58 = vmul.f32 %v2251_v22, %v723_v26  ;;  %v1014_v22 = vld [vmem:[%s2405_s10 + $0x38] sm:$0xff] }
 0x14b   : > { %v2409_v40 = vpop.permute.xlu1 %1218  ;;  %v2411_v43 = vpop.permute.xlu0 %1213  ;;  %v976_v4 = vadd.f32 %v944_v2, %v688_v6  ;;  %v1011_v2 = vld [vmem:[%s2405_s10 + $0x20] sm:$0xff]  ;;  %v691_v5 = vmul.f32 %v2149_v12, %v467_v50  ;;  %v725_v6 = vld [vmem:[%s2331_s26 + $0x30] sm:$0xff] }
 0x14c   : > { %2765 = vst [vmem:[#allocation48_spill] sm:$0xff] %v2409_v40  ;;  %2766 = vst [vmem:[#allocation49_spill] sm:$0xff] %v2411_v43  ;;  %v465_v43 = vld [vmem:[%s2325_s23 + $0x10] sm:$0xff]  ;;  %v466_v40 = vld [vmem:[%s2325_s23 + $0x18] sm:$0xff] }
 0x14d   : > { %v690_v1 = vmul.f32 %v2141_v7, %v466_v40  ;;  %v979_v50 = vadd.f32 %v947_v58, %v691_v5  ;;  %v1016_v58 = vld [vmem:[%s2405_s10 + $0x48] sm:$0xff] }
 0x14f   : > { %v2429_v36 = vpop.permute.xlu1 %1228  ;;  %v2431_v35 = vpop.permute.xlu0 %1223  ;;  %v978_v40 = vadd.f32 %v946_v60, %v690_v1 }
 0x150   : > { %2767 = vst [vmem:[#allocation50_spill] sm:$0xff] %v2429_v36  ;;  %2768 = vst [vmem:[#allocation51_spill] sm:$0xff] %v2431_v35  ;;  %v1295_v36 = vld [vmem:[%s2425_s13] sm:$0xff]  ;;  %v689_v35 = vmul.f32 %v2135_v3, %v465_v43  ;;  %v1264_v3 = vadd.f32 %v1232_v42, %v976_v4  ;;  %v1263_v43 = vadd.f32 %v1231_v10, %v975_v39  ;;  %v726_v10 = vld [vmem:[%s2331_s26 + $0x38] sm:$0xff] }
 0x151   : > { %v470_v4 = vld [vmem:[%s2325_s23 + $0x38] sm:$0xff]  ;;  %v1013_v39 = vld [vmem:[%s2405_s10 + $0x30] sm:$0xff] }
 0x152   : > { %v977_v34 = vadd.f32 %v945_v32, %v689_v35  ;;  %v1236_v32 = vmul.f32 %v2353_v44, %v1012_v25  ;;  %v1235_v35 = vmul.f32 %v2355_v63, %v1011_v2  ;;  %v980_v63 = vadd.f32 %v948_v9, %v692_v49  ;;  %v728_v25 = vld [vmem:[%s2331_s26 + $0x48] sm:$0xff]  ;;  %v727_v2 = vld [vmem:[%s2331_s26 + $0x40] sm:$0xff] }
 0x153   : > { %v1367_v17 = vpop.permute.xlu1 %1366  ;;  %v1362_v18 = vpop.permute.xlu0 %1361 }
 0x154   : > { %v1520_v7 = vmul.f32 %v1367_v17, %v1296_v31  ;;  %v1519_v11 = vmul.f32 %v1362_v18, %v1295_v36  ;;  %v469_v31 = vld [vmem:[%s2325_s23 + $0x30] sm:$0xff]  ;;  %v1266_v36 = vadd.f32 %v1234_v13, %v978_v40  ;;  %v1265_v60 = vadd.f32 %v1233_v14, %v977_v34  ;;  %v1300_v17 = vld [vmem:[%s2425_s13 + $0x28] sm:$0xff]  ;;  %v1299_v18 = vld [vmem:[%s2425_s13 + $0x20] sm:$0xff] }
 0x155   : > { %v950_v13 = vmul.f32 %v2255_v29, %v726_v10  ;;  %v949_v14 = vmul.f32 %v2257_v30, %v725_v6  ;;  %v471_v29 = vld [vmem:[%s2325_s23 + $0x40] sm:$0xff]  ;;  %v1268_v40 = vadd.f32 %v1236_v32, %v980_v63  ;;  %v1267_v30 = vadd.f32 %v1235_v35, %v979_v50  ;;  %v730_v32 = vld [vmem:[%s2331_s26 + $0x58] sm:$0xff]  ;;  %v729_v35 = vld [vmem:[%s2331_s26 + $0x50] sm:$0xff] }
 0x156   : > { %v1552_v41 = vadd.f32 %v1520_v7, %v1264_v3  ;;  %v1551_v42 = vadd.f32 %v1519_v11, %v1263_v43  ;;  %v694_v3 = vmul.f32 %v2153_v15, %v470_v4  ;;  %v693_v43 = vmul.f32 %v2155_v16, %v469_v31  ;;  %v472_v11 = vld [vmem:[%s2325_s23 + $0x48] sm:$0xff]  ;;  %v1302_v4 = vld [vmem:[%s2425_s13 + $0x38] sm:$0xff]  ;;  %v1301_v31 = vld [vmem:[%s2425_s13 + $0x30] sm:$0xff] }
 0x157   : > { %v1377_v12 = vpop.permute.xlu1 %1376  ;;  %v1372_v21 = vpop.permute.xlu0 %1371  ;;  %v1238_v15 = vmul.f32 %v2357_v33, %v1014_v22  ;;  %v1237_v34 = vmul.f32 %v2359_v51, %v1013_v39  ;;  %v952_v33 = vmul.f32 %v2261_v37, %v728_v25  ;;  %v951_v51 = vmul.f32 %v2263_v38, %v727_v2  ;;  %v474_v22 = vld [vmem:[%s2325_s23 + $0x58] sm:$0xff]  ;;  %v473_v37 = vld [vmem:[%s2325_s23 + $0x50] sm:$0xff] }
 0x158   : > { %v1942_v8 = vpack.c.bf16 %v1552_v41, %v1552_v41  ;;  %v1941_v26 = vpack.c.bf16 %v1551_v42, %v1551_v42  ;;  %v1522_v1 = vmul.f32 %v1377_v12, %v1298_v57  ;;  %v1521_v44 = vmul.f32 %v1372_v21, %v1297_v0  ;;  %v1015_v57 = vld [vmem:[%s2405_s10 + $0x40] sm:$0xff] }
 0x159   : > { %v982_v41 = vadd.f32 %v950_v13, %v694_v3  ;;  %v981_v42 = vadd.f32 %v949_v14, %v693_v43  ;;  %v1304_v3 = vld [vmem:[%s2425_s13 + $0x48] sm:$0xff]  ;;  %v1303_v43 = vld [vmem:[%s2425_s13 + $0x40] sm:$0xff]  ;;  %v698_v25 = vmul.f32 %v2165_v23, %v474_v22  ;;  %v697_v2 = vmul.f32 %v2167_v24, %v473_v37  ;;  %v1022_v22 = vld [vmem:[%s2405_s10 + $0x78] sm:$0xff] }
 0x15a   : > { %1713 = vst.msk [vmem:[%s2467_s15 + $0x4] sm:$0xf] %vm1711_vm0, %v1942_v8  ;;  %1712 = vst.msk [vmem:[%s2467_s15] sm:$0xf] %vm1711_vm0, %v1941_v26  ;;  %v1554_v49 = vadd.f32 %v1522_v1, %v1266_v36  ;;  %v1553_v7 = vadd.f32 %v1521_v44, %v1265_v60  ;;  %v696_v36 = vmul.f32 %v2159_v19, %v472_v11  ;;  %v1018_v1 = vld [vmem:[%s2405_s10 + $0x58] sm:$0xff]  ;;  %v1017_v44 = vld [vmem:[%s2405_s10 + $0x50] sm:$0xff] }
 0x15b   : > { %v1387_v16 = vpop.permute.xlu1 %1386  ;;  %v1382_v9 = vpop.permute.xlu0 %1381  ;;  %v695_v60 = vmul.f32 %v2161_v20, %v471_v29  ;;  %v1270_v39 = vadd.f32 %v1238_v15, %v982_v41  ;;  %v1269_v38 = vadd.f32 %v1237_v34, %v981_v42  ;;  %v1240_v19 = vmul.f32 %v2361_v55, %v1016_v58  ;;  %v1306_v41 = vld [vmem:[%s2425_s13 + $0x58] sm:$0xff]  ;;  %v1305_v42 = vld [vmem:[%s2425_s13 + $0x50] sm:$0xff] }
 0x15c   : > { %v1944_v0 = vpack.c.bf16 %v1554_v49, %v1554_v49  ;;  %v1943_v5 = vpack.c.bf16 %v1553_v7, %v1553_v7  ;;  %v1524_v10 = vmul.f32 %v1387_v16, %v1300_v17  ;;  %v1523_v6 = vmul.f32 %v1382_v9, %v1299_v18  ;;  %v732_v49 = vld [vmem:[%s2331_s26 + $0x68] sm:$0xff]  ;;  %v731_v7 = vld [vmem:[%s2331_s26 + $0x60] sm:$0xff]  ;;  %v1021_v37 = vld [vmem:[%s2405_s10 + $0x70] sm:$0xff] }
 0x15d   : > { %v1239_v8 = vmul.f32 %v2363_v48, %v1015_v57  ;;  %v984_v17 = vadd.f32 %v952_v33, %v696_v36  ;;  %v983_v18 = vadd.f32 %v951_v51, %v695_v60  ;;  %v954_v55 = vmul.f32 %v2267_v45, %v730_v32  ;;  %v475_v45 = vld [vmem:[%s2325_s23 + $0x60] sm:$0xff]  ;;  %v1020_v16 = vld [vmem:[%s2405_s10 + $0x68] sm:$0xff]  ;;  %v478_v32 = vld [vmem:[%s2325_s23 + $0x78] sm:$0xff] }
 0x15e   : > { %1715 = vst.msk [vmem:[%s2467_s15 + $0xc] sm:$0xf] %vm1711_vm0, %v1944_v0  ;;  %1714 = vst.msk [vmem:[%s2467_s15 + $0x8] sm:$0xf] %vm1711_vm0, %v1943_v5  ;;  %v1556_v12 = vadd.f32 %v1524_v10, %v1268_v40  ;;  %v1555_v21 = vadd.f32 %v1523_v6, %v1267_v30  ;;  %v953_v48 = vmul.f32 %v2269_v46, %v729_v35  ;;  %v476_v40 = vld [vmem:[%s2325_s23 + $0x68] sm:$0xff]  ;;  %v1019_v9 = vld [vmem:[%s2405_s10 + $0x60] sm:$0xff] }
 0x15f   : > { %v1397_v20 = vpop.permute.xlu1 %1396  ;;  %v1392_v26 = vpop.permute.xlu0 %1391  ;;  %v1272_v30 = vadd.f32 %v1240_v19, %v984_v17  ;;  %v1271_v46 = vadd.f32 %v1239_v8, %v983_v18  ;;  %v1242_v23 = vmul.f32 %v2365_v47, %v1018_v1  ;;  %v1241_v15 = vmul.f32 %v2367_v52, %v1017_v44  ;;  %v1308_v1 = vld [vmem:[%s2425_s13 + $0x68] sm:$0xff]  ;;  %v1307_v44 = vld [vmem:[%s2425_s13 + $0x60] sm:$0xff] }
 0x160   : > { %v1946_v63 = vpack.c.bf16 %v1556_v12, %v1556_v12  ;;  %v1945_v50 = vpack.c.bf16 %v1555_v21, %v1555_v21  ;;  %v1526_v13 = vmul.f32 %v1397_v20, %v1302_v4  ;;  %v1525_v14 = vmul.f32 %v1392_v26, %v1301_v31  ;;  %v734_v4 = vld [vmem:[%s2331_s26 + $0x78] sm:$0xff]  ;;  %v733_v31 = vld [vmem:[%s2331_s26 + $0x70] sm:$0xff]  ;;  %v736_v17 = vld [vmem:[%s2331_s26 + $0x88] sm:$0xff] }
 0x161   : > { %v986_v10 = vadd.f32 %v954_v55, %v698_v25  ;;  %v985_v6 = vadd.f32 %v953_v48, %v697_v2  ;;  %v956_v47 = vmul.f32 %v2273_v53, %v732_v49  ;;  %v955_v52 = vmul.f32 %v2275_v54, %v731_v7  ;;  %v477_v53 = vld [vmem:[%s2325_s23 + $0x70] sm:$0xff]  ;;  %v735_v18 = vld [vmem:[%s2331_s26 + $0x80] sm:$0xff]  ;;  %v2772_v49 = vld [vmem:[#allocation35_spill] sm:$0xff] }
 0x162   : > { %1717 = vst.msk [vmem:[%s2467_s15 + $0x14] sm:$0xf] %vm1711_vm0, %v1946_v63  ;;  %1716 = vst.msk [vmem:[%s2467_s15 + $0x10] sm:$0xf] %vm1711_vm0, %v1945_v50  ;;  %v1558_v11 = vadd.f32 %v1526_v13, %v1270_v39  ;;  %v1557_v29 = vadd.f32 %v1525_v14, %v1269_v38  ;;  %v700_v33 = vmul.f32 %v2171_v27, %v476_v40  ;;  %v2769_v63 = vld [vmem:[#allocation2_spill] sm:$0xff]  ;;  %v2770_v13 = vld [vmem:[#allocation3_spill] sm:$0xff] }
 0x163   : > { %v1407_v24 = vpop.permute.xlu1 %1406  ;;  %v1402_v34 = vpop.permute.xlu0 %1401  ;;  %v699_v51 = vmul.f32 %v2173_v28, %v475_v45  ;;  %v1274_v35 = vadd.f32 %v1242_v23, %v986_v10  ;;  %v1273_v54 = vadd.f32 %v1241_v15, %v985_v6  ;;  %v1244_v27 = vmul.f32 %v2369_v56, %v1020_v16  ;;  %v2771_v25 = vld [vmem:[#allocation34_spill] sm:$0xff]  ;;  %v1024_v40 = vld [vmem:[%s2405_s10 + $0x88] sm:$0xff]  ;;  %v2775_v10 = vld [vmem:[#allocation4_spill] sm:$0xff] }
 0x164   : > { %v1948_v58 = vpack.c.bf16 %v1558_v11, %v1558_v11  ;;  %v1947_v57 = vpack.c.bf16 %v1557_v29, %v1557_v29  ;;  %v1528_v0 = vmul.f32 %v1407_v24, %v1304_v3  ;;  %v1527_v5 = vmul.f32 %v1402_v34, %v1303_v43  ;;  %v480_v3 = vld [vmem:[%s2325_s23 + $0x88] sm:$0xff]  ;;  %v1023_v45 = vld [vmem:[%s2405_s10 + $0x80] sm:$0xff] }
 0x165   : > { %v1243_v12 = vmul.f32 %v2371_v59, %v1019_v9  ;;  %v988_v20 = vadd.f32 %v956_v47, %v700_v33  ;;  %v987_v26 = vadd.f32 %v955_v52, %v699_v51  ;;  %v958_v56 = vmul.f32 %v2279_v61, %v734_v4  ;;  %v479_v61 = vld [vmem:[%s2325_s23 + $0x80] sm:$0xff]  ;;  %v2776_v47 = vld [vmem:[#allocation5_spill] sm:$0xff] }
 0x166   : > { %1719 = vst.msk [vmem:[%s2467_s15 + $0x1c] sm:$0xf] %vm1711_vm0, %v1948_v58  ;;  %1718 = vst.msk [vmem:[%s2467_s15 + $0x18] sm:$0xf] %vm1711_vm0, %v1947_v57  ;;  %v1560_v36 = vadd.f32 %v1528_v0, %v1272_v30  ;;  %v1559_v60 = vadd.f32 %v1527_v5, %v1271_v46  ;;  %v957_v59 = vmul.f32 %v2281_v62, %v733_v31  ;;  %v2773_v16 = vld [vmem:[#allocation18_spill] sm:$0xff]  ;;  %v2774_v58 = vld [vmem:[#allocation19_spill] sm:$0xff] }
 0x167   : > { %v1417_v28 = vpop.permute.xlu1 %1416  ;;  %v1412_v21 = vpop.permute.xlu0 %1411  ;;  %v702_v50 = vmul.f32 %v2769_v63, %v478_v32  ;;  %v701_v14 = vmul.f32 %v2770_v13, %v477_v53  ;;  %v1276_v43 = vadd.f32 %v1244_v27, %v988_v20  ;;  %v1275_v62 = vadd.f32 %v1243_v12, %v987_v26  ;;  %v1310_v0 = vld [vmem:[%s2425_s13 + $0x78] sm:$0xff]  ;;  %v1309_v5 = vld [vmem:[%s2425_s13 + $0x70] sm:$0xff]  ;;  %v2781_v63 = vld [vmem:[#allocation6_spill] sm:$0xff] }
 0x168   : > { %v1950_v39 = vpack.c.bf16 %v1560_v36, %v1560_v36  ;;  %v1949_v38 = vpack.c.bf16 %v1559_v60, %v1559_v60  ;;  %v1530_v19 = vmul.f32 %v1417_v28, %v1306_v41  ;;  %v1529_v8 = vmul.f32 %v1412_v21, %v1305_v42  ;;  %v738_v41 = vld [vmem:[%s2331_s26 + $0x98] sm:$0xff]  ;;  %v737_v42 = vld [vmem:[%s2331_s26 + $0x90] sm:$0xff]  ;;  %v2782_v13 = vld [vmem:[#allocation7_spill] sm:$0xff] }
 0x169   : > { %v1246_v2 = vmul.f32 %v2771_v25, %v1022_v22  ;;  %v1245_v7 = vmul.f32 %v2772_v49, %v1021_v37  ;;  %v990_v24 = vadd.f32 %v958_v56, %v702_v50  ;;  %v989_v34 = vadd.f32 %v957_v59, %v701_v14  ;;  %v482_v4 = vld [vmem:[%s2325_s23 + $0x98] sm:$0xff]  ;;  %v481_v31 = vld [vmem:[%s2325_s23 + $0x90] sm:$0xff]  ;;  %v2783_v25 = vld [vmem:[#allocation38_spill] sm:$0xff] }
 0x16a   : > { %1721 = vst.msk [vmem:[%s2467_s15 + $0x24] sm:$0xf] %vm1711_vm0, %v1950_v39  ;;  %1720 = vst.msk [vmem:[%s2467_s15 + $0x20] sm:$0xf] %vm1711_vm0, %v1949_v38  ;;  %v1562_v55 = vadd.f32 %v1530_v19, %v1274_v35  ;;  %v1561_v48 = vadd.f32 %v1529_v8, %v1273_v54  ;;  %v960_v9 = vmul.f32 %v2773_v16, %v736_v17  ;;  %v2777_v32 = vld [vmem:[#allocation36_spill] sm:$0xff]  ;;  %v2778_v35 = vld [vmem:[#allocation37_spill] sm:$0xff] }
 0x16b   : > { %v1427_v11 = vpop.permute.xlu1 %1426  ;;  %v1422_v29 = vpop.permute.xlu0 %1421  ;;  %v959_v57 = vmul.f32 %v2774_v58, %v735_v18  ;;  %v704_v6 = vmul.f32 %v2775_v10, %v480_v3  ;;  %v703_v52 = vmul.f32 %v2776_v47, %v479_v61  ;;  %v1278_v36 = vadd.f32 %v1246_v2, %v990_v24  ;;  %v1026_v28 = vld [vmem:[%s2405_s10 + $0x98] sm:$0xff]  ;;  %v1025_v21 = vld [vmem:[%s2405_s10 + $0x90] sm:$0xff]  ;;  %v740_v17 = vld [vmem:[%s2331_s26 + $0xa8] sm:$0xff] }
 0x16c   : > { %v1952_v30 = vpack.c.bf16 %v1562_v55, %v1562_v55  ;;  %v1951_v46 = vpack.c.bf16 %v1561_v48, %v1561_v48  ;;  %v1532_v23 = vmul.f32 %v1427_v11, %v1308_v1  ;;  %v1531_v15 = vmul.f32 %v1422_v29, %v1307_v44  ;;  %v2779_v20 = vld [vmem:[#allocation20_spill] sm:$0xff]  ;;  %v2780_v56 = vld [vmem:[#allocation21_spill] sm:$0xff]  ;;  %v1312_v1 = vld [vmem:[%s2425_s13 + $0x88] sm:$0xff] }
 0x16d   : > { %v1277_v60 = vadd.f32 %v1245_v7, %v989_v34  ;;  %v1248_v53 = vmul.f32 %v2777_v32, %v1024_v40  ;;  %v1247_v54 = vmul.f32 %v2778_v35, %v1023_v45  ;;  %v992_v19 = vadd.f32 %v960_v9, %v704_v6  ;;  %v1311_v44 = vld [vmem:[%s2425_s13 + $0x80] sm:$0xff]  ;;  %v484_v3 = vld [vmem:[%s2325_s23 + $0xa8] sm:$0xff]  ;;  %v2787_v10 = vld [vmem:[#allocation8_spill] sm:$0xff] }
 0x16e   : > { %1723 = vst.msk [vmem:[%s2467_s15 + $0x2c] sm:$0xf] %vm1711_vm0, %v1952_v30  ;;  %1722 = vst.msk [vmem:[%s2467_s15 + $0x28] sm:$0xf] %vm1711_vm0, %v1951_v46  ;;  %v1564_v33 = vadd.f32 %v1532_v23, %v1276_v43  ;;  %v1563_v51 = vadd.f32 %v1531_v15, %v1275_v62  ;;  %v991_v8 = vadd.f32 %v959_v57, %v703_v52  ;;  %v739_v18 = vld [vmem:[%s2331_s26 + $0xa0] sm:$0xff]  ;;  %v2784_v49 = vld [vmem:[#allocation39_spill] sm:$0xff] }
 0x16f   : > { %v1437_v27 = vpop.permute.xlu1 %1436  ;;  %v1432_v12 = vpop.permute.xlu0 %1431  ;;  %v962_v26 = vmul.f32 %v2779_v20, %v738_v41  ;;  %v961_v59 = vmul.f32 %v2780_v56, %v737_v42  ;;  %v706_v50 = vmul.f32 %v2781_v63, %v482_v4  ;;  %v705_v14 = vmul.f32 %v2782_v13, %v481_v31  ;;  %v483_v61 = vld [vmem:[%s2325_s23 + $0xa0] sm:$0xff]  ;;  %v1028_v40 = vld [vmem:[%s2405_s10 + $0xa8] sm:$0xff]  ;;  %v2788_v47 = vld [vmem:[#allocation9_spill] sm:$0xff] }
 0x170   : > { %v1954_v22 = vpack.c.bf16 %v1564_v33, %v1564_v33  ;;  %v1953_v37 = vpack.c.bf16 %v1563_v51, %v1563_v51  ;;  %v1534_v39 = vmul.f32 %v1437_v27, %v1310_v0  ;;  %v1533_v38 = vmul.f32 %v1432_v12, %v1309_v5  ;;  %v1027_v45 = vld [vmem:[%s2405_s10 + $0xa0] sm:$0xff]  ;;  %v2786_v58 = vld [vmem:[#allocation23_spill] sm:$0xff]  ;;  %v1314_v0 = vld [vmem:[%s2425_s13 + $0x98] sm:$0xff] }
 0x171   : > { %v1280_v43 = vadd.f32 %v1248_v53, %v992_v19  ;;  %v1279_v62 = vadd.f32 %v1247_v54, %v991_v8  ;;  %v1250_v2 = vmul.f32 %v2783_v25, %v1026_v28  ;;  %v1249_v7 = vmul.f32 %v2784_v49, %v1025_v21  ;;  %v2785_v16 = vld [vmem:[#allocation22_spill] sm:$0xff]  ;;  %v1313_v5 = vld [vmem:[%s2425_s13 + $0x90] sm:$0xff]  ;;  %v742_v41 = vld [vmem:[%s2331_s26 + $0xb8] sm:$0xff] }
 0x172   : > { %1725 = vst.msk [vmem:[%s2467_s15 + $0x34] sm:$0xf] %vm1711_vm0, %v1954_v22  ;;  %1724 = vst.msk [vmem:[%s2467_s15 + $0x30] sm:$0xf] %vm1711_vm0, %v1953_v37  ;;  %v1566_v55 = vadd.f32 %v1534_v39, %v1278_v36  ;;  %v1565_v48 = vadd.f32 %v1533_v38, %v1277_v60  ;;  %v994_v24 = vadd.f32 %v962_v26, %v706_v50  ;;  %v741_v42 = vld [vmem:[%s2331_s26 + $0xb0] sm:$0xff]  ;;  %v486_v4 = vld [vmem:[%s2325_s23 + $0xb8] sm:$0xff] }
 0x173   : > { %v1447_v11 = vpop.permute.xlu1 %1446  ;;  %v1442_v29 = vpop.permute.xlu0 %1441  ;;  %v993_v34 = vadd.f32 %v961_v59, %v705_v14  ;;  %v964_v9 = vmul.f32 %v2785_v16, %v740_v17  ;;  %v963_v57 = vmul.f32 %v2786_v58, %v739_v18  ;;  %v708_v6 = vmul.f32 %v2787_v10, %v484_v3  ;;  %v485_v31 = vld [vmem:[%s2325_s23 + $0xb0] sm:$0xff]  ;;  %v2790_v35 = vld [vmem:[#allocation41_spill] sm:$0xff]  ;;  %v2793_v63 = vld [vmem:[#allocation10_spill] sm:$0xff] }
 0x174   : > { %v1956_v30 = vpack.c.bf16 %v1566_v55, %v1566_v55  ;;  %v1955_v46 = vpack.c.bf16 %v1565_v48, %v1565_v48  ;;  %v1536_v23 = vmul.f32 %v1447_v11, %v1312_v1  ;;  %v1535_v15 = vmul.f32 %v1442_v29, %v1311_v44  ;;  %v2789_v32 = vld [vmem:[#allocation40_spill] sm:$0xff]  ;;  %v1030_v28 = vld [vmem:[%s2405_s10 + $0xb8] sm:$0xff]  ;;  %v1316_v1 = vld [vmem:[%s2425_s13 + $0xa8] sm:$0xff] }
 0x175   : > { %v707_v52 = vmul.f32 %v2788_v47, %v483_v61  ;;  %v1282_v36 = vadd.f32 %v1250_v2, %v994_v24  ;;  %v1281_v60 = vadd.f32 %v1249_v7, %v993_v34  ;;  %v1252_v53 = vmul.f32 %v2789_v32, %v1028_v40  ;;  %v1029_v21 = vld [vmem:[%s2405_s10 + $0xb0] sm:$0xff]  ;;  %v2792_v56 = vld [vmem:[#allocation25_spill] sm:$0xff]  ;;  %v1315_v44 = vld [vmem:[%s2425_s13 + $0xa0] sm:$0xff] }
 0x176   : > { %1727 = vst.msk [vmem:[%s2467_s15 + $0x3c] sm:$0xf] %vm1711_vm0, %v1956_v30  ;;  %1726 = vst.msk [vmem:[%s2467_s15 + $0x38] sm:$0xf] %vm1711_vm0, %v1955_v46  ;;  %v1568_v33 = vadd.f32 %v1536_v23, %v1280_v43  ;;  %v1567_v51 = vadd.f32 %v1535_v15, %v1279_v62  ;;  %v1251_v54 = vmul.f32 %v2790_v35, %v1027_v45  ;;  %v2791_v20 = vld [vmem:[#allocation24_spill] sm:$0xff]  ;;  %v2794_v13 = vld [vmem:[#allocation11_spill] sm:$0xff] }
 0x177   : > { %v1457_v27 = vpop.permute.xlu1 %1456  ;;  %v1452_v12 = vpop.permute.xlu0 %1451  ;;  %v996_v19 = vadd.f32 %v964_v9, %v708_v6  ;;  %v995_v8 = vadd.f32 %v963_v57, %v707_v52  ;;  %v966_v26 = vmul.f32 %v2791_v20, %v742_v41  ;;  %v965_v59 = vmul.f32 %v2792_v56, %v741_v42  ;;  %v744_v17 = vld [vmem:[%s2331_s26 + $0xc8] sm:$0xff]  ;;  %v743_v18 = vld [vmem:[%s2331_s26 + $0xc0] sm:$0xff]  ;;  %v2799_v10 = vld [vmem:[#allocation12_spill] sm:$0xff] }
 0x178   : > { %v1958_v22 = vpack.c.bf16 %v1568_v33, %v1568_v33  ;;  %v1957_v37 = vpack.c.bf16 %v1567_v51, %v1567_v51  ;;  %v1538_v39 = vmul.f32 %v1457_v27, %v1314_v0  ;;  %v1537_v38 = vmul.f32 %v1452_v12, %v1313_v5  ;;  %v488_v3 = vld [vmem:[%s2325_s23 + $0xc8] sm:$0xff]  ;;  %v487_v61 = vld [vmem:[%s2325_s23 + $0xc0] sm:$0xff]  ;;  %v1318_v0 = vld [vmem:[%s2425_s13 + $0xb8] sm:$0xff] }
 0x179   : > { %v710_v50 = vmul.f32 %v2793_v63, %v486_v4  ;;  %v709_v14 = vmul.f32 %v2794_v13, %v485_v31  ;;  %v1284_v43 = vadd.f32 %v1252_v53, %v996_v19  ;;  %v1283_v62 = vadd.f32 %v1251_v54, %v995_v8  ;;  %v2795_v25 = vld [vmem:[#allocation42_spill] sm:$0xff]  ;;  %v2796_v49 = vld [vmem:[#allocation43_spill] sm:$0xff]  ;;  %v1317_v5 = vld [vmem:[%s2425_s13 + $0xb0] sm:$0xff] }
 0x17a   : > { %1729 = vst.msk [vmem:[%s2467_s15 + $0x44] sm:$0xf] %vm1711_vm0, %v1958_v22  ;;  %1728 = vst.msk [vmem:[%s2467_s15 + $0x40] sm:$0xf] %vm1711_vm0, %v1957_v37  ;;  %v1570_v55 = vadd.f32 %v1538_v39, %v1282_v36  ;;  %v1569_v48 = vadd.f32 %v1537_v38, %v1281_v60  ;;  %v1254_v2 = vmul.f32 %v2795_v25, %v1030_v28  ;;  %v1032_v40 = vld [vmem:[%s2405_s10 + $0xc8] sm:$0xff]  ;;  %v1031_v45 = vld [vmem:[%s2405_s10 + $0xc0] sm:$0xff] }
 0x17b   : > { %v1253_v7 = vmul.f32 %v2796_v49, %v1029_v21  ;;  %v1467_v11 = vpop.permute.xlu1 %1466  ;;  %v1462_v29 = vpop.permute.xlu0 %1461  ;;  %v998_v24 = vadd.f32 %v966_v26, %v710_v50  ;;  %v997_v34 = vadd.f32 %v965_v59, %v709_v14  ;;  %v2797_v16 = vld [vmem:[#allocation26_spill] sm:$0xff]  ;;  %v2798_v58 = vld [vmem:[#allocation27_spill] sm:$0xff]  ;;  %v712_v6 = vmul.f32 %v2799_v10, %v488_v3  ;;  %v2800_v47 = vld [vmem:[#allocation13_spill] sm:$0xff] }
 0x17c   : > { %v1960_v30 = vpack.c.bf16 %v1570_v55, %v1570_v55  ;;  %v1959_v46 = vpack.c.bf16 %v1569_v48, %v1569_v48  ;;  %v1540_v23 = vmul.f32 %v1467_v11, %v1316_v1  ;;  %v1539_v15 = vmul.f32 %v1462_v29, %v1315_v44  ;;  %v746_v41 = vld [vmem:[%s2331_s26 + $0xd8] sm:$0xff]  ;;  %v745_v42 = vld [vmem:[%s2331_s26 + $0xd0] sm:$0xff]  ;;  %v1320_v1 = vld [vmem:[%s2425_s13 + $0xc8] sm:$0xff] }
 0x17d   : > { %v968_v9 = vmul.f32 %v2797_v16, %v744_v17  ;;  %v967_v57 = vmul.f32 %v2798_v58, %v743_v18  ;;  %v711_v52 = vmul.f32 %v2800_v47, %v487_v61  ;;  %v490_v4 = vld [vmem:[%s2325_s23 + $0xd8] sm:$0xff]  ;;  %v489_v31 = vld [vmem:[%s2325_s23 + $0xd0] sm:$0xff]  ;;  %v1286_v36 = vadd.f32 %v1254_v2, %v998_v24  ;;  %v1319_v44 = vld [vmem:[%s2425_s13 + $0xc0] sm:$0xff] }
 0x17e   : > { %1731 = vst.msk [vmem:[%s2467_s15 + $0x4c] sm:$0xf] %vm1711_vm0, %v1960_v30  ;;  %1730 = vst.msk [vmem:[%s2467_s15 + $0x48] sm:$0xf] %vm1711_vm0, %v1959_v46  ;;  %v1572_v33 = vadd.f32 %v1540_v23, %v1284_v43  ;;  %v1571_v51 = vadd.f32 %v1539_v15, %v1283_v62  ;;  %v1285_v60 = vadd.f32 %v1253_v7, %v997_v34  ;;  %v2801_v32 = vld [vmem:[#allocation44_spill] sm:$0xff]  ;;  %v2802_v35 = vld [vmem:[#allocation45_spill] sm:$0xff] }
 0x17f   : > { %v1256_v53 = vmul.f32 %v2801_v32, %v1032_v40  ;;  %v1255_v54 = vmul.f32 %v2802_v35, %v1031_v45  ;;  %v1477_v27 = vpop.permute.xlu1 %1476  ;;  %v1472_v12 = vpop.permute.xlu0 %1471  ;;  %v1034_v28 = vld [vmem:[%s2405_s10 + $0xd8] sm:$0xff]  ;;  %v1033_v21 = vld [vmem:[%s2405_s10 + $0xd0] sm:$0xff]  ;;  %v1000_v19 = vadd.f32 %v968_v9, %v712_v6  ;;  %v999_v8 = vadd.f32 %v967_v57, %v711_v52  ;;  %v2805_v63 = vld [vmem:[#allocation14_spill] sm:$0xff] }
 0x180   : > { %v1962_v22 = vpack.c.bf16 %v1572_v33, %v1572_v33  ;;  %v1961_v37 = vpack.c.bf16 %v1571_v51, %v1571_v51  ;;  %v1542_v39 = vmul.f32 %v1477_v27, %v1318_v0  ;;  %v1541_v38 = vmul.f32 %v1472_v12, %v1317_v5  ;;  %v2803_v20 = vld [vmem:[#allocation28_spill] sm:$0xff]  ;;  %v2804_v56 = vld [vmem:[#allocation29_spill] sm:$0xff]  ;;  %v2806_v13 = vld [vmem:[#allocation15_spill] sm:$0xff] }
 0x181   : > { %v970_v26 = vmul.f32 %v2803_v20, %v746_v41  ;;  %v969_v59 = vmul.f32 %v2804_v56, %v745_v42  ;;  %v714_v50 = vmul.f32 %v2805_v63, %v490_v4  ;;  %v713_v14 = vmul.f32 %v2806_v13, %v489_v31  ;;  %v748_v17 = vld [vmem:[%s2331_s26 + $0xe8] sm:$0xff]  ;;  %v747_v18 = vld [vmem:[%s2331_s26 + $0xe0] sm:$0xff]  ;;  %v1322_v0 = vld [vmem:[%s2425_s13 + $0xd8] sm:$0xff] }
 0x182   : > { %1733 = vst.msk [vmem:[%s2467_s15 + $0x54] sm:$0xf] %vm1711_vm0, %v1962_v22  ;;  %1732 = vst.msk [vmem:[%s2467_s15 + $0x50] sm:$0xf] %vm1711_vm0, %v1961_v37  ;;  %v1574_v55 = vadd.f32 %v1542_v39, %v1286_v36  ;;  %v1573_v48 = vadd.f32 %v1541_v38, %v1285_v60  ;;  %v492_v3 = vld [vmem:[%s2325_s23 + $0xe8] sm:$0xff]  ;;  %v491_v61 = vld [vmem:[%s2325_s23 + $0xe0] sm:$0xff]  ;;  %v1288_v43 = vadd.f32 %v1256_v53, %v1000_v19 }
 0x183   : > { %v1287_v62 = vadd.f32 %v1255_v54, %v999_v8  ;;  %v2807_v25 = vld [vmem:[#allocation46_spill] sm:$0xff]  ;;  %v2808_v49 = vld [vmem:[#allocation47_spill] sm:$0xff]  ;;  %v1487_v11 = vpop.permute.xlu1 %1486  ;;  %v1482_v29 = vpop.permute.xlu0 %1481  ;;  %v1002_v24 = vadd.f32 %v970_v26, %v714_v50  ;;  %v1001_v34 = vadd.f32 %v969_v59, %v713_v14  ;;  %v1321_v5 = vld [vmem:[%s2425_s13 + $0xd0] sm:$0xff] }
 0x184   : > { %v1258_v2 = vmul.f32 %v2807_v25, %v1034_v28  ;;  %v1257_v7 = vmul.f32 %v2808_v49, %v1033_v21  ;;  %v1036_v40 = vld [vmem:[%s2405_s10 + $0xe8] sm:$0xff]  ;;  %v1035_v45 = vld [vmem:[%s2405_s10 + $0xe0] sm:$0xff]  ;;  %v1964_v30 = vpack.c.bf16 %v1574_v55, %v1574_v55  ;;  %v1963_v46 = vpack.c.bf16 %v1573_v48, %v1573_v48  ;;  %v2811_v10 = vld [vmem:[#allocation16_spill] sm:$0xff] }
 0x185   : > { %v1544_v23 = vmul.f32 %v1487_v11, %v1320_v1  ;;  %v1543_v15 = vmul.f32 %v1482_v29, %v1319_v44  ;;  %v2809_v16 = vld [vmem:[#allocation30_spill] sm:$0xff]  ;;  %v2810_v58 = vld [vmem:[#allocation31_spill] sm:$0xff]  ;;  %v716_v6 = vmul.f32 %v2811_v10, %v492_v3  ;;  %v2812_v47 = vld [vmem:[#allocation17_spill] sm:$0xff] }
 0x186   : > { %v972_v9 = vmul.f32 %v2809_v16, %v748_v17  ;;  %v971_v57 = vmul.f32 %v2810_v58, %v747_v18  ;;  %v715_v52 = vmul.f32 %v2812_v47, %v491_v61  ;;  %1735 = vst.msk [vmem:[%s2467_s15 + $0x5c] sm:$0xf] %vm1711_vm0, %v1964_v30  ;;  %1734 = vst.msk [vmem:[%s2467_s15 + $0x58] sm:$0xf] %vm1711_vm0, %v1963_v46  ;;  %v2813_v4 = vld [vmem:[#allocation48_spill] sm:$0xff]  ;;  %v2814_v36 = vld [vmem:[#allocation49_spill] sm:$0xff] }
 0x187   : > { %v1576_v41 = vadd.f32 %v1544_v23, %v1288_v43  ;;  %v1575_v42 = vadd.f32 %v1543_v15, %v1287_v62  ;;  %v1290_v33 = vadd.f32 %v1258_v2, %v1002_v24  ;;  %v1289_v51 = vadd.f32 %v1257_v7, %v1001_v34  ;;  %v1497_v32 = vpop.permute.xlu1 %1496  ;;  %v1492_v53 = vpop.permute.xlu0 %1491  ;;  %v1038_v35 = vld [vmem:[%s2405_s10 + $0xf8] sm:$0xff]  ;;  %v1037_v54 = vld [vmem:[%s2405_s10 + $0xf0] sm:$0xff]  ;;  %v1324_v39 = vld [vmem:[%s2425_s13 + $0xe8] sm:$0xff] }
 0x188   : > { %v1260_v31 = vmul.f32 %v2813_v4, %v1036_v40  ;;  %v1259_v60 = vmul.f32 %v2814_v36, %v1035_v45  ;;  %v1546_v28 = vmul.f32 %v1497_v32, %v1322_v0  ;;  %v1545_v21 = vmul.f32 %v1492_v53, %v1321_v5  ;;  %v1323_v38 = vld [vmem:[%s2425_s13 + $0xe0] sm:$0xff]  ;;  %v2816_v1 = vld [vmem:[#allocation51_spill] sm:$0xff]  ;;  %v1326_v55 = vld [vmem:[%s2425_s13 + $0xf8] sm:$0xff] }
 0x189   : > { %v1966_v27 = vpack.c.bf16 %v1576_v41, %v1576_v41  ;;  %v1965_v12 = vpack.c.bf16 %v1575_v42, %v1575_v42  ;;  %v1004_v22 = vadd.f32 %v972_v9, %v716_v6  ;;  %v1003_v37 = vadd.f32 %v971_v57, %v715_v52  ;;  %v2815_v56 = vld [vmem:[#allocation50_spill] sm:$0xff]  ;;  %v1325_v48 = vld [vmem:[%s2425_s13 + $0xf0] sm:$0xff]  ;;  %v2818_v25 = vld [vmem:[#allocation33_spill] sm:$0xff] }
 0x18a   : > { %v1578_v19 = vadd.f32 %v1546_v28, %v1290_v33  ;;  %v1577_v8 = vadd.f32 %v1545_v21, %v1289_v51  ;;  %v1262_v59 = vmul.f32 %v2815_v56, %v1038_v35  ;;  %v1261_v44 = vmul.f32 %v2816_v1, %v1037_v54  ;;  %v2817_v43 = vld [vmem:[#allocation32_spill] sm:$0xff] }
 0x18b   : > { %1737 = vst.msk [vmem:[%s2467_s15 + $0x64] sm:$0xf] %vm1711_vm0, %v1966_v27  ;;  %1736 = vst.msk [vmem:[%s2467_s15 + $0x60] sm:$0xf] %vm1711_vm0, %v1965_v12  ;;  %v1292_v20 = vadd.f32 %v1260_v31, %v1004_v22  ;;  %v1291_v26 = vadd.f32 %v1259_v60, %v1003_v37  ;;  %v1507_v63 = vpop.permute.xlu1 %1506  ;;  %v1502_v50 = vpop.permute.xlu0 %1501 }
 0x18c   : > { %v1968_v13 = vpack.c.bf16 %v1578_v19, %v1578_v19  ;;  %v1967_v14 = vpack.c.bf16 %v1577_v8, %v1577_v8  ;;  %v1548_v17 = vmul.f32 %v1507_v63, %v1324_v39  ;;  %v1547_v18 = vmul.f32 %v1502_v50, %v1323_v38 }
 0x18d   : > { %v1294_v62 = vadd.f32 %v1262_v59, %v2817_v43  ;;  %v1293_v2 = vadd.f32 %v1261_v44, %v2818_v25 }
 0x18e   : > { %1739 = vst.msk [vmem:[%s2467_s15 + $0x6c] sm:$0xf] %vm1711_vm0, %v1968_v13  ;;  %1738 = vst.msk [vmem:[%s2467_s15 + $0x68] sm:$0xf] %vm1711_vm0, %v1967_v14  ;;  %v1580_v3 = vadd.f32 %v1548_v17, %v1292_v20  ;;  %v1579_v61 = vadd.f32 %v1547_v18, %v1291_v26 }
 0x18f   : > { %v1517_v49 = vpop.permute.xlu1 %1516  ;;  %v1512_v7 = vpop.permute.xlu0 %1511 }
 0x190   : > { %v1970_v11 = vpack.c.bf16 %v1580_v3, %v1580_v3  ;;  %v1969_v29 = vpack.c.bf16 %v1579_v61, %v1579_v61  ;;  %v1550_v40 = vmul.f32 %v1517_v49, %v1326_v55  ;;  %v1549_v45 = vmul.f32 %v1512_v7, %v1325_v48 }
 0x192   : > { %1741 = vst.msk [vmem:[%s2467_s15 + $0x74] sm:$0xf] %vm1711_vm0, %v1970_v11  ;;  %1740 = vst.msk [vmem:[%s2467_s15 + $0x70] sm:$0xf] %vm1711_vm0, %v1969_v29  ;;  %v1582_v30 = vadd.f32 %v1550_v40, %v1294_v62  ;;  %v1581_v46 = vadd.f32 %v1549_v45, %v1293_v2 }
 0x194   : > { %v1972_v23 = vpack.c.bf16 %v1582_v30, %v1582_v30  ;;  %v1971_v15 = vpack.c.bf16 %v1581_v46, %v1581_v46 }
 0x196   : > { %1743 = vst.msk [vmem:[%s2467_s15 + $0x7c] sm:$0xf] %vm1711_vm0, %v1972_v23  ;;  %1742 = vst.msk [vmem:[%s2467_s15 + $0x78] sm:$0xf] %vm1711_vm0, %v1971_v15 }
 0x197 PF: > { %s18_s27 = sadd.s32 1, %s1990_s27  }
 0x198   : > { %p15_p4 = scmp.ge.s32.totalorder %s18_s27, 4  }
 0x19a   :  { %17 = sbr.rel (!%p15_p4) target bundleno = 1 (0x1), region = 103 }

// kernel: _lambda_.31
= control target key start
LH: loop header
LB: loop body
LE: loop exit
PB: predicated region body
PF: predicated region fallthrough
CT: control target
= control target key end

     0   :  { %s1867_s18 = smov 0   ;;  %s2115_s0 = inlined_call_operand.vmem [shape: bf16[512,4], index: 0, kind: input, shape index: {}]   ;;  %s2116_s1 = inlined_call_operand.vmem [shape: bf16[512,4], index: 1, kind: input, shape index: {}]   ;;  %s2117_s2 = inlined_call_operand.vmem [shape: bf16[512,4], index: 2, kind: input, shape index: {}]   ;;  %s2118_s3 = inlined_call_operand.vmem [shape: bf16[3,4,3], index: 3, kind: input, shape index: {}]   ;;  %s2119_s4 = inlined_call_operand.vmem [shape: f32[1,3], index: 4, kind: input, shape index: {}]   ;;  %s2120_s5 = inlined_call_operand.vmem [shape: f32[512,3], index: 5, kind: output, shape index: {}]  }
   0x1 LB: > { %s1436_s19 = sadd.s32 4294967295, %s1835_s18   ;;  %p1440_p0 = scmp.ge.s32.totalorder %s1835_s18, 1  ;;  %s1835_s18 = sphi %s1867_s18, %s15_s18  }
   0x2   : > { %p210_p1 = scmp.lt.s32.totalorder %s1835_s18, 3 }
   0x4   : > { %p211_p2 = pnand %p1440_p0, %p210_p1 }
   0x5   : > { %v1449_v0 = vld [vmem:[%s2118_s3 + $0x2] sm:$0x3] (!%p211_p2)  ;;  %vm469_vm0 = vcmask (!%p211_p2), 1041408   ;;  %v305_v1 = vld [vmem:[%s2118_s3] sm:$0x3] (!%p211_p2)  ;;  %s1441_s24 = sshll.u32 (!%p211_p2), %s1436_s19, 5 }
   0x6   : > { %214 = sbr.rel (%p211_p2) target bundleno = 327 (0x147), region = 40  ;;  %1769 = vmatprep.subr.msk.bf16.mxu1 (!%p211_p2), %vm469_vm0, %v1449_v0  ;;  %1770 = vmatprep.subr.msk.bf16.mxu0 (!%p211_p2), %vm469_vm0, %v305_v1  ;;  %v471_v2 = vsel (!%p211_p2), %vm469_vm0, %v1449_v0, 0  ;;  %v763_v3 = vsel (!%p211_p2), %vm469_vm0, %v305_v1, 0  ;;  %p249_p3 = scmp.lt.s32.totalorder (!%p211_p2), %s1441_s24, 63  ;;  %v1514_v4 = vld [vmem:[%s2118_s3 + $0x4] sm:$0x3] (!%p211_p2) }
   0x7   : > { %1602 = vmatpush3.bf16.msra.mxu1 (!%p211_p2), %v471_v2  ;;  %1636 = vmatpush3.bf16.msra.mxu0 (!%p211_p2), %v763_v3  ;;  %vm420_vm1 = vcmask (!%p211_p2), 31744   ;;  %v1089_v9 = vsel (!%p211_p2), %vm469_vm0, %v1514_v4, 0  ;;  %vm1323_vm2 = vcmask (!%p211_p2), 23552  }
   0x8   : > { %1771 = vmatprep.subr.msk.bf16.mxu1 (!%p211_p2), %vm469_vm0, %v305_v1  ;;  %1772 = vmatprep.subr.msk.bf16.mxu0 (!%p211_p2), %vm469_vm0, %v1514_v4 }
   0xd   : > { %s2122_s24 = smov (!%p249_p3, %s1441_s24), 63 }
   0xe   : > { %s1442_s27 = sshll.u32 %s2122_s24, 2  ;;  %s1448_s12 = sshll.u32 %s2122_s24, 3 }
   0xf   : > { %s1896_s30 = scalar_lea.vmem %s2116_s1, %s1442_s27  ;;  %s1902_s8 = scalar_lea.vmem %s2115_s0, %s1442_s27 }
  0x10   : > { %v1781_v5 = vld [vmem:[%s1896_s30] sm:$0xff]   ;;  %v1783_v7 = vld [vmem:[%s1896_s30 + $0x8] sm:$0xff]   ;;  %v1785_v10 = vld [vmem:[%s1896_s30 + $0x10] sm:$0xff]   ;;  %s1928_s11 = scalar_lea.vmem %s2117_s2, %s1442_s27  ;;  %s2014_s17 = scalar_lea.vmem %s2120_s5, %s1448_s12 }
  0x11   : > { %v1782_v6 = vld [vmem:[%s1902_s8] sm:$0xff]   ;;  %1603 = vmatprep.mubr.msk.bf16.mxu1 %vm420_vm1, %v1781_v5  ;;  %v1784_v8 = vld [vmem:[%s1902_s8 + $0x8] sm:$0xff]   ;;  %v1786_v11 = vld [vmem:[%s1902_s8 + $0x10] sm:$0xff]  }
  0x12   : > { %1637 = vmatprep.mubr.msk.bf16.mxu0 %vm420_vm1, %v1782_v6  ;;  %1604 = vmatmul.mubr.msk.bf16.vlgmr.msra.gmra.mrb[0].mxu1 %vm420_vm1, %v1783_v7  ;;  %v1787_v12 = vld [vmem:[%s1896_s30 + $0x18] sm:$0xff]   ;;  %v1789_v14 = vld [vmem:[%s1896_s30 + $0x20] sm:$0xff]   ;;  %v1791_v16 = vld [vmem:[%s1896_s30 + $0x28] sm:$0xff]  }
  0x13   : > { %1704 = vmatpush3.bf16.msra.mxu1 %v763_v3  ;;  %1638 = vmatmul.mubr.msk.bf16.vlgmr.msra.gmra.mrb[0].mxu0 %vm420_vm1, %v1784_v8  ;;  %v1788_v13 = vld [vmem:[%s1902_s8 + $0x18] sm:$0xff]   ;;  %v1790_v15 = vld [vmem:[%s1902_s8 + $0x20] sm:$0xff]   ;;  %v1792_v17 = vld [vmem:[%s1902_s8 + $0x28] sm:$0xff]  }
  0x14   : > { %1670 = vmatpush3.bf16.msra.mxu0 %v1089_v9  ;;  %1607 = vmatprep.mubr.msk.bf16.mxu1 %vm420_vm1, %v1785_v10  ;;  %v1793_v18 = vld [vmem:[%s1896_s30 + $0x30] sm:$0xff]   ;;  %v1795_v20 = vld [vmem:[%s1896_s30 + $0x38] sm:$0xff]   ;;  %v1797_v22 = vld [vmem:[%s1896_s30 + $0x40] sm:$0xff]  }
  0x15   : > { %1641 = vmatprep.mubr.msk.bf16.mxu0 %vm420_vm1, %v1786_v11  ;;  %v1794_v19 = vld [vmem:[%s1902_s8 + $0x30] sm:$0xff]   ;;  %v1796_v21 = vld [vmem:[%s1902_s8 + $0x38] sm:$0xff]   ;;  %v1798_v23 = vld [vmem:[%s1928_s11] sm:$0xff]  }
  0x16   : > { %v1799_v24 = vld [vmem:[%s1896_s30 + $0x48] sm:$0xff]   ;;  %v1801_v26 = vld [vmem:[%s1896_s30 + $0x50] sm:$0xff]   ;;  %v1803_v28 = vld [vmem:[%s1896_s30 + $0x58] sm:$0xff]  }
  0x17   : > { %v1800_v25 = vld [vmem:[%s1928_s11 + $0x8] sm:$0xff]   ;;  %v1802_v27 = vld [vmem:[%s1928_s11 + $0x10] sm:$0xff]   ;;  %v1804_v29 = vld [vmem:[%s1928_s11 + $0x18] sm:$0xff]  }
  0x18   : > { %v1805_v30 = vld [vmem:[%s1896_s30 + $0x60] sm:$0xff]   ;;  %v1807_v32 = vld [vmem:[%s1896_s30 + $0x68] sm:$0xff]   ;;  %v1809_v34 = vld [vmem:[%s1896_s30 + $0x70] sm:$0xff]  }
  0x19   : > { %v1806_v31 = vld [vmem:[%s1928_s11 + $0x20] sm:$0xff]   ;;  %v1808_v33 = vld [vmem:[%s1928_s11 + $0x28] sm:$0xff]   ;;  %v1810_v35 = vld [vmem:[%s1928_s11 + $0x30] sm:$0xff]  }
  0x1a   : > { %1608 = vmatmul.mubr.msk.bf16.gmra.mrb[4].mxu1 %vm420_vm1, %v1787_v12  ;;  %v1811_v36 = vld [vmem:[%s1896_s30 + $0x78] sm:$0xff]   ;;  %v1813_v38 = vld [vmem:[%s1902_s8 + $0x40] sm:$0xff]   ;;  %v1815_v40 = vld [vmem:[%s1902_s8 + $0x48] sm:$0xff]  }
  0x1b   : > { %1642 = vmatmul.mubr.msk.bf16.gmra.mrb[4].mxu0 %vm420_vm1, %v1788_v13  ;;  %1611 = vmatprep.mubr.msk.bf16.mxu1 %vm420_vm1, %v1789_v14  ;;  %v1812_v37 = vld [vmem:[%s1928_s11 + $0x38] sm:$0xff]   ;;  %v1814_v39 = vld [vmem:[%s1928_s11 + $0x40] sm:$0xff]   ;;  %v1816_v41 = vld [vmem:[%s1928_s11 + $0x48] sm:$0xff]  }
  0x1c   : > { %1645 = vmatprep.mubr.msk.bf16.mxu0 %vm420_vm1, %v1790_v15  ;;  %v1817_v42 = vld [vmem:[%s1902_s8 + $0x50] sm:$0xff]   ;;  %v1819_v44 = vld [vmem:[%s1902_s8 + $0x58] sm:$0xff]   ;;  %v1821_v46 = vld [vmem:[%s1902_s8 + $0x60] sm:$0xff]  }
  0x1d   : > { %v1818_v43 = vld [vmem:[%s1928_s11 + $0x50] sm:$0xff]   ;;  %v1820_v45 = vld [vmem:[%s1928_s11 + $0x58] sm:$0xff]   ;;  %v1822_v47 = vld [vmem:[%s1928_s11 + $0x60] sm:$0xff]  }
  0x1e   : > { %v1823_v48 = vld [vmem:[%s1902_s8 + $0x68] sm:$0xff]   ;;  %v1825_v50 = vld [vmem:[%s1902_s8 + $0x70] sm:$0xff]   ;;  %v1827_v52 = vld [vmem:[%s1902_s8 + $0x78] sm:$0xff]  }
  0x1f   : > { %v1824_v49 = vld [vmem:[%s1928_s11 + $0x68] sm:$0xff]   ;;  %v1826_v51 = vld [vmem:[%s1928_s11 + $0x70] sm:$0xff]   ;;  %v1828_v53 = vld [vmem:[%s1928_s11 + $0x78] sm:$0xff]  }
  0x20   : > { %v2009_v7 = vld [vmem:[%s2119_s4] ss:$0 sm:$0xff] }
  0x22   : > { %1612 = vmatmul.mubr.msk.bf16.gmra.mrb[8].mxu1 %vm420_vm1, %v1791_v16 }
  0x23   : > { %1646 = vmatmul.mubr.msk.bf16.gmra.mrb[8].mxu0 %vm420_vm1, %v1792_v17  ;;  %1615 = vmatprep.mubr.msk.bf16.mxu1 %vm420_vm1, %v1793_v18 }
  0x24   : > { %1649 = vmatprep.mubr.msk.bf16.mxu0 %vm420_vm1, %v1794_v19 }
  0x2a   : > { %1616 = vmatmul.mubr.msk.bf16.gmra.mrb[12].mxu1 %vm420_vm1, %v1795_v20 }
  0x2b   : > { %1650 = vmatmul.mubr.msk.bf16.gmra.mrb[12].mxu0 %vm420_vm1, %v1796_v21  ;;  %1619 = vmatprep.mubr.msk.bf16.mxu1 %vm420_vm1, %v1797_v22 }
  0x2c   : > { %1671 = vmatprep.mubr.msk.bf16.mxu0 %vm420_vm1, %v1798_v23 }
  0x32   : > { %1620 = vmatmul.mubr.msk.bf16.gmra.mrb[16].mxu1 %vm420_vm1, %v1799_v24 }
  0x33   : > { %1672 = vmatmul.mubr.msk.bf16.vlgmr.msra.gmra.mrb[0].mxu0 %vm420_vm1, %v1800_v25  ;;  %1623 = vmatprep.mubr.msk.bf16.mxu1 %vm420_vm1, %v1801_v26 }
  0x34   : > { %1675 = vmatprep.mubr.msk.bf16.mxu0 %vm420_vm1, %v1802_v27 }
  0x3a   : > { %1624 = vmatmul.mubr.msk.bf16.gmra.mrb[20].mxu1 %vm420_vm1, %v1803_v28 }
  0x3b   : > { %1676 = vmatmul.mubr.msk.bf16.gmra.mrb[4].mxu0 %vm420_vm1, %v1804_v29  ;;  %1627 = vmatprep.mubr.msk.bf16.mxu1 %vm420_vm1, %v1805_v30 }
  0x3c   : > { %1679 = vmatprep.mubr.msk.bf16.mxu0 %vm420_vm1, %v1806_v31 }
  0x42   : > { %1628 = vmatmul.mubr.msk.bf16.gmra.mrb[24].mxu1 %vm420_vm1, %v1807_v32 }
  0x43   : > { %1680 = vmatmul.mubr.msk.bf16.gmra.mrb[8].mxu0 %vm420_vm1, %v1808_v33  ;;  %1631 = vmatprep.mubr.msk.bf16.mxu1 %vm420_vm1, %v1809_v34 }
  0x44   : > { %1683 = vmatprep.mubr.msk.bf16.mxu0 %vm420_vm1, %v1810_v35 }
  0x4a   : > { %1632 = vmatmul.mubr.msk.bf16.gmra.mrb[28].mxu1 %vm420_vm1, %v1811_v36 }
  0x4b   : > { %1684 = vmatmul.mubr.msk.bf16.gmra.mrb[12].mxu0 %vm420_vm1, %v1812_v37  ;;  %1653 = vmatprep.mubr.msk.bf16.mxu1 %vm420_vm1, %v1813_v38 }
  0x4c   : > { %1687 = vmatprep.mubr.msk.bf16.mxu0 %vm420_vm1, %v1814_v39 }
  0x52   : > { %1654 = vmatmul.mubr.msk.bf16.vlgmr.msra.gmra.mrb[16].mxu1 %vm420_vm1, %v1815_v40 }
  0x53   : > { %1688 = vmatmul.mubr.msk.bf16.gmra.mrb[16].mxu0 %vm420_vm1, %v1816_v41  ;;  %1657 = vmatprep.mubr.msk.bf16.mxu1 %vm420_vm1, %v1817_v42 }
  0x54   : > { %1691 = vmatprep.mubr.msk.bf16.mxu0 %vm420_vm1, %v1818_v43 }
  0x5a   : > { %1658 = vmatmul.mubr.msk.bf16.gmra.mrb[20].mxu1 %vm420_vm1, %v1819_v44 }
  0x5b   : > { %1692 = vmatmul.mubr.msk.bf16.gmra.mrb[20].mxu0 %vm420_vm1, %v1820_v45  ;;  %1661 = vmatprep.mubr.msk.bf16.mxu1 %vm420_vm1, %v1821_v46 }
  0x5c   : > { %1695 = vmatprep.mubr.msk.bf16.mxu0 %vm420_vm1, %v1822_v47 }
  0x62   : > { %1662 = vmatmul.mubr.msk.bf16.gmra.mrb[24].mxu1 %vm420_vm1, %v1823_v48 }
  0x63   : > { %1696 = vmatmul.mubr.msk.bf16.gmra.mrb[24].mxu0 %vm420_vm1, %v1824_v49  ;;  %1665 = vmatprep.mubr.msk.bf16.mxu1 %vm420_vm1, %v1825_v50 }
  0x64   : > { %1699 = vmatprep.mubr.msk.bf16.mxu0 %vm420_vm1, %v1826_v51 }
  0x6a   : > { %1666 = vmatmul.mubr.msk.bf16.gmra.mrb[28].mxu1 %vm420_vm1, %v1827_v52 }
  0x6b   : > { %1700 = vmatmul.mubr.msk.bf16.gmra.mrb[28].mxu0 %vm420_vm1, %v1828_v53 }
  0xe5   : > { %v1605_v54 = vpop.f32.mrb[0].mxu1 }
  0xe6   : > { %v507_v55 = vpop.f32.mrb[1].mxu1 }
  0xe7   : > { %v1606_v56 = vpop.f32.mrb[2].mxu1 }
  0xe8   : > { %v510_v57 = vpop.f32.mrb[3].mxu1 }
  0xed   : > { %v1609_v58 = vpop.f32.mrb[4].mxu1 }
  0xee   : > { %v523_v59 = vpop.f32.mrb[5].mxu1 }
  0xef   : > { %v1610_v60 = vpop.f32.mrb[6].mxu1 }
  0xf0   : > { %v526_v61 = vpop.f32.mrb[7].mxu1 }
  0xf5   : > { %v1613_v62 = vpop.f32.mrb[8].mxu1 }
  0xf6   : > { %v539_v63 = vpop.f32.mrb[9].mxu1 }
  0xf7   : > { %v1614_v0 = vpop.f32.mrb[10].mxu1 }
  0xf8   : > { %v542_v1 = vpop.f32.mrb[11].mxu1 }
  0xfd   : > { %v1617_v2 = vpop.f32.mrb[12].mxu1 }
  0xfe   : > { %v555_v3 = vpop.f32.mrb[13].mxu1 }
  0xff   : > { %v1618_v4 = vpop.f32.mrb[14].mxu1 }
 0x100   : > { %v558_v5 = vpop.f32.mrb[15].mxu1 }
 0x106   : > { %v1673_v6 = vpop.f32.mrb[0].mxu0 }
 0x107   : > { %v1705_v8 = vadd.f32 %v1673_v6, %v1605_v54  ;;  %v1125_v9 = vpop.f32.mrb[1].mxu0 }
 0x108   : > { %v1706_v10 = vadd.f32 %v1125_v9, %v507_v55  ;;  %v1674_v11 = vpop.f32.mrb[2].mxu0 }
 0x109   : > { %v1293_v12 = vadd.f32 %v1705_v8, %v2009_v7  ;;  %v1707_v13 = vadd.f32 %v1674_v11, %v1606_v56  ;;  %v1128_v14 = vpop.f32.mrb[3].mxu0 }
 0x10a   : > { %v1291_v15 = vadd.f32 %v1706_v10, %v2009_v7  ;;  %v1708_v16 = vadd.f32 %v1128_v14, %v510_v57 }
 0x10b   : > { %1326 = vst.msk [vmem:[%s2014_s17 + $0x10] sm:$0xff] %vm1323_vm2, %v1293_v12  ;;  %v1294_v17 = vadd.f32 %v1707_v13, %v2009_v7 }
 0x10c   : > { %1324 = vst.msk [vmem:[%s2014_s17] sm:$0xff] %vm1323_vm2, %v1291_v15  ;;  %v1292_v18 = vadd.f32 %v1708_v16, %v2009_v7 }
 0x10d   : > { %1327 = vst.msk [vmem:[%s2014_s17 + $0x18] sm:$0xff] %vm1323_vm2, %v1294_v17 }
 0x10e   : > { %1325 = vst.msk [vmem:[%s2014_s17 + $0x8] sm:$0xff] %vm1323_vm2, %v1292_v18  ;;  %v1677_v19 = vpop.f32.mrb[4].mxu0 }
 0x10f   : > { %v1709_v20 = vadd.f32 %v1677_v19, %v1609_v58  ;;  %v1141_v21 = vpop.f32.mrb[5].mxu0 }
 0x110   : > { %v1710_v22 = vadd.f32 %v1141_v21, %v523_v59  ;;  %v1678_v23 = vpop.f32.mrb[6].mxu0 }
 0x111   : > { %v1297_v24 = vadd.f32 %v1709_v20, %v2009_v7  ;;  %v1711_v25 = vadd.f32 %v1678_v23, %v1610_v60  ;;  %v1144_v26 = vpop.f32.mrb[7].mxu0 }
 0x112   : > { %v1295_v27 = vadd.f32 %v1710_v22, %v2009_v7  ;;  %v1712_v28 = vadd.f32 %v1144_v26, %v526_v61 }
 0x113   : > { %1330 = vst.msk [vmem:[%s2014_s17 + $0x30] sm:$0xff] %vm1323_vm2, %v1297_v24  ;;  %v1298_v29 = vadd.f32 %v1711_v25, %v2009_v7 }
 0x114   : > { %1328 = vst.msk [vmem:[%s2014_s17 + $0x20] sm:$0xff] %vm1323_vm2, %v1295_v27  ;;  %v1296_v30 = vadd.f32 %v1712_v28, %v2009_v7 }
 0x115   : > { %1331 = vst.msk [vmem:[%s2014_s17 + $0x38] sm:$0xff] %vm1323_vm2, %v1298_v29 }
 0x116   : > { %1329 = vst.msk [vmem:[%s2014_s17 + $0x28] sm:$0xff] %vm1323_vm2, %v1296_v30  ;;  %v1681_v31 = vpop.f32.mrb[8].mxu0 }
 0x117   : > { %v1713_v32 = vadd.f32 %v1681_v31, %v1613_v62  ;;  %v1157_v33 = vpop.f32.mrb[9].mxu0 }
 0x118   : > { %v1714_v34 = vadd.f32 %v1157_v33, %v539_v63  ;;  %v1682_v35 = vpop.f32.mrb[10].mxu0 }
 0x119   : > { %v1301_v36 = vadd.f32 %v1713_v32, %v2009_v7  ;;  %v1715_v37 = vadd.f32 %v1682_v35, %v1614_v0  ;;  %v1160_v38 = vpop.f32.mrb[11].mxu0 }
 0x11a   : > { %v1299_v39 = vadd.f32 %v1714_v34, %v2009_v7  ;;  %v1716_v40 = vadd.f32 %v1160_v38, %v542_v1 }
 0x11b   : > { %1334 = vst.msk [vmem:[%s2014_s17 + $0x50] sm:$0xff] %vm1323_vm2, %v1301_v36  ;;  %v1302_v41 = vadd.f32 %v1715_v37, %v2009_v7 }
 0x11c   : > { %1332 = vst.msk [vmem:[%s2014_s17 + $0x40] sm:$0xff] %vm1323_vm2, %v1299_v39  ;;  %v1300_v42 = vadd.f32 %v1716_v40, %v2009_v7 }
 0x11d   : > { %1335 = vst.msk [vmem:[%s2014_s17 + $0x58] sm:$0xff] %vm1323_vm2, %v1302_v41 }
 0x11e   : > { %1333 = vst.msk [vmem:[%s2014_s17 + $0x48] sm:$0xff] %vm1323_vm2, %v1300_v42  ;;  %v1685_v43 = vpop.f32.mrb[12].mxu0 }
 0x11f   : > { %v1717_v44 = vadd.f32 %v1685_v43, %v1617_v2  ;;  %v1173_v45 = vpop.f32.mrb[13].mxu0 }
 0x120   : > { %v1718_v46 = vadd.f32 %v1173_v45, %v555_v3  ;;  %v1686_v47 = vpop.f32.mrb[14].mxu0 }
 0x121   : > { %v1305_v48 = vadd.f32 %v1717_v44, %v2009_v7  ;;  %v1719_v49 = vadd.f32 %v1686_v47, %v1618_v4  ;;  %v1176_v50 = vpop.f32.mrb[15].mxu0 }
 0x122   : > { %v1303_v51 = vadd.f32 %v1718_v46, %v2009_v7  ;;  %v1720_v52 = vadd.f32 %v1176_v50, %v558_v5 }
 0x123   : > { %1338 = vst.msk [vmem:[%s2014_s17 + $0x70] sm:$0xff] %vm1323_vm2, %v1305_v48  ;;  %v1306_v53 = vadd.f32 %v1719_v49, %v2009_v7 }
 0x124   : > { %1336 = vst.msk [vmem:[%s2014_s17 + $0x60] sm:$0xff] %vm1323_vm2, %v1303_v51  ;;  %v1304_v54 = vadd.f32 %v1720_v52, %v2009_v7 }
 0x125   : > { %1339 = vst.msk [vmem:[%s2014_s17 + $0x78] sm:$0xff] %vm1323_vm2, %v1306_v53  ;;  %v1655_v55 = vpop.f32.mrb[16].mxu1 }
 0x126   : > { %1337 = vst.msk [vmem:[%s2014_s17 + $0x68] sm:$0xff] %vm1323_vm2, %v1304_v54  ;;  %v1689_v56 = vpop.f32.mrb[16].mxu0  ;;  %v863_v57 = vpop.f32.mrb[17].mxu1 }
 0x127   : > { %v1721_v58 = vadd.f32 %v1689_v56, %v1655_v55  ;;  %v1189_v59 = vpop.f32.mrb[17].mxu0  ;;  %v1656_v60 = vpop.f32.mrb[18].mxu1 }
 0x128   : > { %v1722_v61 = vadd.f32 %v1189_v59, %v863_v57  ;;  %v1690_v62 = vpop.f32.mrb[18].mxu0  ;;  %v866_v63 = vpop.f32.mrb[19].mxu1 }
 0x129   : > { %v1309_v0 = vadd.f32 %v1721_v58, %v2009_v7  ;;  %v1723_v1 = vadd.f32 %v1690_v62, %v1656_v60  ;;  %v1192_v2 = vpop.f32.mrb[19].mxu0 }
 0x12a   : > { %v1307_v3 = vadd.f32 %v1722_v61, %v2009_v7  ;;  %v1724_v4 = vadd.f32 %v1192_v2, %v866_v63 }
 0x12b   : > { %1342 = vst.msk [vmem:[%s2014_s17 + $0x90] sm:$0xff] %vm1323_vm2, %v1309_v0  ;;  %v1310_v5 = vadd.f32 %v1723_v1, %v2009_v7 }
 0x12c   : > { %1340 = vst.msk [vmem:[%s2014_s17 + $0x80] sm:$0xff] %vm1323_vm2, %v1307_v3  ;;  %v1308_v6 = vadd.f32 %v1724_v4, %v2009_v7 }
 0x12d   : > { %1343 = vst.msk [vmem:[%s2014_s17 + $0x98] sm:$0xff] %vm1323_vm2, %v1310_v5  ;;  %v1659_v8 = vpop.f32.mrb[20].mxu1 }
 0x12e   : > { %1341 = vst.msk [vmem:[%s2014_s17 + $0x88] sm:$0xff] %vm1323_vm2, %v1308_v6  ;;  %v1693_v9 = vpop.f32.mrb[20].mxu0  ;;  %v879_v10 = vpop.f32.mrb[21].mxu1 }
 0x12f   : > { %v1725_v11 = vadd.f32 %v1693_v9, %v1659_v8  ;;  %v1205_v12 = vpop.f32.mrb[21].mxu0  ;;  %v1660_v13 = vpop.f32.mrb[22].mxu1 }
 0x130   : > { %v1726_v14 = vadd.f32 %v1205_v12, %v879_v10  ;;  %v1694_v15 = vpop.f32.mrb[22].mxu0  ;;  %v882_v16 = vpop.f32.mrb[23].mxu1 }
 0x131   : > { %v1313_v17 = vadd.f32 %v1725_v11, %v2009_v7  ;;  %v1727_v18 = vadd.f32 %v1694_v15, %v1660_v13  ;;  %v1208_v19 = vpop.f32.mrb[23].mxu0 }
 0x132   : > { %v1311_v20 = vadd.f32 %v1726_v14, %v2009_v7  ;;  %v1728_v21 = vadd.f32 %v1208_v19, %v882_v16 }
 0x133   : > { %1346 = vst.msk [vmem:[%s2014_s17 + $0xb0] sm:$0xff] %vm1323_vm2, %v1313_v17  ;;  %v1314_v22 = vadd.f32 %v1727_v18, %v2009_v7 }
 0x134   : > { %1344 = vst.msk [vmem:[%s2014_s17 + $0xa0] sm:$0xff] %vm1323_vm2, %v1311_v20  ;;  %v1312_v23 = vadd.f32 %v1728_v21, %v2009_v7 }
 0x135   : > { %1347 = vst.msk [vmem:[%s2014_s17 + $0xb8] sm:$0xff] %vm1323_vm2, %v1314_v22  ;;  %v1663_v24 = vpop.f32.mrb[24].mxu1 }
 0x136   : > { %1345 = vst.msk [vmem:[%s2014_s17 + $0xa8] sm:$0xff] %vm1323_vm2, %v1312_v23  ;;  %v1697_v25 = vpop.f32.mrb[24].mxu0  ;;  %v895_v26 = vpop.f32.mrb[25].mxu1 }
 0x137   : > { %v1729_v27 = vadd.f32 %v1697_v25, %v1663_v24  ;;  %v1221_v28 = vpop.f32.mrb[25].mxu0  ;;  %v1664_v29 = vpop.f32.mrb[26].mxu1 }
 0x138   : > { %v1730_v30 = vadd.f32 %v1221_v28, %v895_v26  ;;  %v1698_v31 = vpop.f32.mrb[26].mxu0  ;;  %v898_v32 = vpop.f32.mrb[27].mxu1 }
 0x139   : > { %v1317_v33 = vadd.f32 %v1729_v27, %v2009_v7  ;;  %v1731_v34 = vadd.f32 %v1698_v31, %v1664_v29  ;;  %v1224_v35 = vpop.f32.mrb[27].mxu0 }
 0x13a   : > { %v1315_v36 = vadd.f32 %v1730_v30, %v2009_v7  ;;  %v1732_v37 = vadd.f32 %v1224_v35, %v898_v32 }
 0x13b   : > { %1350 = vst.msk [vmem:[%s2014_s17 + $0xd0] sm:$0xff] %vm1323_vm2, %v1317_v33  ;;  %v1318_v38 = vadd.f32 %v1731_v34, %v2009_v7 }
 0x13c   : > { %1348 = vst.msk [vmem:[%s2014_s17 + $0xc0] sm:$0xff] %vm1323_vm2, %v1315_v36  ;;  %v1316_v39 = vadd.f32 %v1732_v37, %v2009_v7 }
 0x13d   : > { %1351 = vst.msk [vmem:[%s2014_s17 + $0xd8] sm:$0xff] %vm1323_vm2, %v1318_v38  ;;  %v1667_v40 = vpop.f32.mrb[28].mxu1 }
 0x13e   : > { %1349 = vst.msk [vmem:[%s2014_s17 + $0xc8] sm:$0xff] %vm1323_vm2, %v1316_v39  ;;  %v1701_v41 = vpop.f32.mrb[28].mxu0  ;;  %v911_v42 = vpop.f32.mrb[29].mxu1 }
 0x13f   : > { %v1733_v43 = vadd.f32 %v1701_v41, %v1667_v40  ;;  %v1237_v44 = vpop.f32.mrb[29].mxu0  ;;  %v1668_v45 = vpop.f32.mrb[30].mxu1 }
 0x140   : > { %v1734_v46 = vadd.f32 %v1237_v44, %v911_v42  ;;  %v1702_v47 = vpop.f32.mrb[30].mxu0  ;;  %v914_v48 = vpop.f32.mrb[31].mxu1 }
 0x141   : > { %v1321_v49 = vadd.f32 %v1733_v43, %v2009_v7  ;;  %v1735_v50 = vadd.f32 %v1702_v47, %v1668_v45  ;;  %v1240_v51 = vpop.f32.mrb[31].mxu0 }
 0x142   : > { %v1319_v52 = vadd.f32 %v1734_v46, %v2009_v7  ;;  %v1736_v53 = vadd.f32 %v1240_v51, %v914_v48 }
 0x143   : > { %1354 = vst.msk [vmem:[%s2014_s17 + $0xf0] sm:$0xff] %vm1323_vm2, %v1321_v49  ;;  %v1322_v54 = vadd.f32 %v1735_v50, %v2009_v7 }
 0x144   : > { %1352 = vst.msk [vmem:[%s2014_s17 + $0xe0] sm:$0xff] %vm1323_vm2, %v1319_v52  ;;  %v1320_v55 = vadd.f32 %v1736_v53, %v2009_v7 }
 0x145   : > { %1355 = vst.msk [vmem:[%s2014_s17 + $0xf8] sm:$0xff] %vm1323_vm2, %v1322_v54 }
 0x146   : > { %1353 = vst.msk [vmem:[%s2014_s17 + $0xe8] sm:$0xff] %vm1323_vm2, %v1320_v55 }
 0x147 PF: > { %s15_s18 = sadd.s32 1, %s1835_s18  }
 0x148   : > { %p12_p4 = scmp.ge.s32.totalorder %s15_s18, 4  }
 0x14a   :  { %14 = sbr.rel (!%p12_p4) target bundleno = 1 (0x1), region = 78 }

</bundles_post_ra>
